<compile_context>
chip_gen: v7x
topology: tpu7x:2x2x1
jax: 0.10.0
libtpu: 0.0.40
codegen_flags: <defaults>
</compile_context>

<pallas_src>
import functools

import jax
import jax.numpy as jnp
from jax.experimental import pallas as pl
from jax.experimental.pallas import tpu as pltpu


def _round_up(x, m):
    return (x + m - 1) // m * m


_COMPILER_PARAMS = pltpu.CompilerParams(
    dimension_semantics=("parallel",),
    vmem_limit_bytes=32 * 1024 * 1024,   # explicit so tiles are sized for v7x too
)


# ----------------------------------------------------------------------------------
# Pallas kernels
# ----------------------------------------------------------------------------------
def _multi_tap_conv_kernel(x_ref, w_ref, b_ref, o_ref, *, group_taps, Ho, Wok, relu):
    """out = act( concat_g[ sum_t x[di:di+Ho, dj:dj+Wok, c0:c0+Cin] @ W_t ] + b ).

    x_ref : (1, Hp, Wp, Ctot)     bf16  padded NHWC slab for one batch element
    w_ref : (T, Cin, Cout)        bf16  tap-major weight stack (VMEM resident)
    b_ref : (1, G*Cout)           f32
    o_ref : (1, Ho*Wok, G*Cout)
    """
    cin = w_ref.shape[1]
    cout = w_ref.shape[2]
    t = 0
    group_out = []
    for taps in group_taps:                       # static unroll (<= 9 matmuls total)
        acc = jnp.zeros((Ho * Wok, cout), jnp.float32)
        for (di, dj, c0) in taps:
            patch = x_ref[0, di:di + Ho, dj:dj + Wok, c0:c0 + cin]    # (Ho, Wok, Cin)
            acc = acc + jnp.dot(patch.reshape(Ho * Wok, cin), w_ref[t],
                                preferred_element_type=jnp.float32)
            t += 1
        group_out.append(acc)
    y = group_out[0] if len(group_out) == 1 else jnp.concatenate(group_out, axis=-1)
    y = y + b_ref[...]
    if relu:
        y = jnp.maximum(y, 0.0)
    o_ref[0] = y.astype(o_ref.dtype)              # single store per block


def _latent_kernel(x_ref, w_ref, b_ref, eps_ref, mu_ref, lv_ref, z_ref, *, L):
    """Fused encoder head: [mu | log_var] = x @ Wcat + bcat ; z = mu + eps*exp(.5*lv)."""
    y = jnp.dot(x_ref[...], w_ref[...], preferred_element_type=jnp.float32) + b_ref[...]
    mu = y[:, :L]
    log_var = y[:, L:]
    mu_ref[...] = mu
    lv_ref[...] = log_var
    z_ref[...] = (mu + eps_ref[...] * jnp.exp(0.5 * log_var)).astype(z_ref.dtype)


# ----------------------------------------------------------------------------------
# Kernel wrappers
# ----------------------------------------------------------------------------------
def multi_tap_conv(x, layer, Ho, Wo, relu, pre_pad=((0, 0), (0, 0)),
                   out_dtype=jnp.bfloat16):
    """Run the generic multi-tap conv kernel on an NHWC tensor.

    `pre_pad` is the layer's own zero padding ((top, bottom), (left, right)); it is
    merged with the tap-extent / lane-alignment padding into ONE jnp.pad.  The working
    width Wok is rounded up to a multiple of 8 (sublane friendly, makes the in-kernel
    reshape layout-trivial); extra columns read zero padding and are sliced off here.
    Returns (B, Ho, Wo, G*Cout).
    """
    w, b, group_taps = layer["w"], layer["b"], layer["group_taps"]
    T, cin, cout = w.shape
    G = len(group_taps)
    assert T == sum(len(taps) for taps in group_taps)

    B, H, W, Ct = x.shape
    Wok = _round_up(Wo, 8)
    max_di = max(di for taps in group_taps for (di, _, _) in taps)
    max_dj = max(dj for taps in group_taps for (_, dj, _) in taps)
    (p_t, p_b), (p_l, p_r) = pre_pad
    p_b = p_b + max(0, max_di + Ho - (H + p_t + p_b))
    p_r = p_r + max(0, max_dj + Wok - (W + p_l + p_r))
    if p_t or p_b or p_l or p_r:
        x = jnp.pad(x, ((0, 0), (p_t, p_b), (p_l, p_r), (0, 0)))
    Hp, Wp = H + p_t + p_b, W + p_l + p_r

    out = pl.pallas_call(
        functools.partial(_multi_tap_conv_kernel, group_taps=group_taps,
                          Ho=Ho, Wok=Wok, relu=relu),
        grid=(B,),
        in_specs=[
            pl.BlockSpec((1, Hp, Wp, Ct), lambda bi: (bi, 0, 0, 0)),   # activation slab
            pl.BlockSpec((T, cin, cout), lambda bi: (0, 0, 0)),        # weights resident
            pl.BlockSpec((1, G * cout), lambda bi: (0, 0)),            # bias resident
        ],
        out_specs=pl.BlockSpec((1, Ho * Wok, G * cout), lambda bi: (bi, 0, 0)),
        out_shape=jax.ShapeDtypeStruct((B, Ho * Wok, G * cout), out_dtype),
        compiler_params=_COMPILER_PARAMS,
    )(x.astype(jnp.bfloat16), w, b)
    out = out.reshape(B, Ho, Wok, G * cout)
    return out if Wok == Wo else out[:, :, :Wo, :]


def fused_latent(x2d, w_cat, b_cat, eps2d, L):
    """mu, log_var and reparameterization in one Pallas call, tiled over rows."""
    M, C = x2d.shape
    TM = min(512, _round_up(M, 8))
    M_pad = _round_up(M, TM)
    if M_pad != M:
        x2d = jnp.pad(x2d, ((0, M_pad - M), (0, 0)))
        eps2d = jnp.pad(eps2d, ((0, M_pad - M), (0, 0)))
    row = lambda n: pl.BlockSpec((TM, n), lambda i: (i, 0))
    full = lambda a: pl.BlockSpec(a.shape, lambda i: (0, 0))
    mu, log_var, z = pl.pallas_call(
        functools.partial(_latent_kernel, L=L),
        grid=(M_pad // TM,),
        in_specs=[row(C), full(w_cat), full(b_cat), row(L)],
        out_specs=(row(L), row(L), row(L)),
        out_shape=(jax.ShapeDtypeStruct((M_pad, L), jnp.float32),
                   jax.ShapeDtypeStruct((M_pad, L), jnp.float32),
                   jax.ShapeDtypeStruct((M_pad, L), jnp.bfloat16)),
        compiler_params=_COMPILER_PARAMS,
    )(x2d.astype(jnp.bfloat16), w_cat, b_cat, eps2d.astype(jnp.float32))
    return mu[:M], log_var[:M], z[:M]


# ----------------------------------------------------------------------------------
# Layer helpers (JAX glue: one pad / one phase transpose only — no im2col, no dilation)
# ----------------------------------------------------------------------------------
def conv_s1(x, layer, relu, pad=0, out_dtype=jnp.bfloat16):
    """nn.Conv2d, stride 1 (1x1 color amplifier and 3x3 restore conv)."""
    B, H, W, _ = x.shape
    return multi_tap_conv(x, layer, Ho=H, Wo=W, relu=relu,
                          pre_pad=((pad, pad), (pad, pad)), out_dtype=out_dtype)


def conv_s2(x, layer, relu):
    """3x3 / stride 2 / pad 1 conv.  The padded input is phase-stacked (NHWC ->
    half resolution, 4*Cin channels) so every one of the 9 taps becomes a static
    stride-1 slice inside the kernel."""
    B, H, W, Cin = x.shape
    assert H % 2 == 0 and W % 2 == 0
    xp = jnp.pad(x, ((0, 0), (1, 1), (1, 1), (0, 0)))
    Hp2, Wp2 = (H + 2) // 2, (W + 2) // 2
    xs = xp.reshape(B, Hp2, 2, Wp2, 2, Cin)
    xs = xs.transpose(0, 1, 3, 2, 4, 5).reshape(B, Hp2, Wp2, 4 * Cin)
    return multi_tap_conv(xs, layer, Ho=H // 2, Wo=W // 2, relu=relu)


def deconv_s2(x, layer, relu):
    """nn.ConvTranspose2d(k=3, s=2, p=1, output_padding=1) via sub-pixel phase
    decomposition of the output: 4 small stride-1 convs on the un-dilated input,
    computed in one kernel call (phase-stacked output channels), then interleaved."""
    B, H, W, _ = x.shape
    cout = layer["w"].shape[2]
    out = multi_tap_conv(x, layer, Ho=H, Wo=W, relu=relu,
                         pre_pad=((0, 1), (0, 1)))               # (B, H, W, 4*Cout)
    out = out.reshape(B, H, W, 2, 2, cout)
    out = out.transpose(0, 1, 3, 2, 4, 5).reshape(B, 2 * H, 2 * W, cout)
    return out


# ----------------------------------------------------------------------------------
# Parameters: synthetic init (same shapes as the PyTorch module) + one-time pre-pack
# ----------------------------------------------------------------------------------
def init_params(key, lattent_dim, encode_layer, feature_in=4, feature_out=3):
    enc_shapes = sorted(int(lattent_dim / 2 ** i) for i in range(encode_layer))
    dec_shapes = enc_shapes[::-1]
    state = {"k": key}

    def w_init(shape, scale=0.1):
        state["k"], sub = jax.random.split(state["k"])
        return scale * jax.random.normal(sub, shape, jnp.float32)

    params = {}
    params["amp_w"] = w_init((feature_out, feature_out, 1, 1))
    params["amp_b"] = w_init((feature_out,))
    params["enc"] = []
    for i in range(encode_layer):
        cin = feature_in if i == 0 else enc_shapes[i - 1]
        params["enc"].append((w_init((enc_shapes[i], cin, 3, 3)), w_init((enc_shapes[i],))))
    params["mu_w"] = w_init((lattent_dim, enc_shapes[-1]))
    params["mu_b"] = w_init((lattent_dim,))
    params["lv_w"] = w_init((lattent_dim, enc_shapes[-1]))
    params["lv_b"] = w_init((lattent_dim,))
    params["dsr"] = []
    for i in range(encode_layer):
        cin = feature_in if i == 0 else enc_shapes[i - 1]
        params["dsr"].append((w_init((enc_shapes[i], cin, 3, 3)), w_init((enc_shapes[i],))))
    params["dec"] = []
    for i in range(encode_layer):
        cin = lattent_dim + enc_shapes[-1] if i == 0 else dec_shapes[i - 1]
        params["dec"].append((w_init((cin, dec_shapes[i], 3, 3)), w_init((dec_shapes[i],))))
    params["res_w"] = w_init((feature_out, dec_shapes[-1], 3, 3))
    params["res_b"] = w_init((feature_out,))
    return params


def _pack_conv_s1(w, b):
    """nn.Conv2d weight (Cout, Cin, kh, kw), stride 1."""
    Cout, Cin, kh, kw = w.shape
    taps, mats = [], []
    for di in range(kh):
        for dj in range(kw):
            taps.append((di, dj, 0))
            mats.append(jnp.transpose(w[:, :, di, dj]))           # (Cin, Cout)
    return {"w": jnp.stack(mats).astype(jnp.bfloat16),
            "b": b.reshape(1, Cout).astype(jnp.float32),
            "group_taps": (tuple(taps),)}


def _pack_conv_s2(w, b):
    """nn.Conv2d weight (Cout, Cin, 3, 3), stride 2, pad 1, consumed on a
    phase-stacked input (channel offset selects the (di%2, dj%2) phase)."""
    Cout, Cin, kh, kw = w.shape
    assert kh == 3 and kw == 3
    taps, mats = [], []
    for di in range(3):
        for dj in range(3):
            taps.append((di // 2, dj // 2, ((di % 2) * 2 + (dj % 2)) * Cin))
            mats.append(jnp.transpose(w[:, :, di, dj]))           # (Cin, Cout)
    return {"w": jnp.stack(mats).astype(jnp.bfloat16),
            "b": b.reshape(1, Cout).astype(jnp.float32),
            "group_taps": (tuple(taps),)}


# Output-phase decomposition of ConvTranspose2d(k=3, s=2, p=1, output_padding=1):
#   y[2m+a, 2n+b] = sum over (di, dj, ki, kj):  x[m+di, n+dj] @ W[:, :, ki, kj]
_DECONV_PHASES = (
    ((0, 0, 1, 1),),                                              # phase (0, 0)
    ((0, 0, 1, 2), (0, 1, 1, 0)),                                 # phase (0, 1)
    ((0, 0, 2, 1), (1, 0, 0, 1)),                                 # phase (1, 0)
    ((0, 0, 2, 2), (0, 1, 2, 0), (1, 0, 0, 2), (1, 1, 0, 0)),     # phase (1, 1)
)


def _pack_deconv(w, b):
    """nn.ConvTranspose2d weight (Cin, Cout, 3, 3); decomposition is only valid for
    k=3, stride=2, padding=1, output_padding=1 (the module's configuration)."""
    Cin, Cout, kh, kw = w.shape
    assert kh == 3 and kw == 3, "phase decomposition derived for k=3, s=2, p=1, op=1"
    group_taps, mats = [], []
    for phase in _DECONV_PHASES:
        taps = []
        for (di, dj, ki, kj) in phase:
            taps.append((di, dj, 0))
            mats.append(w[:, :, ki, kj])                          # (Cin, Cout)
        group_taps.append(tuple(taps))
    return {"w": jnp.stack(mats).astype(jnp.bfloat16),
            "b": jnp.tile(b.reshape(1, Cout), (1, 4)).astype(jnp.float32),
            "group_taps": tuple(group_taps)}


def prepack_params(params):
    """Pre-pack all weights once (bf16 tap stacks, concatenated mu/log_var matrix)."""
    return {
        "amp": _pack_conv_s1(params["amp_w"], params["amp_b"]),
        "enc": [_pack_conv_s2(w, b) for (w, b) in params["enc"]],
        "dsr": [_pack_conv_s2(w, b) for (w, b) in params["dsr"]],
        "dec": [_pack_deconv(w, b) for (w, b) in params["dec"]],
        "res": _pack_conv_s1(params["res_w"], params["res_b"]),
        "wcat": jnp.concatenate([params["mu_w"].T, params["lv_w"].T],
                                axis=1).astype(jnp.bfloat16),
        "bcat": jnp.concatenate([params["mu_b"], params["lv_b"]]
                                ).reshape(1, -1).astype(jnp.float32),
    }


# ----------------------------------------------------------------------------------
# Forward pass (training branch of the PyTorch module)
# ----------------------------------------------------------------------------------
def forward(packed, lited_up_image, illu_fea, target, eps, *, lattent_dim, encode_layer):
    nhwc = lambda a: jnp.transpose(a, (0, 2, 3, 1)).astype(jnp.bfloat16)
    lited, illu, tgt = nhwc(lited_up_image), nhwc(illu_fea), nhwc(target)
    B = tgt.shape[0]

    # ---------------- encode ----------------
    amp = conv_s1(tgt, packed["amp"], relu=True)                  # color amplifier
    latent = jnp.concatenate([amp, illu], axis=-1)                # torch cat on channels
    for i in range(encode_layer):
        latent = conv_s2(latent, packed["enc"][i], relu=True)
    _, H4, W4, C = latent.shape
    lat2d = latent.reshape(B * H4 * W4, C)
    eps2d = eps.reshape(B * H4 * W4, lattent_dim)
    # TODO(synk): torch.randn_like(std) inside reparameterize is replaced by a
    # deterministic pre-sampled eps argument (same distribution, fixed PRNGKey).
    mu, log_var, z2d = fused_latent(lat2d, packed["wcat"], packed["bcat"],
                                    eps2d, lattent_dim)
    z = z2d.reshape(B, H4, W4, lattent_dim)

    # ---------------- decode ----------------
    feat = jnp.concatenate([lited, illu], axis=-1)
    for i in range(encode_layer):
        feat = conv_s2(feat, packed["dsr"][i], relu=(i != encode_layer - 1))
    rest = jnp.concatenate([z, feat], axis=-1)
    for i in range(encode_layer):
        rest = deconv_s2(rest, packed["dec"][i], relu=(i != encode_layer - 1))
    rest = conv_s1(rest, packed["res"], relu=False, pad=1, out_dtype=jnp.float32)

    restored_img = jnp.transpose(rest, (0, 3, 1, 2))              # NCHW, like torch
    # PyTorch computes mu/log_var on the channel-last permuted latent and never
    # permutes them back, so (B, H4, W4, lattent_dim) matches the reference layout.
    mu_out = mu.reshape(B, H4, W4, lattent_dim)
    log_var_out = log_var.reshape(B, H4, W4, lattent_dim)
    return restored_img, mu_out, log_var_out


# ----------------------------------------------------------------------------------
if __name__ == "__main__":
    key = jax.random.PRNGKey(0)
    B, H, W = 2, 16, 16
    lattent_dim, encode_layer = 32, 2
    feature_in, feature_out = 4, 3   # => illu_fea has feature_in - feature_out = 1 channel

    k1, k2, k3, k4, kp = jax.random.split(key, 5)
    lited_up_image = jax.random.normal(k1, (B, feature_out, H, W), jnp.float32)
    illu_fea = jax.random.normal(k2, (B, feature_in - feature_out, H, W), jnp.float32)
    target = jax.random.normal(k3, (B, feature_out, H, W), jnp.float32)
    Hd, Wd = H // 2 ** encode_layer, W // 2 ** encode_layer
    eps = jax.random.normal(k4, (B, Hd, Wd, lattent_dim), jnp.float32)

    params = init_params(kp, lattent_dim, encode_layer, feature_in, feature_out)
    packed = prepack_params(params)

    fwd = jax.jit(functools.partial(forward, packed,
                                    lattent_dim=lattent_dim,
                                    encode_layer=encode_layer))
    restored_img, mu, log_var = fwd(lited_up_image, illu_fea, target, eps)
    jax.block_until_ready((restored_img, mu, log_var))

    assert restored_img.shape == (B, feature_out, H, W)
    assert mu.shape == (B, Hd, Wd, lattent_dim)
    assert log_var.shape == (B, Hd, Wd, lattent_dim)
    assert bool(jnp.all(jnp.isfinite(restored_img)))
    assert bool(jnp.all(jnp.isfinite(mu))) and bool(jnp.all(jnp.isfinite(log_var)))
    print("KERNEL_OK")
</pallas_src>

<mosaic_0001>
module attributes {stable_mosaic.version = 11 : i64} {
  func.func @_multi_tap_conv_kernel(%arg0: i32, %arg1: memref<1x16x16x3xbf16, #tpu.memory_space<vmem>>, %arg2: memref<1x3x3xbf16, #tpu.memory_space<vmem>>, %arg3: memref<1x3xf32, #tpu.memory_space<vmem>>, %arg4: memref<1x256x3xbf16, #tpu.memory_space<vmem>>) attributes {dimension_semantics = [#tpu.dimension_semantics<parallel>], iteration_bounds = array<i64: 2>, scalar_prefetch = 0 : i64, scratch_operands = 0 : i64, tpu.core_type = #tpu.core_type<tc>, window_params = [{transform_indices = @transform_0, window_bounds = array<i64: 1, 16, 16, 3>}, {pipeline_mode = #tpu.pipeline_mode<synchronous>, transform_indices = @transform_1, window_bounds = array<i64: 1, 3, 3>}, {pipeline_mode = #tpu.pipeline_mode<synchronous>, transform_indices = @transform_2, window_bounds = array<i64: 1, 3>}, {transform_indices = @transform_3, window_bounds = array<i64: 1, 256, 3>}]} {
    %cst = arith.constant 0.000000e+00 : f32
    %0 = vector.broadcast %cst : f32 to vector<256x3xf32>
    %c0 = arith.constant 0 : index
    %c0_0 = arith.constant 0 : index
    %c0_1 = arith.constant 0 : index
    %c0_2 = arith.constant 0 : index
    %1 = vector.load %arg1[%c0, %c0_0, %c0_1, %c0_2] : memref<1x16x16x3xbf16, #tpu.memory_space<vmem>>, vector<1x16x16x3xbf16>
    %2 = vector.shape_cast %1 : vector<1x16x16x3xbf16> to vector<16x16x3xbf16>
    %3 = vector.shape_cast %2 : vector<16x16x3xbf16> to vector<256x3xbf16>
    %c0_3 = arith.constant 0 : index
    %c0_4 = arith.constant 0 : index
    %c0_5 = arith.constant 0 : index
    %4 = vector.load %arg2[%c0_3, %c0_4, %c0_5] : memref<1x3x3xbf16, #tpu.memory_space<vmem>>, vector<1x3x3xbf16>
    %5 = vector.shape_cast %4 : vector<1x3x3xbf16> to vector<3x3xbf16>
    %cst_6 = arith.constant dense<0.000000e+00> : vector<256x3xf32>
    %6 = tpu.matmul %3, %5, %cst_6 {dimension_numbers = #tpu.dot_dimension_numbers<[1], [0], [0], [1], [0, 0, 1, 1], [], []>} : vector<256x3xbf16>, vector<3x3xbf16>, vector<256x3xf32> -> vector<256x3xf32>
    %7 = arith.addf %0, %6 : vector<256x3xf32>
    %c0_7 = arith.constant 0 : index
    %c0_8 = arith.constant 0 : index
    %8 = vector.load %arg3[%c0_7, %c0_8] : memref<1x3xf32, #tpu.memory_space<vmem>>, vector<1x3xf32>
    %9 = vector.broadcast %8 : vector<1x3xf32> to vector<256x3xf32>
    %10 = arith.addf %7, %9 : vector<256x3xf32>
    %cst_9 = arith.constant 0.000000e+00 : f32
    %11 = vector.broadcast %cst_9 : f32 to vector<256x3xf32>
    %12 = arith.maximumf %10, %11 : vector<256x3xf32>
    %13 = arith.truncf %12 : vector<256x3xf32> to vector<256x3xbf16>
    %c0_10 = arith.constant 0 : index
    %c0_11 = arith.constant 0 : index
    %c0_12 = arith.constant 0 : index
    %14 = vector.load %arg4[%c0_10, %c0_11, %c0_12] : memref<1x256x3xbf16, #tpu.memory_space<vmem>>, vector<1x256x3xbf16>
    %15 = vector.shape_cast %14 : vector<1x256x3xbf16> to vector<256x3xbf16>
    %16 = vector.shape_cast %13 : vector<256x3xbf16> to vector<1x256x3xbf16>
    tpu.vector_store %arg4[%c0_10, %c0_11, %c0_12], %16 {strides = array<i32>} : memref<1x256x3xbf16, #tpu.memory_space<vmem>>, vector<1x256x3xbf16>,
    return
  }
  func.func @transform_0(%arg0: i32) -> (i32, i32, i32, i32) {
    %c0_i32 = arith.constant 0 : i32
    %c0_i32_0 = arith.constant 0 : i32
    %c0_i32_1 = arith.constant 0 : i32
    %c0_i32_2 = arith.constant 0 : i32
    return %arg0, %c0_i32, %c0_i32_0, %c0_i32_1 : i32, i32, i32, i32
  }
  func.func @transform_1(%arg0: i32) -> (i32, i32, i32) {
    %c0_i32 = arith.constant 0 : i32
    %c0_i32_0 = arith.constant 0 : i32
    %c0_i32_1 = arith.constant 0 : i32
    %c0_i32_2 = arith.constant 0 : i32
    return %c0_i32, %c0_i32_0, %c0_i32_1 : i32, i32, i32
  }
  func.func @transform_2(%arg0: i32) -> (i32, i32) {
    %c0_i32 = arith.constant 0 : i32
    %c0_i32_0 = arith.constant 0 : i32
    %c0_i32_1 = arith.constant 0 : i32
    return %c0_i32, %c0_i32_0 : i32, i32
  }
  func.func @transform_3(%arg0: i32) -> (i32, i32, i32) {
    %c0_i32 = arith.constant 0 : i32
    %c0_i32_0 = arith.constant 0 : i32
    %c0_i32_1 = arith.constant 0 : i32
    return %arg0, %c0_i32, %c0_i32_0 : i32, i32, i32
  }
}

module attributes {stable_mosaic.version = 11 : i64} {
  func.func @_multi_tap_conv_kernel(%arg0: i32, %arg1: memref<1x9x9x16xbf16, #tpu.memory_space<vmem>>, %arg2: memref<9x4x16xbf16, #tpu.memory_space<vmem>>, %arg3: memref<1x16xf32, #tpu.memory_space<vmem>>, %arg4: memref<1x64x16xbf16, #tpu.memory_space<vmem>>) attributes {dimension_semantics = [#tpu.dimension_semantics<parallel>], iteration_bounds = array<i64: 2>, scalar_prefetch = 0 : i64, scratch_operands = 0 : i64, tpu.core_type = #tpu.core_type<tc>, window_params = [{transform_indices = @transform_0, window_bounds = array<i64: 1, 9, 9, 16>}, {pipeline_mode = #tpu.pipeline_mode<synchronous>, transform_indices = @transform_1, window_bounds = array<i64: 9, 4, 16>}, {pipeline_mode = #tpu.pipeline_mode<synchronous>, transform_indices = @transform_2, window_bounds = array<i64: 1, 16>}, {transform_indices = @transform_3, window_bounds = array<i64: 1, 64, 16>}]} {
    %cst = arith.constant 0.000000e+00 : f32
    %0 = vector.broadcast %cst : f32 to vector<64x16xf32>
    %c0 = arith.constant 0 : index
    %c0_0 = arith.constant 0 : index
    %c0_1 = arith.constant 0 : index
    %c0_2 = arith.constant 0 : index
    %1 = vector.load %arg1[%c0, %c0_0, %c0_1, %c0_2] : memref<1x9x9x16xbf16, #tpu.memory_space<vmem>>, vector<1x8x8x4xbf16>
    %2 = vector.shape_cast %1 : vector<1x8x8x4xbf16> to vector<8x8x4xbf16>
    %3 = vector.shape_cast %2 : vector<8x8x4xbf16> to vector<64x4xbf16>
    %c0_3 = arith.constant 0 : index
    %c0_4 = arith.constant 0 : index
    %c0_5 = arith.constant 0 : index
    %4 = vector.load %arg2[%c0_3, %c0_4, %c0_5] : memref<9x4x16xbf16, #tpu.memory_space<vmem>>, vector<1x4x16xbf16>
    %5 = vector.shape_cast %4 : vector<1x4x16xbf16> to vector<4x16xbf16>
    %cst_6 = arith.constant dense<0.000000e+00> : vector<64x16xf32>
    %6 = tpu.matmul %3, %5, %cst_6 {dimension_numbers = #tpu.dot_dimension_numbers<[1], [0], [0], [1], [0, 0, 1, 1], [], []>} : vector<64x4xbf16>, vector<4x16xbf16>, vector<64x16xf32> -> vector<64x16xf32>
    %7 = arith.addf %0, %6 : vector<64x16xf32>
    %c0_7 = arith.constant 0 : index
    %c0_8 = arith.constant 0 : index
    %c0_9 = arith.constant 0 : index
    %c4 = arith.constant 4 : index
    %8 = vector.load %arg1[%c0_7, %c0_8, %c0_9, %c4] : memref<1x9x9x16xbf16, #tpu.memory_space<vmem>>, vector<1x8x8x4xbf16>
    %9 = vector.shape_cast %8 : vector<1x8x8x4xbf16> to vector<8x8x4xbf16>
    %10 = vector.shape_cast %9 : vector<8x8x4xbf16> to vector<64x4xbf16>
    %c1 = arith.constant 1 : index
    %c0_10 = arith.constant 0 : index
    %c0_11 = arith.constant 0 : index
    %11 = vector.load %arg2[%c1, %c0_10, %c0_11] : memref<9x4x16xbf16, #tpu.memory_space<vmem>>, vector<1x4x16xbf16>
    %12 = vector.shape_cast %11 : vector<1x4x16xbf16> to vector<4x16xbf16>
    %cst_12 = arith.constant dense<0.000000e+00> : vector<64x16xf32>
    %13 = tpu.matmul %10, %12, %cst_12 {dimension_numbers = #tpu.dot_dimension_numbers<[1], [0], [0], [1], [0, 0, 1, 1], [], []>} : vector<64x4xbf16>, vector<4x16xbf16>, vector<64x16xf32> -> vector<64x16xf32>
    %14 = arith.addf %7, %13 : vector<64x16xf32>
    %c0_13 = arith.constant 0 : index
    %c0_14 = arith.constant 0 : index
    %c1_15 = arith.constant 1 : index
    %c0_16 = arith.constant 0 : index
    %15 = vector.load %arg1[%c0_13, %c0_14, %c1_15, %c0_16] : memref<1x9x9x16xbf16, #tpu.memory_space<vmem>>, vector<1x8x8x4xbf16>
    %16 = vector.shape_cast %15 : vector<1x8x8x4xbf16> to vector<8x8x4xbf16>
    %17 = vector.shape_cast %16 : vector<8x8x4xbf16> to vector<64x4xbf16>
    %c2 = arith.constant 2 : index
    %c0_17 = arith.constant 0 : index
    %c0_18 = arith.constant 0 : index
    %18 = vector.load %arg2[%c2, %c0_17, %c0_18] : memref<9x4x16xbf16, #tpu.memory_space<vmem>>, vector<1x4x16xbf16>
    %19 = vector.shape_cast %18 : vector<1x4x16xbf16> to vector<4x16xbf16>
    %cst_19 = arith.constant dense<0.000000e+00> : vector<64x16xf32>
    %20 = tpu.matmul %17, %19, %cst_19 {dimension_numbers = #tpu.dot_dimension_numbers<[1], [0], [0], [1], [0, 0, 1, 1], [], []>} : vector<64x4xbf16>, vector<4x16xbf16>, vector<64x16xf32> -> vector<64x16xf32>
    %21 = arith.addf %14, %20 : vector<64x16xf32>
    %c0_20 = arith.constant 0 : index
    %c0_21 = arith.constant 0 : index
    %c0_22 = arith.constant 0 : index
    %c8 = arith.constant 8 : index
    %22 = vector.load %arg1[%c0_20, %c0_21, %c0_22, %c8] : memref<1x9x9x16xbf16, #tpu.memory_space<vmem>>, vector<1x8x8x4xbf16>
    %23 = vector.shape_cast %22 : vector<1x8x8x4xbf16> to vector<8x8x4xbf16>
    %24 = vector.shape_cast %23 : vector<8x8x4xbf16> to vector<64x4xbf16>
    %c3 = arith.constant 3 : index
    %c0_23 = arith.constant 0 : index
    %c0_24 = arith.constant 0 : index
    %25 = vector.load %arg2[%c3, %c0_23, %c0_24] : memref<9x4x16xbf16, #tpu.memory_space<vmem>>, vector<1x4x16xbf16>
    %26 = vector.shape_cast %25 : vector<1x4x16xbf16> to vector<4x16xbf16>
    %cst_25 = arith.constant dense<0.000000e+00> : vector<64x16xf32>
    %27 = tpu.matmul %24, %26, %cst_25 {dimension_numbers = #tpu.dot_dimension_numbers<[1], [0], [0], [1], [0, 0, 1, 1], [], []>} : vector<64x4xbf16>, vector<4x16xbf16>, vector<64x16xf32> -> vector<64x16xf32>
    %28 = arith.addf %21, %27 : vector<64x16xf32>
    %c0_26 = arith.constant 0 : index
    %c0_27 = arith.constant 0 : index
    %c0_28 = arith.constant 0 : index
    %c12 = arith.constant 12 : index
    %29 = vector.load %arg1[%c0_26, %c0_27, %c0_28, %c12] : memref<1x9x9x16xbf16, #tpu.memory_space<vmem>>, vector<1x8x8x4xbf16>
    %30 = vector.shape_cast %29 : vector<1x8x8x4xbf16> to vector<8x8x4xbf16>
    %31 = vector.shape_cast %30 : vector<8x8x4xbf16> to vector<64x4xbf16>
    %c4_29 = arith.constant 4 : index
    %c0_30 = arith.constant 0 : index
    %c0_31 = arith.constant 0 : index
    %32 = vector.load %arg2[%c4_29, %c0_30, %c0_31] : memref<9x4x16xbf16, #tpu.memory_space<vmem>>, vector<1x4x16xbf16>
    %33 = vector.shape_cast %32 : vector<1x4x16xbf16> to vector<4x16xbf16>
    %cst_32 = arith.constant dense<0.000000e+00> : vector<64x16xf32>
    %34 = tpu.matmul %31, %33, %cst_32 {dimension_numbers = #tpu.dot_dimension_numbers<[1], [0], [0], [1], [0, 0, 1, 1], [], []>} : vector<64x4xbf16>, vector<4x16xbf16>, vector<64x16xf32> -> vector<64x16xf32>
    %35 = arith.addf %28, %34 : vector<64x16xf32>
    %c0_33 = arith.constant 0 : index
    %c0_34 = arith.constant 0 : index
    %c1_35 = arith.constant 1 : index
    %c8_36 = arith.constant 8 : index
    %36 = vector.load %arg1[%c0_33, %c0_34, %c1_35, %c8_36] : memref<1x9x9x16xbf16, #tpu.memory_space<vmem>>, vector<1x8x8x4xbf16>
    %37 = vector.shape_cast %36 : vector<1x8x8x4xbf16> to vector<8x8x4xbf16>
    %38 = vector.shape_cast %37 : vector<8x8x4xbf16> to vector<64x4xbf16>
    %c5 = arith.constant 5 : index
    %c0_37 = arith.constant 0 : index
    %c0_38 = arith.constant 0 : index
    %39 = vector.load %arg2[%c5, %c0_37, %c0_38] : memref<9x4x16xbf16, #tpu.memory_space<vmem>>, vector<1x4x16xbf16>
    %40 = vector.shape_cast %39 : vector<1x4x16xbf16> to vector<4x16xbf16>
    %cst_39 = arith.constant dense<0.000000e+00> : vector<64x16xf32>
    %41 = tpu.matmul %38, %40, %cst_39 {dimension_numbers = #tpu.dot_dimension_numbers<[1], [0], [0], [1], [0, 0, 1, 1], [], []>} : vector<64x4xbf16>, vector<4x16xbf16>, vector<64x16xf32> -> vector<64x16xf32>
    %42 = arith.addf %35, %41 : vector<64x16xf32>
    %c0_40 = arith.constant 0 : index
    %c1_41 = arith.constant 1 : index
    %c0_42 = arith.constant 0 : index
    %c0_43 = arith.constant 0 : index
    %43 = vector.load %arg1[%c0_40, %c1_41, %c0_42, %c0_43] : memref<1x9x9x16xbf16, #tpu.memory_space<vmem>>, vector<1x8x8x4xbf16>
    %44 = vector.shape_cast %43 : vector<1x8x8x4xbf16> to vector<8x8x4xbf16>
    %45 = vector.shape_cast %44 : vector<8x8x4xbf16> to vector<64x4xbf16>
    %c6 = arith.constant 6 : index
    %c0_44 = arith.constant 0 : index
    %c0_45 = arith.constant 0 : index
    %46 = vector.load %arg2[%c6, %c0_44, %c0_45] : memref<9x4x16xbf16, #tpu.memory_space<vmem>>, vector<1x4x16xbf16>
    %47 = vector.shape_cast %46 : vector<1x4x16xbf16> to vector<4x16xbf16>
    %cst_46 = arith.constant dense<0.000000e+00> : vector<64x16xf32>
    %48 = tpu.matmul %45, %47, %cst_46 {dimension_numbers = #tpu.dot_dimension_numbers<[1], [0], [0], [1], [0, 0, 1, 1], [], []>} : vector<64x4xbf16>, vector<4x16xbf16>, vector<64x16xf32> -> vector<64x16xf32>
    %49 = arith.addf %42, %48 : vector<64x16xf32>
    %c0_47 = arith.constant 0 : index
    %c1_48 = arith.constant 1 : index
    %c0_49 = arith.constant 0 : index
    %c4_50 = arith.constant 4 : index
    %50 = vector.load %arg1[%c0_47, %c1_48, %c0_49, %c4_50] : memref<1x9x9x16xbf16, #tpu.memory_space<vmem>>, vector<1x8x8x4xbf16>
    %51 = vector.shape_cast %50 : vector<1x8x8x4xbf16> to vector<8x8x4xbf16>
    %52 = vector.shape_cast %51 : vector<8x8x4xbf16> to vector<64x4xbf16>
    %c7 = arith.constant 7 : index
    %c0_51 = arith.constant 0 : index
    %c0_52 = arith.constant 0 : index
    %53 = vector.load %arg2[%c7, %c0_51, %c0_52] : memref<9x4x16xbf16, #tpu.memory_space<vmem>>, vector<1x4x16xbf16>
    %54 = vector.shape_cast %53 : vector<1x4x16xbf16> to vector<4x16xbf16>
    %cst_53 = arith.constant dense<0.000000e+00> : vector<64x16xf32>
    %55 = tpu.matmul %52, %54, %cst_53 {dimension_numbers = #tpu.dot_dimension_numbers<[1], [0], [0], [1], [0, 0, 1, 1], [], []>} : vector<64x4xbf16>, vector<4x16xbf16>, vector<64x16xf32> -> vector<64x16xf32>
    %56 = arith.addf %49, %55 : vector<64x16xf32>
    %c0_54 = arith.constant 0 : index
    %c1_55 = arith.constant 1 : index
    %c1_56 = arith.constant 1 : index
    %c0_57 = arith.constant 0 : index
    %57 = vector.load %arg1[%c0_54, %c1_55, %c1_56, %c0_57] : memref<1x9x9x16xbf16, #tpu.memory_space<vmem>>, vector<1x8x8x4xbf16>
    %58 = vector.shape_cast %57 : vector<1x8x8x4xbf16> to vector<8x8x4xbf16>
    %59 = vector.shape_cast %58 : vector<8x8x4xbf16> to vector<64x4xbf16>
    %c8_58 = arith.constant 8 : index
    %c0_59 = arith.constant 0 : index
    %c0_60 = arith.constant 0 : index
    %60 = vector.load %arg2[%c8_58, %c0_59, %c0_60] : memref<9x4x16xbf16, #tpu.memory_space<vmem>>, vector<1x4x16xbf16>
    %61 = vector.shape_cast %60 : vector<1x4x16xbf16> to vector<4x16xbf16>
    %cst_61 = arith.constant dense<0.000000e+00> : vector<64x16xf32>
    %62 = tpu.matmul %59, %61, %cst_61 {dimension_numbers = #tpu.dot_dimension_numbers<[1], [0], [0], [1], [0, 0, 1, 1], [], []>} : vector<64x4xbf16>, vector<4x16xbf16>, vector<64x16xf32> -> vector<64x16xf32>
    %63 = arith.addf %56, %62 : vector<64x16xf32>
    %c0_62 = arith.constant 0 : index
    %c0_63 = arith.constant 0 : index
    %64 = vector.load %arg3[%c0_62, %c0_63] : memref<1x16xf32, #tpu.memory_space<vmem>>, vector<1x16xf32>
    %65 = vector.broadcast %64 : vector<1x16xf32> to vector<64x16xf32>
    %66 = arith.addf %63, %65 : vector<64x16xf32>
    %cst_64 = arith.constant 0.000000e+00 : f32
    %67 = vector.broadcast %cst_64 : f32 to vector<64x16xf32>
    %68 = arith.maximumf %66, %67 : vector<64x16xf32>
    %69 = arith.truncf %68 : vector<64x16xf32> to vector<64x16xbf16>
    %c0_65 = arith.constant 0 : index
    %c0_66 = arith.constant 0 : index
    %c0_67 = arith.constant 0 : index
    %70 = vector.load %arg4[%c0_65, %c0_66, %c0_67] : memref<1x64x16xbf16, #tpu.memory_space<vmem>>, vector<1x64x16xbf16>
    %71 = vector.shape_cast %70 : vector<1x64x16xbf16> to vector<64x16xbf16>
    %72 = vector.shape_cast %69 : vector<64x16xbf16> to vector<1x64x16xbf16>
    tpu.vector_store %arg4[%c0_65, %c0_66, %c0_67], %72 {strides = array<i32>} : memref<1x64x16xbf16, #tpu.memory_space<vmem>>, vector<1x64x16xbf16>,
    return
  }
  func.func @transform_0(%arg0: i32) -> (i32, i32, i32, i32) {
    %c0_i32 = arith.constant 0 : i32
    %c0_i32_0 = arith.constant 0 : i32
    %c0_i32_1 = arith.constant 0 : i32
    %c0_i32_2 = arith.constant 0 : i32
    return %arg0, %c0_i32, %c0_i32_0, %c0_i32_1 : i32, i32, i32, i32
  }
  func.func @transform_1(%arg0: i32) -> (i32, i32, i32) {
    %c0_i32 = arith.constant 0 : i32
    %c0_i32_0 = arith.constant 0 : i32
    %c0_i32_1 = arith.constant 0 : i32
    %c0_i32_2 = arith.constant 0 : i32
    return %c0_i32, %c0_i32_0, %c0_i32_1 : i32, i32, i32
  }
  func.func @transform_2(%arg0: i32) -> (i32, i32) {
    %c0_i32 = arith.constant 0 : i32
    %c0_i32_0 = arith.constant 0 : i32
    %c0_i32_1 = arith.constant 0 : i32
    return %c0_i32, %c0_i32_0 : i32, i32
  }
  func.func @transform_3(%arg0: i32) -> (i32, i32, i32) {
    %c0_i32 = arith.constant 0 : i32
    %c0_i32_0 = arith.constant 0 : i32
    %c0_i32_1 = arith.constant 0 : i32
    return %arg0, %c0_i32, %c0_i32_0 : i32, i32, i32
  }
}

module attributes {stable_mosaic.version = 11 : i64} {
  func.func @_multi_tap_conv_kernel(%arg0: i32, %arg1: memref<1x5x9x64xbf16, #tpu.memory_space<vmem>>, %arg2: memref<9x16x32xbf16, #tpu.memory_space<vmem>>, %arg3: memref<1x32xf32, #tpu.memory_space<vmem>>, %arg4: memref<1x32x32xbf16, #tpu.memory_space<vmem>>) attributes {dimension_semantics = [#tpu.dimension_semantics<parallel>], iteration_bounds = array<i64: 2>, scalar_prefetch = 0 : i64, scratch_operands = 0 : i64, tpu.core_type = #tpu.core_type<tc>, window_params = [{transform_indices = @transform_0, window_bounds = array<i64: 1, 5, 9, 64>}, {pipeline_mode = #tpu.pipeline_mode<synchronous>, transform_indices = @transform_1, window_bounds = array<i64: 9, 16, 32>}, {pipeline_mode = #tpu.pipeline_mode<synchronous>, transform_indices = @transform_2, window_bounds = array<i64: 1, 32>}, {transform_indices = @transform_3, window_bounds = array<i64: 1, 32, 32>}]} {
    %cst = arith.constant 0.000000e+00 : f32
    %0 = vector.broadcast %cst : f32 to vector<32x32xf32>
    %c0 = arith.constant 0 : index
    %c0_0 = arith.constant 0 : index
    %c0_1 = arith.constant 0 : index
    %c0_2 = arith.constant 0 : index
    %1 = vector.load %arg1[%c0, %c0_0, %c0_1, %c0_2] : memref<1x5x9x64xbf16, #tpu.memory_space<vmem>>, vector<1x4x8x16xbf16>
    %2 = vector.shape_cast %1 : vector<1x4x8x16xbf16> to vector<4x8x16xbf16>
    %3 = vector.shape_cast %2 : vector<4x8x16xbf16> to vector<32x16xbf16>
    %c0_3 = arith.constant 0 : index
    %c0_4 = arith.constant 0 : index
    %c0_5 = arith.constant 0 : index
    %4 = vector.load %arg2[%c0_3, %c0_4, %c0_5] : memref<9x16x32xbf16, #tpu.memory_space<vmem>>, vector<1x16x32xbf16>
    %5 = vector.shape_cast %4 : vector<1x16x32xbf16> to vector<16x32xbf16>
    %cst_6 = arith.constant dense<0.000000e+00> : vector<32x32xf32>
    %6 = tpu.matmul %3, %5, %cst_6 {dimension_numbers = #tpu.dot_dimension_numbers<[1], [0], [0], [1], [0, 0, 1, 1], [], []>} : vector<32x16xbf16>, vector<16x32xbf16>, vector<32x32xf32> -> vector<32x32xf32>
    %7 = arith.addf %0, %6 : vector<32x32xf32>
    %c0_7 = arith.constant 0 : index
    %c0_8 = arith.constant 0 : index
    %c0_9 = arith.constant 0 : index
    %c16 = arith.constant 16 : index
    %8 = vector.load %arg1[%c0_7, %c0_8, %c0_9, %c16] : memref<1x5x9x64xbf16, #tpu.memory_space<vmem>>, vector<1x4x8x16xbf16>
    %9 = vector.shape_cast %8 : vector<1x4x8x16xbf16> to vector<4x8x16xbf16>
    %10 = vector.shape_cast %9 : vector<4x8x16xbf16> to vector<32x16xbf16>
    %c1 = arith.constant 1 : index
    %c0_10 = arith.constant 0 : index
    %c0_11 = arith.constant 0 : index
    %11 = vector.load %arg2[%c1, %c0_10, %c0_11] : memref<9x16x32xbf16, #tpu.memory_space<vmem>>, vector<1x16x32xbf16>
    %12 = vector.shape_cast %11 : vector<1x16x32xbf16> to vector<16x32xbf16>
    %cst_12 = arith.constant dense<0.000000e+00> : vector<32x32xf32>
    %13 = tpu.matmul %10, %12, %cst_12 {dimension_numbers = #tpu.dot_dimension_numbers<[1], [0], [0], [1], [0, 0, 1, 1], [], []>} : vector<32x16xbf16>, vector<16x32xbf16>, vector<32x32xf32> -> vector<32x32xf32>
    %14 = arith.addf %7, %13 : vector<32x32xf32>
    %c0_13 = arith.constant 0 : index
    %c0_14 = arith.constant 0 : index
    %c1_15 = arith.constant 1 : index
    %c0_16 = arith.constant 0 : index
    %15 = vector.load %arg1[%c0_13, %c0_14, %c1_15, %c0_16] : memref<1x5x9x64xbf16, #tpu.memory_space<vmem>>, vector<1x4x8x16xbf16>
    %16 = vector.shape_cast %15 : vector<1x4x8x16xbf16> to vector<4x8x16xbf16>
    %17 = vector.shape_cast %16 : vector<4x8x16xbf16> to vector<32x16xbf16>
    %c2 = arith.constant 2 : index
    %c0_17 = arith.constant 0 : index
    %c0_18 = arith.constant 0 : index
    %18 = vector.load %arg2[%c2, %c0_17, %c0_18] : memref<9x16x32xbf16, #tpu.memory_space<vmem>>, vector<1x16x32xbf16>
    %19 = vector.shape_cast %18 : vector<1x16x32xbf16> to vector<16x32xbf16>
    %cst_19 = arith.constant dense<0.000000e+00> : vector<32x32xf32>
    %20 = tpu.matmul %17, %19, %cst_19 {dimension_numbers = #tpu.dot_dimension_numbers<[1], [0], [0], [1], [0, 0, 1, 1], [], []>} : vector<32x16xbf16>, vector<16x32xbf16>, vector<32x32xf32> -> vector<32x32xf32>
    %21 = arith.addf %14, %20 : vector<32x32xf32>
    %c0_20 = arith.constant 0 : index
    %c0_21 = arith.constant 0 : index
    %c0_22 = arith.constant 0 : index
    %c32 = arith.constant 32 : index
    %22 = vector.load %arg1[%c0_20, %c0_21, %c0_22, %c32] : memref<1x5x9x64xbf16, #tpu.memory_space<vmem>>, vector<1x4x8x16xbf16>
    %23 = vector.shape_cast %22 : vector<1x4x8x16xbf16> to vector<4x8x16xbf16>
    %24 = vector.shape_cast %23 : vector<4x8x16xbf16> to vector<32x16xbf16>
    %c3 = arith.constant 3 : index
    %c0_23 = arith.constant 0 : index
    %c0_24 = arith.constant 0 : index
    %25 = vector.load %arg2[%c3, %c0_23, %c0_24] : memref<9x16x32xbf16, #tpu.memory_space<vmem>>, vector<1x16x32xbf16>
    %26 = vector.shape_cast %25 : vector<1x16x32xbf16> to vector<16x32xbf16>
    %cst_25 = arith.constant dense<0.000000e+00> : vector<32x32xf32>
    %27 = tpu.matmul %24, %26, %cst_25 {dimension_numbers = #tpu.dot_dimension_numbers<[1], [0], [0], [1], [0, 0, 1, 1], [], []>} : vector<32x16xbf16>, vector<16x32xbf16>, vector<32x32xf32> -> vector<32x32xf32>
    %28 = arith.addf %21, %27 : vector<32x32xf32>
    %c0_26 = arith.constant 0 : index
    %c0_27 = arith.constant 0 : index
    %c0_28 = arith.constant 0 : index
    %c48 = arith.constant 48 : index
    %29 = vector.load %arg1[%c0_26, %c0_27, %c0_28, %c48] : memref<1x5x9x64xbf16, #tpu.memory_space<vmem>>, vector<1x4x8x16xbf16>
    %30 = vector.shape_cast %29 : vector<1x4x8x16xbf16> to vector<4x8x16xbf16>
    %31 = vector.shape_cast %30 : vector<4x8x16xbf16> to vector<32x16xbf16>
    %c4 = arith.constant 4 : index
    %c0_29 = arith.constant 0 : index
    %c0_30 = arith.constant 0 : index
    %32 = vector.load %arg2[%c4, %c0_29, %c0_30] : memref<9x16x32xbf16, #tpu.memory_space<vmem>>, vector<1x16x32xbf16>
    %33 = vector.shape_cast %32 : vector<1x16x32xbf16> to vector<16x32xbf16>
    %cst_31 = arith.constant dense<0.000000e+00> : vector<32x32xf32>
    %34 = tpu.matmul %31, %33, %cst_31 {dimension_numbers = #tpu.dot_dimension_numbers<[1], [0], [0], [1], [0, 0, 1, 1], [], []>} : vector<32x16xbf16>, vector<16x32xbf16>, vector<32x32xf32> -> vector<32x32xf32>
    %35 = arith.addf %28, %34 : vector<32x32xf32>
    %c0_32 = arith.constant 0 : index
    %c0_33 = arith.constant 0 : index
    %c1_34 = arith.constant 1 : index
    %c32_35 = arith.constant 32 : index
    %36 = vector.load %arg1[%c0_32, %c0_33, %c1_34, %c32_35] : memref<1x5x9x64xbf16, #tpu.memory_space<vmem>>, vector<1x4x8x16xbf16>
    %37 = vector.shape_cast %36 : vector<1x4x8x16xbf16> to vector<4x8x16xbf16>
    %38 = vector.shape_cast %37 : vector<4x8x16xbf16> to vector<32x16xbf16>
    %c5 = arith.constant 5 : index
    %c0_36 = arith.constant 0 : index
    %c0_37 = arith.constant 0 : index
    %39 = vector.load %arg2[%c5, %c0_36, %c0_37] : memref<9x16x32xbf16, #tpu.memory_space<vmem>>, vector<1x16x32xbf16>
    %40 = vector.shape_cast %39 : vector<1x16x32xbf16> to vector<16x32xbf16>
    %cst_38 = arith.constant dense<0.000000e+00> : vector<32x32xf32>
    %41 = tpu.matmul %38, %40, %cst_38 {dimension_numbers = #tpu.dot_dimension_numbers<[1], [0], [0], [1], [0, 0, 1, 1], [], []>} : vector<32x16xbf16>, vector<16x32xbf16>, vector<32x32xf32> -> vector<32x32xf32>
    %42 = arith.addf %35, %41 : vector<32x32xf32>
    %c0_39 = arith.constant 0 : index
    %c1_40 = arith.constant 1 : index
    %c0_41 = arith.constant 0 : index
    %c0_42 = arith.constant 0 : index
    %43 = vector.load %arg1[%c0_39, %c1_40, %c0_41, %c0_42] : memref<1x5x9x64xbf16, #tpu.memory_space<vmem>>, vector<1x4x8x16xbf16>
    %44 = vector.shape_cast %43 : vector<1x4x8x16xbf16> to vector<4x8x16xbf16>
    %45 = vector.shape_cast %44 : vector<4x8x16xbf16> to vector<32x16xbf16>
    %c6 = arith.constant 6 : index
    %c0_43 = arith.constant 0 : index
    %c0_44 = arith.constant 0 : index
    %46 = vector.load %arg2[%c6, %c0_43, %c0_44] : memref<9x16x32xbf16, #tpu.memory_space<vmem>>, vector<1x16x32xbf16>
    %47 = vector.shape_cast %46 : vector<1x16x32xbf16> to vector<16x32xbf16>
    %cst_45 = arith.constant dense<0.000000e+00> : vector<32x32xf32>
    %48 = tpu.matmul %45, %47, %cst_45 {dimension_numbers = #tpu.dot_dimension_numbers<[1], [0], [0], [1], [0, 0, 1, 1], [], []>} : vector<32x16xbf16>, vector<16x32xbf16>, vector<32x32xf32> -> vector<32x32xf32>
    %49 = arith.addf %42, %48 : vector<32x32xf32>
    %c0_46 = arith.constant 0 : index
    %c1_47 = arith.constant 1 : index
    %c0_48 = arith.constant 0 : index
    %c16_49 = arith.constant 16 : index
    %50 = vector.load %arg1[%c0_46, %c1_47, %c0_48, %c16_49] : memref<1x5x9x64xbf16, #tpu.memory_space<vmem>>, vector<1x4x8x16xbf16>
    %51 = vector.shape_cast %50 : vector<1x4x8x16xbf16> to vector<4x8x16xbf16>
    %52 = vector.shape_cast %51 : vector<4x8x16xbf16> to vector<32x16xbf16>
    %c7 = arith.constant 7 : index
    %c0_50 = arith.constant 0 : index
    %c0_51 = arith.constant 0 : index
    %53 = vector.load %arg2[%c7, %c0_50, %c0_51] : memref<9x16x32xbf16, #tpu.memory_space<vmem>>, vector<1x16x32xbf16>
    %54 = vector.shape_cast %53 : vector<1x16x32xbf16> to vector<16x32xbf16>
    %cst_52 = arith.constant dense<0.000000e+00> : vector<32x32xf32>
    %55 = tpu.matmul %52, %54, %cst_52 {dimension_numbers = #tpu.dot_dimension_numbers<[1], [0], [0], [1], [0, 0, 1, 1], [], []>} : vector<32x16xbf16>, vector<16x32xbf16>, vector<32x32xf32> -> vector<32x32xf32>
    %56 = arith.addf %49, %55 : vector<32x32xf32>
    %c0_53 = arith.constant 0 : index
    %c1_54 = arith.constant 1 : index
    %c1_55 = arith.constant 1 : index
    %c0_56 = arith.constant 0 : index
    %57 = vector.load %arg1[%c0_53, %c1_54, %c1_55, %c0_56] : memref<1x5x9x64xbf16, #tpu.memory_space<vmem>>, vector<1x4x8x16xbf16>
    %58 = vector.shape_cast %57 : vector<1x4x8x16xbf16> to vector<4x8x16xbf16>
    %59 = vector.shape_cast %58 : vector<4x8x16xbf16> to vector<32x16xbf16>
    %c8 = arith.constant 8 : index
    %c0_57 = arith.constant 0 : index
    %c0_58 = arith.constant 0 : index
    %60 = vector.load %arg2[%c8, %c0_57, %c0_58] : memref<9x16x32xbf16, #tpu.memory_space<vmem>>, vector<1x16x32xbf16>
    %61 = vector.shape_cast %60 : vector<1x16x32xbf16> to vector<16x32xbf16>
    %cst_59 = arith.constant dense<0.000000e+00> : vector<32x32xf32>
    %62 = tpu.matmul %59, %61, %cst_59 {dimension_numbers = #tpu.dot_dimension_numbers<[1], [0], [0], [1], [0, 0, 1, 1], [], []>} : vector<32x16xbf16>, vector<16x32xbf16>, vector<32x32xf32> -> vector<32x32xf32>
    %63 = arith.addf %56, %62 : vector<32x32xf32>
    %c0_60 = arith.constant 0 : index
    %c0_61 = arith.constant 0 : index
    %64 = vector.load %arg3[%c0_60, %c0_61] : memref<1x32xf32, #tpu.memory_space<vmem>>, vector<1x32xf32>
    %65 = vector.broadcast %64 : vector<1x32xf32> to vector<32x32xf32>
    %66 = arith.addf %63, %65 : vector<32x32xf32>
    %cst_62 = arith.constant 0.000000e+00 : f32
    %67 = vector.broadcast %cst_62 : f32 to vector<32x32xf32>
    %68 = arith.maximumf %66, %67 : vector<32x32xf32>
    %69 = arith.truncf %68 : vector<32x32xf32> to vector<32x32xbf16>
    %c0_63 = arith.constant 0 : index
    %c0_64 = arith.constant 0 : index
    %c0_65 = arith.constant 0 : index
    %70 = vector.load %arg4[%c0_63, %c0_64, %c0_65] : memref<1x32x32xbf16, #tpu.memory_space<vmem>>, vector<1x32x32xbf16>
    %71 = vector.shape_cast %70 : vector<1x32x32xbf16> to vector<32x32xbf16>
    %72 = vector.shape_cast %69 : vector<32x32xbf16> to vector<1x32x32xbf16>
    tpu.vector_store %arg4[%c0_63, %c0_64, %c0_65], %72 {strides = array<i32>} : memref<1x32x32xbf16, #tpu.memory_space<vmem>>, vector<1x32x32xbf16>,
    return
  }
  func.func @transform_0(%arg0: i32) -> (i32, i32, i32, i32) {
    %c0_i32 = arith.constant 0 : i32
    %c0_i32_0 = arith.constant 0 : i32
    %c0_i32_1 = arith.constant 0 : i32
    %c0_i32_2 = arith.constant 0 : i32
    return %arg0, %c0_i32, %c0_i32_0, %c0_i32_1 : i32, i32, i32, i32
  }
  func.func @transform_1(%arg0: i32) -> (i32, i32, i32) {
    %c0_i32 = arith.constant 0 : i32
    %c0_i32_0 = arith.constant 0 : i32
    %c0_i32_1 = arith.constant 0 : i32
    %c0_i32_2 = arith.constant 0 : i32
    return %c0_i32, %c0_i32_0, %c0_i32_1 : i32, i32, i32
  }
  func.func @transform_2(%arg0: i32) -> (i32, i32) {
    %c0_i32 = arith.constant 0 : i32
    %c0_i32_0 = arith.constant 0 : i32
    %c0_i32_1 = arith.constant 0 : i32
    return %c0_i32, %c0_i32_0 : i32, i32
  }
  func.func @transform_3(%arg0: i32) -> (i32, i32, i32) {
    %c0_i32 = arith.constant 0 : i32
    %c0_i32_0 = arith.constant 0 : i32
    %c0_i32_1 = arith.constant 0 : i32
    return %arg0, %c0_i32, %c0_i32_0 : i32, i32, i32
  }
}

module attributes {stable_mosaic.version = 11 : i64} {
  func.func @_multi_tap_conv_kernel(%arg0: i32, %arg1: memref<1x5x9x64xbf16, #tpu.memory_space<vmem>>, %arg2: memref<9x16x32xbf16, #tpu.memory_space<vmem>>, %arg3: memref<1x32xf32, #tpu.memory_space<vmem>>, %arg4: memref<1x32x32xbf16, #tpu.memory_space<vmem>>) attributes {dimension_semantics = [#tpu.dimension_semantics<parallel>], iteration_bounds = array<i64: 2>, scalar_prefetch = 0 : i64, scratch_operands = 0 : i64, tpu.core_type = #tpu.core_type<tc>, window_params = [{transform_indices = @transform_0, window_bounds = array<i64: 1, 5, 9, 64>}, {pipeline_mode = #tpu.pipeline_mode<synchronous>, transform_indices = @transform_1, window_bounds = array<i64: 9, 16, 32>}, {pipeline_mode = #tpu.pipeline_mode<synchronous>, transform_indices = @transform_2, window_bounds = array<i64: 1, 32>}, {transform_indices = @transform_3, window_bounds = array<i64: 1, 32, 32>}]} {
    %cst = arith.constant 0.000000e+00 : f32
    %0 = vector.broadcast %cst : f32 to vector<32x32xf32>
    %c0 = arith.constant 0 : index
    %c0_0 = arith.constant 0 : index
    %c0_1 = arith.constant 0 : index
    %c0_2 = arith.constant 0 : index
    %1 = vector.load %arg1[%c0, %c0_0, %c0_1, %c0_2] : memref<1x5x9x64xbf16, #tpu.memory_space<vmem>>, vector<1x4x8x16xbf16>
    %2 = vector.shape_cast %1 : vector<1x4x8x16xbf16> to vector<4x8x16xbf16>
    %3 = vector.shape_cast %2 : vector<4x8x16xbf16> to vector<32x16xbf16>
    %c0_3 = arith.constant 0 : index
    %c0_4 = arith.constant 0 : index
    %c0_5 = arith.constant 0 : index
    %4 = vector.load %arg2[%c0_3, %c0_4, %c0_5] : memref<9x16x32xbf16, #tpu.memory_space<vmem>>, vector<1x16x32xbf16>
    %5 = vector.shape_cast %4 : vector<1x16x32xbf16> to vector<16x32xbf16>
    %cst_6 = arith.constant dense<0.000000e+00> : vector<32x32xf32>
    %6 = tpu.matmul %3, %5, %cst_6 {dimension_numbers = #tpu.dot_dimension_numbers<[1], [0], [0], [1], [0, 0, 1, 1], [], []>} : vector<32x16xbf16>, vector<16x32xbf16>, vector<32x32xf32> -> vector<32x32xf32>
    %7 = arith.addf %0, %6 : vector<32x32xf32>
    %c0_7 = arith.constant 0 : index
    %c0_8 = arith.constant 0 : index
    %c0_9 = arith.constant 0 : index
    %c16 = arith.constant 16 : index
    %8 = vector.load %arg1[%c0_7, %c0_8, %c0_9, %c16] : memref<1x5x9x64xbf16, #tpu.memory_space<vmem>>, vector<1x4x8x16xbf16>
    %9 = vector.shape_cast %8 : vector<1x4x8x16xbf16> to vector<4x8x16xbf16>
    %10 = vector.shape_cast %9 : vector<4x8x16xbf16> to vector<32x16xbf16>
    %c1 = arith.constant 1 : index
    %c0_10 = arith.constant 0 : index
    %c0_11 = arith.constant 0 : index
    %11 = vector.load %arg2[%c1, %c0_10, %c0_11] : memref<9x16x32xbf16, #tpu.memory_space<vmem>>, vector<1x16x32xbf16>
    %12 = vector.shape_cast %11 : vector<1x16x32xbf16> to vector<16x32xbf16>
    %cst_12 = arith.constant dense<0.000000e+00> : vector<32x32xf32>
    %13 = tpu.matmul %10, %12, %cst_12 {dimension_numbers = #tpu.dot_dimension_numbers<[1], [0], [0], [1], [0, 0, 1, 1], [], []>} : vector<32x16xbf16>, vector<16x32xbf16>, vector<32x32xf32> -> vector<32x32xf32>
    %14 = arith.addf %7, %13 : vector<32x32xf32>
    %c0_13 = arith.constant 0 : index
    %c0_14 = arith.constant 0 : index
    %c1_15 = arith.constant 1 : index
    %c0_16 = arith.constant 0 : index
    %15 = vector.load %arg1[%c0_13, %c0_14, %c1_15, %c0_16] : memref<1x5x9x64xbf16, #tpu.memory_space<vmem>>, vector<1x4x8x16xbf16>
    %16 = vector.shape_cast %15 : vector<1x4x8x16xbf16> to vector<4x8x16xbf16>
    %17 = vector.shape_cast %16 : vector<4x8x16xbf16> to vector<32x16xbf16>
    %c2 = arith.constant 2 : index
    %c0_17 = arith.constant 0 : index
    %c0_18 = arith.constant 0 : index
    %18 = vector.load %arg2[%c2, %c0_17, %c0_18] : memref<9x16x32xbf16, #tpu.memory_space<vmem>>, vector<1x16x32xbf16>
    %19 = vector.shape_cast %18 : vector<1x16x32xbf16> to vector<16x32xbf16>
    %cst_19 = arith.constant dense<0.000000e+00> : vector<32x32xf32>
    %20 = tpu.matmul %17, %19, %cst_19 {dimension_numbers = #tpu.dot_dimension_numbers<[1], [0], [0], [1], [0, 0, 1, 1], [], []>} : vector<32x16xbf16>, vector<16x32xbf16>, vector<32x32xf32> -> vector<32x32xf32>
    %21 = arith.addf %14, %20 : vector<32x32xf32>
    %c0_20 = arith.constant 0 : index
    %c0_21 = arith.constant 0 : index
    %c0_22 = arith.constant 0 : index
    %c32 = arith.constant 32 : index
    %22 = vector.load %arg1[%c0_20, %c0_21, %c0_22, %c32] : memref<1x5x9x64xbf16, #tpu.memory_space<vmem>>, vector<1x4x8x16xbf16>
    %23 = vector.shape_cast %22 : vector<1x4x8x16xbf16> to vector<4x8x16xbf16>
    %24 = vector.shape_cast %23 : vector<4x8x16xbf16> to vector<32x16xbf16>
    %c3 = arith.constant 3 : index
    %c0_23 = arith.constant 0 : index
    %c0_24 = arith.constant 0 : index
    %25 = vector.load %arg2[%c3, %c0_23, %c0_24] : memref<9x16x32xbf16, #tpu.memory_space<vmem>>, vector<1x16x32xbf16>
    %26 = vector.shape_cast %25 : vector<1x16x32xbf16> to vector<16x32xbf16>
    %cst_25 = arith.constant dense<0.000000e+00> : vector<32x32xf32>
    %27 = tpu.matmul %24, %26, %cst_25 {dimension_numbers = #tpu.dot_dimension_numbers<[1], [0], [0], [1], [0, 0, 1, 1], [], []>} : vector<32x16xbf16>, vector<16x32xbf16>, vector<32x32xf32> -> vector<32x32xf32>
    %28 = arith.addf %21, %27 : vector<32x32xf32>
    %c0_26 = arith.constant 0 : index
    %c0_27 = arith.constant 0 : index
    %c0_28 = arith.constant 0 : index
    %c48 = arith.constant 48 : index
    %29 = vector.load %arg1[%c0_26, %c0_27, %c0_28, %c48] : memref<1x5x9x64xbf16, #tpu.memory_space<vmem>>, vector<1x4x8x16xbf16>
    %30 = vector.shape_cast %29 : vector<1x4x8x16xbf16> to vector<4x8x16xbf16>
    %31 = vector.shape_cast %30 : vector<4x8x16xbf16> to vector<32x16xbf16>
    %c4 = arith.constant 4 : index
    %c0_29 = arith.constant 0 : index
    %c0_30 = arith.constant 0 : index
    %32 = vector.load %arg2[%c4, %c0_29, %c0_30] : memref<9x16x32xbf16, #tpu.memory_space<vmem>>, vector<1x16x32xbf16>
    %33 = vector.shape_cast %32 : vector<1x16x32xbf16> to vector<16x32xbf16>
    %cst_31 = arith.constant dense<0.000000e+00> : vector<32x32xf32>
    %34 = tpu.matmul %31, %33, %cst_31 {dimension_numbers = #tpu.dot_dimension_numbers<[1], [0], [0], [1], [0, 0, 1, 1], [], []>} : vector<32x16xbf16>, vector<16x32xbf16>, vector<32x32xf32> -> vector<32x32xf32>
    %35 = arith.addf %28, %34 : vector<32x32xf32>
    %c0_32 = arith.constant 0 : index
    %c0_33 = arith.constant 0 : index
    %c1_34 = arith.constant 1 : index
    %c32_35 = arith.constant 32 : index
    %36 = vector.load %arg1[%c0_32, %c0_33, %c1_34, %c32_35] : memref<1x5x9x64xbf16, #tpu.memory_space<vmem>>, vector<1x4x8x16xbf16>
    %37 = vector.shape_cast %36 : vector<1x4x8x16xbf16> to vector<4x8x16xbf16>
    %38 = vector.shape_cast %37 : vector<4x8x16xbf16> to vector<32x16xbf16>
    %c5 = arith.constant 5 : index
    %c0_36 = arith.constant 0 : index
    %c0_37 = arith.constant 0 : index
    %39 = vector.load %arg2[%c5, %c0_36, %c0_37] : memref<9x16x32xbf16, #tpu.memory_space<vmem>>, vector<1x16x32xbf16>
    %40 = vector.shape_cast %39 : vector<1x16x32xbf16> to vector<16x32xbf16>
    %cst_38 = arith.constant dense<0.000000e+00> : vector<32x32xf32>
    %41 = tpu.matmul %38, %40, %cst_38 {dimension_numbers = #tpu.dot_dimension_numbers<[1], [0], [0], [1], [0, 0, 1, 1], [], []>} : vector<32x16xbf16>, vector<16x32xbf16>, vector<32x32xf32> -> vector<32x32xf32>
    %42 = arith.addf %35, %41 : vector<32x32xf32>
    %c0_39 = arith.constant 0 : index
    %c1_40 = arith.constant 1 : index
    %c0_41 = arith.constant 0 : index
    %c0_42 = arith.constant 0 : index
    %43 = vector.load %arg1[%c0_39, %c1_40, %c0_41, %c0_42] : memref<1x5x9x64xbf16, #tpu.memory_space<vmem>>, vector<1x4x8x16xbf16>
    %44 = vector.shape_cast %43 : vector<1x4x8x16xbf16> to vector<4x8x16xbf16>
    %45 = vector.shape_cast %44 : vector<4x8x16xbf16> to vector<32x16xbf16>
    %c6 = arith.constant 6 : index
    %c0_43 = arith.constant 0 : index
    %c0_44 = arith.constant 0 : index
    %46 = vector.load %arg2[%c6, %c0_43, %c0_44] : memref<9x16x32xbf16, #tpu.memory_space<vmem>>, vector<1x16x32xbf16>
    %47 = vector.shape_cast %46 : vector<1x16x32xbf16> to vector<16x32xbf16>
    %cst_45 = arith.constant dense<0.000000e+00> : vector<32x32xf32>
    %48 = tpu.matmul %45, %47, %cst_45 {dimension_numbers = #tpu.dot_dimension_numbers<[1], [0], [0], [1], [0, 0, 1, 1], [], []>} : vector<32x16xbf16>, vector<16x32xbf16>, vector<32x32xf32> -> vector<32x32xf32>
    %49 = arith.addf %42, %48 : vector<32x32xf32>
    %c0_46 = arith.constant 0 : index
    %c1_47 = arith.constant 1 : index
    %c0_48 = arith.constant 0 : index
    %c16_49 = arith.constant 16 : index
    %50 = vector.load %arg1[%c0_46, %c1_47, %c0_48, %c16_49] : memref<1x5x9x64xbf16, #tpu.memory_space<vmem>>, vector<1x4x8x16xbf16>
    %51 = vector.shape_cast %50 : vector<1x4x8x16xbf16> to vector<4x8x16xbf16>
    %52 = vector.shape_cast %51 : vector<4x8x16xbf16> to vector<32x16xbf16>
    %c7 = arith.constant 7 : index
    %c0_50 = arith.constant 0 : index
    %c0_51 = arith.constant 0 : index
    %53 = vector.load %arg2[%c7, %c0_50, %c0_51] : memref<9x16x32xbf16, #tpu.memory_space<vmem>>, vector<1x16x32xbf16>
    %54 = vector.shape_cast %53 : vector<1x16x32xbf16> to vector<16x32xbf16>
    %cst_52 = arith.constant dense<0.000000e+00> : vector<32x32xf32>
    %55 = tpu.matmul %52, %54, %cst_52 {dimension_numbers = #tpu.dot_dimension_numbers<[1], [0], [0], [1], [0, 0, 1, 1], [], []>} : vector<32x16xbf16>, vector<16x32xbf16>, vector<32x32xf32> -> vector<32x32xf32>
    %56 = arith.addf %49, %55 : vector<32x32xf32>
    %c0_53 = arith.constant 0 : index
    %c1_54 = arith.constant 1 : index
    %c1_55 = arith.constant 1 : index
    %c0_56 = arith.constant 0 : index
    %57 = vector.load %arg1[%c0_53, %c1_54, %c1_55, %c0_56] : memref<1x5x9x64xbf16, #tpu.memory_space<vmem>>, vector<1x4x8x16xbf16>
    %58 = vector.shape_cast %57 : vector<1x4x8x16xbf16> to vector<4x8x16xbf16>
    %59 = vector.shape_cast %58 : vector<4x8x16xbf16> to vector<32x16xbf16>
    %c8 = arith.constant 8 : index
    %c0_57 = arith.constant 0 : index
    %c0_58 = arith.constant 0 : index
    %60 = vector.load %arg2[%c8, %c0_57, %c0_58] : memref<9x16x32xbf16, #tpu.memory_space<vmem>>, vector<1x16x32xbf16>
    %61 = vector.shape_cast %60 : vector<1x16x32xbf16> to vector<16x32xbf16>
    %cst_59 = arith.constant dense<0.000000e+00> : vector<32x32xf32>
    %62 = tpu.matmul %59, %61, %cst_59 {dimension_numbers = #tpu.dot_dimension_numbers<[1], [0], [0], [1], [0, 0, 1, 1], [], []>} : vector<32x16xbf16>, vector<16x32xbf16>, vector<32x32xf32> -> vector<32x32xf32>
    %63 = arith.addf %56, %62 : vector<32x32xf32>
    %c0_60 = arith.constant 0 : index
    %c0_61 = arith.constant 0 : index
    %64 = vector.load %arg3[%c0_60, %c0_61] : memref<1x32xf32, #tpu.memory_space<vmem>>, vector<1x32xf32>
    %65 = vector.broadcast %64 : vector<1x32xf32> to vector<32x32xf32>
    %66 = arith.addf %63, %65 : vector<32x32xf32>
    %67 = arith.truncf %66 : vector<32x32xf32> to vector<32x32xbf16>
    %c0_62 = arith.constant 0 : index
    %c0_63 = arith.constant 0 : index
    %c0_64 = arith.constant 0 : index
    %68 = vector.load %arg4[%c0_62, %c0_63, %c0_64] : memref<1x32x32xbf16, #tpu.memory_space<vmem>>, vector<1x32x32xbf16>
    %69 = vector.shape_cast %68 : vector<1x32x32xbf16> to vector<32x32xbf16>
    %70 = vector.shape_cast %67 : vector<32x32xbf16> to vector<1x32x32xbf16>
    tpu.vector_store %arg4[%c0_62, %c0_63, %c0_64], %70 {strides = array<i32>} : memref<1x32x32xbf16, #tpu.memory_space<vmem>>, vector<1x32x32xbf16>,
    return
  }
  func.func @transform_0(%arg0: i32) -> (i32, i32, i32, i32) {
    %c0_i32 = arith.constant 0 : i32
    %c0_i32_0 = arith.constant 0 : i32
    %c0_i32_1 = arith.constant 0 : i32
    %c0_i32_2 = arith.constant 0 : i32
    return %arg0, %c0_i32, %c0_i32_0, %c0_i32_1 : i32, i32, i32, i32
  }
  func.func @transform_1(%arg0: i32) -> (i32, i32, i32) {
    %c0_i32 = arith.constant 0 : i32
    %c0_i32_0 = arith.constant 0 : i32
    %c0_i32_1 = arith.constant 0 : i32
    %c0_i32_2 = arith.constant 0 : i32
    return %c0_i32, %c0_i32_0, %c0_i32_1 : i32, i32, i32
  }
  func.func @transform_2(%arg0: i32) -> (i32, i32) {
    %c0_i32 = arith.constant 0 : i32
    %c0_i32_0 = arith.constant 0 : i32
    %c0_i32_1 = arith.constant 0 : i32
    return %c0_i32, %c0_i32_0 : i32, i32
  }
  func.func @transform_3(%arg0: i32) -> (i32, i32, i32) {
    %c0_i32 = arith.constant 0 : i32
    %c0_i32_0 = arith.constant 0 : i32
    %c0_i32_1 = arith.constant 0 : i32
    return %arg0, %c0_i32, %c0_i32_0 : i32, i32, i32
  }
}

module attributes {stable_mosaic.version = 11 : i64} {
  func.func @_latent_kernel(%arg0: i32, %arg1: memref<32x32xbf16, #tpu.memory_space<vmem>>, %arg2: memref<32x64xbf16, #tpu.memory_space<vmem>>, %arg3: memref<1x64xf32, #tpu.memory_space<vmem>>, %arg4: memref<32x32xf32, #tpu.memory_space<vmem>>, %arg5: memref<32x32xf32, #tpu.memory_space<vmem>>, %arg6: memref<32x32xf32, #tpu.memory_space<vmem>>, %arg7: memref<32x32xbf16, #tpu.memory_space<vmem>>) attributes {dimension_semantics = [#tpu.dimension_semantics<parallel>], iteration_bounds = array<i64: 1>, scalar_prefetch = 0 : i64, scratch_operands = 0 : i64, tpu.core_type = #tpu.core_type<tc>, window_params = [{transform_indices = @transform_0, window_bounds = array<i64: 32, 32>}, {pipeline_mode = #tpu.pipeline_mode<synchronous>, transform_indices = @transform_1, window_bounds = array<i64: 32, 64>}, {pipeline_mode = #tpu.pipeline_mode<synchronous>, transform_indices = @transform_2, window_bounds = array<i64: 1, 64>}, {transform_indices = @transform_3, window_bounds = array<i64: 32, 32>}, {transform_indices = @transform_4, window_bounds = array<i64: 32, 32>}, {transform_indices = @transform_5, window_bounds = array<i64: 32, 32>}, {transform_indices = @transform_6, window_bounds = array<i64: 32, 32>}]} {
    %c0 = arith.constant 0 : index
    %c0_0 = arith.constant 0 : index
    %0 = vector.load %arg1[%c0, %c0_0] : memref<32x32xbf16, #tpu.memory_space<vmem>>, vector<32x32xbf16>
    %c0_1 = arith.constant 0 : index
    %c0_2 = arith.constant 0 : index
    %1 = vector.load %arg2[%c0_1, %c0_2] : memref<32x64xbf16, #tpu.memory_space<vmem>>, vector<32x64xbf16>
    %cst = arith.constant dense<0.000000e+00> : vector<32x64xf32>
    %2 = tpu.matmul %0, %1, %cst {dimension_numbers = #tpu.dot_dimension_numbers<[1], [0], [0], [1], [0, 0, 1, 1], [], []>} : vector<32x32xbf16>, vector<32x64xbf16>, vector<32x64xf32> -> vector<32x64xf32>
    %c0_3 = arith.constant 0 : index
    %c0_4 = arith.constant 0 : index
    %3 = vector.load %arg3[%c0_3, %c0_4] : memref<1x64xf32, #tpu.memory_space<vmem>>, vector<1x64xf32>
    %4 = vector.broadcast %3 : vector<1x64xf32> to vector<32x64xf32>
    %5 = arith.addf %2, %4 : vector<32x64xf32>
    %6 = vector.extract_strided_slice %5 {offsets = [0, 0], sizes = [32, 32], strides = [1, 1]} : vector<32x64xf32> to vector<32x32xf32>
    %7 = vector.extract_strided_slice %5 {offsets = [0, 32], sizes = [32, 32], strides = [1, 1]} : vector<32x64xf32> to vector<32x32xf32>
    %c0_5 = arith.constant 0 : index
    %c0_6 = arith.constant 0 : index
    %8 = vector.load %arg5[%c0_5, %c0_6] : memref<32x32xf32, #tpu.memory_space<vmem>>, vector<32x32xf32>
    tpu.vector_store %arg5[%c0_5, %c0_6], %6 {strides = array<i32>} : memref<32x32xf32, #tpu.memory_space<vmem>>, vector<32x32xf32>,
    %c0_7 = arith.constant 0 : index
    %c0_8 = arith.constant 0 : index
    %9 = vector.load %arg6[%c0_7, %c0_8] : memref<32x32xf32, #tpu.memory_space<vmem>>, vector<32x32xf32>
    tpu.vector_store %arg6[%c0_7, %c0_8], %7 {strides = array<i32>} : memref<32x32xf32, #tpu.memory_space<vmem>>, vector<32x32xf32>,
    %c0_9 = arith.constant 0 : index
    %c0_10 = arith.constant 0 : index
    %10 = vector.load %arg4[%c0_9, %c0_10] : memref<32x32xf32, #tpu.memory_space<vmem>>, vector<32x32xf32>
    %cst_11 = arith.constant 5.000000e-01 : f32
    %11 = vector.broadcast %cst_11 : f32 to vector<32x32xf32>
    %12 = arith.mulf %11, %7 : vector<32x32xf32>
    %13 = math.exp %12 : vector<32x32xf32>
    %14 = arith.mulf %10, %13 : vector<32x32xf32>
    %15 = arith.addf %6, %14 : vector<32x32xf32>
    %16 = arith.truncf %15 : vector<32x32xf32> to vector<32x32xbf16>
    %c0_12 = arith.constant 0 : index
    %c0_13 = arith.constant 0 : index
    %17 = vector.load %arg7[%c0_12, %c0_13] : memref<32x32xbf16, #tpu.memory_space<vmem>>, vector<32x32xbf16>
    tpu.vector_store %arg7[%c0_12, %c0_13], %16 {strides = array<i32>} : memref<32x32xbf16, #tpu.memory_space<vmem>>, vector<32x32xbf16>,
    return
  }
  func.func @transform_0(%arg0: i32) -> (i32, i32) {
    %c0_i32 = arith.constant 0 : i32
    %c0_i32_0 = arith.constant 0 : i32
    return %arg0, %c0_i32 : i32, i32
  }
  func.func @transform_1(%arg0: i32) -> (i32, i32) {
    %c0_i32 = arith.constant 0 : i32
    %c0_i32_0 = arith.constant 0 : i32
    %c0_i32_1 = arith.constant 0 : i32
    return %c0_i32, %c0_i32_0 : i32, i32
  }
  func.func @transform_2(%arg0: i32) -> (i32, i32) {
    %c0_i32 = arith.constant 0 : i32
    %c0_i32_0 = arith.constant 0 : i32
    %c0_i32_1 = arith.constant 0 : i32
    return %c0_i32, %c0_i32_0 : i32, i32
  }
  func.func @transform_3(%arg0: i32) -> (i32, i32) {
    %c0_i32 = arith.constant 0 : i32
    %c0_i32_0 = arith.constant 0 : i32
    return %arg0, %c0_i32 : i32, i32
  }
  func.func @transform_4(%arg0: i32) -> (i32, i32) {
    %c0_i32 = arith.constant 0 : i32
    %c0_i32_0 = arith.constant 0 : i32
    return %arg0, %c0_i32 : i32, i32
  }
  func.func @transform_5(%arg0: i32) -> (i32, i32) {
    %c0_i32 = arith.constant 0 : i32
    %c0_i32_0 = arith.constant 0 : i32
    return %arg0, %c0_i32 : i32, i32
  }
  func.func @transform_6(%arg0: i32) -> (i32, i32) {
    %c0_i32 = arith.constant 0 : i32
    %c0_i32_0 = arith.constant 0 : i32
    return %arg0, %c0_i32 : i32, i32
  }
}

module attributes {stable_mosaic.version = 11 : i64} {
  func.func @_multi_tap_conv_kernel(%arg0: i32, %arg1: memref<1x5x9x64xbf16, #tpu.memory_space<vmem>>, %arg2: memref<9x64x32xbf16, #tpu.memory_space<vmem>>, %arg3: memref<1x128xf32, #tpu.memory_space<vmem>>, %arg4: memref<1x32x128xbf16, #tpu.memory_space<vmem>>) attributes {dimension_semantics = [#tpu.dimension_semantics<parallel>], iteration_bounds = array<i64: 2>, scalar_prefetch = 0 : i64, scratch_operands = 0 : i64, tpu.core_type = #tpu.core_type<tc>, window_params = [{transform_indices = @transform_0, window_bounds = array<i64: 1, 5, 9, 64>}, {pipeline_mode = #tpu.pipeline_mode<synchronous>, transform_indices = @transform_1, window_bounds = array<i64: 9, 64, 32>}, {pipeline_mode = #tpu.pipeline_mode<synchronous>, transform_indices = @transform_2, window_bounds = array<i64: 1, 128>}, {transform_indices = @transform_3, window_bounds = array<i64: 1, 32, 128>}]} {
    %cst = arith.constant 0.000000e+00 : f32
    %0 = vector.broadcast %cst : f32 to vector<32x32xf32>
    %c0 = arith.constant 0 : index
    %c0_0 = arith.constant 0 : index
    %c0_1 = arith.constant 0 : index
    %c0_2 = arith.constant 0 : index
    %1 = vector.load %arg1[%c0, %c0_0, %c0_1, %c0_2] : memref<1x5x9x64xbf16, #tpu.memory_space<vmem>>, vector<1x4x8x64xbf16>
    %2 = vector.shape_cast %1 : vector<1x4x8x64xbf16> to vector<4x8x64xbf16>
    %3 = vector.shape_cast %2 : vector<4x8x64xbf16> to vector<32x64xbf16>
    %c0_3 = arith.constant 0 : index
    %c0_4 = arith.constant 0 : index
    %c0_5 = arith.constant 0 : index
    %4 = vector.load %arg2[%c0_3, %c0_4, %c0_5] : memref<9x64x32xbf16, #tpu.memory_space<vmem>>, vector<1x64x32xbf16>
    %5 = vector.shape_cast %4 : vector<1x64x32xbf16> to vector<64x32xbf16>
    %cst_6 = arith.constant dense<0.000000e+00> : vector<32x32xf32>
    %6 = tpu.matmul %3, %5, %cst_6 {dimension_numbers = #tpu.dot_dimension_numbers<[1], [0], [0], [1], [0, 0, 1, 1], [], []>} : vector<32x64xbf16>, vector<64x32xbf16>, vector<32x32xf32> -> vector<32x32xf32>
    %7 = arith.addf %0, %6 : vector<32x32xf32>
    %cst_7 = arith.constant 0.000000e+00 : f32
    %8 = vector.broadcast %cst_7 : f32 to vector<32x32xf32>
    %c0_8 = arith.constant 0 : index
    %c0_9 = arith.constant 0 : index
    %c0_10 = arith.constant 0 : index
    %c0_11 = arith.constant 0 : index
    %9 = vector.load %arg1[%c0_8, %c0_9, %c0_10, %c0_11] : memref<1x5x9x64xbf16, #tpu.memory_space<vmem>>, vector<1x4x8x64xbf16>
    %10 = vector.shape_cast %9 : vector<1x4x8x64xbf16> to vector<4x8x64xbf16>
    %11 = vector.shape_cast %10 : vector<4x8x64xbf16> to vector<32x64xbf16>
    %c1 = arith.constant 1 : index
    %c0_12 = arith.constant 0 : index
    %c0_13 = arith.constant 0 : index
    %12 = vector.load %arg2[%c1, %c0_12, %c0_13] : memref<9x64x32xbf16, #tpu.memory_space<vmem>>, vector<1x64x32xbf16>
    %13 = vector.shape_cast %12 : vector<1x64x32xbf16> to vector<64x32xbf16>
    %cst_14 = arith.constant dense<0.000000e+00> : vector<32x32xf32>
    %14 = tpu.matmul %11, %13, %cst_14 {dimension_numbers = #tpu.dot_dimension_numbers<[1], [0], [0], [1], [0, 0, 1, 1], [], []>} : vector<32x64xbf16>, vector<64x32xbf16>, vector<32x32xf32> -> vector<32x32xf32>
    %15 = arith.addf %8, %14 : vector<32x32xf32>
    %c0_15 = arith.constant 0 : index
    %c0_16 = arith.constant 0 : index
    %c1_17 = arith.constant 1 : index
    %c0_18 = arith.constant 0 : index
    %16 = vector.load %arg1[%c0_15, %c0_16, %c1_17, %c0_18] : memref<1x5x9x64xbf16, #tpu.memory_space<vmem>>, vector<1x4x8x64xbf16>
    %17 = vector.shape_cast %16 : vector<1x4x8x64xbf16> to vector<4x8x64xbf16>
    %18 = vector.shape_cast %17 : vector<4x8x64xbf16> to vector<32x64xbf16>
    %c2 = arith.constant 2 : index
    %c0_19 = arith.constant 0 : index
    %c0_20 = arith.constant 0 : index
    %19 = vector.load %arg2[%c2, %c0_19, %c0_20] : memref<9x64x32xbf16, #tpu.memory_space<vmem>>, vector<1x64x32xbf16>
    %20 = vector.shape_cast %19 : vector<1x64x32xbf16> to vector<64x32xbf16>
    %cst_21 = arith.constant dense<0.000000e+00> : vector<32x32xf32>
    %21 = tpu.matmul %18, %20, %cst_21 {dimension_numbers = #tpu.dot_dimension_numbers<[1], [0], [0], [1], [0, 0, 1, 1], [], []>} : vector<32x64xbf16>, vector<64x32xbf16>, vector<32x32xf32> -> vector<32x32xf32>
    %22 = arith.addf %15, %21 : vector<32x32xf32>
    %cst_22 = arith.constant 0.000000e+00 : f32
    %23 = vector.broadcast %cst_22 : f32 to vector<32x32xf32>
    %c0_23 = arith.constant 0 : index
    %c0_24 = arith.constant 0 : index
    %c0_25 = arith.constant 0 : index
    %c0_26 = arith.constant 0 : index
    %24 = vector.load %arg1[%c0_23, %c0_24, %c0_25, %c0_26] : memref<1x5x9x64xbf16, #tpu.memory_space<vmem>>, vector<1x4x8x64xbf16>
    %25 = vector.shape_cast %24 : vector<1x4x8x64xbf16> to vector<4x8x64xbf16>
    %26 = vector.shape_cast %25 : vector<4x8x64xbf16> to vector<32x64xbf16>
    %c3 = arith.constant 3 : index
    %c0_27 = arith.constant 0 : index
    %c0_28 = arith.constant 0 : index
    %27 = vector.load %arg2[%c3, %c0_27, %c0_28] : memref<9x64x32xbf16, #tpu.memory_space<vmem>>, vector<1x64x32xbf16>
    %28 = vector.shape_cast %27 : vector<1x64x32xbf16> to vector<64x32xbf16>
    %cst_29 = arith.constant dense<0.000000e+00> : vector<32x32xf32>
    %29 = tpu.matmul %26, %28, %cst_29 {dimension_numbers = #tpu.dot_dimension_numbers<[1], [0], [0], [1], [0, 0, 1, 1], [], []>} : vector<32x64xbf16>, vector<64x32xbf16>, vector<32x32xf32> -> vector<32x32xf32>
    %30 = arith.addf %23, %29 : vector<32x32xf32>
    %c0_30 = arith.constant 0 : index
    %c1_31 = arith.constant 1 : index
    %c0_32 = arith.constant 0 : index
    %c0_33 = arith.constant 0 : index
    %31 = vector.load %arg1[%c0_30, %c1_31, %c0_32, %c0_33] : memref<1x5x9x64xbf16, #tpu.memory_space<vmem>>, vector<1x4x8x64xbf16>
    %32 = vector.shape_cast %31 : vector<1x4x8x64xbf16> to vector<4x8x64xbf16>
    %33 = vector.shape_cast %32 : vector<4x8x64xbf16> to vector<32x64xbf16>
    %c4 = arith.constant 4 : index
    %c0_34 = arith.constant 0 : index
    %c0_35 = arith.constant 0 : index
    %34 = vector.load %arg2[%c4, %c0_34, %c0_35] : memref<9x64x32xbf16, #tpu.memory_space<vmem>>, vector<1x64x32xbf16>
    %35 = vector.shape_cast %34 : vector<1x64x32xbf16> to vector<64x32xbf16>
    %cst_36 = arith.constant dense<0.000000e+00> : vector<32x32xf32>
    %36 = tpu.matmul %33, %35, %cst_36 {dimension_numbers = #tpu.dot_dimension_numbers<[1], [0], [0], [1], [0, 0, 1, 1], [], []>} : vector<32x64xbf16>, vector<64x32xbf16>, vector<32x32xf32> -> vector<32x32xf32>
    %37 = arith.addf %30, %36 : vector<32x32xf32>
    %cst_37 = arith.constant 0.000000e+00 : f32
    %38 = vector.broadcast %cst_37 : f32 to vector<32x32xf32>
    %c0_38 = arith.constant 0 : index
    %c0_39 = arith.constant 0 : index
    %c0_40 = arith.constant 0 : index
    %c0_41 = arith.constant 0 : index
    %39 = vector.load %arg1[%c0_38, %c0_39, %c0_40, %c0_41] : memref<1x5x9x64xbf16, #tpu.memory_space<vmem>>, vector<1x4x8x64xbf16>
    %40 = vector.shape_cast %39 : vector<1x4x8x64xbf16> to vector<4x8x64xbf16>
    %41 = vector.shape_cast %40 : vector<4x8x64xbf16> to vector<32x64xbf16>
    %c5 = arith.constant 5 : index
    %c0_42 = arith.constant 0 : index
    %c0_43 = arith.constant 0 : index
    %42 = vector.load %arg2[%c5, %c0_42, %c0_43] : memref<9x64x32xbf16, #tpu.memory_space<vmem>>, vector<1x64x32xbf16>
    %43 = vector.shape_cast %42 : vector<1x64x32xbf16> to vector<64x32xbf16>
    %cst_44 = arith.constant dense<0.000000e+00> : vector<32x32xf32>
    %44 = tpu.matmul %41, %43, %cst_44 {dimension_numbers = #tpu.dot_dimension_numbers<[1], [0], [0], [1], [0, 0, 1, 1], [], []>} : vector<32x64xbf16>, vector<64x32xbf16>, vector<32x32xf32> -> vector<32x32xf32>
    %45 = arith.addf %38, %44 : vector<32x32xf32>
    %c0_45 = arith.constant 0 : index
    %c0_46 = arith.constant 0 : index
    %c1_47 = arith.constant 1 : index
    %c0_48 = arith.constant 0 : index
    %46 = vector.load %arg1[%c0_45, %c0_46, %c1_47, %c0_48] : memref<1x5x9x64xbf16, #tpu.memory_space<vmem>>, vector<1x4x8x64xbf16>
    %47 = vector.shape_cast %46 : vector<1x4x8x64xbf16> to vector<4x8x64xbf16>
    %48 = vector.shape_cast %47 : vector<4x8x64xbf16> to vector<32x64xbf16>
    %c6 = arith.constant 6 : index
    %c0_49 = arith.constant 0 : index
    %c0_50 = arith.constant 0 : index
    %49 = vector.load %arg2[%c6, %c0_49, %c0_50] : memref<9x64x32xbf16, #tpu.memory_space<vmem>>, vector<1x64x32xbf16>
    %50 = vector.shape_cast %49 : vector<1x64x32xbf16> to vector<64x32xbf16>
    %cst_51 = arith.constant dense<0.000000e+00> : vector<32x32xf32>
    %51 = tpu.matmul %48, %50, %cst_51 {dimension_numbers = #tpu.dot_dimension_numbers<[1], [0], [0], [1], [0, 0, 1, 1], [], []>} : vector<32x64xbf16>, vector<64x32xbf16>, vector<32x32xf32> -> vector<32x32xf32>
    %52 = arith.addf %45, %51 : vector<32x32xf32>
    %c0_52 = arith.constant 0 : index
    %c1_53 = arith.constant 1 : index
    %c0_54 = arith.constant 0 : index
    %c0_55 = arith.constant 0 : index
    %53 = vector.load %arg1[%c0_52, %c1_53, %c0_54, %c0_55] : memref<1x5x9x64xbf16, #tpu.memory_space<vmem>>, vector<1x4x8x64xbf16>
    %54 = vector.shape_cast %53 : vector<1x4x8x64xbf16> to vector<4x8x64xbf16>
    %55 = vector.shape_cast %54 : vector<4x8x64xbf16> to vector<32x64xbf16>
    %c7 = arith.constant 7 : index
    %c0_56 = arith.constant 0 : index
    %c0_57 = arith.constant 0 : index
    %56 = vector.load %arg2[%c7, %c0_56, %c0_57] : memref<9x64x32xbf16, #tpu.memory_space<vmem>>, vector<1x64x32xbf16>
    %57 = vector.shape_cast %56 : vector<1x64x32xbf16> to vector<64x32xbf16>
    %cst_58 = arith.constant dense<0.000000e+00> : vector<32x32xf32>
    %58 = tpu.matmul %55, %57, %cst_58 {dimension_numbers = #tpu.dot_dimension_numbers<[1], [0], [0], [1], [0, 0, 1, 1], [], []>} : vector<32x64xbf16>, vector<64x32xbf16>, vector<32x32xf32> -> vector<32x32xf32>
    %59 = arith.addf %52, %58 : vector<32x32xf32>
    %c0_59 = arith.constant 0 : index
    %c1_60 = arith.constant 1 : index
    %c1_61 = arith.constant 1 : index
    %c0_62 = arith.constant 0 : index
    %60 = vector.load %arg1[%c0_59, %c1_60, %c1_61, %c0_62] : memref<1x5x9x64xbf16, #tpu.memory_space<vmem>>, vector<1x4x8x64xbf16>
    %61 = vector.shape_cast %60 : vector<1x4x8x64xbf16> to vector<4x8x64xbf16>
    %62 = vector.shape_cast %61 : vector<4x8x64xbf16> to vector<32x64xbf16>
    %c8 = arith.constant 8 : index
    %c0_63 = arith.constant 0 : index
    %c0_64 = arith.constant 0 : index
    %63 = vector.load %arg2[%c8, %c0_63, %c0_64] : memref<9x64x32xbf16, #tpu.memory_space<vmem>>, vector<1x64x32xbf16>
    %64 = vector.shape_cast %63 : vector<1x64x32xbf16> to vector<64x32xbf16>
    %cst_65 = arith.constant dense<0.000000e+00> : vector<32x32xf32>
    %65 = tpu.matmul %62, %64, %cst_65 {dimension_numbers = #tpu.dot_dimension_numbers<[1], [0], [0], [1], [0, 0, 1, 1], [], []>} : vector<32x64xbf16>, vector<64x32xbf16>, vector<32x32xf32> -> vector<32x32xf32>
    %66 = arith.addf %59, %65 : vector<32x32xf32>
    %67 = tpu.concatenate %7, %22, %37, %66 in 1 : vector<32x32xf32>, vector<32x32xf32>, vector<32x32xf32>, vector<32x32xf32> -> vector<32x128xf32>
    %c0_66 = arith.constant 0 : index
    %c0_67 = arith.constant 0 : index
    %68 = vector.load %arg3[%c0_66, %c0_67] : memref<1x128xf32, #tpu.memory_space<vmem>>, vector<1x128xf32>
    %69 = vector.broadcast %68 : vector<1x128xf32> to vector<32x128xf32>
    %70 = arith.addf %67, %69 : vector<32x128xf32>
    %cst_68 = arith.constant 0.000000e+00 : f32
    %71 = vector.broadcast %cst_68 : f32 to vector<32x128xf32>
    %72 = arith.maximumf %70, %71 : vector<32x128xf32>
    %73 = arith.truncf %72 : vector<32x128xf32> to vector<32x128xbf16>
    %c0_69 = arith.constant 0 : index
    %c0_70 = arith.constant 0 : index
    %c0_71 = arith.constant 0 : index
    %74 = vector.load %arg4[%c0_69, %c0_70, %c0_71] : memref<1x32x128xbf16, #tpu.memory_space<vmem>>, vector<1x32x128xbf16>
    %75 = vector.shape_cast %74 : vector<1x32x128xbf16> to vector<32x128xbf16>
    %76 = vector.shape_cast %73 : vector<32x128xbf16> to vector<1x32x128xbf16>
    tpu.vector_store %arg4[%c0_69, %c0_70, %c0_71], %76 {strides = array<i32>} : memref<1x32x128xbf16, #tpu.memory_space<vmem>>, vector<1x32x128xbf16>,
    return
  }
  func.func @transform_0(%arg0: i32) -> (i32, i32, i32, i32) {
    %c0_i32 = arith.constant 0 : i32
    %c0_i32_0 = arith.constant 0 : i32
    %c0_i32_1 = arith.constant 0 : i32
    %c0_i32_2 = arith.constant 0 : i32
    return %arg0, %c0_i32, %c0_i32_0, %c0_i32_1 : i32, i32, i32, i32
  }
  func.func @transform_1(%arg0: i32) -> (i32, i32, i32) {
    %c0_i32 = arith.constant 0 : i32
    %c0_i32_0 = arith.constant 0 : i32
    %c0_i32_1 = arith.constant 0 : i32
    %c0_i32_2 = arith.constant 0 : i32
    return %c0_i32, %c0_i32_0, %c0_i32_1 : i32, i32, i32
  }
  func.func @transform_2(%arg0: i32) -> (i32, i32) {
    %c0_i32 = arith.constant 0 : i32
    %c0_i32_0 = arith.constant 0 : i32
    %c0_i32_1 = arith.constant 0 : i32
    return %c0_i32, %c0_i32_0 : i32, i32
  }
  func.func @transform_3(%arg0: i32) -> (i32, i32, i32) {
    %c0_i32 = arith.constant 0 : i32
    %c0_i32_0 = arith.constant 0 : i32
    %c0_i32_1 = arith.constant 0 : i32
    return %arg0, %c0_i32, %c0_i32_0 : i32, i32, i32
  }
}

module attributes {stable_mosaic.version = 11 : i64} {
  func.func @_multi_tap_conv_kernel(%arg0: i32, %arg1: memref<1x9x9x32xbf16, #tpu.memory_space<vmem>>, %arg2: memref<9x32x16xbf16, #tpu.memory_space<vmem>>, %arg3: memref<1x64xf32, #tpu.memory_space<vmem>>, %arg4: memref<1x64x64xbf16, #tpu.memory_space<vmem>>) attributes {dimension_semantics = [#tpu.dimension_semantics<parallel>], iteration_bounds = array<i64: 2>, scalar_prefetch = 0 : i64, scratch_operands = 0 : i64, tpu.core_type = #tpu.core_type<tc>, window_params = [{transform_indices = @transform_0, window_bounds = array<i64: 1, 9, 9, 32>}, {pipeline_mode = #tpu.pipeline_mode<synchronous>, transform_indices = @transform_1, window_bounds = array<i64: 9, 32, 16>}, {pipeline_mode = #tpu.pipeline_mode<synchronous>, transform_indices = @transform_2, window_bounds = array<i64: 1, 64>}, {transform_indices = @transform_3, window_bounds = array<i64: 1, 64, 64>}]} {
    %cst = arith.constant 0.000000e+00 : f32
    %0 = vector.broadcast %cst : f32 to vector<64x16xf32>
    %c0 = arith.constant 0 : index
    %c0_0 = arith.constant 0 : index
    %c0_1 = arith.constant 0 : index
    %c0_2 = arith.constant 0 : index
    %1 = vector.load %arg1[%c0, %c0_0, %c0_1, %c0_2] : memref<1x9x9x32xbf16, #tpu.memory_space<vmem>>, vector<1x8x8x32xbf16>
    %2 = vector.shape_cast %1 : vector<1x8x8x32xbf16> to vector<8x8x32xbf16>
    %3 = vector.shape_cast %2 : vector<8x8x32xbf16> to vector<64x32xbf16>
    %c0_3 = arith.constant 0 : index
    %c0_4 = arith.constant 0 : index
    %c0_5 = arith.constant 0 : index
    %4 = vector.load %arg2[%c0_3, %c0_4, %c0_5] : memref<9x32x16xbf16, #tpu.memory_space<vmem>>, vector<1x32x16xbf16>
    %5 = vector.shape_cast %4 : vector<1x32x16xbf16> to vector<32x16xbf16>
    %cst_6 = arith.constant dense<0.000000e+00> : vector<64x16xf32>
    %6 = tpu.matmul %3, %5, %cst_6 {dimension_numbers = #tpu.dot_dimension_numbers<[1], [0], [0], [1], [0, 0, 1, 1], [], []>} : vector<64x32xbf16>, vector<32x16xbf16>, vector<64x16xf32> -> vector<64x16xf32>
    %7 = arith.addf %0, %6 : vector<64x16xf32>
    %cst_7 = arith.constant 0.000000e+00 : f32
    %8 = vector.broadcast %cst_7 : f32 to vector<64x16xf32>
    %c0_8 = arith.constant 0 : index
    %c0_9 = arith.constant 0 : index
    %c0_10 = arith.constant 0 : index
    %c0_11 = arith.constant 0 : index
    %9 = vector.load %arg1[%c0_8, %c0_9, %c0_10, %c0_11] : memref<1x9x9x32xbf16, #tpu.memory_space<vmem>>, vector<1x8x8x32xbf16>
    %10 = vector.shape_cast %9 : vector<1x8x8x32xbf16> to vector<8x8x32xbf16>
    %11 = vector.shape_cast %10 : vector<8x8x32xbf16> to vector<64x32xbf16>
    %c1 = arith.constant 1 : index
    %c0_12 = arith.constant 0 : index
    %c0_13 = arith.constant 0 : index
    %12 = vector.load %arg2[%c1, %c0_12, %c0_13] : memref<9x32x16xbf16, #tpu.memory_space<vmem>>, vector<1x32x16xbf16>
    %13 = vector.shape_cast %12 : vector<1x32x16xbf16> to vector<32x16xbf16>
    %cst_14 = arith.constant dense<0.000000e+00> : vector<64x16xf32>
    %14 = tpu.matmul %11, %13, %cst_14 {dimension_numbers = #tpu.dot_dimension_numbers<[1], [0], [0], [1], [0, 0, 1, 1], [], []>} : vector<64x32xbf16>, vector<32x16xbf16>, vector<64x16xf32> -> vector<64x16xf32>
    %15 = arith.addf %8, %14 : vector<64x16xf32>
    %c0_15 = arith.constant 0 : index
    %c0_16 = arith.constant 0 : index
    %c1_17 = arith.constant 1 : index
    %c0_18 = arith.constant 0 : index
    %16 = vector.load %arg1[%c0_15, %c0_16, %c1_17, %c0_18] : memref<1x9x9x32xbf16, #tpu.memory_space<vmem>>, vector<1x8x8x32xbf16>
    %17 = vector.shape_cast %16 : vector<1x8x8x32xbf16> to vector<8x8x32xbf16>
    %18 = vector.shape_cast %17 : vector<8x8x32xbf16> to vector<64x32xbf16>
    %c2 = arith.constant 2 : index
    %c0_19 = arith.constant 0 : index
    %c0_20 = arith.constant 0 : index
    %19 = vector.load %arg2[%c2, %c0_19, %c0_20] : memref<9x32x16xbf16, #tpu.memory_space<vmem>>, vector<1x32x16xbf16>
    %20 = vector.shape_cast %19 : vector<1x32x16xbf16> to vector<32x16xbf16>
    %cst_21 = arith.constant dense<0.000000e+00> : vector<64x16xf32>
    %21 = tpu.matmul %18, %20, %cst_21 {dimension_numbers = #tpu.dot_dimension_numbers<[1], [0], [0], [1], [0, 0, 1, 1], [], []>} : vector<64x32xbf16>, vector<32x16xbf16>, vector<64x16xf32> -> vector<64x16xf32>
    %22 = arith.addf %15, %21 : vector<64x16xf32>
    %cst_22 = arith.constant 0.000000e+00 : f32
    %23 = vector.broadcast %cst_22 : f32 to vector<64x16xf32>
    %c0_23 = arith.constant 0 : index
    %c0_24 = arith.constant 0 : index
    %c0_25 = arith.constant 0 : index
    %c0_26 = arith.constant 0 : index
    %24 = vector.load %arg1[%c0_23, %c0_24, %c0_25, %c0_26] : memref<1x9x9x32xbf16, #tpu.memory_space<vmem>>, vector<1x8x8x32xbf16>
    %25 = vector.shape_cast %24 : vector<1x8x8x32xbf16> to vector<8x8x32xbf16>
    %26 = vector.shape_cast %25 : vector<8x8x32xbf16> to vector<64x32xbf16>
    %c3 = arith.constant 3 : index
    %c0_27 = arith.constant 0 : index
    %c0_28 = arith.constant 0 : index
    %27 = vector.load %arg2[%c3, %c0_27, %c0_28] : memref<9x32x16xbf16, #tpu.memory_space<vmem>>, vector<1x32x16xbf16>
    %28 = vector.shape_cast %27 : vector<1x32x16xbf16> to vector<32x16xbf16>
    %cst_29 = arith.constant dense<0.000000e+00> : vector<64x16xf32>
    %29 = tpu.matmul %26, %28, %cst_29 {dimension_numbers = #tpu.dot_dimension_numbers<[1], [0], [0], [1], [0, 0, 1, 1], [], []>} : vector<64x32xbf16>, vector<32x16xbf16>, vector<64x16xf32> -> vector<64x16xf32>
    %30 = arith.addf %23, %29 : vector<64x16xf32>
    %c0_30 = arith.constant 0 : index
    %c1_31 = arith.constant 1 : index
    %c0_32 = arith.constant 0 : index
    %c0_33 = arith.constant 0 : index
    %31 = vector.load %arg1[%c0_30, %c1_31, %c0_32, %c0_33] : memref<1x9x9x32xbf16, #tpu.memory_space<vmem>>, vector<1x8x8x32xbf16>
    %32 = vector.shape_cast %31 : vector<1x8x8x32xbf16> to vector<8x8x32xbf16>
    %33 = vector.shape_cast %32 : vector<8x8x32xbf16> to vector<64x32xbf16>
    %c4 = arith.constant 4 : index
    %c0_34 = arith.constant 0 : index
    %c0_35 = arith.constant 0 : index
    %34 = vector.load %arg2[%c4, %c0_34, %c0_35] : memref<9x32x16xbf16, #tpu.memory_space<vmem>>, vector<1x32x16xbf16>
    %35 = vector.shape_cast %34 : vector<1x32x16xbf16> to vector<32x16xbf16>
    %cst_36 = arith.constant dense<0.000000e+00> : vector<64x16xf32>
    %36 = tpu.matmul %33, %35, %cst_36 {dimension_numbers = #tpu.dot_dimension_numbers<[1], [0], [0], [1], [0, 0, 1, 1], [], []>} : vector<64x32xbf16>, vector<32x16xbf16>, vector<64x16xf32> -> vector<64x16xf32>
    %37 = arith.addf %30, %36 : vector<64x16xf32>
    %cst_37 = arith.constant 0.000000e+00 : f32
    %38 = vector.broadcast %cst_37 : f32 to vector<64x16xf32>
    %c0_38 = arith.constant 0 : index
    %c0_39 = arith.constant 0 : index
    %c0_40 = arith.constant 0 : index
    %c0_41 = arith.constant 0 : index
    %39 = vector.load %arg1[%c0_38, %c0_39, %c0_40, %c0_41] : memref<1x9x9x32xbf16, #tpu.memory_space<vmem>>, vector<1x8x8x32xbf16>
    %40 = vector.shape_cast %39 : vector<1x8x8x32xbf16> to vector<8x8x32xbf16>
    %41 = vector.shape_cast %40 : vector<8x8x32xbf16> to vector<64x32xbf16>
    %c5 = arith.constant 5 : index
    %c0_42 = arith.constant 0 : index
    %c0_43 = arith.constant 0 : index
    %42 = vector.load %arg2[%c5, %c0_42, %c0_43] : memref<9x32x16xbf16, #tpu.memory_space<vmem>>, vector<1x32x16xbf16>
    %43 = vector.shape_cast %42 : vector<1x32x16xbf16> to vector<32x16xbf16>
    %cst_44 = arith.constant dense<0.000000e+00> : vector<64x16xf32>
    %44 = tpu.matmul %41, %43, %cst_44 {dimension_numbers = #tpu.dot_dimension_numbers<[1], [0], [0], [1], [0, 0, 1, 1], [], []>} : vector<64x32xbf16>, vector<32x16xbf16>, vector<64x16xf32> -> vector<64x16xf32>
    %45 = arith.addf %38, %44 : vector<64x16xf32>
    %c0_45 = arith.constant 0 : index
    %c0_46 = arith.constant 0 : index
    %c1_47 = arith.constant 1 : index
    %c0_48 = arith.constant 0 : index
    %46 = vector.load %arg1[%c0_45, %c0_46, %c1_47, %c0_48] : memref<1x9x9x32xbf16, #tpu.memory_space<vmem>>, vector<1x8x8x32xbf16>
    %47 = vector.shape_cast %46 : vector<1x8x8x32xbf16> to vector<8x8x32xbf16>
    %48 = vector.shape_cast %47 : vector<8x8x32xbf16> to vector<64x32xbf16>
    %c6 = arith.constant 6 : index
    %c0_49 = arith.constant 0 : index
    %c0_50 = arith.constant 0 : index
    %49 = vector.load %arg2[%c6, %c0_49, %c0_50] : memref<9x32x16xbf16, #tpu.memory_space<vmem>>, vector<1x32x16xbf16>
    %50 = vector.shape_cast %49 : vector<1x32x16xbf16> to vector<32x16xbf16>
    %cst_51 = arith.constant dense<0.000000e+00> : vector<64x16xf32>
    %51 = tpu.matmul %48, %50, %cst_51 {dimension_numbers = #tpu.dot_dimension_numbers<[1], [0], [0], [1], [0, 0, 1, 1], [], []>} : vector<64x32xbf16>, vector<32x16xbf16>, vector<64x16xf32> -> vector<64x16xf32>
    %52 = arith.addf %45, %51 : vector<64x16xf32>
    %c0_52 = arith.constant 0 : index
    %c1_53 = arith.constant 1 : index
    %c0_54 = arith.constant 0 : index
    %c0_55 = arith.constant 0 : index
    %53 = vector.load %arg1[%c0_52, %c1_53, %c0_54, %c0_55] : memref<1x9x9x32xbf16, #tpu.memory_space<vmem>>, vector<1x8x8x32xbf16>
    %54 = vector.shape_cast %53 : vector<1x8x8x32xbf16> to vector<8x8x32xbf16>
    %55 = vector.shape_cast %54 : vector<8x8x32xbf16> to vector<64x32xbf16>
    %c7 = arith.constant 7 : index
    %c0_56 = arith.constant 0 : index
    %c0_57 = arith.constant 0 : index
    %56 = vector.load %arg2[%c7, %c0_56, %c0_57] : memref<9x32x16xbf16, #tpu.memory_space<vmem>>, vector<1x32x16xbf16>
    %57 = vector.shape_cast %56 : vector<1x32x16xbf16> to vector<32x16xbf16>
    %cst_58 = arith.constant dense<0.000000e+00> : vector<64x16xf32>
    %58 = tpu.matmul %55, %57, %cst_58 {dimension_numbers = #tpu.dot_dimension_numbers<[1], [0], [0], [1], [0, 0, 1, 1], [], []>} : vector<64x32xbf16>, vector<32x16xbf16>, vector<64x16xf32> -> vector<64x16xf32>
    %59 = arith.addf %52, %58 : vector<64x16xf32>
    %c0_59 = arith.constant 0 : index
    %c1_60 = arith.constant 1 : index
    %c1_61 = arith.constant 1 : index
    %c0_62 = arith.constant 0 : index
    %60 = vector.load %arg1[%c0_59, %c1_60, %c1_61, %c0_62] : memref<1x9x9x32xbf16, #tpu.memory_space<vmem>>, vector<1x8x8x32xbf16>
    %61 = vector.shape_cast %60 : vector<1x8x8x32xbf16> to vector<8x8x32xbf16>
    %62 = vector.shape_cast %61 : vector<8x8x32xbf16> to vector<64x32xbf16>
    %c8 = arith.constant 8 : index
    %c0_63 = arith.constant 0 : index
    %c0_64 = arith.constant 0 : index
    %63 = vector.load %arg2[%c8, %c0_63, %c0_64] : memref<9x32x16xbf16, #tpu.memory_space<vmem>>, vector<1x32x16xbf16>
    %64 = vector.shape_cast %63 : vector<1x32x16xbf16> to vector<32x16xbf16>
    %cst_65 = arith.constant dense<0.000000e+00> : vector<64x16xf32>
    %65 = tpu.matmul %62, %64, %cst_65 {dimension_numbers = #tpu.dot_dimension_numbers<[1], [0], [0], [1], [0, 0, 1, 1], [], []>} : vector<64x32xbf16>, vector<32x16xbf16>, vector<64x16xf32> -> vector<64x16xf32>
    %66 = arith.addf %59, %65 : vector<64x16xf32>
    %67 = tpu.concatenate %7, %22, %37, %66 in 1 : vector<64x16xf32>, vector<64x16xf32>, vector<64x16xf32>, vector<64x16xf32> -> vector<64x64xf32>
    %c0_66 = arith.constant 0 : index
    %c0_67 = arith.constant 0 : index
    %68 = vector.load %arg3[%c0_66, %c0_67] : memref<1x64xf32, #tpu.memory_space<vmem>>, vector<1x64xf32>
    %69 = vector.broadcast %68 : vector<1x64xf32> to vector<64x64xf32>
    %70 = arith.addf %67, %69 : vector<64x64xf32>
    %71 = arith.truncf %70 : vector<64x64xf32> to vector<64x64xbf16>
    %c0_68 = arith.constant 0 : index
    %c0_69 = arith.constant 0 : index
    %c0_70 = arith.constant 0 : index
    %72 = vector.load %arg4[%c0_68, %c0_69, %c0_70] : memref<1x64x64xbf16, #tpu.memory_space<vmem>>, vector<1x64x64xbf16>
    %73 = vector.shape_cast %72 : vector<1x64x64xbf16> to vector<64x64xbf16>
    %74 = vector.shape_cast %71 : vector<64x64xbf16> to vector<1x64x64xbf16>
    tpu.vector_store %arg4[%c0_68, %c0_69, %c0_70], %74 {strides = array<i32>} : memref<1x64x64xbf16, #tpu.memory_space<vmem>>, vector<1x64x64xbf16>,
    return
  }
  func.func @transform_0(%arg0: i32) -> (i32, i32, i32, i32) {
    %c0_i32 = arith.constant 0 : i32
    %c0_i32_0 = arith.constant 0 : i32
    %c0_i32_1 = arith.constant 0 : i32
    %c0_i32_2 = arith.constant 0 : i32
    return %arg0, %c0_i32, %c0_i32_0, %c0_i32_1 : i32, i32, i32, i32
  }
  func.func @transform_1(%arg0: i32) -> (i32, i32, i32) {
    %c0_i32 = arith.constant 0 : i32
    %c0_i32_0 = arith.constant 0 : i32
    %c0_i32_1 = arith.constant 0 : i32
    %c0_i32_2 = arith.constant 0 : i32
    return %c0_i32, %c0_i32_0, %c0_i32_1 : i32, i32, i32
  }
  func.func @transform_2(%arg0: i32) -> (i32, i32) {
    %c0_i32 = arith.constant 0 : i32
    %c0_i32_0 = arith.constant 0 : i32
    %c0_i32_1 = arith.constant 0 : i32
    return %c0_i32, %c0_i32_0 : i32, i32
  }
  func.func @transform_3(%arg0: i32) -> (i32, i32, i32) {
    %c0_i32 = arith.constant 0 : i32
    %c0_i32_0 = arith.constant 0 : i32
    %c0_i32_1 = arith.constant 0 : i32
    return %arg0, %c0_i32, %c0_i32_0 : i32, i32, i32
  }
}

module attributes {stable_mosaic.version = 11 : i64} {
  func.func @_multi_tap_conv_kernel(%arg0: i32, %arg1: memref<1x18x18x16xbf16, #tpu.memory_space<vmem>>, %arg2: memref<9x16x3xbf16, #tpu.memory_space<vmem>>, %arg3: memref<1x3xf32, #tpu.memory_space<vmem>>, %arg4: memref<1x256x3xf32, #tpu.memory_space<vmem>>) attributes {dimension_semantics = [#tpu.dimension_semantics<parallel>], iteration_bounds = array<i64: 2>, scalar_prefetch = 0 : i64, scratch_operands = 0 : i64, tpu.core_type = #tpu.core_type<tc>, window_params = [{transform_indices = @transform_0, window_bounds = array<i64: 1, 18, 18, 16>}, {pipeline_mode = #tpu.pipeline_mode<synchronous>, transform_indices = @transform_1, window_bounds = array<i64: 9, 16, 3>}, {pipeline_mode = #tpu.pipeline_mode<synchronous>, transform_indices = @transform_2, window_bounds = array<i64: 1, 3>}, {transform_indices = @transform_3, window_bounds = array<i64: 1, 256, 3>}]} {
    %cst = arith.constant 0.000000e+00 : f32
    %0 = vector.broadcast %cst : f32 to vector<256x3xf32>
    %c0 = arith.constant 0 : index
    %c0_0 = arith.constant 0 : index
    %c0_1 = arith.constant 0 : index
    %c0_2 = arith.constant 0 : index
    %1 = vector.load %arg1[%c0, %c0_0, %c0_1, %c0_2] : memref<1x18x18x16xbf16, #tpu.memory_space<vmem>>, vector<1x16x16x16xbf16>
    %2 = vector.shape_cast %1 : vector<1x16x16x16xbf16> to vector<16x16x16xbf16>
    %3 = vector.shape_cast %2 : vector<16x16x16xbf16> to vector<256x16xbf16>
    %c0_3 = arith.constant 0 : index
    %c0_4 = arith.constant 0 : index
    %c0_5 = arith.constant 0 : index
    %4 = vector.load %arg2[%c0_3, %c0_4, %c0_5] : memref<9x16x3xbf16, #tpu.memory_space<vmem>>, vector<1x16x3xbf16>
    %5 = vector.shape_cast %4 : vector<1x16x3xbf16> to vector<16x3xbf16>
    %cst_6 = arith.constant dense<0.000000e+00> : vector<256x3xf32>
    %6 = tpu.matmul %3, %5, %cst_6 {dimension_numbers = #tpu.dot_dimension_numbers<[1], [0], [0], [1], [0, 0, 1, 1], [], []>} : vector<256x16xbf16>, vector<16x3xbf16>, vector<256x3xf32> -> vector<256x3xf32>
    %7 = arith.addf %0, %6 : vector<256x3xf32>
    %c0_7 = arith.constant 0 : index
    %c0_8 = arith.constant 0 : index
    %c1 = arith.constant 1 : index
    %c0_9 = arith.constant 0 : index
    %8 = vector.load %arg1[%c0_7, %c0_8, %c1, %c0_9] : memref<1x18x18x16xbf16, #tpu.memory_space<vmem>>, vector<1x16x16x16xbf16>
    %9 = vector.shape_cast %8 : vector<1x16x16x16xbf16> to vector<16x16x16xbf16>
    %10 = vector.shape_cast %9 : vector<16x16x16xbf16> to vector<256x16xbf16>
    %c1_10 = arith.constant 1 : index
    %c0_11 = arith.constant 0 : index
    %c0_12 = arith.constant 0 : index
    %11 = vector.load %arg2[%c1_10, %c0_11, %c0_12] : memref<9x16x3xbf16, #tpu.memory_space<vmem>>, vector<1x16x3xbf16>
    %12 = vector.shape_cast %11 : vector<1x16x3xbf16> to vector<16x3xbf16>
    %cst_13 = arith.constant dense<0.000000e+00> : vector<256x3xf32>
    %13 = tpu.matmul %10, %12, %cst_13 {dimension_numbers = #tpu.dot_dimension_numbers<[1], [0], [0], [1], [0, 0, 1, 1], [], []>} : vector<256x16xbf16>, vector<16x3xbf16>, vector<256x3xf32> -> vector<256x3xf32>
    %14 = arith.addf %7, %13 : vector<256x3xf32>
    %c0_14 = arith.constant 0 : index
    %c0_15 = arith.constant 0 : index
    %c2 = arith.constant 2 : index
    %c0_16 = arith.constant 0 : index
    %15 = vector.load %arg1[%c0_14, %c0_15, %c2, %c0_16] : memref<1x18x18x16xbf16, #tpu.memory_space<vmem>>, vector<1x16x16x16xbf16>
    %16 = vector.shape_cast %15 : vector<1x16x16x16xbf16> to vector<16x16x16xbf16>
    %17 = vector.shape_cast %16 : vector<16x16x16xbf16> to vector<256x16xbf16>
    %c2_17 = arith.constant 2 : index
    %c0_18 = arith.constant 0 : index
    %c0_19 = arith.constant 0 : index
    %18 = vector.load %arg2[%c2_17, %c0_18, %c0_19] : memref<9x16x3xbf16, #tpu.memory_space<vmem>>, vector<1x16x3xbf16>
    %19 = vector.shape_cast %18 : vector<1x16x3xbf16> to vector<16x3xbf16>
    %cst_20 = arith.constant dense<0.000000e+00> : vector<256x3xf32>
    %20 = tpu.matmul %17, %19, %cst_20 {dimension_numbers = #tpu.dot_dimension_numbers<[1], [0], [0], [1], [0, 0, 1, 1], [], []>} : vector<256x16xbf16>, vector<16x3xbf16>, vector<256x3xf32> -> vector<256x3xf32>
    %21 = arith.addf %14, %20 : vector<256x3xf32>
    %c0_21 = arith.constant 0 : index
    %c1_22 = arith.constant 1 : index
    %c0_23 = arith.constant 0 : index
    %c0_24 = arith.constant 0 : index
    %22 = vector.load %arg1[%c0_21, %c1_22, %c0_23, %c0_24] : memref<1x18x18x16xbf16, #tpu.memory_space<vmem>>, vector<1x16x16x16xbf16>
    %23 = vector.shape_cast %22 : vector<1x16x16x16xbf16> to vector<16x16x16xbf16>
    %24 = vector.shape_cast %23 : vector<16x16x16xbf16> to vector<256x16xbf16>
    %c3 = arith.constant 3 : index
    %c0_25 = arith.constant 0 : index
    %c0_26 = arith.constant 0 : index
    %25 = vector.load %arg2[%c3, %c0_25, %c0_26] : memref<9x16x3xbf16, #tpu.memory_space<vmem>>, vector<1x16x3xbf16>
    %26 = vector.shape_cast %25 : vector<1x16x3xbf16> to vector<16x3xbf16>
    %cst_27 = arith.constant dense<0.000000e+00> : vector<256x3xf32>
    %27 = tpu.matmul %24, %26, %cst_27 {dimension_numbers = #tpu.dot_dimension_numbers<[1], [0], [0], [1], [0, 0, 1, 1], [], []>} : vector<256x16xbf16>, vector<16x3xbf16>, vector<256x3xf32> -> vector<256x3xf32>
    %28 = arith.addf %21, %27 : vector<256x3xf32>
    %c0_28 = arith.constant 0 : index
    %c1_29 = arith.constant 1 : index
    %c1_30 = arith.constant 1 : index
    %c0_31 = arith.constant 0 : index
    %29 = vector.load %arg1[%c0_28, %c1_29, %c1_30, %c0_31] : memref<1x18x18x16xbf16, #tpu.memory_space<vmem>>, vector<1x16x16x16xbf16>
    %30 = vector.shape_cast %29 : vector<1x16x16x16xbf16> to vector<16x16x16xbf16>
    %31 = vector.shape_cast %30 : vector<16x16x16xbf16> to vector<256x16xbf16>
    %c4 = arith.constant 4 : index
    %c0_32 = arith.constant 0 : index
    %c0_33 = arith.constant 0 : index
    %32 = vector.load %arg2[%c4, %c0_32, %c0_33] : memref<9x16x3xbf16, #tpu.memory_space<vmem>>, vector<1x16x3xbf16>
    %33 = vector.shape_cast %32 : vector<1x16x3xbf16> to vector<16x3xbf16>
    %cst_34 = arith.constant dense<0.000000e+00> : vector<256x3xf32>
    %34 = tpu.matmul %31, %33, %cst_34 {dimension_numbers = #tpu.dot_dimension_numbers<[1], [0], [0], [1], [0, 0, 1, 1], [], []>} : vector<256x16xbf16>, vector<16x3xbf16>, vector<256x3xf32> -> vector<256x3xf32>
    %35 = arith.addf %28, %34 : vector<256x3xf32>
    %c0_35 = arith.constant 0 : index
    %c1_36 = arith.constant 1 : index
    %c2_37 = arith.constant 2 : index
    %c0_38 = arith.constant 0 : index
    %36 = vector.load %arg1[%c0_35, %c1_36, %c2_37, %c0_38] : memref<1x18x18x16xbf16, #tpu.memory_space<vmem>>, vector<1x16x16x16xbf16>
    %37 = vector.shape_cast %36 : vector<1x16x16x16xbf16> to vector<16x16x16xbf16>
    %38 = vector.shape_cast %37 : vector<16x16x16xbf16> to vector<256x16xbf16>
    %c5 = arith.constant 5 : index
    %c0_39 = arith.constant 0 : index
    %c0_40 = arith.constant 0 : index
    %39 = vector.load %arg2[%c5, %c0_39, %c0_40] : memref<9x16x3xbf16, #tpu.memory_space<vmem>>, vector<1x16x3xbf16>
    %40 = vector.shape_cast %39 : vector<1x16x3xbf16> to vector<16x3xbf16>
    %cst_41 = arith.constant dense<0.000000e+00> : vector<256x3xf32>
    %41 = tpu.matmul %38, %40, %cst_41 {dimension_numbers = #tpu.dot_dimension_numbers<[1], [0], [0], [1], [0, 0, 1, 1], [], []>} : vector<256x16xbf16>, vector<16x3xbf16>, vector<256x3xf32> -> vector<256x3xf32>
    %42 = arith.addf %35, %41 : vector<256x3xf32>
    %c0_42 = arith.constant 0 : index
    %c2_43 = arith.constant 2 : index
    %c0_44 = arith.constant 0 : index
    %c0_45 = arith.constant 0 : index
    %43 = vector.load %arg1[%c0_42, %c2_43, %c0_44, %c0_45] : memref<1x18x18x16xbf16, #tpu.memory_space<vmem>>, vector<1x16x16x16xbf16>
    %44 = vector.shape_cast %43 : vector<1x16x16x16xbf16> to vector<16x16x16xbf16>
    %45 = vector.shape_cast %44 : vector<16x16x16xbf16> to vector<256x16xbf16>
    %c6 = arith.constant 6 : index
    %c0_46 = arith.constant 0 : index
    %c0_47 = arith.constant 0 : index
    %46 = vector.load %arg2[%c6, %c0_46, %c0_47] : memref<9x16x3xbf16, #tpu.memory_space<vmem>>, vector<1x16x3xbf16>
    %47 = vector.shape_cast %46 : vector<1x16x3xbf16> to vector<16x3xbf16>
    %cst_48 = arith.constant dense<0.000000e+00> : vector<256x3xf32>
    %48 = tpu.matmul %45, %47, %cst_48 {dimension_numbers = #tpu.dot_dimension_numbers<[1], [0], [0], [1], [0, 0, 1, 1], [], []>} : vector<256x16xbf16>, vector<16x3xbf16>, vector<256x3xf32> -> vector<256x3xf32>
    %49 = arith.addf %42, %48 : vector<256x3xf32>
    %c0_49 = arith.constant 0 : index
    %c2_50 = arith.constant 2 : index
    %c1_51 = arith.constant 1 : index
    %c0_52 = arith.constant 0 : index
    %50 = vector.load %arg1[%c0_49, %c2_50, %c1_51, %c0_52] : memref<1x18x18x16xbf16, #tpu.memory_space<vmem>>, vector<1x16x16x16xbf16>
    %51 = vector.shape_cast %50 : vector<1x16x16x16xbf16> to vector<16x16x16xbf16>
    %52 = vector.shape_cast %51 : vector<16x16x16xbf16> to vector<256x16xbf16>
    %c7 = arith.constant 7 : index
    %c0_53 = arith.constant 0 : index
    %c0_54 = arith.constant 0 : index
    %53 = vector.load %arg2[%c7, %c0_53, %c0_54] : memref<9x16x3xbf16, #tpu.memory_space<vmem>>, vector<1x16x3xbf16>
    %54 = vector.shape_cast %53 : vector<1x16x3xbf16> to vector<16x3xbf16>
    %cst_55 = arith.constant dense<0.000000e+00> : vector<256x3xf32>
    %55 = tpu.matmul %52, %54, %cst_55 {dimension_numbers = #tpu.dot_dimension_numbers<[1], [0], [0], [1], [0, 0, 1, 1], [], []>} : vector<256x16xbf16>, vector<16x3xbf16>, vector<256x3xf32> -> vector<256x3xf32>
    %56 = arith.addf %49, %55 : vector<256x3xf32>
    %c0_56 = arith.constant 0 : index
    %c2_57 = arith.constant 2 : index
    %c2_58 = arith.constant 2 : index
    %c0_59 = arith.constant 0 : index
    %57 = vector.load %arg1[%c0_56, %c2_57, %c2_58, %c0_59] : memref<1x18x18x16xbf16, #tpu.memory_space<vmem>>, vector<1x16x16x16xbf16>
    %58 = vector.shape_cast %57 : vector<1x16x16x16xbf16> to vector<16x16x16xbf16>
    %59 = vector.shape_cast %58 : vector<16x16x16xbf16> to vector<256x16xbf16>
    %c8 = arith.constant 8 : index
    %c0_60 = arith.constant 0 : index
    %c0_61 = arith.constant 0 : index
    %60 = vector.load %arg2[%c8, %c0_60, %c0_61] : memref<9x16x3xbf16, #tpu.memory_space<vmem>>, vector<1x16x3xbf16>
    %61 = vector.shape_cast %60 : vector<1x16x3xbf16> to vector<16x3xbf16>
    %cst_62 = arith.constant dense<0.000000e+00> : vector<256x3xf32>
    %62 = tpu.matmul %59, %61, %cst_62 {dimension_numbers = #tpu.dot_dimension_numbers<[1], [0], [0], [1], [0, 0, 1, 1], [], []>} : vector<256x16xbf16>, vector<16x3xbf16>, vector<256x3xf32> -> vector<256x3xf32>
    %63 = arith.addf %56, %62 : vector<256x3xf32>
    %c0_63 = arith.constant 0 : index
    %c0_64 = arith.constant 0 : index
    %64 = vector.load %arg3[%c0_63, %c0_64] : memref<1x3xf32, #tpu.memory_space<vmem>>, vector<1x3xf32>
    %65 = vector.broadcast %64 : vector<1x3xf32> to vector<256x3xf32>
    %66 = arith.addf %63, %65 : vector<256x3xf32>
    %c0_65 = arith.constant 0 : index
    %c0_66 = arith.constant 0 : index
    %c0_67 = arith.constant 0 : index
    %67 = vector.load %arg4[%c0_65, %c0_66, %c0_67] : memref<1x256x3xf32, #tpu.memory_space<vmem>>, vector<1x256x3xf32>
    %68 = vector.shape_cast %67 : vector<1x256x3xf32> to vector<256x3xf32>
    %69 = vector.shape_cast %66 : vector<256x3xf32> to vector<1x256x3xf32>
    tpu.vector_store %arg4[%c0_65, %c0_66, %c0_67], %69 {strides = array<i32>} : memref<1x256x3xf32, #tpu.memory_space<vmem>>, vector<1x256x3xf32>,
    return
  }
  func.func @transform_0(%arg0: i32) -> (i32, i32, i32, i32) {
    %c0_i32 = arith.constant 0 : i32
    %c0_i32_0 = arith.constant 0 : i32
    %c0_i32_1 = arith.constant 0 : i32
    %c0_i32_2 = arith.constant 0 : i32
    return %arg0, %c0_i32, %c0_i32_0, %c0_i32_1 : i32, i32, i32, i32
  }
  func.func @transform_1(%arg0: i32) -> (i32, i32, i32) {
    %c0_i32 = arith.constant 0 : i32
    %c0_i32_0 = arith.constant 0 : i32
    %c0_i32_1 = arith.constant 0 : i32
    %c0_i32_2 = arith.constant 0 : i32
    return %c0_i32, %c0_i32_0, %c0_i32_1 : i32, i32, i32
  }
  func.func @transform_2(%arg0: i32) -> (i32, i32) {
    %c0_i32 = arith.constant 0 : i32
    %c0_i32_0 = arith.constant 0 : i32
    %c0_i32_1 = arith.constant 0 : i32
    return %c0_i32, %c0_i32_0 : i32, i32
  }
  func.func @transform_3(%arg0: i32) -> (i32, i32, i32) {
    %c0_i32 = arith.constant 0 : i32
    %c0_i32_0 = arith.constant 0 : i32
    %c0_i32_1 = arith.constant 0 : i32
    return %arg0, %c0_i32, %c0_i32_0 : i32, i32, i32
  }
}

</mosaic_0001>

<bundles_post_ra>
// kernel: forward.9
= control target key start
LH: loop header
LB: loop body
LE: loop exit
PB: predicated region body
PF: predicated region fallthrough
CT: control target
= control target key end

     0   :  { %s974_s12 = smov 0   ;;  %s1138_s0 = inlined_call_operand.vmem [shape: bf16[2,16,16,3], index: 0, kind: input, shape index: {}]   ;;  %s1139_s1 = inlined_call_operand.vmem [shape: bf16[1,3,3], index: 1, kind: input, shape index: {}]   ;;  %s1140_s2 = inlined_call_operand.vmem [shape: f32[1,3], index: 2, kind: input, shape index: {}]   ;;  %s1141_s3 = inlined_call_operand.vmem [shape: bf16[2,256,3], index: 3, kind: output, shape index: {}]  }
   0x1 LB: > { %s757_s13 = sadd.s32 4294967295, %s951_s12   ;;  %p761_p0 = scmp.ge.s32.totalorder %s951_s12, 1  ;;  %s951_s12 = sphi %s974_s12, %s13_s12  }
   0x2   : > { %p137_p1 = scmp.lt.s32.totalorder %s951_s12, 3 }
   0x4   : > { %p138_p2 = pnand %p761_p0, %p137_p1 }
   0x5   : > { %v204_v0 = vld [vmem:[%s1139_s1] sm:$0x3] (!%p138_p2)  ;;  %vm341_vm0 = vcmask (!%p138_p2), 1040384   ;;  %vm342_vm1 = vcmask (!%p138_p2), 1041408   ;;  %p161_p3 = scmp.lt.s32.totalorder (!%p138_p2), %s757_s13, 1  ;;  %v953_v1 = vmov (!%p138_p2), 65535  }
   0x6   : > { %141 = sbr.rel (%p138_p2) target bundleno = 265 (0x109), region = 32  ;;  %v343_v2 = vsel (!%p138_p2), %vm341_vm0, 4294967295, %v953_v1  ;;  %vm292_vm2 = vcmask (!%p138_p2), 23552   ;;  %v1030_v21 = vld [vmem:[%s1140_s2] ss:$0 sm:$0xff] (!%p138_p2)  ;;  %vm669_vm3 = vcmask (!%p138_p2), 19456  }
   0x7   : > { %v344_v3 = vsel (!%p138_p2), %vm342_vm1, %v343_v2, 0 }
   0x8   : > { %v346_v4 = vand.u32 (!%p138_p2), %v344_v3, %v204_v0 }
   0xa   : > { %884 = vmatprep.subr.bf16.mxu0 (!%p138_p2), %v346_v4  ;;  %918 = vmatprep.subr.bf16.mxu1 (!%p138_p2), %v346_v4 }
   0xb   : > { %885 = vmatpush3.bf16.msra.mxu0 (!%p138_p2), %v346_v4  ;;  %919 = vmatpush3.bf16.msra.mxu1 (!%p138_p2), %v346_v4 }
   0xd   : > { %s1143_s13 = smov (!%p161_p3, %s757_s13), 1 }
   0xe   : > { %s833_s16 = sshll.u32 %s1143_s13, 7 }
   0xf   : > { %s993_s19 = scalar_lea.vmem %s1138_s0, %s833_s16  ;;  %s1042_s24 = scalar_lea.vmem %s1141_s3, %s833_s16 }
  0x10   : > { %v929_v5 = vld [vmem:[%s993_s19] sm:$0xff]   ;;  %v931_v7 = vld [vmem:[%s993_s19 + $0x8] sm:$0xff]   ;;  %v933_v9 = vld [vmem:[%s993_s19 + $0x10] sm:$0xff]  }
  0x11   : > { %v930_v6 = vld [vmem:[%s993_s19 + $0x40] sm:$0xff]   ;;  %886 = vmatprep.mubr.msk.bf16.mxu0 %vm292_vm2, %v929_v5  ;;  %v932_v8 = vld [vmem:[%s993_s19 + $0x48] sm:$0xff]   ;;  %v934_v10 = vld [vmem:[%s993_s19 + $0x50] sm:$0xff]  }
  0x12   : > { %902 = vmatprep.mubr.msk.bf16.mxu1 %vm292_vm2, %v930_v6  ;;  %887 = vmatmul.mubr.msk.bf16.vlgmr.msra.gmra.mrb[0].mxu0 %vm292_vm2, %v931_v7  ;;  %v935_v11 = vld [vmem:[%s993_s19 + $0x18] sm:$0xff]   ;;  %v937_v13 = vld [vmem:[%s993_s19 + $0x20] sm:$0xff]   ;;  %v939_v15 = vld [vmem:[%s993_s19 + $0x28] sm:$0xff]  }
  0x13   : > { %903 = vmatmul.mubr.msk.bf16.vlgmr.msra.gmra.mrb[0].mxu1 %vm292_vm2, %v932_v8  ;;  %890 = vmatprep.mubr.msk.bf16.mxu0 %vm292_vm2, %v933_v9  ;;  %v936_v12 = vld [vmem:[%s993_s19 + $0x58] sm:$0xff]   ;;  %v938_v14 = vld [vmem:[%s993_s19 + $0x60] sm:$0xff]   ;;  %v940_v16 = vld [vmem:[%s993_s19 + $0x68] sm:$0xff]  }
  0x14   : > { %906 = vmatprep.mubr.msk.bf16.mxu1 %vm292_vm2, %v934_v10  ;;  %v941_v17 = vld [vmem:[%s993_s19 + $0x30] sm:$0xff]   ;;  %v943_v19 = vld [vmem:[%s993_s19 + $0x38] sm:$0xff]  }
  0x15   : > { %v942_v18 = vld [vmem:[%s993_s19 + $0x70] sm:$0xff]   ;;  %v944_v20 = vld [vmem:[%s993_s19 + $0x78] sm:$0xff]  }
  0x1a   : > { %891 = vmatmul.mubr.msk.bf16.gmra.mrb[4].mxu0 %vm292_vm2, %v935_v11 }
  0x1b   : > { %907 = vmatmul.mubr.msk.bf16.gmra.mrb[4].mxu1 %vm292_vm2, %v936_v12  ;;  %894 = vmatprep.mubr.msk.bf16.mxu0 %vm292_vm2, %v937_v13 }
  0x1c   : > { %910 = vmatprep.mubr.msk.bf16.mxu1 %vm292_vm2, %v938_v14 }
  0x22   : > { %895 = vmatmul.mubr.msk.bf16.gmra.mrb[8].mxu0 %vm292_vm2, %v939_v15 }
  0x23   : > { %911 = vmatmul.mubr.msk.bf16.gmra.mrb[8].mxu1 %vm292_vm2, %v940_v16  ;;  %898 = vmatprep.mubr.msk.bf16.mxu0 %vm292_vm2, %v941_v17 }
  0x24   : > { %914 = vmatprep.mubr.msk.bf16.mxu1 %vm292_vm2, %v942_v18 }
  0x2a   : > { %899 = vmatmul.mubr.msk.bf16.gmra.mrb[12].mxu0 %vm292_vm2, %v943_v19 }
  0x2b   : > { %915 = vmatmul.mubr.msk.bf16.gmra.mrb[12].mxu1 %vm292_vm2, %v944_v20 }
  0xe5   : > { %v888_v22 = vpop.f32.mrb[0].mxu0 }
  0xe6   : > { %v391_v23 = vadd.f32 %v888_v22, %v1030_v21  ;;  %v904_v24 = vpop.f32.mrb[0].mxu1  ;;  %v382_v25 = vpop.f32.mrb[1].mxu0 }
  0xe7   : > { %v455_v26 = vadd.f32 %v904_v24, %v1030_v21  ;;  %v383_v27 = vadd.f32 %v1030_v21, %v382_v25  ;;  %v446_v28 = vpop.f32.mrb[1].mxu1  ;;  %v889_v29 = vpop.f32.mrb[2].mxu0 }
  0xe8   : > { %v511_v30 = vmax.f32 %v391_v23, 0.0  ;;  %v447_v31 = vadd.f32 %v1030_v21, %v446_v28  ;;  %v394_v32 = vadd.f32 %v889_v29, %v1030_v21  ;;  %v905_v33 = vpop.f32.mrb[2].mxu1  ;;  %v385_v34 = vpop.f32.mrb[3].mxu0 }
  0xe9   : > { %v527_v35 = vmax.f32 %v455_v26, 0.0  ;;  %v509_v36 = vmax.f32 %v383_v27, 0.0  ;;  %v458_v37 = vadd.f32 %v905_v33, %v1030_v21  ;;  %v386_v38 = vadd.f32 %v1030_v21, %v385_v34  ;;  %v449_v39 = vpop.f32.mrb[3].mxu1 }
  0xea   : > { %v837_v40 = vpack.c.bf16 %v511_v30, %v511_v30  ;;  %v525_v41 = vmax.f32 %v447_v31, 0.0  ;;  %v512_v42 = vmax.f32 %v394_v32, 0.0  ;;  %v450_v43 = vadd.f32 %v1030_v21, %v449_v39 }
  0xeb   : > { %v853_v44 = vpack.c.bf16 %v527_v35, %v527_v35  ;;  %v835_v45 = vpack.c.bf16 %v509_v36, %v509_v36  ;;  %v528_v46 = vmax.f32 %v458_v37, 0.0  ;;  %v510_v47 = vmax.f32 %v386_v38, 0.0 }
  0xec   : > { %672 = vst.msk [vmem:[%s1042_s24 + $0x8] sm:$0xf] %vm669_vm3, %v837_v40  ;;  %v851_v48 = vpack.c.bf16 %v525_v41, %v525_v41  ;;  %v838_v49 = vpack.c.bf16 %v512_v42, %v512_v42  ;;  %v526_v50 = vmax.f32 %v450_v43, 0.0 }
  0xed   : > { %688 = vst.msk [vmem:[%s1042_s24 + $0x48] sm:$0xf] %vm669_vm3, %v853_v44  ;;  %670 = vst.msk [vmem:[%s1042_s24] sm:$0xf] %vm669_vm3, %v835_v45  ;;  %v854_v51 = vpack.c.bf16 %v528_v46, %v528_v46  ;;  %v836_v52 = vpack.c.bf16 %v510_v47, %v510_v47  ;;  %v892_v53 = vpop.f32.mrb[4].mxu0 }
  0xee   : > { %686 = vst.msk [vmem:[%s1042_s24 + $0x40] sm:$0xf] %vm669_vm3, %v851_v48  ;;  %673 = vst.msk [vmem:[%s1042_s24 + $0xc] sm:$0xf] %vm669_vm3, %v838_v49  ;;  %v852_v54 = vpack.c.bf16 %v526_v50, %v526_v50  ;;  %v407_v55 = vadd.f32 %v892_v53, %v1030_v21  ;;  %v908_v56 = vpop.f32.mrb[4].mxu1  ;;  %v398_v57 = vpop.f32.mrb[5].mxu0 }
  0xef   : > { %689 = vst.msk [vmem:[%s1042_s24 + $0x4c] sm:$0xf] %vm669_vm3, %v854_v51  ;;  %671 = vst.msk [vmem:[%s1042_s24 + $0x4] sm:$0xf] %vm669_vm3, %v836_v52  ;;  %v471_v58 = vadd.f32 %v908_v56, %v1030_v21  ;;  %v399_v59 = vadd.f32 %v1030_v21, %v398_v57  ;;  %v462_v60 = vpop.f32.mrb[5].mxu1  ;;  %v893_v61 = vpop.f32.mrb[6].mxu0 }
  0xf0   : > { %687 = vst.msk [vmem:[%s1042_s24 + $0x44] sm:$0xf] %vm669_vm3, %v852_v54  ;;  %v515_v62 = vmax.f32 %v407_v55, 0.0  ;;  %v463_v63 = vadd.f32 %v1030_v21, %v462_v60  ;;  %v410_v0 = vadd.f32 %v893_v61, %v1030_v21  ;;  %v909_v1 = vpop.f32.mrb[6].mxu1  ;;  %v401_v2 = vpop.f32.mrb[7].mxu0 }
  0xf1   : > { %v531_v3 = vmax.f32 %v471_v58, 0.0  ;;  %v513_v4 = vmax.f32 %v399_v59, 0.0  ;;  %v474_v5 = vadd.f32 %v909_v1, %v1030_v21  ;;  %v402_v6 = vadd.f32 %v1030_v21, %v401_v2  ;;  %v465_v7 = vpop.f32.mrb[7].mxu1 }
  0xf2   : > { %v841_v8 = vpack.c.bf16 %v515_v62, %v515_v62  ;;  %v529_v9 = vmax.f32 %v463_v63, 0.0  ;;  %v516_v10 = vmax.f32 %v410_v0, 0.0  ;;  %v466_v11 = vadd.f32 %v1030_v21, %v465_v7 }
  0xf3   : > { %v857_v12 = vpack.c.bf16 %v531_v3, %v531_v3  ;;  %v839_v13 = vpack.c.bf16 %v513_v4, %v513_v4  ;;  %v532_v14 = vmax.f32 %v474_v5, 0.0  ;;  %v514_v15 = vmax.f32 %v402_v6, 0.0 }
  0xf4   : > { %676 = vst.msk [vmem:[%s1042_s24 + $0x18] sm:$0xf] %vm669_vm3, %v841_v8  ;;  %v855_v16 = vpack.c.bf16 %v529_v9, %v529_v9  ;;  %v842_v17 = vpack.c.bf16 %v516_v10, %v516_v10  ;;  %v530_v18 = vmax.f32 %v466_v11, 0.0 }
  0xf5   : > { %692 = vst.msk [vmem:[%s1042_s24 + $0x58] sm:$0xf] %vm669_vm3, %v857_v12  ;;  %674 = vst.msk [vmem:[%s1042_s24 + $0x10] sm:$0xf] %vm669_vm3, %v839_v13  ;;  %v858_v19 = vpack.c.bf16 %v532_v14, %v532_v14  ;;  %v840_v20 = vpack.c.bf16 %v514_v15, %v514_v15  ;;  %v896_v22 = vpop.f32.mrb[8].mxu0 }
  0xf6   : > { %690 = vst.msk [vmem:[%s1042_s24 + $0x50] sm:$0xf] %vm669_vm3, %v855_v16  ;;  %677 = vst.msk [vmem:[%s1042_s24 + $0x1c] sm:$0xf] %vm669_vm3, %v842_v17  ;;  %v856_v23 = vpack.c.bf16 %v530_v18, %v530_v18  ;;  %v423_v24 = vadd.f32 %v896_v22, %v1030_v21  ;;  %v912_v25 = vpop.f32.mrb[8].mxu1  ;;  %v414_v26 = vpop.f32.mrb[9].mxu0 }
  0xf7   : > { %693 = vst.msk [vmem:[%s1042_s24 + $0x5c] sm:$0xf] %vm669_vm3, %v858_v19  ;;  %675 = vst.msk [vmem:[%s1042_s24 + $0x14] sm:$0xf] %vm669_vm3, %v840_v20  ;;  %v487_v27 = vadd.f32 %v912_v25, %v1030_v21  ;;  %v415_v28 = vadd.f32 %v1030_v21, %v414_v26  ;;  %v478_v29 = vpop.f32.mrb[9].mxu1  ;;  %v897_v30 = vpop.f32.mrb[10].mxu0 }
  0xf8   : > { %691 = vst.msk [vmem:[%s1042_s24 + $0x54] sm:$0xf] %vm669_vm3, %v856_v23  ;;  %v519_v31 = vmax.f32 %v423_v24, 0.0  ;;  %v479_v32 = vadd.f32 %v1030_v21, %v478_v29  ;;  %v426_v33 = vadd.f32 %v897_v30, %v1030_v21  ;;  %v913_v34 = vpop.f32.mrb[10].mxu1  ;;  %v417_v35 = vpop.f32.mrb[11].mxu0 }
  0xf9   : > { %v535_v36 = vmax.f32 %v487_v27, 0.0  ;;  %v517_v37 = vmax.f32 %v415_v28, 0.0  ;;  %v490_v38 = vadd.f32 %v913_v34, %v1030_v21  ;;  %v418_v39 = vadd.f32 %v1030_v21, %v417_v35  ;;  %v481_v40 = vpop.f32.mrb[11].mxu1 }
  0xfa   : > { %v845_v41 = vpack.c.bf16 %v519_v31, %v519_v31  ;;  %v533_v42 = vmax.f32 %v479_v32, 0.0  ;;  %v520_v43 = vmax.f32 %v426_v33, 0.0  ;;  %v482_v44 = vadd.f32 %v1030_v21, %v481_v40 }
  0xfb   : > { %v861_v45 = vpack.c.bf16 %v535_v36, %v535_v36  ;;  %v843_v46 = vpack.c.bf16 %v517_v37, %v517_v37  ;;  %v536_v47 = vmax.f32 %v490_v38, 0.0  ;;  %v518_v48 = vmax.f32 %v418_v39, 0.0 }
  0xfc   : > { %680 = vst.msk [vmem:[%s1042_s24 + $0x28] sm:$0xf] %vm669_vm3, %v845_v41  ;;  %v859_v49 = vpack.c.bf16 %v533_v42, %v533_v42  ;;  %v846_v50 = vpack.c.bf16 %v520_v43, %v520_v43  ;;  %v534_v51 = vmax.f32 %v482_v44, 0.0 }
  0xfd   : > { %696 = vst.msk [vmem:[%s1042_s24 + $0x68] sm:$0xf] %vm669_vm3, %v861_v45  ;;  %678 = vst.msk [vmem:[%s1042_s24 + $0x20] sm:$0xf] %vm669_vm3, %v843_v46  ;;  %v862_v52 = vpack.c.bf16 %v536_v47, %v536_v47  ;;  %v844_v53 = vpack.c.bf16 %v518_v48, %v518_v48  ;;  %v900_v54 = vpop.f32.mrb[12].mxu0 }
  0xfe   : > { %694 = vst.msk [vmem:[%s1042_s24 + $0x60] sm:$0xf] %vm669_vm3, %v859_v49  ;;  %681 = vst.msk [vmem:[%s1042_s24 + $0x2c] sm:$0xf] %vm669_vm3, %v846_v50  ;;  %v860_v55 = vpack.c.bf16 %v534_v51, %v534_v51  ;;  %v439_v56 = vadd.f32 %v900_v54, %v1030_v21  ;;  %v916_v57 = vpop.f32.mrb[12].mxu1  ;;  %v430_v58 = vpop.f32.mrb[13].mxu0 }
  0xff   : > { %697 = vst.msk [vmem:[%s1042_s24 + $0x6c] sm:$0xf] %vm669_vm3, %v862_v52  ;;  %679 = vst.msk [vmem:[%s1042_s24 + $0x24] sm:$0xf] %vm669_vm3, %v844_v53  ;;  %v503_v59 = vadd.f32 %v916_v57, %v1030_v21  ;;  %v431_v60 = vadd.f32 %v1030_v21, %v430_v58  ;;  %v494_v61 = vpop.f32.mrb[13].mxu1  ;;  %v901_v62 = vpop.f32.mrb[14].mxu0 }
 0x100   : > { %695 = vst.msk [vmem:[%s1042_s24 + $0x64] sm:$0xf] %vm669_vm3, %v860_v55  ;;  %v523_v63 = vmax.f32 %v439_v56, 0.0  ;;  %v495_v0 = vadd.f32 %v1030_v21, %v494_v61  ;;  %v442_v1 = vadd.f32 %v901_v62, %v1030_v21  ;;  %v917_v2 = vpop.f32.mrb[14].mxu1  ;;  %v433_v3 = vpop.f32.mrb[15].mxu0 }
 0x101   : > { %v539_v4 = vmax.f32 %v503_v59, 0.0  ;;  %v521_v5 = vmax.f32 %v431_v60, 0.0  ;;  %v506_v6 = vadd.f32 %v917_v2, %v1030_v21  ;;  %v434_v7 = vadd.f32 %v1030_v21, %v433_v3  ;;  %v497_v8 = vpop.f32.mrb[15].mxu1 }
 0x102   : > { %v849_v9 = vpack.c.bf16 %v523_v63, %v523_v63  ;;  %v537_v10 = vmax.f32 %v495_v0, 0.0  ;;  %v524_v11 = vmax.f32 %v442_v1, 0.0  ;;  %v498_v12 = vadd.f32 %v1030_v21, %v497_v8 }
 0x103   : > { %v865_v13 = vpack.c.bf16 %v539_v4, %v539_v4  ;;  %v847_v14 = vpack.c.bf16 %v521_v5, %v521_v5  ;;  %v540_v15 = vmax.f32 %v506_v6, 0.0  ;;  %v522_v16 = vmax.f32 %v434_v7, 0.0 }
 0x104   : > { %684 = vst.msk [vmem:[%s1042_s24 + $0x38] sm:$0xf] %vm669_vm3, %v849_v9  ;;  %v863_v17 = vpack.c.bf16 %v537_v10, %v537_v10  ;;  %v850_v18 = vpack.c.bf16 %v524_v11, %v524_v11  ;;  %v538_v19 = vmax.f32 %v498_v12, 0.0 }
 0x105   : > { %700 = vst.msk [vmem:[%s1042_s24 + $0x78] sm:$0xf] %vm669_vm3, %v865_v13  ;;  %682 = vst.msk [vmem:[%s1042_s24 + $0x30] sm:$0xf] %vm669_vm3, %v847_v14  ;;  %v866_v20 = vpack.c.bf16 %v540_v15, %v540_v15  ;;  %v848_v22 = vpack.c.bf16 %v522_v16, %v522_v16 }
 0x106   : > { %698 = vst.msk [vmem:[%s1042_s24 + $0x70] sm:$0xf] %vm669_vm3, %v863_v17  ;;  %685 = vst.msk [vmem:[%s1042_s24 + $0x3c] sm:$0xf] %vm669_vm3, %v850_v18  ;;  %v864_v21 = vpack.c.bf16 %v538_v19, %v538_v19 }
 0x107   : > { %701 = vst.msk [vmem:[%s1042_s24 + $0x7c] sm:$0xf] %vm669_vm3, %v866_v20  ;;  %683 = vst.msk [vmem:[%s1042_s24 + $0x34] sm:$0xf] %vm669_vm3, %v848_v22 }
 0x108   : > { %699 = vst.msk [vmem:[%s1042_s24 + $0x74] sm:$0xf] %vm669_vm3, %v864_v21 }
 0x109 PF: > { %s13_s12 = sadd.s32 1, %s951_s12  }
 0x10a   : > { %p10_p4 = scmp.ge.s32.totalorder %s13_s12, 4  }
 0x10c   :  { %12 = sbr.rel (!%p10_p4) target bundleno = 1 (0x1), region = 62 }

// kernel: forward.10
= control target key start
LH: loop header
LB: loop body
LE: loop exit
PB: predicated region body
PF: predicated region fallthrough
CT: control target
= control target key end

     0   :  { %s1840_s12 = smov 0   ;;  %s2149_s0 = inlined_call_operand.vmem [shape: bf16[2,9,9,16], index: 0, kind: input, shape index: {}]   ;;  %s2150_s1 = inlined_call_operand.vmem [shape: bf16[9,4,16], index: 1, kind: input, shape index: {}]   ;;  %s2151_s2 = inlined_call_operand.vmem [shape: f32[1,16], index: 2, kind: input, shape index: {}]   ;;  %s2152_s3 = inlined_call_operand.vmem [shape: bf16[2,64,16], index: 3, kind: output, shape index: {}]  }
   0x1 LB: > { %s1466_s13 = sadd.s32 4294967295, %s1815_s12   ;;  %p1470_p0 = scmp.ge.s32.totalorder %s1815_s12, 1  ;;  %s1815_s12 = sphi %s1840_s12, %s13_s12  }
   0x2   : > { %p137_p1 = scmp.lt.s32.totalorder %s1815_s12, 3 }
   0x4   : > { %p138_p2 = pnand %p1470_p0, %p137_p1 }
   0x5   : > { %p161_p3 = scmp.lt.s32.totalorder (!%p138_p2), %s1466_s13, 1  ;;  %v1474_v0 = vld [vmem:[%s2150_s1 + $0x2] sm:$0x3] (!%p138_p2)  ;;  %vm224_vm0 = vcmask (!%p138_p2), 1041408   ;;  %v1858_v2 = vld [vmem:[%s2150_s1 + $0x8] sm:$0x3] (!%p138_p2) }
   0x6   : > { %141 = sbr.rel (%p138_p2) target bundleno = 433 (0x1b1), region = 32  ;;  %1779 = vmatprep.subr.msk.bf16.mxu1 (!%p138_p2), %vm224_vm0, %v1474_v0  ;;  %v226_v1 = vsel (!%p138_p2), %vm224_vm0, %v1474_v0, 0  ;;  %v1863_v3 = vld [vmem:[%s2150_s1] sm:$0x3] (!%p138_p2)  ;;  %1783 = vmatprep.subr.msk.bf16.mxu0 (!%p138_p2), %vm224_vm0, %v1858_v2  ;;  %v1869_v4 = vsel (!%p138_p2), %vm224_vm0, %v1858_v2, 0  ;;  %s1817_s26 = smov (!%p138_p2), 124  }
   0x7   : > { %1624 = vmatpush3.bf16.msra.mxu1 (!%p138_p2), %v226_v1  ;;  %v1874_v5 = vld [vmem:[%s2150_s1 + $0xa] sm:$0x3] (!%p138_p2)  ;;  %1664 = vmatpush3.bf16.msra.mxu0 (!%p138_p2), %v1869_v4  ;;  %vm389_vm1 = vsmask.f32 (!%p138_p2), 3328  ;;  %vm390_vm2 = vsmask.f32 (!%p138_p2), 7440 }
   0x8   : > { %1780 = vmatprep.subr.msk.bf16.mxu1 (!%p138_p2), %vm224_vm0, %v1863_v3  ;;  %1785 = vmatprep.subr.msk.bf16.mxu0 (!%p138_p2), %vm224_vm0, %v1874_v5  ;;  %s1818_s27 = smov (!%p138_p2), 116   ;;  %vm1920_vm3 = vmor (!%p138_p2), %vm389_vm1, %vm390_vm2  ;;  %s1819_s28 = smov (!%p138_p2), 120   ;;  %vm211_vm4 = vcmask (!%p138_p2), 31744   ;;  %v825_v37 = vsel (!%p138_p2), %vm224_vm0, %v1874_v5, 0  ;;  %vm1402_vm5 = vcmask (!%p138_p2), 125952  }
   0xd   : > { %s2156_s13 = smov (!%p161_p3, %s1466_s13), 1 }
   0xe   : > { %s1789_s22 = smul.u32 72, %s2156_s13  ;;  %s1569_s16 = sshll.u32 %s2156_s13, 5 }
   0xf   : > { %s2128_s19 = scalar_lea.vmem %s2152_s3, %s1569_s16 }
  0x10   : > { %s1885_s25 = scalar_lea.vmem %s2149_s0, %s1789_s22 }
  0x11   : > { %v1888_v6 = vld [vmem:[%s1885_s25] ss:$8 sps:$4 sm:$0xff]   ;;  %v1891_v7 = vld [vmem:[%s1885_s25 + $0x10] ss:$8 sps:$4 sm:$0xff]   ;;  %v374_v10 = vld [vmem:[%s1885_s25 + $0x4] sm:$0x1] }
  0x12   : > { %203 = vrot.lane.b32.xlu0 %v1888_v6, %s1817_s26  ;;  %205 = vrot.lane.b32.xlu1 %v1891_v7, %s1817_s26  ;;  %v1898_v8 = vld [vmem:[%s1885_s25 + $0x20] ss:$8 sps:$4 sm:$0xff]   ;;  %v1904_v12 = vld [vmem:[%s1885_s25 + $0x30] ss:$8 sps:$4 sm:$0xff]   ;;  %v402_v16 = vshll.u32 %v374_v10, 16 }
  0x13   : > { %v373_v9 = vld [vmem:[%s1885_s25] sm:$0xf]  ;;  %v375_v11 = vld [vmem:[%s1885_s25 + $0x8] sm:$0xf]  ;;  %v376_v13 = vld [vmem:[%s1885_s25 + $0xc] sm:$0x1] }
  0x14   : > { %v393_v14 = vshrl.u32 %v373_v9, 16  ;;  %v396_v15 = vshll.u32 %v373_v9, 16  ;;  %v407_v17 = vshrl.u32 %v375_v11, 16  ;;  %v410_v18 = vshll.u32 %v375_v11, 16  ;;  %v377_v20 = vld [vmem:[%s1885_s25 + $0x10] sm:$0xf] }
  0x15   : > { %v416_v19 = vshll.u32 %v376_v13, 16  ;;  %v378_v21 = vld [vmem:[%s1885_s25 + $0x14] sm:$0x1]  ;;  %v404_v24 = vrot.slane %v402_v16, 5  ;;  %v379_v26 = vld [vmem:[%s1885_s25 + $0x18] sm:$0xf] }
  0x16   : > { %706 = vrot.lane.b32.xlu0 %v1888_v6, %s1818_s27  ;;  %708 = vrot.lane.b32.xlu1 %v1891_v7, %s1818_s27  ;;  %v395_v22 = vrot.slane %v393_v14, 4  ;;  %v398_v23 = vrot.slane %v396_v15, 5  ;;  %v409_v25 = vrot.slane %v407_v17, 4  ;;  %v412_v27 = vrot.slane %v410_v18, 5  ;;  %v380_v29 = vld [vmem:[%s1885_s25 + $0x1c] sm:$0x1] }
  0x17   : > { %v418_v28 = vrot.slane %v416_v19, 5  ;;  %v421_v30 = vshrl.u32 %v377_v20, 16  ;;  %v424_v31 = vshll.u32 %v377_v20, 16  ;;  %v430_v33 = vshll.u32 %v378_v21, 16  ;;  %v381_v36 = vld [vmem:[%s1885_s25 + $0x20] sm:$0xf] }
  0x18   : > { %v399_v32 = vor.u32 %v398_v23, %v395_v22  ;;  %v435_v34 = vshrl.u32 %v379_v26, 16  ;;  %v438_v35 = vshll.u32 %v379_v26, 16  ;;  %v413_v38 = vor.u32 %v412_v27, %v409_v25  ;;  %v382_v42 = vld [vmem:[%s1885_s25 + $0x24] sm:$0x1]  ;;  %v383_v47 = vld [vmem:[%s1885_s25 + $0x28] sm:$0xf] }
  0x19   : > { %v423_v39 = vrot.slane %v421_v30, 4  ;;  %v426_v40 = vrot.slane %v424_v31, 5  ;;  %v444_v41 = vshll.u32 %v380_v29, 16  ;;  %v432_v44 = vrot.slane %v430_v33, 5  ;;  %v384_v54 = vld [vmem:[%s1885_s25 + $0x2c] sm:$0x1] }
  0x1a   : > { %207 = vrot.lane.b32.xlu0 %v1898_v8, %s1817_s26  ;;  %209 = vrot.lane.b32.xlu1 %v1904_v12, %s1817_s26  ;;  %v400_v43 = vrot.slane %v399_v32, 4  ;;  %v437_v45 = vrot.slane %v435_v34, 4  ;;  %v440_v46 = vrot.slane %v438_v35, 5  ;;  %v414_v48 = vrot.slane %v413_v38, 4  ;;  %v385_v61 = vld [vmem:[%s1885_s25 + $0x30] sm:$0xf] }
  0x1b   : > { %v427_v49 = vor.u32 %v426_v40, %v423_v39  ;;  %v446_v50 = vrot.slane %v444_v41, 5  ;;  %v449_v51 = vshrl.u32 %v381_v36, 16  ;;  %v452_v55 = vshll.u32 %v381_v36, 16  ;;  %v386_v1 = vld [vmem:[%s1885_s25 + $0x34] sm:$0x1] }
  0x1c   : > { %v405_v52 = vsel %vm1920_vm3, %v400_v43, %v404_v24  ;;  %v441_v53 = vor.u32 %v440_v46, %v437_v45  ;;  %v458_v56 = vshll.u32 %v382_v42, 16  ;;  %v419_v57 = vsel %vm1920_vm3, %v414_v48, %v418_v28  ;;  %v387_v9 = vld [vmem:[%s1885_s25 + $0x38] sm:$0xf]  ;;  %v388_v17 = vld [vmem:[%s1885_s25 + $0x3c] sm:$0x1] }
  0x1d   : > { %v428_v58 = vrot.slane %v427_v49, 4  ;;  %v451_v59 = vrot.slane %v449_v51, 4  ;;  %v463_v60 = vshrl.u32 %v383_v47, 16  ;;  %v1934_v62 = vcombine.low %v405_v52, %v419_v57  ;;  %v1960_v46 = vld [vmem:[%s1885_s25 + $0x8] ss:$8 sps:$4 sm:$0xff]  }
  0x1e   : > { %v442_v63 = vrot.slane %v441_v53, 4  ;;  %v454_v0 = vrot.slane %v452_v55, 5  ;;  %v466_v13 = vshll.u32 %v383_v47, 16  ;;  %v472_v14 = vshll.u32 %v384_v54, 16  ;;  %v1971_v49 = vld [vmem:[%s1885_s25 + $0x18] ss:$8 sps:$4 sm:$0xff]  }
  0x1f   : > { %v433_v10 = vsel %vm1920_vm3, %v428_v58, %v432_v44  ;;  %v465_v11 = vrot.slane %v463_v60, 4  ;;  %804 = vrot.lane.b32.xlu0 %v1934_v62, %s1819_s28  ;;  %v477_v18 = vshrl.u32 %v385_v61, 16  ;;  %v480_v19 = vshll.u32 %v385_v61, 16  ;;  %v1985_v51 = vld [vmem:[%s1885_s25 + $0x38] ss:$8 sps:$4 sm:$0xff]  }
  0x20   : > { %v447_v15 = vsel %vm1920_vm3, %v442_v63, %v446_v50  ;;  %v455_v16 = vor.u32 %v454_v0, %v451_v59  ;;  %v460_v21 = vrot.slane %v458_v56, 5  ;;  %v468_v22 = vrot.slane %v466_v13, 5  ;;  %v1978_v50 = vld [vmem:[%s1885_s25 + $0x28] ss:$8 sps:$4 sm:$0xff]   ;;  %v1537_v58 = vld [vmem:[%s1885_s25 + $0x18] sm:$0xf] }
  0x21   : > { %v1945_v20 = vcombine.low %v433_v10, %v447_v15  ;;  %v486_v23 = vshll.u32 %v386_v1, 16  ;;  %v479_v25 = vrot.slane %v477_v18, 4  ;;  %v482_v26 = vrot.slane %v480_v19, 5  ;;  %v1533_v52 = vld [vmem:[%s1885_s25 + $0x8] sm:$0xf] }
  0x22   : > { %v456_v24 = vrot.slane %v455_v16, 4  ;;  %v491_v27 = vshrl.u32 %v387_v9, 16  ;;  %v469_v28 = vor.u32 %v468_v22, %v465_v11  ;;  %v474_v29 = vrot.slane %v472_v14, 5  ;;  %v1535_v53 = vld [vmem:[%s1885_s25 + $0x10] sm:$0xf] }
  0x23   : > { %806 = vrot.lane.b32.xlu1 %v1945_v20, %s1819_s28  ;;  %v494_v30 = vshll.u32 %v387_v9, 16  ;;  %v500_v31 = vshll.u32 %v388_v17, 16  ;;  %v483_v32 = vor.u32 %v482_v26, %v479_v25  ;;  %v488_v36 = vrot.slane %v486_v23, 5  ;;  %v1539_v9 = vld [vmem:[%s1885_s25 + $0x20] sm:$0xf] }
  0x24   : > { %v493_v33 = vrot.slane %v491_v27, 4  ;;  %v461_v34 = vsel %vm1920_vm3, %v456_v24, %v460_v21  ;;  %v470_v35 = vrot.slane %v469_v28, 4  ;;  %v1134_v54 = vshrl.u32 %v1533_v52, 16  ;;  %v1534_v10 = vld [vmem:[%s1885_s25 + $0xc] sm:$0x1] }
  0x25   : > { %v496_v38 = vrot.slane %v494_v30, 5  ;;  %v484_v39 = vrot.slane %v483_v32, 4  ;;  %v502_v42 = vrot.slane %v500_v31, 5  ;;  %v1137_v55 = vshll.u32 %v1533_v52, 16  ;;  %v1536_v11 = vld [vmem:[%s1885_s25 + $0x14] sm:$0x1] }
  0x26   : > { %v475_v40 = vsel %vm1920_vm3, %v470_v35, %v474_v29  ;;  %v1148_v56 = vshrl.u32 %v1535_v53, 16  ;;  %v1151_v57 = vshll.u32 %v1535_v53, 16  ;;  %v1162_v59 = vshrl.u32 %v1537_v58, 16  ;;  %v1538_v19 = vld [vmem:[%s1885_s25 + $0x1c] sm:$0x1] }
  0x27   : > { %v497_v41 = vor.u32 %v496_v38, %v493_v33  ;;  %v1953_v43 = vcombine.low %v461_v34, %v475_v40  ;;  %v489_v44 = vsel %vm1920_vm3, %v484_v39, %v488_v36  ;;  %v1165_v60 = vshll.u32 %v1537_v58, 16  ;;  %v1540_v21 = vld [vmem:[%s1885_s25 + $0x24] sm:$0x1]  ;;  %v1541_v34 = vld [vmem:[%s1885_s25 + $0x28] sm:$0xf] }
  0x28   : > { %v1136_v61 = vrot.slane %v1134_v54, 4  ;;  %v1139_v63 = vrot.slane %v1137_v55, 5  ;;  %v1150_v0 = vrot.slane %v1148_v56, 4  ;;  %v1153_v1 = vrot.slane %v1151_v57, 5  ;;  %v1543_v39 = vld [vmem:[%s1885_s25 + $0x30] sm:$0xf] }
  0x29   : > { %v498_v45 = vrot.slane %v497_v41, 4  ;;  %808 = vrot.lane.b32.xlu0 %v1953_v43, %s1819_s28  ;;  %v1164_v13 = vrot.slane %v1162_v59, 4  ;;  %v1167_v14 = vrot.slane %v1165_v60, 5  ;;  %v1143_v16 = vshll.u32 %v1534_v10, 16  ;;  %v1545_v55 = vld [vmem:[%s1885_s25 + $0x38] sm:$0xf] }
  0x2a   : > { %v1140_v15 = vor.u32 %v1139_v63, %v1136_v61  ;;  %v1154_v17 = vor.u32 %v1153_v1, %v1150_v0  ;;  %v1157_v18 = vshll.u32 %v1536_v11, 16  ;;  %v1171_v23 = vshll.u32 %v1538_v19, 16  ;;  %v1542_v57 = vld [vmem:[%s1885_s25 + $0x2c] sm:$0x1]  ;;  %v1544_v58 = vld [vmem:[%s1885_s25 + $0x34] sm:$0x1] }
  0x2b   : > { %v503_v47 = vsel %vm1920_vm3, %v498_v45, %v502_v42  ;;  %v1168_v22 = vor.u32 %v1167_v14, %v1164_v13  ;;  %v1176_v24 = vshrl.u32 %v1539_v9, 16  ;;  %v1179_v25 = vshll.u32 %v1539_v9, 16  ;;  %v1546_v1 = vld [vmem:[%s1885_s25 + $0x3c] sm:$0x1]  ;;  %v1547_v11 = vld [vmem:[%s1885_s25 + $0x40] sm:$0xf] }
  0x2c   : > { %v1964_v48 = vcombine.low %v489_v44, %v503_v47  ;;  %v1141_v26 = vrot.slane %v1140_v15, 4  ;;  %v1145_v27 = vrot.slane %v1143_v16, 5  ;;  %v1155_v28 = vrot.slane %v1154_v17, 4  ;;  %v1548_v13 = vld [vmem:[%s1885_s25 + $0x44] sm:$0x1] }
  0x2d   : > { %1021 = vrot.lane.b32.xlu0 %v1960_v46, %s1817_s26  ;;  %v1159_v29 = vrot.slane %v1157_v18, 5  ;;  %v1169_v30 = vrot.slane %v1168_v22, 4  ;;  %v1173_v31 = vrot.slane %v1171_v23, 5  ;;  %v1178_v32 = vrot.slane %v1176_v24, 4 }
  0x2e   : > { %810 = vrot.lane.b32.xlu1 %v1964_v48, %s1819_s28  ;;  %v1181_v33 = vrot.slane %v1179_v25, 5  ;;  %v1146_v35 = vsel %vm1920_vm3, %v1141_v26, %v1145_v27  ;;  %v1185_v38 = vshll.u32 %v1540_v21, 16  ;;  %v1190_v40 = vshrl.u32 %v1541_v34, 16 }
  0x2f   : > { %v1160_v36 = vsel %vm1920_vm3, %v1155_v28, %v1159_v29  ;;  %v1174_v42 = vsel %vm1920_vm3, %v1169_v30, %v1173_v31  ;;  %v1193_v45 = vshll.u32 %v1541_v34, 16  ;;  %v1204_v53 = vshrl.u32 %v1543_v39, 16 }
  0x30   : > { %v2011_v41 = vcombine.low %v1146_v35, %v1160_v36  ;;  %v1182_v44 = vor.u32 %v1181_v33, %v1178_v32  ;;  %v1187_v47 = vrot.slane %v1185_v38, 5  ;;  %v1192_v52 = vrot.slane %v1190_v40, 4 }
  0x31   : > { %608 = vrot.lane.b32.xlu0 %v1888_v6, %s1819_s28  ;;  %v1207_v54 = vshll.u32 %v1543_v39, 16  ;;  %v1195_v59 = vrot.slane %v1193_v45, 5  ;;  %v1199_v60 = vshll.u32 %v1542_v57, 16  ;;  %v1206_v61 = vrot.slane %v1204_v53, 4 }
  0x32   : > { %1023 = vrot.lane.b32.xlu1 %v1971_v49, %s1817_s26  ;;  %v1183_v56 = vrot.slane %v1182_v44, 4  ;;  %v1213_v0 = vshll.u32 %v1544_v58, 16  ;;  %v1218_v14 = vshrl.u32 %v1545_v55, 16  ;;  %v1221_v15 = vshll.u32 %v1545_v55, 16 }
  0x33   : > { %v1209_v63 = vrot.slane %v1207_v54, 5  ;;  %v1196_v10 = vor.u32 %v1195_v59, %v1192_v52  ;;  %v1201_v17 = vrot.slane %v1199_v60, 5  ;;  %v1227_v24 = vshll.u32 %v1546_v1, 16  ;;  %v1487_v54 = vld [vmem:[%s2150_s1 + $0x4] sm:$0x3] }
  0x34   : > { %v1188_v9 = vsel %vm1920_vm3, %v1183_v56, %v1187_v47  ;;  %v1215_v19 = vrot.slane %v1213_v0, 5  ;;  %v1220_v22 = vrot.slane %v1218_v14, 4  ;;  %v1223_v23 = vrot.slane %v1221_v15, 5  ;;  %v1496_v0 = vld [vmem:[%s2150_s1 + $0x6] sm:$0x3] }
  0x35   : > { %1025 = vrot.lane.b32.xlu0 %v1978_v50, %s1817_s26  ;;  %v2023_v16 = vcombine.low %v1174_v42, %v1188_v9  ;;  %v1210_v18 = vor.u32 %v1209_v63, %v1206_v61  ;;  %v1197_v21 = vrot.slane %v1196_v10, 4  ;;  %v1232_v26 = vshrl.u32 %v1547_v11, 16  ;;  %v1528_v63 = vld [vmem:[%s2150_s1 + $0xe] sm:$0x3] }
  0x36   : > { %610 = vrot.lane.b32.xlu1 %v1891_v7, %s1819_s28  ;;  %v1235_v27 = vshll.u32 %v1547_v11, 16  ;;  %v1241_v28 = vshll.u32 %v1548_v13, 16  ;;  %v1224_v30 = vor.u32 %v1223_v23, %v1220_v22  ;;  %v1229_v31 = vrot.slane %v1227_v24, 5 }
  0x37   : > { %v1211_v25 = vrot.slane %v1210_v18, 4  ;;  %v1202_v29 = vsel %vm1920_vm3, %v1197_v21, %v1201_v17  ;;  %v1234_v33 = vrot.slane %v1232_v26, 4  ;;  %v306_v52 = vsel %vm224_vm0, %v1863_v3, 0  ;;  %v1519_v3 = vld [vmem:[%s2150_s1 + $0xc] sm:$0x3] }
  0x38   : > { %v1237_v34 = vrot.slane %v1235_v27, 5  ;;  %v1225_v36 = vrot.slane %v1224_v30, 4  ;;  %v1243_v39 = vrot.slane %v1241_v28, 5  ;;  %v531_v59 = vsel %vm224_vm0, %v1487_v54, 0 }
  0x39   : > { %612 = vrot.lane.b32.xlu0 %v1898_v8, %s1819_s28  ;;  %v1216_v32 = vsel %vm1920_vm3, %v1211_v25, %v1215_v19  ;;  %v944_v60 = vsel %vm224_vm0, %v1519_v3, 0 }
  0x3a   : > { %1027 = vrot.lane.b32.xlu1 %v1985_v51, %s1817_s26  ;;  %v2029_v35 = vcombine.low %v1202_v29, %v1216_v32  ;;  %v1238_v38 = vor.u32 %v1237_v34, %v1234_v33  ;;  %v1230_v40 = vsel %vm1920_vm3, %v1225_v36, %v1229_v31 }
  0x3c   : > { %v1239_v42 = vrot.slane %v1238_v38, 4 }
  0x3d   : > { %710 = vrot.lane.b32.xlu0 %v1898_v8, %s1818_s27 }
  0x3e   : > { %614 = vrot.lane.b32.xlu1 %v1904_v12, %s1819_s28  ;;  %v1244_v44 = vsel %vm1920_vm3, %v1239_v42, %v1243_v39 }
  0x3f   : > { %v2035_v45 = vcombine.low %v1230_v40, %v1244_v44 }
  0x42   : > { %712 = vrot.lane.b32.xlu1 %v1904_v12, %s1818_s27 }
  0x84   : > { %v204_v47 = vpop.permute.xlu0 %203  ;;  %v206_v53 = vpop.permute.xlu1 %205 }
  0x85   : > { %1625 = vmatprep.mubr.msk.bf16.mxu1 %vm211_vm4, %v204_v47 }
  0x86   : > { %1626 = vmatmul.mubr.msk.bf16.vlgmr.msra.gmra.mrb[0].mxu1 %vm211_vm4, %v206_v53 }
  0x87   : > { %1634 = vmatpush3.bf16.msra.mxu1 %v306_v52 }
  0x88   : > { %v707_v55 = vpop.permute.xlu0 %706  ;;  %1781 = vmatprep.subr.msk.bf16.mxu1 %vm224_vm0, %v1487_v54  ;;  %v709_v56 = vpop.permute.xlu1 %708 }
  0x89   : > { %1665 = vmatprep.mubr.msk.bf16.mxu0 %vm211_vm4, %v707_v55 }
  0x8a   : > { %1666 = vmatmul.mubr.msk.bf16.vlgmr.msra.gmra.mrb[0].mxu0 %vm211_vm4, %v709_v56 }
  0x8b   : > { %1674 = vmatpush3.bf16.msra.mxu0 %v825_v37 }
  0x8c   : > { %v208_v57 = vpop.permute.xlu0 %207  ;;  %1786 = vmatprep.subr.msk.bf16.mxu0 %vm224_vm0, %v1519_v3  ;;  %v210_v58 = vpop.permute.xlu1 %209 }
  0x8d   : > { %1629 = vmatprep.mubr.msk.bf16.mxu1 %vm211_vm4, %v208_v57 }
  0x8e   : > { %1630 = vmatmul.mubr.msk.bf16.gmra.mrb[4].mxu1 %vm211_vm4, %v210_v58 }
  0x8f   : > { %1635 = vmatprep.mubr.msk.bf16.mxu1 %vm211_vm4, %v1888_v6 }
  0x91   : > { %v805_v5 = vpop.permute.xlu0 %804 }
  0x92   : > { %1675 = vmatprep.mubr.msk.bf16.mxu0 %vm211_vm4, %v805_v5 }
  0x95   : > { %v807_v61 = vpop.permute.xlu1 %806 }
  0x96   : > { %1636 = vmatmul.mubr.msk.bf16.vlgmr.msra.gmra.mrb[0].mxu1 %vm211_vm4, %v1891_v7  ;;  %1676 = vmatmul.mubr.msk.bf16.vlgmr.msra.gmra.mrb[0].mxu0 %vm211_vm4, %v807_v61 }
  0x97   : > { %1644 = vmatpush3.bf16.msra.mxu1 %v531_v59  ;;  %1684 = vmatpush3.bf16.msra.mxu0 %v944_v60 }
  0x98   : > { %1639 = vmatprep.mubr.msk.bf16.mxu1 %vm211_vm4, %v1898_v8  ;;  %1787 = vmatprep.subr.msk.bf16.mxu0 %vm224_vm0, %v1528_v63  ;;  %v629_v8 = vsel %vm224_vm0, %v1496_v0, 0 }
  0x99   : > { %1782 = vmatprep.subr.msk.bf16.mxu1 %vm224_vm0, %v1496_v0 }
  0x9b   : > { %v809_v6 = vpop.permute.xlu0 %808 }
  0x9c   : > { %1679 = vmatprep.mubr.msk.bf16.mxu0 %vm211_vm4, %v809_v6 }
  0x9e   : > { %1640 = vmatmul.mubr.msk.bf16.gmra.mrb[4].mxu1 %vm211_vm4, %v1904_v12  ;;  %v1042_v12 = vsel %vm224_vm0, %v1528_v63, 0 }
  0x9f   : > { %1645 = vmatprep.mubr.msk.bf16.mxu1 %vm211_vm4, %v1934_v62  ;;  %v1022_v1 = vpop.permute.xlu0 %1021 }
  0xa0   : > { %v811_v7 = vpop.permute.xlu1 %810 }
  0xa1   : > { %1680 = vmatmul.mubr.msk.bf16.gmra.mrb[4].mxu0 %vm211_vm4, %v811_v7 }
  0xa2   : > { %1685 = vmatprep.mubr.msk.bf16.mxu0 %vm211_vm4, %v1960_v46  ;;  %v1549_v46 = vld [vmem:[%s2150_s1 + $0x10] sm:$0x3] }
  0xa3   : > { %v609_v9 = vpop.permute.xlu0 %608 }
  0xa4   : > { %v1024_v62 = vpop.permute.xlu1 %1023 }
  0xa6   : > { %1646 = vmatmul.mubr.msk.bf16.vlgmr.msra.gmra.mrb[0].mxu1 %vm211_vm4, %v1945_v20 }
  0xa7   : > { %1654 = vmatpush3.bf16.msra.mxu1 %v629_v8  ;;  %1649 = vmatprep.mubr.msk.bf16.mxu1 %vm211_vm4, %v1953_v43  ;;  %v1026_v20 = vpop.permute.xlu0 %1025 }
  0xa8   : > { %1784 = vmatprep.subr.msk.bf16.mxu1 %vm224_vm0, %v1858_v2  ;;  %v611_v43 = vpop.permute.xlu1 %610 }
  0xa9   : > { %1686 = vmatmul.mubr.msk.bf16.vlgmr.msra.gmra.mrb[0].mxu0 %vm211_vm4, %v1971_v49 }
  0xaa   : > { %1694 = vmatpush3.bf16.msra.mxu0 %v1042_v12  ;;  %1689 = vmatprep.mubr.msk.bf16.mxu0 %vm211_vm4, %v1978_v50  ;;  %v1272_v50 = vsel %vm224_vm0, %v1549_v46, 0 }
  0xab   : > { %1788 = vmatprep.subr.msk.bf16.mxu0 %vm224_vm0, %v1549_v46  ;;  %v613_v2 = vpop.permute.xlu0 %612 }
  0xac   : > { %v1028_v49 = vpop.permute.xlu1 %1027 }
  0xae   : > { %1650 = vmatmul.mubr.msk.bf16.gmra.mrb[4].mxu1 %vm211_vm4, %v1964_v48 }
  0xaf   : > { %1655 = vmatprep.mubr.msk.bf16.mxu1 %vm211_vm4, %v609_v9  ;;  %v711_v10 = vpop.permute.xlu0 %710 }
  0xb0   : > { %v615_v48 = vpop.permute.xlu1 %614 }
  0xb1   : > { %1690 = vmatmul.mubr.msk.bf16.gmra.mrb[4].mxu0 %vm211_vm4, %v1985_v51 }
  0xb2   : > { %1695 = vmatprep.mubr.msk.bf16.mxu0 %vm211_vm4, %v1022_v1 }
  0xb6   : > { %1656 = vmatmul.mubr.msk.bf16.vlgmr.msra.gmra.mrb[0].mxu1 %vm211_vm4, %v611_v43 }
  0xb7   : > { %1714 = vmatpush3.bf16.msra.mxu1 %v1869_v4  ;;  %1659 = vmatprep.mubr.msk.bf16.mxu1 %vm211_vm4, %v613_v2  ;;  %v713_v4 = vpop.permute.xlu1 %712 }
  0xb9   : > { %1696 = vmatmul.mubr.msk.bf16.vlgmr.msra.gmra.mrb[0].mxu0 %vm211_vm4, %v1024_v62 }
  0xba   : > { %1704 = vmatpush3.bf16.msra.mxu0 %v1272_v50  ;;  %1699 = vmatprep.mubr.msk.bf16.mxu0 %vm211_vm4, %v1026_v20 }
  0xbe   : > { %1660 = vmatmul.mubr.msk.bf16.gmra.mrb[4].mxu1 %vm211_vm4, %v615_v48 }
  0xbf   : > { %1669 = vmatprep.mubr.msk.bf16.mxu1 %vm211_vm4, %v711_v10 }
  0xc1   : > { %1700 = vmatmul.mubr.msk.bf16.gmra.mrb[4].mxu0 %vm211_vm4, %v1028_v49 }
  0xc2   : > { %1705 = vmatprep.mubr.msk.bf16.mxu0 %vm211_vm4, %v2011_v41  ;;  %v1558_v41 = vld [vmem:[%s2151_s2] ss:$0 sm:$0xff] }
  0xc9   : > { %1706 = vmatmul.mubr.msk.bf16.vlgmr.msra.gmra.mrb[0].mxu0 %vm211_vm4, %v2023_v16 }
  0xca   : > { %1670 = vmatmul.mubr.msk.bf16.vlgmr.msra.gmra.mrb[4].mxu1 %vm211_vm4, %v713_v4  ;;  %1709 = vmatprep.mubr.msk.bf16.mxu0 %vm211_vm4, %v2029_v35 }
  0xd1   : > { %1710 = vmatmul.mubr.msk.bf16.gmra.mrb[4].mxu0 %vm211_vm4, %v2035_v45 }
 0x189   : > { %v1657_v51 = vpop.f32.mrb[0].mxu1 }
 0x18a   : > { %v665_v11 = vpop.f32.mrb[1].mxu1 }
 0x18b   : > { %v1658_v13 = vpop.f32.mrb[2].mxu1 }
 0x18c   : > { %v668_v14 = vpop.f32.mrb[3].mxu1 }
 0x19c   : > { %v1707_v15 = vpop.f32.mrb[0].mxu0 }
 0x19d   : > { %v1671_v17 = vpop.f32.mrb[4].mxu1  ;;  %v1715_v16 = vadd.f32 %v1707_v15, %v1657_v51  ;;  %v1308_v18 = vpop.f32.mrb[1].mxu0 }
 0x19e   : > { %v779_v19 = vpop.f32.mrb[5].mxu1  ;;  %v1716_v21 = vadd.f32 %v1308_v18, %v665_v11  ;;  %v1708_v22 = vpop.f32.mrb[2].mxu0 }
 0x19f   : > { %v1672_v23 = vpop.f32.mrb[6].mxu1  ;;  %v1356_v24 = vadd.f32 %v1715_v16, %v1558_v41  ;;  %v1717_v25 = vadd.f32 %v1708_v22, %v1658_v13  ;;  %v1311_v26 = vpop.f32.mrb[3].mxu0 }
 0x1a0   : > { %v782_v27 = vpop.f32.mrb[7].mxu1  ;;  %v1354_v28 = vadd.f32 %v1716_v21, %v1558_v41  ;;  %v1718_v29 = vadd.f32 %v1311_v26, %v668_v14 }
 0x1a1   : > { %v1364_v30 = vmax.f32 %v1356_v24, 0.0  ;;  %v1357_v31 = vadd.f32 %v1717_v25, %v1558_v41 }
 0x1a2   : > { %v1362_v32 = vmax.f32 %v1354_v28, 0.0  ;;  %v1355_v33 = vadd.f32 %v1718_v29, %v1558_v41 }
 0x1a3   : > { %v1572_v34 = vpack.c.bf16 %v1364_v30, %v1364_v30  ;;  %v1365_v35 = vmax.f32 %v1357_v31, 0.0 }
 0x1a4   : > { %v1570_v36 = vpack.c.bf16 %v1362_v32, %v1362_v32  ;;  %v1363_v38 = vmax.f32 %v1355_v33, 0.0  ;;  %v1711_v39 = vpop.f32.mrb[4].mxu0 }
 0x1a5   : > { %1405 = vst.msk [vmem:[%s2128_s19 + $0x8] sm:$0xf] %vm1402_vm5, %v1572_v34  ;;  %v1573_v40 = vpack.c.bf16 %v1365_v35, %v1365_v35  ;;  %v1719_v42 = vadd.f32 %v1711_v39, %v1671_v17  ;;  %v1324_v44 = vpop.f32.mrb[5].mxu0 }
 0x1a6   : > { %1403 = vst.msk [vmem:[%s2128_s19] sm:$0xf] %vm1402_vm5, %v1570_v36  ;;  %v1571_v45 = vpack.c.bf16 %v1363_v38, %v1363_v38  ;;  %v1720_v47 = vadd.f32 %v1324_v44, %v779_v19  ;;  %v1712_v52 = vpop.f32.mrb[6].mxu0 }
 0x1a7   : > { %1406 = vst.msk [vmem:[%s2128_s19 + $0xc] sm:$0xf] %vm1402_vm5, %v1573_v40  ;;  %v1360_v53 = vadd.f32 %v1719_v42, %v1558_v41  ;;  %v1721_v54 = vadd.f32 %v1712_v52, %v1672_v23  ;;  %v1327_v55 = vpop.f32.mrb[7].mxu0 }
 0x1a8   : > { %1404 = vst.msk [vmem:[%s2128_s19 + $0x4] sm:$0xf] %vm1402_vm5, %v1571_v45  ;;  %v1358_v37 = vadd.f32 %v1720_v47, %v1558_v41  ;;  %v1722_v56 = vadd.f32 %v1327_v55, %v782_v27 }
 0x1a9   : > { %v1368_v3 = vmax.f32 %v1360_v53, 0.0  ;;  %v1361_v57 = vadd.f32 %v1721_v54, %v1558_v41 }
 0x1aa   : > { %v1366_v58 = vmax.f32 %v1358_v37, 0.0  ;;  %v1359_v5 = vadd.f32 %v1722_v56, %v1558_v41 }
 0x1ab   : > { %v1576_v59 = vpack.c.bf16 %v1368_v3, %v1368_v3  ;;  %v1369_v60 = vmax.f32 %v1361_v57, 0.0 }
 0x1ac   : > { %v1574_v61 = vpack.c.bf16 %v1366_v58, %v1366_v58  ;;  %v1367_v63 = vmax.f32 %v1359_v5, 0.0 }
 0x1ad   : > { %1409 = vst.msk [vmem:[%s2128_s19 + $0x18] sm:$0xf] %vm1402_vm5, %v1576_v59  ;;  %v1577_v0 = vpack.c.bf16 %v1369_v60, %v1369_v60 }
 0x1ae   : > { %1407 = vst.msk [vmem:[%s2128_s19 + $0x10] sm:$0xf] %vm1402_vm5, %v1574_v61  ;;  %v1575_v6 = vpack.c.bf16 %v1367_v63, %v1367_v63 }
 0x1af   : > { %1410 = vst.msk [vmem:[%s2128_s19 + $0x1c] sm:$0xf] %vm1402_vm5, %v1577_v0 }
 0x1b0   : > { %1408 = vst.msk [vmem:[%s2128_s19 + $0x14] sm:$0xf] %vm1402_vm5, %v1575_v6 }
 0x1b1 PF: > { %s13_s12 = sadd.s32 1, %s1815_s12  }
 0x1b2   : > { %p10_p4 = scmp.ge.s32.totalorder %s13_s12, 4  }
 0x1b4   :  { %12 = sbr.rel (!%p10_p4) target bundleno = 1 (0x1), region = 71 }

// kernel: forward.12
= control target key start
LH: loop header
LB: loop body
LE: loop exit
PB: predicated region body
PF: predicated region fallthrough
CT: control target
= control target key end

     0   :  { %12 = vsyncpa [#allocation3], 0  ;;  %vm60_vm0 = vcmask 261120   ;;  %s464_s0 = inlined_call_operand.vmem [shape: bf16[32,32], index: 0, kind: input, shape index: {}]   ;;  %s465_s1 = inlined_call_operand.vmem [shape: bf16[32,64], index: 1, kind: input, shape index: {}]   ;;  %s466_s2 = inlined_call_operand.vmem [shape: f32[1,64], index: 2, kind: input, shape index: {}]   ;;  %s467_s3 = inlined_call_operand.vmem [shape: f32[32,32], index: 3, kind: input, shape index: {}]   ;;  %s468_s4 = inlined_call_operand.hbm [shape: f32[32,32], index: 4, kind: output, shape index: {0}]   ;;  %s469_s5 = inlined_call_operand.hbm [shape: f32[32,32], index: 5, kind: output, shape index: {1}]   ;;  %s470_s6 = inlined_call_operand.vmem [shape: bf16[32,32], index: 6, kind: output, shape index: {2}]  }
   0x1   :  { %v269_v0 = vld [vmem:[%s465_s1] sm:$0xff]   ;;  %v270_v1 = vld [vmem:[%s465_s1 + $0x8] sm:$0xff]  }
   0x2   :  { %256 = vmatprep.subr.bf16.mxu0 %v269_v0  ;;  %v271_v2 = vld [vmem:[%s464_s0] sm:$0xff]  }
   0x3   :  { %257 = vmatpush3.bf16.msra.mxu0 %v269_v0  ;;  %260 = vmatprep.mubr.msk.bf16.mxu0 %vm60_vm0, %v271_v2 }
   0x4   :  { %258 = vmatprep.subr.bf16.mxu0 %v270_v1 }
   0x5   :  { %13 = vsyncpa [#allocation5], 0  ;;  %v272_v3 = vld [vmem:[%s464_s0 + $0x8] sm:$0xff]   ;;  %v237_v4 = vld [vmem:[%s466_s2] ss:$0 sm:$0xff]  ;;  %s329_s0 = smov [#allocation2]  }
   0x6   :  { %s206_s2 = sshll.u32 %s329_s0, 4  ;;  %s330_s30 = smov 96   ;;  %s207_s2 = int_to_ptr.vmem [resolvable:$true] %s206_s2 }
   0x7   :  { %259 = vmatpush3.bf16.msra.mxu0 %v270_v1  ;;  %s281_s7 = scalar_lea.vmem %s207_s2, 512  ;;  %p286_p1 = scmp.lt.s32.totalorder %s207_s2, %s207_s2 }
   0x8   :  { %p282_p0 = scmp.ne.s32.totalorder %s207_s2, %s281_s7  ;;  %p287_p2 = scmp.lt.s32.totalorder %s281_s7, %s281_s7 }
   0xa   :  { %261 = vmatmul.mubr.msk.bf16.vlgmr.msra.gmra.mrb[0].mxu0 %vm60_vm0, %v272_v3  ;;  %p288_p3 = por %p287_p2, %p286_p1 }
   0xc   :  { %p289_p4 = pnand %p288_p3, %p282_p0 }
  0xdd   :  { %v262_v5 = vpop.f32.mrb[0].mxu0 }
  0xde   :  { %v110_v6 = vadd.f32 %v262_v5, %v237_v4  ;;  %v101_v7 = vpop.f32.mrb[1].mxu0 }
  0xdf   :  { %v102_v8 = vadd.f32 %v237_v4, %v101_v7  ;;  %v263_v9 = vpop.f32.mrb[2].mxu0 }
  0xe0   :  { %118 = vst.msk [vmem:[#allocation2 + $0x10] sm:$0xff] %vm60_vm0, %v110_v6  ;;  %v146_v10 = vmul.f32 0.5, %v110_v6  ;;  %v387_v11 = vadd.f32 %v263_v9, %v237_v4  ;;  %v104_v12 = vpop.f32.mrb[3].mxu0 }
  0xe1   :  { %116 = vst.msk [vmem:[#allocation2] sm:$0xff] %vm60_vm0, %v102_v8  ;;  %v144_v13 = vmul.f32 0.5, %v102_v8  ;;  %v390_v14 = vadd.f32 %v237_v4, %v104_v12 }
  0xe2   :  { %v152_v15 = vmul.f32 1.442695, %v146_v10  ;;  %119 = vst.msk [vmem:[#allocation2 + $0x18] sm:$0xff] %vm60_vm0, %v387_v11  ;;  %v147_v16 = vmul.f32 0.5, %v387_v11 }
  0xe3   :  { %v148_v17 = vmul.f32 1.442695, %v144_v13  ;;  %117 = vst.msk [vmem:[#allocation2 + $0x8] sm:$0xff] %vm60_vm0, %v390_v14  ;;  %v145_v18 = vmul.f32 0.5, %v390_v14 }
  0xe4   :  { %273 = vpow2.f32 %v152_v15  ;;  %v154_v19 = vmul.f32 1.442695, %v147_v16 }
  0xe5   :  { %275 = vpow2.f32 %v148_v17  ;;  %v150_v20 = vmul.f32 1.442695, %v145_v18 }
  0xe6   :  { %277 = vpow2.f32 %v154_v19 }
  0xe7   :  { %279 = vpow2.f32 %v150_v20 }
  0xee   :  { %v274_v21 = vpop.eup %273 }
  0xef   :  { %v276_v22 = vpop.eup %275  ;;  %164 = vrot.lane.b32.xlu1 %v274_v21, %s330_s30 }
  0xf0   :  { %160 = vrot.lane.b32.xlu0 %v276_v22, %s330_s30 }
  0xf1   :  { %292 = shalt.err (!%p289_p4)
}
  0xf2   :  { %s293_s10 = scalar_lea.hbm %s468_s4, 512 }
  0xf3   :  { %p294_p5 = scmp.ne.s32.totalorder %s468_s4, %s293_s10  ;;  %p297_p6 = scmp.lt.u32.totalorder %s293_s10, %s468_s4 }
  0xf5   :  { %p299_p7 = pnand %p297_p6, %p294_p5 }
  0xf7   :  { %302 = shalt.err (!%p299_p7)
}
  0xf8   :  { %s331_s15 = smov 128   ;;  %s332_s16 = smov 8   ;;  %v278_v23 = vpop.eup %277  ;;  %v142_v25 = vld [vmem:[%s467_s3 + $0x10] sm:$0xff]  ;;  %v140_v26 = vld [vmem:[%s467_s3] sm:$0xff]  ;;  %v143_v31 = vld [vmem:[%s467_s3 + $0x18] sm:$0xff]  ;;  %vm196_vm1 = vcmask 257024  }
  0xf9   :  { %212 = dma.vmem_to_hbm [thread:$0]  %s207_s2, 512, %s468_s4, [#allocation3], %s331_s15, %s331_s15, %s332_s16   ;;  %v280_v24 = vpop.eup %279 }
  0xfa   :  { %166 = vrot.lane.b32.xlu1 %v278_v23, %s330_s30  ;;  %162 = vrot.lane.b32.xlu0 %v280_v24, %s330_s30  ;;  %v141_v33 = vld [vmem:[%s467_s3 + $0x8] sm:$0xff]  ;;  %s333_s3 = smov [#allocation4]  }
  0xfb   :  { %s218_s1 = sshll.u32 %s333_s3, 4  ;;  %s219_s1 = int_to_ptr.vmem [resolvable:$true] %s218_s1 }
  0xfc   :  { %s303_s8 = scalar_lea.vmem %s219_s1, 512  ;;  %p308_p9 = scmp.lt.s32.totalorder %s219_s1, %s219_s1 }
  0xfd   :  { %p304_p8 = scmp.ne.s32.totalorder %s219_s1, %s303_s8  ;;  %p309_p10 = scmp.lt.s32.totalorder %s303_s8, %s303_s8 }
  0xfe   :  { %126 = vrot.lane.b32.xlu1 %v390_v14, %s330_s30  ;;  %124 = vrot.lane.b32.xlu0 %v102_v8, %s330_s30 }
  0xff   :  { %p310_p11 = por %p309_p10, %p308_p9 }
 0x101   :  { %p311_p12 = pnand %p310_p11, %p304_p8 }
 0x102   :  { %130 = vrot.lane.b32.xlu1 %v387_v11, %s330_s30  ;;  %128 = vrot.lane.b32.xlu0 %v110_v6, %s330_s30 }
 0x161   :  { %v165_v27 = vpop.permute.xlu1 %164 }
 0x162   :  { %v174_v28 = vmul.f32 %v165_v27, %v142_v25  ;;  %v161_v29 = vpop.permute.xlu0 %160 }
 0x163   :  { %v172_v30 = vmul.f32 %v161_v29, %v140_v26 }
 0x164   :  { %v178_v32 = vadd.f32 %v174_v28, %v110_v6 }
 0x165   :  { %v176_v34 = vadd.f32 %v172_v30, %v102_v8 }
 0x166   :  { %v250_v36 = vpack.c.bf16 %v178_v32, %v178_v32 }
 0x167   :  { %v248_v39 = vpack.c.bf16 %v176_v34, %v176_v34 }
 0x168   :  { %199 = vst.msk [vmem:[%s470_s6 + $0x8] sm:$0xf] %vm196_vm1, %v250_v36 }
 0x169   :  { %197 = vst.msk [vmem:[%s470_s6] sm:$0xf] %vm196_vm1, %v248_v39 }
 0x16c   :  { %v167_v35 = vpop.permute.xlu1 %166  ;;  %v163_v38 = vpop.permute.xlu0 %162 }
 0x16d   :  { %v175_v37 = vmul.f32 %v167_v35, %v143_v31  ;;  %v173_v40 = vmul.f32 %v163_v38, %v141_v33 }
 0x16f   :  { %v179_v41 = vadd.f32 %v175_v37, %v387_v11  ;;  %v177_v42 = vadd.f32 %v173_v40, %v390_v14 }
 0x170   :  { %v127_v43 = vpop.permute.xlu1 %126  ;;  %v125_v45 = vpop.permute.xlu0 %124 }
 0x171   :  { %v251_v44 = vpack.c.bf16 %v179_v41, %v179_v41  ;;  %137 = vst.msk [vmem:[#allocation4 + $0x8] sm:$0xff] %vm60_vm0, %v127_v43  ;;  %v249_v46 = vpack.c.bf16 %v177_v42, %v177_v42  ;;  %136 = vst.msk [vmem:[#allocation4] sm:$0xff] %vm60_vm0, %v125_v45 }
 0x173   :  { %200 = vst.msk [vmem:[%s470_s6 + $0xc] sm:$0xf] %vm196_vm1, %v251_v44  ;;  %198 = vst.msk [vmem:[%s470_s6 + $0x4] sm:$0xf] %vm196_vm1, %v249_v46 }
 0x174   :  { %v131_v47 = vpop.permute.xlu1 %130  ;;  %v129_v48 = vpop.permute.xlu0 %128 }
 0x175   :  { %139 = vst.msk [vmem:[#allocation4 + $0x18] sm:$0xff] %vm60_vm0, %v131_v47  ;;  %138 = vst.msk [vmem:[#allocation4 + $0x10] sm:$0xff] %vm60_vm0, %v129_v48 }
 0x176   :  { %314 = shalt.err (!%p311_p12)
}
 0x177   :  { %s315_s11 = scalar_lea.hbm %s469_s5, 512 }
 0x178   :  { %p316_p13 = scmp.ne.s32.totalorder %s469_s5, %s315_s11  ;;  %p319_p0 = scmp.lt.u32.totalorder %s315_s11, %s469_s5 }
 0x17a   :  { %p321_p1 = pnand %p319_p0, %p316_p13 }
 0x17c   :  { %324 = shalt.err (!%p321_p1)
}
 0x17d   :  { %224 = dma.vmem_to_hbm [thread:$0]  %s219_s1, 512, %s469_s5, [#allocation5], %s331_s15, %s331_s15, %s332_s16  }
 0x17e   :  { %325 = dma.done.wait [#allocation3], 512  }
 0x17f   :  { %326 = vsyncadd [#allocation3], 4294966784 }
 0x180   :  { %327 = dma.done.wait [#allocation5], 512  }
 0x181   :  { %328 = vsyncadd [#allocation5], 4294966784 }
 0x182   :  { %235 = vsyncpa [#allocation3], 1 }
 0x183   :  { %236 = vsyncpa [#allocation5], 1 }

// kernel: forward.11
= control target key start
LH: loop header
LB: loop body
LE: loop exit
PB: predicated region body
PF: predicated region fallthrough
CT: control target
= control target key end

     0   :  { %s1311_s12 = smov 0   ;;  %s1464_s0 = inlined_call_operand.vmem [shape: bf16[2,5,9,64], index: 0, kind: input, shape index: {}]   ;;  %s1465_s1 = inlined_call_operand.vmem [shape: bf16[9,16,32], index: 1, kind: input, shape index: {}]   ;;  %s1466_s2 = inlined_call_operand.vmem [shape: f32[1,32], index: 2, kind: input, shape index: {}]   ;;  %s1467_s3 = inlined_call_operand.vmem [shape: bf16[2,32,32], index: 3, kind: output, shape index: {}]  }
   0x1 LB: > { %s1059_s13 = sadd.s32 4294967295, %s1286_s12   ;;  %p1063_p0 = scmp.ge.s32.totalorder %s1286_s12, 1  ;;  %s1286_s12 = sphi %s1311_s12, %s13_s12  }
   0x2   : > { %p137_p1 = scmp.lt.s32.totalorder %s1286_s12, 3 }
   0x4   : > { %p138_p2 = pnand %p1063_p0, %p137_p1 }
   0x5   : > { %p161_p3 = scmp.lt.s32.totalorder (!%p138_p2), %s1059_s13, 1  ;;  %v1271_v0 = vld [vmem:[%s1465_s1 + $0x20] sm:$0xff] (!%p138_p2)   ;;  %v1327_v1 = vld [vmem:[%s1465_s1 + $0x28] sm:$0xff] (!%p138_p2)   ;;  %vm326_vm0 = vsmask.f32 (!%p138_p2), 3328  ;;  %s1288_s24 = smov (!%p138_p2), 80  }
   0x6   : > { %141 = sbr.rel (%p138_p2) target bundleno = 409 (0x199), region = 32  ;;  %1193 = vmatprep.subr.bf16.mxu0 (!%p138_p2), %v1271_v0  ;;  %v1273_v2 = vld [vmem:[%s1465_s1 + $0x8] sm:$0xff] (!%p138_p2)   ;;  %s1289_s25 = smov (!%p138_p2), 112   ;;  %vm327_vm1 = vsmask.f32 (!%p138_p2), 7440  ;;  %v1360_v29 = vld [vmem:[%s1465_s1] sm:$0xff] (!%p138_p2)  }
   0x7   : > { %1194 = vmatpush3.bf16.msra.mxu0 (!%p138_p2), %v1271_v0  ;;  %1169 = vmatprep.subr.bf16.mxu1 (!%p138_p2), %v1273_v2  ;;  %vm1364_vm2 = vmor (!%p138_p2), %vm326_vm0, %vm327_vm1  ;;  %s1290_s28 = smov (!%p138_p2), 96   ;;  %vm201_vm3 = vcmask (!%p138_p2), 130048   ;;  %v1276_v30 = vld [vmem:[%s1465_s1 + $0x10] sm:$0xff] (!%p138_p2)   ;;  %vm999_vm4 = vcmask (!%p138_p2), 257024  }
   0x8   : > { %1199 = vmatprep.subr.bf16.mxu0 (!%p138_p2), %v1327_v1  ;;  %1170 = vmatpush3.bf16.msra.mxu1 (!%p138_p2), %v1273_v2 }
   0x9   : > { %1175 = vmatprep.subr.bf16.mxu1 (!%p138_p2), %v1360_v29 }
   0xd   : > { %s1471_s13 = smov (!%p161_p3, %s1059_s13), 1 }
   0xe   : > { %s1255_s18 = smul.u32 40, %s1471_s13  ;;  %s1137_s16 = sshll.u32 %s1471_s13, 4 }
   0xf   : > { %s170_s19 = scalar_lea.vmem %s1467_s3, %s1137_s16 }
  0x10   : > { %s1336_s23 = scalar_lea.vmem %s1464_s0, %s1255_s18 }
  0x11   : > { %v1340_v3 = vld [vmem:[%s1336_s23] ss:$8 sps:$4 sm:$0xff]   ;;  %v1343_v4 = vld [vmem:[%s1336_s23 + $0x10] ss:$8 sps:$4 sm:$0xff]   ;;  %v319_v6 = vld [vmem:[%s1336_s23 + $0x4] sm:$0x1] }
  0x12   : > { %534 = vrot.lane.b32.xlu0 %v1340_v3, %s1288_s24  ;;  %191 = vrot.lane.b32.xlu1 %v1340_v3, %s1289_s25  ;;  %v318_v5 = vld [vmem:[%s1336_s23] sm:$0xf]  ;;  %v320_v7 = vld [vmem:[%s1336_s23 + $0x8] sm:$0xf]  ;;  %v339_v11 = vshll.u32 %v319_v6, 16 }
  0x13   : > { %v321_v8 = vld [vmem:[%s1336_s23 + $0xc] sm:$0x1]  ;;  %v330_v9 = vshrl.u32 %v318_v5, 16  ;;  %v333_v10 = vshll.u32 %v318_v5, 16  ;;  %v344_v12 = vshrl.u32 %v320_v7, 16  ;;  %v347_v13 = vshll.u32 %v320_v7, 16 }
  0x14   : > { %v353_v14 = vshll.u32 %v321_v8, 16  ;;  %v322_v15 = vld [vmem:[%s1336_s23 + $0x10] sm:$0xf]  ;;  %v323_v18 = vld [vmem:[%s1336_s23 + $0x14] sm:$0x1]  ;;  %v341_v20 = vrot.slane %v339_v11, 5 }
  0x15   : > { %v332_v16 = vrot.slane %v330_v9, 4  ;;  %v335_v17 = vrot.slane %v333_v10, 5  ;;  %v324_v19 = vld [vmem:[%s1336_s23 + $0x18] sm:$0xf]  ;;  %v346_v21 = vrot.slane %v344_v12, 4  ;;  %v349_v22 = vrot.slane %v347_v13, 5 }
  0x16   : > { %536 = vrot.lane.b32.xlu0 %v1343_v4, %s1288_s24  ;;  %v355_v23 = vrot.slane %v353_v14, 5  ;;  %v325_v24 = vld [vmem:[%s1336_s23 + $0x1c] sm:$0x1]  ;;  %v358_v26 = vshrl.u32 %v322_v15, 16  ;;  %v361_v27 = vshll.u32 %v322_v15, 16  ;;  %v367_v28 = vshll.u32 %v323_v18, 16 }
  0x17   : > { %v336_v25 = vor.u32 %v335_v17, %v332_v16  ;;  %v350_v31 = vor.u32 %v349_v22, %v346_v21  ;;  %v372_v32 = vshrl.u32 %v324_v19, 16  ;;  %v375_v33 = vshll.u32 %v324_v19, 16  ;;  %v1369_v38 = vld [vmem:[%s1336_s23 + $0x8] ss:$8 sps:$4 sm:$0xff]   ;;  %v1392_v54 = vld [vmem:[%s1336_s23 + $0x18] ss:$8 sps:$4 sm:$0xff]  }
  0x18   : > { %v381_v34 = vshll.u32 %v325_v24, 16  ;;  %v360_v36 = vrot.slane %v358_v26, 4  ;;  %v363_v37 = vrot.slane %v361_v27, 5  ;;  %v369_v44 = vrot.slane %v367_v28, 5  ;;  %v1115_v55 = vld [vmem:[%s1336_s23 + $0x8] sm:$0xf] }
  0x19   : > { %v337_v35 = vrot.slane %v336_v25, 4  ;;  %v351_v39 = vrot.slane %v350_v31, 4  ;;  %v374_v40 = vrot.slane %v372_v32, 4  ;;  %v377_v41 = vrot.slane %v375_v33, 5  ;;  %v1117_v56 = vld [vmem:[%s1336_s23 + $0x10] sm:$0xf] }
  0x1a   : > { %193 = vrot.lane.b32.xlu0 %v1343_v4, %s1289_s25  ;;  %v364_v43 = vor.u32 %v363_v37, %v360_v36  ;;  %v383_v47 = vrot.slane %v381_v34, 5  ;;  %v839_v57 = vshrl.u32 %v1115_v55, 16  ;;  %v842_v58 = vshll.u32 %v1115_v55, 16  ;;  %v1119_v61 = vld [vmem:[%s1336_s23 + $0x18] sm:$0xf] }
  0x1b   : > { %v342_v42 = vsel %vm1364_vm2, %v337_v35, %v341_v20  ;;  %v356_v45 = vsel %vm1364_vm2, %v351_v39, %v355_v23  ;;  %v378_v46 = vor.u32 %v377_v41, %v374_v40  ;;  %v853_v59 = vshrl.u32 %v1117_v56, 16  ;;  %v1121_v7 = vld [vmem:[%s1336_s23 + $0x20] sm:$0xf]  ;;  %v1116_v8 = vld [vmem:[%s1336_s23 + $0xc] sm:$0x1] }
  0x1c   : > { %v1378_v48 = vcombine.low %v342_v42, %v356_v45  ;;  %v365_v49 = vrot.slane %v364_v43, 4  ;;  %v856_v60 = vshll.u32 %v1117_v56, 16  ;;  %v867_v62 = vshrl.u32 %v1119_v61, 16  ;;  %v1118_v9 = vld [vmem:[%s1336_s23 + $0x14] sm:$0x1] }
  0x1d   : > { %v379_v50 = vrot.slane %v378_v46, 4  ;;  %v870_v63 = vshll.u32 %v1119_v61, 16  ;;  %v841_v0 = vrot.slane %v839_v57, 4  ;;  %v844_v2 = vrot.slane %v842_v58, 5  ;;  %v1120_v10 = vld [vmem:[%s1336_s23 + $0x1c] sm:$0x1] }
  0x1e   : > { %761 = vrot.lane.b32.xlu0 %v1369_v38, %s1289_s25  ;;  %606 = vrot.lane.b32.xlu1 %v1378_v48, %s1290_s28  ;;  %v370_v51 = vsel %vm1364_vm2, %v365_v49, %v369_v44  ;;  %v855_v5 = vrot.slane %v853_v59, 4  ;;  %v858_v6 = vrot.slane %v856_v60, 5  ;;  %v848_v12 = vshll.u32 %v1116_v8, 16  ;;  %v1122_v15 = vld [vmem:[%s1336_s23 + $0x24] sm:$0x1]  ;;  %v1275_v45 = vld [vmem:[%s1465_s1 + $0x30] sm:$0xff]  }
  0x1f   : > { %v384_v52 = vsel %vm1364_vm2, %v379_v50, %v383_v47  ;;  %v845_v11 = vor.u32 %v844_v2, %v841_v0  ;;  %v862_v14 = vshll.u32 %v1118_v9, 16  ;;  %v869_v16 = vrot.slane %v867_v62, 4  ;;  %v1130_v57 = vld [vmem:[%s1466_s2] ss:$0 sm:$0xff] }
  0x20   : > { %v1387_v53 = vcombine.low %v370_v51, %v384_v52  ;;  %v859_v13 = vor.u32 %v858_v6, %v855_v5  ;;  %v872_v17 = vrot.slane %v870_v63, 5  ;;  %v876_v18 = vshll.u32 %v1120_v10, 16  ;;  %v1279_v51 = vld [vmem:[%s1465_s1 + $0x40] sm:$0xff]  }
  0x21   : > { %v881_v19 = vshrl.u32 %v1121_v7, 16  ;;  %v846_v20 = vrot.slane %v845_v11, 4  ;;  %v850_v21 = vrot.slane %v848_v12, 5  ;;  %v864_v23 = vrot.slane %v862_v14, 5 }
  0x22   : > { %462 = vrot.lane.b32.xlu0 %v1340_v3, %s1290_s28  ;;  %608 = vrot.lane.b32.xlu1 %v1387_v53, %s1290_s28  ;;  %v860_v22 = vrot.slane %v859_v13, 4  ;;  %v873_v24 = vor.u32 %v872_v17, %v869_v16  ;;  %v878_v25 = vrot.slane %v876_v18, 5  ;;  %v884_v27 = vshll.u32 %v1121_v7, 16 }
  0x23   : > { %v883_v26 = vrot.slane %v881_v19, 4  ;;  %v851_v28 = vsel %vm1364_vm2, %v846_v20, %v850_v21  ;;  %v890_v32 = vshll.u32 %v1122_v15, 16 }
  0x24   : > { %v865_v31 = vsel %vm1364_vm2, %v860_v22, %v864_v23  ;;  %v874_v34 = vrot.slane %v873_v24, 4  ;;  %v886_v35 = vrot.slane %v884_v27, 5 }
  0x25   : > { %v1125_v33 = vcombine.low %v851_v28, %v865_v31  ;;  %v892_v39 = vrot.slane %v890_v32, 5 }
  0x26   : > { %763 = vrot.lane.b32.xlu1 %v1392_v54, %s1289_s25  ;;  %v879_v36 = vsel %vm1364_vm2, %v874_v34, %v878_v25  ;;  %v887_v37 = vor.u32 %v886_v35, %v883_v26 }
  0x28   : > { %v888_v40 = vrot.slane %v887_v37, 4 }
  0x2a   : > { %464 = vrot.lane.b32.xlu1 %v1343_v4, %s1290_s28  ;;  %v893_v41 = vsel %vm1364_vm2, %v888_v40, %v892_v39 }
  0x2b   : > { %v1126_v42 = vcombine.low %v879_v36, %v893_v41 }
  0x84   : > { %v535_v43 = vpop.permute.xlu0 %534  ;;  %v192_v44 = vpop.permute.xlu1 %191 }
  0x85   : > { %1195 = vmatprep.mubr.msk.bf16.mxu0 %vm201_vm3, %v535_v43  ;;  %1171 = vmatprep.mubr.msk.bf16.mxu1 %vm201_vm3, %v192_v44 }
  0x88   : > { %v537_v46 = vpop.permute.xlu0 %536 }
  0x89   : > { %1196 = vmatmul.mubr.msk.bf16.vlgmr.msra.gmra.mrb[0].mxu0 %vm201_vm3, %v537_v46 }
  0x8a   : > { %1200 = vmatpush3.bf16.msra.mxu0 %v1327_v1  ;;  %v1277_v1 = vld [vmem:[%s1465_s1 + $0x38] sm:$0xff]  }
  0x8b   : > { %1205 = vmatprep.subr.bf16.mxu0 %v1275_v45 }
  0x8c   : > { %v194_v47 = vpop.permute.xlu0 %193 }
  0x8d   : > { %1172 = vmatmul.mubr.msk.bf16.vlgmr.msra.gmra.mrb[0].mxu1 %vm201_vm3, %v194_v47 }
  0x8e   : > { %1176 = vmatpush3.bf16.msra.mxu1 %v1360_v29  ;;  %1177 = vmatprep.mubr.msk.bf16.mxu1 %vm201_vm3, %v1340_v3  ;;  %v1278_v29 = vld [vmem:[%s1465_s1 + $0x18] sm:$0xff]  }
  0x8f   : > { %1181 = vmatprep.subr.bf16.mxu1 %v1276_v30 }
  0x90   : > { %v607_v49 = vpop.permute.xlu1 %606  ;;  %v762_v3 = vpop.permute.xlu0 %761 }
  0x91   : > { %1201 = vmatprep.mubr.msk.bf16.mxu0 %vm201_vm3, %v607_v49 }
  0x94   : > { %v609_v50 = vpop.permute.xlu1 %608 }
  0x95   : > { %1202 = vmatmul.mubr.msk.bf16.vlgmr.msra.gmra.mrb[0].mxu0 %vm201_vm3, %v609_v50 }
  0x96   : > { %1206 = vmatpush3.bf16.msra.mxu0 %v1275_v45  ;;  %1207 = vmatprep.mubr.msk.bf16.mxu0 %vm201_vm3, %v1369_v38  ;;  %v463_v38 = vpop.permute.xlu0 %462 }
  0x97   : > { %1211 = vmatprep.subr.bf16.mxu0 %v1277_v1 }
  0x99   : > { %1178 = vmatmul.mubr.msk.bf16.vlgmr.msra.gmra.mrb[0].mxu1 %vm201_vm3, %v1343_v4  ;;  %v764_v4 = vpop.permute.xlu1 %763 }
  0x9a   : > { %1182 = vmatpush3.bf16.msra.mxu1 %v1276_v30  ;;  %1183 = vmatprep.mubr.msk.bf16.mxu1 %vm201_vm3, %v1378_v48 }
  0x9b   : > { %1187 = vmatprep.subr.bf16.mxu1 %v1278_v29 }
  0x9d   : > { %v465_v48 = vpop.permute.xlu1 %464 }
  0xa1   : > { %1208 = vmatmul.mubr.msk.bf16.vlgmr.msra.gmra.mrb[0].mxu0 %vm201_vm3, %v1392_v54 }
  0xa2   : > { %1212 = vmatpush3.bf16.msra.mxu0 %v1277_v1  ;;  %1213 = vmatprep.mubr.msk.bf16.mxu0 %vm201_vm3, %v762_v3 }
  0xa3   : > { %1217 = vmatprep.subr.bf16.mxu0 %v1279_v51 }
  0xa5   : > { %1184 = vmatmul.mubr.msk.bf16.vlgmr.msra.gmra.mrb[0].mxu1 %vm201_vm3, %v1387_v53 }
  0xa6   : > { %1188 = vmatpush3.bf16.msra.mxu1 %v1278_v29  ;;  %1189 = vmatprep.mubr.msk.bf16.mxu1 %vm201_vm3, %v463_v38 }
  0xad   : > { %1214 = vmatmul.mubr.msk.bf16.vlgmr.msra.gmra.mrb[0].mxu0 %vm201_vm3, %v764_v4 }
  0xae   : > { %1218 = vmatpush3.bf16.msra.mxu0 %v1279_v51  ;;  %1219 = vmatprep.mubr.msk.bf16.mxu0 %vm201_vm3, %v1125_v33 }
  0xb1   : > { %1190 = vmatmul.mubr.msk.bf16.vlgmr.msra.gmra.mrb[0].mxu1 %vm201_vm3, %v465_v48 }
  0xb9   : > { %1220 = vmatmul.mubr.msk.bf16.vlgmr.msra.gmra.mrb[0].mxu0 %vm201_vm3, %v1126_v42 }
 0x184   : > { %v1191_v52 = vpop.f32.mrb[0].mxu1 }
 0x185   : > { %v512_v54 = vpop.f32.mrb[1].mxu1 }
 0x186   : > { %v1192_v55 = vpop.f32.mrb[2].mxu1 }
 0x187   : > { %v515_v56 = vpop.f32.mrb[3].mxu1 }
 0x18c   : > { %v1221_v53 = vpop.f32.mrb[0].mxu0 }
 0x18d   : > { %v1223_v58 = vadd.f32 %v1221_v53, %v1191_v52  ;;  %v949_v59 = vpop.f32.mrb[1].mxu0 }
 0x18e   : > { %v1224_v60 = vadd.f32 %v949_v59, %v512_v54  ;;  %v1222_v61 = vpop.f32.mrb[2].mxu0 }
 0x18f   : > { %v977_v62 = vadd.f32 %v1223_v58, %v1130_v57  ;;  %v1225_v63 = vadd.f32 %v1222_v61, %v1192_v55  ;;  %v952_v0 = vpop.f32.mrb[3].mxu0 }
 0x190   : > { %v975_v2 = vadd.f32 %v1224_v60, %v1130_v57  ;;  %v1226_v5 = vadd.f32 %v952_v0, %v515_v56 }
 0x191   : > { %v981_v6 = vmax.f32 %v977_v62, 0.0  ;;  %v978_v7 = vadd.f32 %v1225_v63, %v1130_v57 }
 0x192   : > { %v979_v8 = vmax.f32 %v975_v2, 0.0  ;;  %v976_v9 = vadd.f32 %v1226_v5, %v1130_v57 }
 0x193   : > { %v1140_v10 = vpack.c.bf16 %v981_v6, %v981_v6  ;;  %v982_v11 = vmax.f32 %v978_v7, 0.0 }
 0x194   : > { %v1138_v12 = vpack.c.bf16 %v979_v8, %v979_v8  ;;  %v980_v13 = vmax.f32 %v976_v9, 0.0 }
 0x195   : > { %1002 = vst.msk [vmem:[%s170_s19 + $0x8] sm:$0xf] %vm999_vm4, %v1140_v10  ;;  %v1141_v14 = vpack.c.bf16 %v982_v11, %v982_v11 }
 0x196   : > { %1000 = vst.msk [vmem:[%s170_s19] sm:$0xf] %vm999_vm4, %v1138_v12  ;;  %v1139_v15 = vpack.c.bf16 %v980_v13, %v980_v13 }
 0x197   : > { %1003 = vst.msk [vmem:[%s170_s19 + $0xc] sm:$0xf] %vm999_vm4, %v1141_v14 }
 0x198   : > { %1001 = vst.msk [vmem:[%s170_s19 + $0x4] sm:$0xf] %vm999_vm4, %v1139_v15 }
 0x199 PF: > { %s13_s12 = sadd.s32 1, %s1286_s12  }
 0x19a   : > { %p10_p4 = scmp.ge.s32.totalorder %s13_s12, 4  }
 0x19c   :  { %12 = sbr.rel (!%p10_p4) target bundleno = 1 (0x1), region = 71 }

// kernel: forward.14
= control target key start
LH: loop header
LB: loop body
LE: loop exit
PB: predicated region body
PF: predicated region fallthrough
CT: control target
= control target key end

     0   :  { %s1307_s12 = smov 0   ;;  %s1460_s0 = inlined_call_operand.vmem [shape: bf16[2,5,9,64], index: 0, kind: input, shape index: {}]   ;;  %s1461_s1 = inlined_call_operand.vmem [shape: bf16[9,16,32], index: 1, kind: input, shape index: {}]   ;;  %s1462_s2 = inlined_call_operand.vmem [shape: f32[1,32], index: 2, kind: input, shape index: {}]   ;;  %s1463_s3 = inlined_call_operand.vmem [shape: bf16[2,32,32], index: 3, kind: output, shape index: {}]  }
   0x1 LB: > { %s1055_s13 = sadd.s32 4294967295, %s1282_s12   ;;  %p1059_p0 = scmp.ge.s32.totalorder %s1282_s12, 1  ;;  %s1282_s12 = sphi %s1307_s12, %s13_s12  }
   0x2   : > { %p137_p1 = scmp.lt.s32.totalorder %s1282_s12, 3 }
   0x4   : > { %p138_p2 = pnand %p1059_p0, %p137_p1 }
   0x5   : > { %p161_p3 = scmp.lt.s32.totalorder (!%p138_p2), %s1055_s13, 1  ;;  %v1267_v0 = vld [vmem:[%s1461_s1 + $0x20] sm:$0xff] (!%p138_p2)   ;;  %v1323_v1 = vld [vmem:[%s1461_s1 + $0x28] sm:$0xff] (!%p138_p2)   ;;  %vm326_vm0 = vsmask.f32 (!%p138_p2), 3328  ;;  %s1284_s24 = smov (!%p138_p2), 80  }
   0x6   : > { %141 = sbr.rel (%p138_p2) target bundleno = 407 (0x197), region = 32  ;;  %1189 = vmatprep.subr.bf16.mxu0 (!%p138_p2), %v1267_v0  ;;  %v1269_v2 = vld [vmem:[%s1461_s1 + $0x8] sm:$0xff] (!%p138_p2)   ;;  %s1285_s25 = smov (!%p138_p2), 112   ;;  %vm327_vm1 = vsmask.f32 (!%p138_p2), 7440  ;;  %v1356_v29 = vld [vmem:[%s1461_s1] sm:$0xff] (!%p138_p2)  }
   0x7   : > { %1190 = vmatpush3.bf16.msra.mxu0 (!%p138_p2), %v1267_v0  ;;  %1165 = vmatprep.subr.bf16.mxu1 (!%p138_p2), %v1269_v2  ;;  %vm1360_vm2 = vmor (!%p138_p2), %vm326_vm0, %vm327_vm1  ;;  %s1286_s28 = smov (!%p138_p2), 96   ;;  %vm201_vm3 = vcmask (!%p138_p2), 130048   ;;  %v1272_v30 = vld [vmem:[%s1461_s1 + $0x10] sm:$0xff] (!%p138_p2)   ;;  %vm995_vm4 = vcmask (!%p138_p2), 257024  }
   0x8   : > { %1195 = vmatprep.subr.bf16.mxu0 (!%p138_p2), %v1323_v1  ;;  %1166 = vmatpush3.bf16.msra.mxu1 (!%p138_p2), %v1269_v2 }
   0x9   : > { %1171 = vmatprep.subr.bf16.mxu1 (!%p138_p2), %v1356_v29 }
   0xd   : > { %s1467_s13 = smov (!%p161_p3, %s1055_s13), 1 }
   0xe   : > { %s1251_s18 = smul.u32 40, %s1467_s13  ;;  %s1133_s16 = sshll.u32 %s1467_s13, 4 }
   0xf   : > { %s170_s19 = scalar_lea.vmem %s1463_s3, %s1133_s16 }
  0x10   : > { %s1332_s23 = scalar_lea.vmem %s1460_s0, %s1251_s18 }
  0x11   : > { %v1336_v3 = vld [vmem:[%s1332_s23] ss:$8 sps:$4 sm:$0xff]   ;;  %v1339_v4 = vld [vmem:[%s1332_s23 + $0x10] ss:$8 sps:$4 sm:$0xff]   ;;  %v319_v6 = vld [vmem:[%s1332_s23 + $0x4] sm:$0x1] }
  0x12   : > { %534 = vrot.lane.b32.xlu0 %v1336_v3, %s1284_s24  ;;  %191 = vrot.lane.b32.xlu1 %v1336_v3, %s1285_s25  ;;  %v318_v5 = vld [vmem:[%s1332_s23] sm:$0xf]  ;;  %v320_v7 = vld [vmem:[%s1332_s23 + $0x8] sm:$0xf]  ;;  %v339_v11 = vshll.u32 %v319_v6, 16 }
  0x13   : > { %v321_v8 = vld [vmem:[%s1332_s23 + $0xc] sm:$0x1]  ;;  %v330_v9 = vshrl.u32 %v318_v5, 16  ;;  %v333_v10 = vshll.u32 %v318_v5, 16  ;;  %v344_v12 = vshrl.u32 %v320_v7, 16  ;;  %v347_v13 = vshll.u32 %v320_v7, 16 }
  0x14   : > { %v353_v14 = vshll.u32 %v321_v8, 16  ;;  %v322_v15 = vld [vmem:[%s1332_s23 + $0x10] sm:$0xf]  ;;  %v323_v18 = vld [vmem:[%s1332_s23 + $0x14] sm:$0x1]  ;;  %v341_v20 = vrot.slane %v339_v11, 5 }
  0x15   : > { %v332_v16 = vrot.slane %v330_v9, 4  ;;  %v335_v17 = vrot.slane %v333_v10, 5  ;;  %v324_v19 = vld [vmem:[%s1332_s23 + $0x18] sm:$0xf]  ;;  %v346_v21 = vrot.slane %v344_v12, 4  ;;  %v349_v22 = vrot.slane %v347_v13, 5 }
  0x16   : > { %536 = vrot.lane.b32.xlu0 %v1339_v4, %s1284_s24  ;;  %v355_v23 = vrot.slane %v353_v14, 5  ;;  %v325_v24 = vld [vmem:[%s1332_s23 + $0x1c] sm:$0x1]  ;;  %v358_v26 = vshrl.u32 %v322_v15, 16  ;;  %v361_v27 = vshll.u32 %v322_v15, 16  ;;  %v367_v28 = vshll.u32 %v323_v18, 16 }
  0x17   : > { %v336_v25 = vor.u32 %v335_v17, %v332_v16  ;;  %v350_v31 = vor.u32 %v349_v22, %v346_v21  ;;  %v372_v32 = vshrl.u32 %v324_v19, 16  ;;  %v375_v33 = vshll.u32 %v324_v19, 16  ;;  %v1365_v38 = vld [vmem:[%s1332_s23 + $0x8] ss:$8 sps:$4 sm:$0xff]   ;;  %v1388_v54 = vld [vmem:[%s1332_s23 + $0x18] ss:$8 sps:$4 sm:$0xff]  }
  0x18   : > { %v381_v34 = vshll.u32 %v325_v24, 16  ;;  %v360_v36 = vrot.slane %v358_v26, 4  ;;  %v363_v37 = vrot.slane %v361_v27, 5  ;;  %v369_v44 = vrot.slane %v367_v28, 5  ;;  %v1111_v55 = vld [vmem:[%s1332_s23 + $0x8] sm:$0xf] }
  0x19   : > { %v337_v35 = vrot.slane %v336_v25, 4  ;;  %v351_v39 = vrot.slane %v350_v31, 4  ;;  %v374_v40 = vrot.slane %v372_v32, 4  ;;  %v377_v41 = vrot.slane %v375_v33, 5  ;;  %v1113_v56 = vld [vmem:[%s1332_s23 + $0x10] sm:$0xf] }
  0x1a   : > { %193 = vrot.lane.b32.xlu0 %v1339_v4, %s1285_s25  ;;  %v364_v43 = vor.u32 %v363_v37, %v360_v36  ;;  %v383_v47 = vrot.slane %v381_v34, 5  ;;  %v839_v57 = vshrl.u32 %v1111_v55, 16  ;;  %v842_v58 = vshll.u32 %v1111_v55, 16  ;;  %v1115_v61 = vld [vmem:[%s1332_s23 + $0x18] sm:$0xf] }
  0x1b   : > { %v342_v42 = vsel %vm1360_vm2, %v337_v35, %v341_v20  ;;  %v356_v45 = vsel %vm1360_vm2, %v351_v39, %v355_v23  ;;  %v378_v46 = vor.u32 %v377_v41, %v374_v40  ;;  %v853_v59 = vshrl.u32 %v1113_v56, 16  ;;  %v1117_v7 = vld [vmem:[%s1332_s23 + $0x20] sm:$0xf]  ;;  %v1112_v8 = vld [vmem:[%s1332_s23 + $0xc] sm:$0x1] }
  0x1c   : > { %v1374_v48 = vcombine.low %v342_v42, %v356_v45  ;;  %v365_v49 = vrot.slane %v364_v43, 4  ;;  %v856_v60 = vshll.u32 %v1113_v56, 16  ;;  %v867_v62 = vshrl.u32 %v1115_v61, 16  ;;  %v1114_v9 = vld [vmem:[%s1332_s23 + $0x14] sm:$0x1] }
  0x1d   : > { %v379_v50 = vrot.slane %v378_v46, 4  ;;  %v870_v63 = vshll.u32 %v1115_v61, 16  ;;  %v841_v0 = vrot.slane %v839_v57, 4  ;;  %v844_v2 = vrot.slane %v842_v58, 5  ;;  %v1116_v10 = vld [vmem:[%s1332_s23 + $0x1c] sm:$0x1] }
  0x1e   : > { %761 = vrot.lane.b32.xlu0 %v1365_v38, %s1285_s25  ;;  %606 = vrot.lane.b32.xlu1 %v1374_v48, %s1286_s28  ;;  %v370_v51 = vsel %vm1360_vm2, %v365_v49, %v369_v44  ;;  %v855_v5 = vrot.slane %v853_v59, 4  ;;  %v858_v6 = vrot.slane %v856_v60, 5  ;;  %v848_v12 = vshll.u32 %v1112_v8, 16  ;;  %v1118_v15 = vld [vmem:[%s1332_s23 + $0x24] sm:$0x1]  ;;  %v1271_v45 = vld [vmem:[%s1461_s1 + $0x30] sm:$0xff]  }
  0x1f   : > { %v384_v52 = vsel %vm1360_vm2, %v379_v50, %v383_v47  ;;  %v845_v11 = vor.u32 %v844_v2, %v841_v0  ;;  %v862_v14 = vshll.u32 %v1114_v9, 16  ;;  %v869_v16 = vrot.slane %v867_v62, 4  ;;  %v1126_v57 = vld [vmem:[%s1462_s2] ss:$0 sm:$0xff] }
  0x20   : > { %v1383_v53 = vcombine.low %v370_v51, %v384_v52  ;;  %v859_v13 = vor.u32 %v858_v6, %v855_v5  ;;  %v872_v17 = vrot.slane %v870_v63, 5  ;;  %v876_v18 = vshll.u32 %v1116_v10, 16  ;;  %v1275_v51 = vld [vmem:[%s1461_s1 + $0x40] sm:$0xff]  }
  0x21   : > { %v881_v19 = vshrl.u32 %v1117_v7, 16  ;;  %v846_v20 = vrot.slane %v845_v11, 4  ;;  %v850_v21 = vrot.slane %v848_v12, 5  ;;  %v864_v23 = vrot.slane %v862_v14, 5 }
  0x22   : > { %462 = vrot.lane.b32.xlu0 %v1336_v3, %s1286_s28  ;;  %608 = vrot.lane.b32.xlu1 %v1383_v53, %s1286_s28  ;;  %v860_v22 = vrot.slane %v859_v13, 4  ;;  %v873_v24 = vor.u32 %v872_v17, %v869_v16  ;;  %v878_v25 = vrot.slane %v876_v18, 5  ;;  %v884_v27 = vshll.u32 %v1117_v7, 16 }
  0x23   : > { %v883_v26 = vrot.slane %v881_v19, 4  ;;  %v851_v28 = vsel %vm1360_vm2, %v846_v20, %v850_v21  ;;  %v890_v32 = vshll.u32 %v1118_v15, 16 }
  0x24   : > { %v865_v31 = vsel %vm1360_vm2, %v860_v22, %v864_v23  ;;  %v874_v34 = vrot.slane %v873_v24, 4  ;;  %v886_v35 = vrot.slane %v884_v27, 5 }
  0x25   : > { %v1121_v33 = vcombine.low %v851_v28, %v865_v31  ;;  %v892_v39 = vrot.slane %v890_v32, 5 }
  0x26   : > { %763 = vrot.lane.b32.xlu1 %v1388_v54, %s1285_s25  ;;  %v879_v36 = vsel %vm1360_vm2, %v874_v34, %v878_v25  ;;  %v887_v37 = vor.u32 %v886_v35, %v883_v26 }
  0x28   : > { %v888_v40 = vrot.slane %v887_v37, 4 }
  0x2a   : > { %464 = vrot.lane.b32.xlu1 %v1339_v4, %s1286_s28  ;;  %v893_v41 = vsel %vm1360_vm2, %v888_v40, %v892_v39 }
  0x2b   : > { %v1122_v42 = vcombine.low %v879_v36, %v893_v41 }
  0x84   : > { %v535_v43 = vpop.permute.xlu0 %534  ;;  %v192_v44 = vpop.permute.xlu1 %191 }
  0x85   : > { %1191 = vmatprep.mubr.msk.bf16.mxu0 %vm201_vm3, %v535_v43  ;;  %1167 = vmatprep.mubr.msk.bf16.mxu1 %vm201_vm3, %v192_v44 }
  0x88   : > { %v537_v46 = vpop.permute.xlu0 %536 }
  0x89   : > { %1192 = vmatmul.mubr.msk.bf16.vlgmr.msra.gmra.mrb[0].mxu0 %vm201_vm3, %v537_v46 }
  0x8a   : > { %1196 = vmatpush3.bf16.msra.mxu0 %v1323_v1  ;;  %v1273_v1 = vld [vmem:[%s1461_s1 + $0x38] sm:$0xff]  }
  0x8b   : > { %1201 = vmatprep.subr.bf16.mxu0 %v1271_v45 }
  0x8c   : > { %v194_v47 = vpop.permute.xlu0 %193 }
  0x8d   : > { %1168 = vmatmul.mubr.msk.bf16.vlgmr.msra.gmra.mrb[0].mxu1 %vm201_vm3, %v194_v47 }
  0x8e   : > { %1172 = vmatpush3.bf16.msra.mxu1 %v1356_v29  ;;  %1173 = vmatprep.mubr.msk.bf16.mxu1 %vm201_vm3, %v1336_v3  ;;  %v1274_v29 = vld [vmem:[%s1461_s1 + $0x18] sm:$0xff]  }
  0x8f   : > { %1177 = vmatprep.subr.bf16.mxu1 %v1272_v30 }
  0x90   : > { %v607_v49 = vpop.permute.xlu1 %606  ;;  %v762_v3 = vpop.permute.xlu0 %761 }
  0x91   : > { %1197 = vmatprep.mubr.msk.bf16.mxu0 %vm201_vm3, %v607_v49 }
  0x94   : > { %v609_v50 = vpop.permute.xlu1 %608 }
  0x95   : > { %1198 = vmatmul.mubr.msk.bf16.vlgmr.msra.gmra.mrb[0].mxu0 %vm201_vm3, %v609_v50 }
  0x96   : > { %1202 = vmatpush3.bf16.msra.mxu0 %v1271_v45  ;;  %1203 = vmatprep.mubr.msk.bf16.mxu0 %vm201_vm3, %v1365_v38  ;;  %v463_v38 = vpop.permute.xlu0 %462 }
  0x97   : > { %1207 = vmatprep.subr.bf16.mxu0 %v1273_v1 }
  0x99   : > { %1174 = vmatmul.mubr.msk.bf16.vlgmr.msra.gmra.mrb[0].mxu1 %vm201_vm3, %v1339_v4  ;;  %v764_v4 = vpop.permute.xlu1 %763 }
  0x9a   : > { %1178 = vmatpush3.bf16.msra.mxu1 %v1272_v30  ;;  %1179 = vmatprep.mubr.msk.bf16.mxu1 %vm201_vm3, %v1374_v48 }
  0x9b   : > { %1183 = vmatprep.subr.bf16.mxu1 %v1274_v29 }
  0x9d   : > { %v465_v48 = vpop.permute.xlu1 %464 }
  0xa1   : > { %1204 = vmatmul.mubr.msk.bf16.vlgmr.msra.gmra.mrb[0].mxu0 %vm201_vm3, %v1388_v54 }
  0xa2   : > { %1208 = vmatpush3.bf16.msra.mxu0 %v1273_v1  ;;  %1209 = vmatprep.mubr.msk.bf16.mxu0 %vm201_vm3, %v762_v3 }
  0xa3   : > { %1213 = vmatprep.subr.bf16.mxu0 %v1275_v51 }
  0xa5   : > { %1180 = vmatmul.mubr.msk.bf16.vlgmr.msra.gmra.mrb[0].mxu1 %vm201_vm3, %v1383_v53 }
  0xa6   : > { %1184 = vmatpush3.bf16.msra.mxu1 %v1274_v29  ;;  %1185 = vmatprep.mubr.msk.bf16.mxu1 %vm201_vm3, %v463_v38 }
  0xad   : > { %1210 = vmatmul.mubr.msk.bf16.vlgmr.msra.gmra.mrb[0].mxu0 %vm201_vm3, %v764_v4 }
  0xae   : > { %1214 = vmatpush3.bf16.msra.mxu0 %v1275_v51  ;;  %1215 = vmatprep.mubr.msk.bf16.mxu0 %vm201_vm3, %v1121_v33 }
  0xb1   : > { %1186 = vmatmul.mubr.msk.bf16.vlgmr.msra.gmra.mrb[0].mxu1 %vm201_vm3, %v465_v48 }
  0xb9   : > { %1216 = vmatmul.mubr.msk.bf16.vlgmr.msra.gmra.mrb[0].mxu0 %vm201_vm3, %v1122_v42 }
 0x184   : > { %v1187_v52 = vpop.f32.mrb[0].mxu1 }
 0x185   : > { %v512_v54 = vpop.f32.mrb[1].mxu1 }
 0x186   : > { %v1188_v55 = vpop.f32.mrb[2].mxu1 }
 0x187   : > { %v515_v56 = vpop.f32.mrb[3].mxu1 }
 0x18c   : > { %v1217_v53 = vpop.f32.mrb[0].mxu0 }
 0x18d   : > { %v1219_v58 = vadd.f32 %v1217_v53, %v1187_v52  ;;  %v949_v59 = vpop.f32.mrb[1].mxu0 }
 0x18e   : > { %v1220_v60 = vadd.f32 %v949_v59, %v512_v54  ;;  %v1218_v61 = vpop.f32.mrb[2].mxu0 }
 0x18f   : > { %v977_v62 = vadd.f32 %v1219_v58, %v1126_v57  ;;  %v1221_v63 = vadd.f32 %v1218_v61, %v1188_v55  ;;  %v952_v0 = vpop.f32.mrb[3].mxu0 }
 0x190   : > { %v975_v2 = vadd.f32 %v1220_v60, %v1126_v57  ;;  %v1222_v5 = vadd.f32 %v952_v0, %v515_v56 }
 0x191   : > { %v1136_v6 = vpack.c.bf16 %v977_v62, %v977_v62  ;;  %v978_v7 = vadd.f32 %v1221_v63, %v1126_v57 }
 0x192   : > { %v1134_v8 = vpack.c.bf16 %v975_v2, %v975_v2  ;;  %v976_v9 = vadd.f32 %v1222_v5, %v1126_v57 }
 0x193   : > { %998 = vst.msk [vmem:[%s170_s19 + $0x8] sm:$0xf] %vm995_vm4, %v1136_v6  ;;  %v1137_v10 = vpack.c.bf16 %v978_v7, %v978_v7 }
 0x194   : > { %996 = vst.msk [vmem:[%s170_s19] sm:$0xf] %vm995_vm4, %v1134_v8  ;;  %v1135_v11 = vpack.c.bf16 %v976_v9, %v976_v9 }
 0x195   : > { %999 = vst.msk [vmem:[%s170_s19 + $0xc] sm:$0xf] %vm995_vm4, %v1137_v10 }
 0x196   : > { %997 = vst.msk [vmem:[%s170_s19 + $0x4] sm:$0xf] %vm995_vm4, %v1135_v11 }
 0x197 PF: > { %s13_s12 = sadd.s32 1, %s1282_s12  }
 0x198   : > { %p10_p4 = scmp.ge.s32.totalorder %s13_s12, 4  }
 0x19a   :  { %12 = sbr.rel (!%p10_p4) target bundleno = 1 (0x1), region = 71 }

// kernel: forward.15
= control target key start
LH: loop header
LB: loop body
LE: loop exit
PB: predicated region body
PF: predicated region fallthrough
CT: control target
= control target key end

     0   :  { %s1700_s12 = smov 0   ;;  %s1922_s0 = inlined_call_operand.vmem [shape: bf16[2,5,9,64], index: 0, kind: input, shape index: {}]   ;;  %s1923_s1 = inlined_call_operand.vmem [shape: bf16[9,64,32], index: 1, kind: input, shape index: {}]   ;;  %s1924_s2 = inlined_call_operand.vmem [shape: f32[1,128], index: 2, kind: input, shape index: {}]   ;;  %s1925_s3 = inlined_call_operand.vmem [shape: bf16[2,32,128], index: 3, kind: output, shape index: {}]  }
   0x1 LB: > { %s1266_s13 = sadd.s32 4294967295, %s1675_s12   ;;  %p1270_p0 = scmp.ge.s32.totalorder %s1675_s12, 1  ;;  %s1675_s12 = sphi %s1700_s12, %s13_s12  }
   0x2   : > { %p137_p1 = scmp.lt.s32.totalorder %s1675_s12, 3 }
   0x4   : > { %p138_p2 = pnand %p1270_p0, %p137_p1 }
   0x5   : > { %v1629_v0 = vld [vmem:[%s1923_s1] sm:$0xff] (!%p138_p2)   ;;  %p161_p3 = scmp.lt.s32.totalorder (!%p138_p2), %s1266_s13, 1  ;;  %v1631_v2 = vld [vmem:[%s1923_s1 + $0x8] sm:$0xff] (!%p138_p2)   ;;  %v1633_v4 = vld [vmem:[%s1923_s1 + $0x10] sm:$0xff] (!%p138_p2)   ;;  %vm218_vm0 = vcmask (!%p138_p2), 523264   ;;  %s1677_s16 = smov (!%p138_p2), 32  }
   0x6   : > { %141 = sbr.rel (%p138_p2) target bundleno = 429 (0x1ad), region = 32  ;;  %v1630_v1 = vld [vmem:[%s1923_s1 + $0x20] sm:$0xff] (!%p138_p2)   ;;  %1489 = vmatprep.subr.bf16.mxu0 (!%p138_p2), %v1629_v0  ;;  %v1632_v3 = vld [vmem:[%s1923_s1 + $0x28] sm:$0xff] (!%p138_p2)   ;;  %v1634_v5 = vld [vmem:[%s1923_s1 + $0x30] sm:$0xff] (!%p138_p2)   ;;  %vm291_vm1 = vsmask.f32 (!%p138_p2), 3328 }
   0x7   : > { %1513 = vmatprep.subr.bf16.mxu1 (!%p138_p2), %v1630_v1  ;;  %1490 = vmatpush3.bf16.msra.mxu0 (!%p138_p2), %v1629_v0  ;;  %v1635_v6 = vld [vmem:[%s1923_s1 + $0x18] sm:$0xff] (!%p138_p2)   ;;  %v1638_v9 = vld [vmem:[%s1923_s1 + $0x40] sm:$0xff] (!%p138_p2)   ;;  %v1641_v12 = vld [vmem:[%s1923_s1 + $0x48] sm:$0xff] (!%p138_p2)   ;;  %vm292_vm2 = vsmask.f32 (!%p138_p2), 7440  ;;  %s1678_s17 = smov (!%p138_p2), 64  }
   0x8   : > { %1514 = vmatpush3.bf16.msra.mxu1 (!%p138_p2), %v1630_v1  ;;  %1491 = vmatprep.subr.bf16.mxu0 (!%p138_p2), %v1631_v2  ;;  %v1636_v8 = vld [vmem:[%s1923_s1 + $0x38] sm:$0xff] (!%p138_p2)   ;;  %v1640_v10 = vld [vmem:[%s1923_s1 + $0xc0] sm:$0xff] (!%p138_p2)   ;;  %v1642_v13 = vld [vmem:[%s1923_s1 + $0xc8] sm:$0xff] (!%p138_p2)   ;;  %s1679_s18 = smov (!%p138_p2), 96   ;;  %vm1162_vm4 = vcmask (!%p138_p2), 261120   ;;  %vm1171_vm5 = vcmask (!%p138_p2), 785408  }
   0x9   : > { %1515 = vmatprep.subr.bf16.mxu1 (!%p138_p2), %v1632_v3  ;;  %v1643_v14 = vld [vmem:[%s1923_s1 + $0x50] sm:$0xff] (!%p138_p2)   ;;  %v1645_v38 = vld [vmem:[%s1923_s1 + $0x58] sm:$0xff] (!%p138_p2)   ;;  %vm1788_vm3 = vmor (!%p138_p2), %vm291_vm1, %vm292_vm2 }
   0xa   : > { %v1644_v18 = vld [vmem:[%s1923_s1 + $0xd0] sm:$0xff] (!%p138_p2)   ;;  %v1646_v43 = vld [vmem:[%s1923_s1 + $0xd8] sm:$0xff] (!%p138_p2)   ;;  %v1647_v60 = vld [vmem:[%s1923_s1 + $0x80] sm:$0xff] (!%p138_p2)  }
   0xb   : > { %1492 = vmatpush3.bf16.msra.mxu0 (!%p138_p2), %v1631_v2  ;;  %v1648_v63 = vld [vmem:[%s1923_s1 + $0xa0] sm:$0xff] (!%p138_p2)   ;;  %v1649_v2 = vld [vmem:[%s1923_s1 + $0x88] sm:$0xff] (!%p138_p2)  }
   0xc   : > { %1516 = vmatpush3.bf16.msra.mxu1 (!%p138_p2), %v1632_v3  ;;  %1493 = vmatprep.subr.bf16.mxu0 (!%p138_p2), %v1633_v4 }
   0xd   : > { %s1929_s13 = smov (!%p161_p3, %s1266_s13), 1  ;;  %1517 = vmatprep.subr.bf16.mxu1 %v1634_v5 }
   0xe   : > { %s1617_s24 = smul.u32 40, %s1929_s13  ;;  %s1419_s21 = sshll.u32 %s1929_s13, 4 }
   0xf   : > { %1494 = vmatpush3.bf16.msra.mxu0 %v1633_v4  ;;  %v1650_v4 = vld [vmem:[%s1923_s1 + $0xa8] sm:$0xff]  }
  0x10   : > { %s1732_s29 = scalar_lea.vmem %s1922_s0, %s1617_s24  ;;  %1518 = vmatpush3.bf16.msra.mxu1 %v1634_v5  ;;  %1495 = vmatprep.subr.bf16.mxu0 %v1635_v6  ;;  %s170_s24 = scalar_lea.vmem %s1925_s3, %s1419_s21 }
  0x11   : > { %v1738_v7 = vld [vmem:[%s1732_s29] ss:$8 sps:$4 sm:$0xff]   ;;  %1519 = vmatprep.subr.bf16.mxu1 %v1636_v8  ;;  %v1754_v11 = vld [vmem:[%s1732_s29 + $0x10] ss:$8 sps:$4 sm:$0xff]   ;;  %v284_v16 = vld [vmem:[%s1732_s29 + $0x4] sm:$0x1] }
  0x12   : > { %1521 = vmatprep.mubr.msk.bf16.mxu1 %vm218_vm0, %v1738_v7  ;;  %1497 = vmatprep.mubr.msk.bf16.mxu0 %vm218_vm0, %v1738_v7  ;;  %v283_v15 = vld [vmem:[%s1732_s29] sm:$0xf]  ;;  %v285_v17 = vld [vmem:[%s1732_s29 + $0x8] sm:$0xf]  ;;  %v286_v19 = vld [vmem:[%s1732_s29 + $0xc] sm:$0x1] }
  0x13   : > { %1496 = vmatpush3.bf16.msra.mxu0 %v1635_v6  ;;  %v295_v20 = vshrl.u32 %v283_v15, 16  ;;  %v298_v21 = vshll.u32 %v283_v15, 16  ;;  %v304_v22 = vshll.u32 %v284_v16, 16  ;;  %v309_v23 = vshrl.u32 %v285_v17, 16  ;;  %v287_v24 = vld [vmem:[%s1732_s29 + $0x10] sm:$0xf] }
  0x14   : > { %1520 = vmatpush3.bf16.msra.mxu1 %v1636_v8  ;;  %1501 = vmatprep.subr.bf16.mxu0 %v1638_v9  ;;  %v312_v25 = vshll.u32 %v285_v17, 16  ;;  %v318_v26 = vshll.u32 %v286_v19, 16  ;;  %v288_v27 = vld [vmem:[%s1732_s29 + $0x14] sm:$0x1]  ;;  %v289_v28 = vld [vmem:[%s1732_s29 + $0x18] sm:$0xf] }
  0x15   : > { %1549 = vmatprep.subr.bf16.mxu1 %v1640_v10  ;;  %v297_v29 = vrot.slane %v295_v20, 4  ;;  %v300_v30 = vrot.slane %v298_v21, 5  ;;  %v306_v31 = vrot.slane %v304_v22, 5  ;;  %v311_v32 = vrot.slane %v309_v23, 4  ;;  %v290_v33 = vld [vmem:[%s1732_s29 + $0x1c] sm:$0x1] }
  0x16   : > { %1498 = vmatmul.mubr.msk.bf16.vlgmr.msra.gmra.mrb[0].mxu0 %vm218_vm0, %v1754_v11  ;;  %v314_v34 = vrot.slane %v312_v25, 5  ;;  %v320_v35 = vrot.slane %v318_v26, 5  ;;  %v323_v36 = vshrl.u32 %v287_v24, 16  ;;  %v326_v37 = vshll.u32 %v287_v24, 16  ;;  %v1655_v5 = vld [vmem:[%s1732_s29 + $0x8] ss:$8 sps:$4 sm:$0xff]  }
  0x17   : > { %1522 = vmatmul.mubr.msk.bf16.vlgmr.msra.gmra.mrb[0].mxu1 %vm218_vm0, %v1754_v11  ;;  %1502 = vmatpush3.bf16.msra.mxu0 %v1638_v9  ;;  %v301_v39 = vor.u32 %v300_v30, %v297_v29  ;;  %v332_v40 = vshll.u32 %v288_v27, 16  ;;  %v337_v41 = vshrl.u32 %v289_v28, 16  ;;  %v340_v42 = vshll.u32 %v289_v28, 16  ;;  %v1651_v6 = vld [vmem:[%s1923_s1 + $0x90] sm:$0xff]   ;;  %v1653_v9 = vld [vmem:[%s1923_s1 + $0x98] sm:$0xff]   ;;  %v1659_v19 = vld [vmem:[%s1923_s1 + $0x68] sm:$0xff]  }
  0x18   : > { %1550 = vmatpush3.bf16.msra.mxu1 %v1640_v10  ;;  %1503 = vmatprep.subr.bf16.mxu0 %v1641_v12  ;;  %v315_v45 = vor.u32 %v314_v34, %v311_v32  ;;  %v325_v46 = vrot.slane %v323_v36, 4  ;;  %v328_v47 = vrot.slane %v326_v37, 5  ;;  %v346_v48 = vshll.u32 %v290_v33, 16  ;;  %v1652_v8 = vld [vmem:[%s1923_s1 + $0xb0] sm:$0xff]   ;;  %v1654_v10 = vld [vmem:[%s1923_s1 + $0xb8] sm:$0xff]   ;;  %v1660_v20 = vld [vmem:[%s1923_s1 + $0xe8] sm:$0xff]  }
  0x19   : > { %1551 = vmatprep.subr.bf16.mxu1 %v1642_v13  ;;  %v302_v49 = vrot.slane %v301_v39, 4  ;;  %v339_v50 = vrot.slane %v337_v41, 4  ;;  %v342_v51 = vrot.slane %v340_v42, 5  ;;  %v334_v54 = vrot.slane %v332_v40, 5  ;;  %v1388_v15 = vld [vmem:[%s1732_s29 + $0x8] sm:$0xf] }
  0x1a   : > { %v316_v52 = vrot.slane %v315_v45, 4  ;;  %v329_v53 = vor.u32 %v328_v47, %v325_v46  ;;  %v348_v57 = vrot.slane %v346_v48, 5  ;;  %v1390_v16 = vld [vmem:[%s1732_s29 + $0x10] sm:$0xf]  ;;  %v961_v17 = vshrl.u32 %v1388_v15, 16  ;;  %v1664_v36 = vld [vmem:[%s1923_s1 + $0xf8] sm:$0xff]  }
  0x1b   : > { %1504 = vmatpush3.bf16.msra.mxu0 %v1641_v12  ;;  %v307_v55 = vsel %vm1788_vm3, %v302_v49, %v306_v31  ;;  %v343_v56 = vor.u32 %v342_v51, %v339_v50  ;;  %v1656_v12 = vld [vmem:[%s1923_s1 + $0x60] sm:$0xff]   ;;  %v975_v21 = vshrl.u32 %v1390_v16, 16  ;;  %v978_v22 = vshll.u32 %v1390_v16, 16  ;;  %v1389_v23 = vld [vmem:[%s1732_s29 + $0xc] sm:$0x1]  ;;  %v1661_v29 = vld [vmem:[%s1923_s1 + $0x70] sm:$0xff]  }
  0x1c   : > { %1552 = vmatpush3.bf16.msra.mxu1 %v1642_v13  ;;  %1505 = vmatprep.subr.bf16.mxu0 %v1643_v14  ;;  %v321_v58 = vsel %vm1788_vm3, %v316_v52, %v320_v35  ;;  %v330_v59 = vrot.slane %v329_v53, 4  ;;  %v1657_v13 = vld [vmem:[%s1923_s1 + $0xe0] sm:$0xff]   ;;  %v1391_v24 = vld [vmem:[%s1732_s29 + $0x14] sm:$0x1]  ;;  %v963_v25 = vrot.slane %v961_v17, 4  ;;  %v970_v32 = vshll.u32 %v1389_v23, 16 }
  0x1d   : > { %1553 = vmatprep.subr.bf16.mxu1 %v1644_v18  ;;  %v1298_v61 = vcombine.low %v307_v55, %v321_v58  ;;  %v344_v62 = vrot.slane %v343_v56, 4  ;;  %v977_v27 = vrot.slane %v975_v21, 4  ;;  %v980_v28 = vrot.slane %v978_v22, 5  ;;  %v1662_v30 = vld [vmem:[%s1923_s1 + $0xf0] sm:$0xff]   ;;  %v1663_v35 = vld [vmem:[%s1923_s1 + $0x78] sm:$0xff]   ;;  %v1665_v47 = vld [vmem:[%s1923_s1 + $0x100] sm:$0xff]  }
  0x1e   : > { %v335_v0 = vsel %vm1788_vm3, %v330_v59, %v334_v54  ;;  %v984_v34 = vshll.u32 %v1391_v24, 16  ;;  %v1392_v37 = vld [vmem:[%s1732_s29 + $0x18] sm:$0xf]  ;;  %v972_v39 = vrot.slane %v970_v32, 5  ;;  %v1666_v55 = vld [vmem:[%s1923_s1 + $0x108] sm:$0xff]  }
  0x1f   : > { %1506 = vmatpush3.bf16.msra.mxu0 %v1643_v14  ;;  %1509 = vmatprep.mubr.msk.bf16.mxu0 %vm218_vm0, %v1298_v61  ;;  %v349_v1 = vsel %vm1788_vm3, %v344_v62, %v348_v57  ;;  %v1839_v14 = vld [vmem:[%s1732_s29 + $0x18] ss:$8 sps:$4 sm:$0xff]   ;;  %v981_v33 = vor.u32 %v980_v28, %v977_v27  ;;  %v989_v42 = vshrl.u32 %v1392_v37, 16  ;;  %v1393_v56 = vld [vmem:[%s1732_s29 + $0x1c] sm:$0x1]  ;;  %v1667_v62 = vld [vmem:[%s1923_s1 + $0x110] sm:$0xff]  }
  0x20   : > { %1554 = vmatpush3.bf16.msra.mxu1 %v1644_v18  ;;  %1507 = vmatprep.subr.bf16.mxu0 %v1645_v38  ;;  %v1299_v3 = vcombine.low %v335_v0, %v349_v1  ;;  %v964_v18 = vshll.u32 %v1388_v15, 16  ;;  %v986_v41 = vrot.slane %v984_v34, 5  ;;  %v1395_v57 = vld [vmem:[%s1732_s29 + $0x24] sm:$0x1]  ;;  %v998_v59 = vshll.u32 %v1393_v56, 16 }
  0x21   : > { %1555 = vmatprep.subr.bf16.mxu1 %v1646_v43  ;;  %1557 = vmatprep.mubr.msk.bf16.mxu1 %vm218_vm0, %v1298_v61  ;;  %v982_v40 = vrot.slane %v981_v33, 4  ;;  %v991_v50 = vrot.slane %v989_v42, 4  ;;  %v1012_v61 = vshll.u32 %v1395_v57, 16 }
  0x22   : > { %v966_v26 = vrot.slane %v964_v18, 5  ;;  %v1000_v0 = vrot.slane %v998_v59, 5 }
  0x23   : > { %1508 = vmatpush3.bf16.msra.mxu0 %v1645_v38  ;;  %v987_v49 = vsel %vm1788_vm3, %v982_v40, %v986_v41  ;;  %v1412_v40 = vld [vmem:[%s1924_s2] ss:$0 sm:$0xff] }
  0x24   : > { %1556 = vmatpush3.bf16.msra.mxu1 %v1646_v43  ;;  %1525 = vmatprep.subr.bf16.mxu0 %v1647_v60  ;;  %v967_v31 = vor.u32 %v966_v26, %v963_v25  ;;  %v992_v43 = vshll.u32 %v1392_v37, 16 }
  0x25   : > { %1561 = vmatprep.subr.bf16.mxu1 %v1648_v63 }
  0x26   : > { %1510 = vmatmul.mubr.msk.bf16.vlgmr.msra.gmra.mrb[4].mxu0 %vm218_vm0, %v1299_v3  ;;  %v968_v38 = vrot.slane %v967_v31, 4  ;;  %v994_v52 = vrot.slane %v992_v43, 5 }
  0x27   : > { %1558 = vmatmul.mubr.msk.bf16.vlgmr.msra.gmra.mrb[4].mxu1 %vm218_vm0, %v1299_v3  ;;  %1526 = vmatpush3.bf16.msra.mxu0 %v1647_v60 }
  0x28   : > { %1562 = vmatpush3.bf16.msra.mxu1 %v1648_v63  ;;  %1527 = vmatprep.subr.bf16.mxu0 %v1649_v2  ;;  %v973_v48 = vsel %vm1788_vm3, %v968_v38, %v972_v39  ;;  %v995_v58 = vor.u32 %v994_v52, %v991_v50 }
  0x29   : > { %1563 = vmatprep.subr.bf16.mxu1 %v1650_v4  ;;  %1533 = vmatprep.mubr.msk.bf16.mxu0 %vm218_vm0, %v1655_v5  ;;  %v1404_v51 = vcombine.low %v973_v48, %v987_v49 }
  0x2a   : > { %1569 = vmatprep.mubr.msk.bf16.mxu1 %vm218_vm0, %v1738_v7  ;;  %v996_v63 = vrot.slane %v995_v58, 4 }
  0x2b   : > { %1528 = vmatpush3.bf16.msra.mxu0 %v1649_v2  ;;  %v1668_v2 = vld [vmem:[%s1923_s1 + $0x118] sm:$0xff]  }
  0x2c   : > { %1564 = vmatpush3.bf16.msra.mxu1 %v1650_v4  ;;  %1529 = vmatprep.subr.bf16.mxu0 %v1651_v6  ;;  %v1001_v3 = vsel %vm1788_vm3, %v996_v63, %v1000_v0 }
  0x2d   : > { %1565 = vmatprep.subr.bf16.mxu1 %v1652_v8 }
  0x2f   : > { %1530 = vmatpush3.bf16.msra.mxu0 %v1651_v6 }
  0x30   : > { %1566 = vmatpush3.bf16.msra.mxu1 %v1652_v8  ;;  %1531 = vmatprep.subr.bf16.mxu0 %v1653_v9 }
  0x31   : > { %1567 = vmatprep.subr.bf16.mxu1 %v1654_v10 }
  0x33   : > { %1532 = vmatpush3.bf16.msra.mxu0 %v1653_v9 }
  0x34   : > { %1568 = vmatpush3.bf16.msra.mxu1 %v1654_v10  ;;  %1537 = vmatprep.subr.bf16.mxu0 %v1656_v12 }
  0x35   : > { %1573 = vmatprep.subr.bf16.mxu1 %v1657_v13 }
  0x36   : > { %1534 = vmatmul.mubr.msk.bf16.vlgmr.msra.gmra.mrb[8].mxu0 %vm218_vm0, %v1839_v14 }
  0x37   : > { %1570 = vmatmul.mubr.msk.bf16.vlgmr.msra.gmra.mrb[4].mxu1 %vm218_vm0, %v1754_v11  ;;  %1538 = vmatpush3.bf16.msra.mxu0 %v1656_v12 }
  0x38   : > { %1574 = vmatpush3.bf16.msra.mxu1 %v1657_v13  ;;  %1539 = vmatprep.subr.bf16.mxu0 %v1659_v19 }
  0x39   : > { %1575 = vmatprep.subr.bf16.mxu1 %v1660_v20  ;;  %1545 = vmatprep.mubr.msk.bf16.mxu0 %vm218_vm0, %v1738_v7  ;;  %v1394_v7 = vld [vmem:[%s1732_s29 + $0x20] sm:$0xf] }
  0x3a   : > { %1581 = vmatprep.mubr.msk.bf16.mxu1 %vm218_vm0, %v1655_v5  ;;  %v1003_v45 = vshrl.u32 %v1394_v7, 16  ;;  %v1006_v46 = vshll.u32 %v1394_v7, 16 }
  0x3b   : > { %1540 = vmatpush3.bf16.msra.mxu0 %v1659_v19 }
  0x3c   : > { %1576 = vmatpush3.bf16.msra.mxu1 %v1660_v20  ;;  %1541 = vmatprep.subr.bf16.mxu0 %v1661_v29  ;;  %v1005_v53 = vrot.slane %v1003_v45, 4  ;;  %v1008_v54 = vrot.slane %v1006_v46, 5 }
  0x3d   : > { %1577 = vmatprep.subr.bf16.mxu1 %v1662_v30 }
  0x3e   : > { %v1009_v60 = vor.u32 %v1008_v54, %v1005_v53 }
  0x3f   : > { %1542 = vmatpush3.bf16.msra.mxu0 %v1661_v29 }
  0x40   : > { %1578 = vmatpush3.bf16.msra.mxu1 %v1662_v30  ;;  %1543 = vmatprep.subr.bf16.mxu0 %v1663_v35  ;;  %v1010_v1 = vrot.slane %v1009_v60, 4 }
  0x41   : > { %1579 = vmatprep.subr.bf16.mxu1 %v1664_v36 }
  0x43   : > { %1544 = vmatpush3.bf16.msra.mxu0 %v1663_v35 }
  0x44   : > { %1580 = vmatpush3.bf16.msra.mxu1 %v1664_v36 }
  0x45   : > { %1585 = vmatprep.subr.bf16.mxu1 %v1665_v47 }
  0x46   : > { %1546 = vmatmul.mubr.msk.bf16.vlgmr.msra.gmra.mrb[8].mxu0 %vm218_vm0, %v1754_v11  ;;  %v1014_v11 = vrot.slane %v1012_v61, 5 }
  0x47   : > { %1582 = vmatmul.mubr.msk.bf16.vlgmr.msra.gmra.mrb[4].mxu1 %vm218_vm0, %v1839_v14 }
  0x48   : > { %1586 = vmatpush3.bf16.msra.mxu1 %v1665_v47  ;;  %1593 = vmatprep.mubr.msk.bf16.mxu1 %vm218_vm0, %v1404_v51  ;;  %v1015_v4 = vsel %vm1788_vm3, %v1010_v1, %v1014_v11 }
  0x49   : > { %1587 = vmatprep.subr.bf16.mxu1 %v1666_v55  ;;  %v1405_v5 = vcombine.low %v1001_v3, %v1015_v4 }
  0x4c   : > { %1588 = vmatpush3.bf16.msra.mxu1 %v1666_v55 }
  0x4d   : > { %1589 = vmatprep.subr.bf16.mxu1 %v1667_v62 }
  0x50   : > { %1590 = vmatpush3.bf16.msra.mxu1 %v1667_v62 }
  0x51   : > { %1591 = vmatprep.subr.bf16.mxu1 %v1668_v2 }
  0x54   : > { %1592 = vmatpush3.bf16.msra.mxu1 %v1668_v2 }
  0x57   : > { %1594 = vmatmul.mubr.msk.bf16.vlgmr.msra.gmra.mrb[4].mxu1 %vm218_vm0, %v1405_v5 }
  0xe9   : > { %v1499_v6 = vpop.f32.mrb[0].mxu0 }
  0xea   : > { %v1523_v8 = vpop.f32.mrb[0].mxu1  ;;  %v259_v9 = vpop.f32.mrb[1].mxu0 }
  0xeb   : > { %v502_v10 = vpop.f32.mrb[1].mxu1  ;;  %v1500_v12 = vpop.f32.mrb[2].mxu0 }
  0xec   : > { %v1524_v13 = vpop.f32.mrb[2].mxu1  ;;  %v262_v14 = vpop.f32.mrb[3].mxu0 }
  0xed   : > { %v505_v15 = vpop.f32.mrb[3].mxu1 }
  0xf9   : > { %v1511_v16 = vpop.f32.mrb[4].mxu0 }
  0xfa   : > { %v511_v17 = vadd.f32 %v1523_v8, %v1511_v16  ;;  %v429_v18 = vpop.f32.mrb[5].mxu0 }
  0xfb   : > { %v503_v19 = vadd.f32 %v502_v10, %v429_v18  ;;  %v1512_v20 = vpop.f32.mrb[6].mxu0 }
  0xfc   : > { %v514_v44 = vadd.f32 %v1524_v13, %v1512_v20  ;;  %1122 = vrot.lane.b32.xlu1 %v511_v17, %s1677_s16  ;;  %v432_v21 = vpop.f32.mrb[7].mxu0 }
  0xfd   : > { %v506_v22 = vadd.f32 %v505_v15, %v432_v21  ;;  %1118 = vrot.lane.b32.xlu0 %v503_v19, %s1677_s16 }
 0x100   : > { %1124 = vrot.lane.b32.xlu1 %v514_v44, %s1677_s16 }
 0x101   : > { %1120 = vrot.lane.b32.xlu0 %v506_v22, %s1677_s16 }
 0x119   : > { %v1547_v23 = vpop.f32.mrb[8].mxu0 }
 0x11a   : > { %v687_v24 = vpop.f32.mrb[9].mxu0  ;;  %1138 = vrot.lane.b32.xlu0 %v1547_v23, %s1678_s17 }
 0x11b   : > { %v1548_v25 = vpop.f32.mrb[10].mxu0 }
 0x11c   : > { %1140 = vrot.lane.b32.xlu1 %v1548_v25, %s1678_s17  ;;  %v690_v26 = vpop.f32.mrb[11].mxu0 }
 0x11e   : > { %1134 = vrot.lane.b32.xlu0 %v687_v24, %s1678_s17 }
 0x120   : > { %1136 = vrot.lane.b32.xlu1 %v690_v26, %s1678_s17 }
 0x12a   : > { %v1595_v27 = vpop.f32.mrb[4].mxu1 }
 0x12b   : > { %v1095_v28 = vpop.f32.mrb[5].mxu1 }
 0x12c   : > { %v1596_v29 = vpop.f32.mrb[6].mxu1  ;;  %1150 = vrot.lane.b32.xlu0 %v1095_v28, %s1679_s18 }
 0x12d   : > { %v1098_v30 = vpop.f32.mrb[7].mxu1 }
 0x12e   : > { %1152 = vrot.lane.b32.xlu1 %v1098_v30, %s1679_s18 }
 0x130   : > { %1154 = vrot.lane.b32.xlu0 %v1595_v27, %s1679_s18 }
 0x132   : > { %1156 = vrot.lane.b32.xlu1 %v1596_v29, %s1679_s18 }
 0x16e   : > { %v1123_v32 = vpop.permute.xlu1 %1122 }
 0x16f   : > { %v1119_v31 = vpop.permute.xlu0 %1118  ;;  %v1165_v48 = vsel %vm1162_vm4, %v1499_v6, %v1123_v32 }
 0x170   : > { %v1163_v39 = vsel %vm1162_vm4, %v259_v9, %v1119_v31 }
 0x172   : > { %v1125_v34 = vpop.permute.xlu1 %1124 }
 0x173   : > { %v1121_v33 = vpop.permute.xlu0 %1120  ;;  %v1166_v53 = vsel %vm1162_vm4, %v1500_v12, %v1125_v34 }
 0x174   : > { %v1164_v42 = vsel %vm1162_vm4, %v262_v14, %v1121_v33 }
 0x18c   : > { %v1139_v35 = vpop.permute.xlu0 %1138 }
 0x18d   : > { %v1169_v50 = vsel %vm218_vm0, %v1165_v48, %v1139_v35 }
 0x18e   : > { %v1141_v36 = vpop.permute.xlu1 %1140 }
 0x18f   : > { %v1170_v55 = vsel %vm218_vm0, %v1166_v53, %v1141_v36 }
 0x190   : > { %v1135_v37 = vpop.permute.xlu0 %1134 }
 0x191   : > { %v1167_v41 = vsel %vm218_vm0, %v1163_v39, %v1135_v37 }
 0x192   : > { %v1137_v38 = vpop.permute.xlu1 %1136 }
 0x193   : > { %v1168_v45 = vsel %vm218_vm0, %v1164_v42, %v1137_v38 }
 0x19e   : > { %v1151_v7 = vpop.permute.xlu0 %1150 }
 0x19f   : > { %v1172_v43 = vsel %vm1171_vm5, %v1167_v41, %v1151_v7 }
 0x1a0   : > { %v1183_v46 = vadd.f32 %v1412_v40, %v1172_v43  ;;  %v1153_v47 = vpop.permute.xlu1 %1152 }
 0x1a1   : > { %v1173_v49 = vsel %vm1171_vm5, %v1168_v45, %v1153_v47 }
 0x1a2   : > { %v1184_v51 = vadd.f32 %v1412_v40, %v1173_v49  ;;  %v1155_v52 = vpop.permute.xlu0 %1154  ;;  %v1187_v56 = vmax.f32 %v1183_v46, 0.0 }
 0x1a3   : > { %v1174_v54 = vsel %vm1171_vm5, %v1169_v50, %v1155_v52 }
 0x1a4   : > { %v1188_v57 = vmax.f32 %v1184_v51, 0.0  ;;  %v1185_v58 = vadd.f32 %v1412_v40, %v1174_v54  ;;  %v1157_v59 = vpop.permute.xlu1 %1156 }
 0x1a5   : > { %v1175_v60 = vsel %vm1171_vm5, %v1170_v55, %v1157_v59 }
 0x1a6   : > { %v1427_v61 = vpack.c.bf16 %v1188_v57, %v1187_v56  ;;  %v1186_v62 = vadd.f32 %v1412_v40, %v1175_v60  ;;  %v1189_v63 = vmax.f32 %v1185_v58, 0.0 }
 0x1a8   : > { %1428 = vst [vmem:[%s170_s24] sm:$0xff] %v1427_v61   ;;  %v1190_v0 = vmax.f32 %v1186_v62, 0.0 }
 0x1aa   : > { %v1432_v1 = vpack.c.bf16 %v1190_v0, %v1189_v63 }
 0x1ac   : > { %1434 = vst [vmem:[%s170_s24 + $0x8] sm:$0xff] %v1432_v1  }
 0x1ad PF: > { %s13_s12 = sadd.s32 1, %s1675_s12  }
 0x1ae   : > { %p10_p4 = scmp.ge.s32.totalorder %s13_s12, 4  }
 0x1b0   :  { %12 = sbr.rel (!%p10_p4) target bundleno = 1 (0x1), region = 71 }

// kernel: forward.16
= control target key start
LH: loop header
LB: loop body
LE: loop exit
PB: predicated region body
PF: predicated region fallthrough
CT: control target
= control target key end

     0   :  { %s1976_s12 = smov 0   ;;  %s2279_s0 = inlined_call_operand.vmem [shape: bf16[2,9,9,32], index: 0, kind: input, shape index: {}]   ;;  %s2280_s1 = inlined_call_operand.vmem [shape: bf16[9,32,16], index: 1, kind: input, shape index: {}]   ;;  %s2281_s2 = inlined_call_operand.vmem [shape: f32[1,64], index: 2, kind: input, shape index: {}]   ;;  %s2282_s3 = inlined_call_operand.vmem [shape: bf16[2,64,64], index: 3, kind: output, shape index: {}]  }
   0x1 LB: > { %s1547_s13 = sadd.s32 4294967295, %s1951_s12   ;;  %p1551_p0 = scmp.ge.s32.totalorder %s1951_s12, 1  ;;  %s1951_s12 = sphi %s1976_s12, %s13_s12  }
   0x2   : > { %p137_p1 = scmp.lt.s32.totalorder %s1951_s12, 3 }
   0x4   : > { %p138_p2 = pnand %p1551_p0, %p137_p1 }
   0x5   : > { %v1919_v0 = vld [vmem:[%s2280_s1] sm:$0xff] (!%p138_p2)   ;;  %p161_p3 = scmp.lt.s32.totalorder (!%p138_p2), %s1547_s13, 1  ;;  %v1990_v1 = vld [vmem:[%s2280_s1 + $0x10] sm:$0xff] (!%p138_p2)   ;;  %v1921_v2 = vld [vmem:[%s2280_s1 + $0x8] sm:$0xff] (!%p138_p2)   ;;  %vm216_vm0 = vcmask (!%p138_p2), 261120   ;;  %s1954_s30 = smov (!%p138_p2), 32  }
   0x6   : > { %141 = sbr.rel (%p138_p2) target bundleno = 440 (0x1b8), region = 32  ;;  %1755 = vmatprep.subr.bf16.mxu0 (!%p138_p2), %v1919_v0  ;;  %1863 = vmatprep.subr.bf16.mxu1 (!%p138_p2), %v1990_v1  ;;  %v2001_v3 = vld [vmem:[%s2280_s1 + $0x18] sm:$0xff] (!%p138_p2)   ;;  %v1925_v4 = vld [vmem:[%s2280_s1 + $0x20] sm:$0xff] (!%p138_p2)   ;;  %v1929_v8 = vld [vmem:[%s2280_s1 + $0x68] sm:$0xff] (!%p138_p2)   ;;  %vm315_vm1 = vsmask.f32 (!%p138_p2), 3328 }
   0x7   : > { %1756 = vmatpush3.bf16.msra.mxu0 (!%p138_p2), %v1919_v0  ;;  %1865 = vmatpush3.bf16.msra.mxu1 (!%p138_p2), %v1990_v1  ;;  %v1928_v5 = vld [vmem:[%s2280_s1 + $0x60] sm:$0xff] (!%p138_p2)   ;;  %v1930_v11 = vld [vmem:[%s2280_s1 + $0x28] sm:$0xff] (!%p138_p2)   ;;  %vm316_vm2 = vsmask.f32 (!%p138_p2), 7440  ;;  %v1931_v39 = vld [vmem:[%s2280_s1 + $0x50] sm:$0xff] (!%p138_p2)   ;;  %s1955_s4 = smov (!%p138_p2), 48  }
   0x8   : > { %1757 = vmatprep.subr.bf16.mxu0 (!%p138_p2), %v1921_v2  ;;  %1864 = vmatprep.subr.bf16.mxu1 (!%p138_p2), %v2001_v3  ;;  %vm2063_vm3 = vmor (!%p138_p2), %vm315_vm1, %vm316_vm2  ;;  %vm1410_vm4 = vcmask (!%p138_p2), 130048   ;;  %vm1427_vm5 = vcmask (!%p138_p2), 392192   ;;  %vm1483_vm6 = vcmask (!%p138_p2), 519168  }
   0xb   : > { %1758 = vmatpush3.bf16.msra.mxu0 (!%p138_p2), %v1921_v2  ;;  %1866 = vmatpush3.bf16.msra.mxu1 (!%p138_p2), %v2001_v3 }
   0xc   : > { %1767 = vmatprep.subr.bf16.mxu0 (!%p138_p2), %v1925_v4  ;;  %1815 = vmatprep.subr.bf16.mxu1 (!%p138_p2), %v1928_v5 }
   0xd   : > { %s2286_s13 = smov (!%p161_p3, %s1547_s13), 1 }
   0xe   : > { %s1907_s22 = smul.u32 72, %s2286_s13  ;;  %s1692_s7 = sshll.u32 %s2286_s13, 5 }
   0xf   : > { %s2234_s10 = scalar_lea.vmem %s2282_s3, %s1692_s7 }
  0x10   : > { %s2015_s29 = scalar_lea.vmem %s2279_s0, %s1907_s22 }
  0x11   : > { %v2018_v6 = vld [vmem:[%s2015_s29] ss:$8 sps:$4 sm:$0xff]   ;;  %v2022_v7 = vld [vmem:[%s2015_s29 + $0x10] ss:$8 sps:$4 sm:$0xff]   ;;  %v300_v13 = vld [vmem:[%s2015_s29 + $0x4] sm:$0x1] }
  0x12   : > { %1759 = vmatprep.mubr.msk.bf16.mxu0 %vm216_vm0, %v2018_v6  ;;  %v2030_v9 = vld [vmem:[%s2015_s29 + $0x20] ss:$8 sps:$4 sm:$0xff]   ;;  %v2035_v10 = vld [vmem:[%s2015_s29 + $0x30] ss:$8 sps:$4 sm:$0xff]   ;;  %v302_v15 = vld [vmem:[%s2015_s29 + $0xc] sm:$0x1] }
  0x13   : > { %1760 = vmatmul.mubr.msk.bf16.vlgmr.msra.gmra.mrb[0].mxu0 %vm216_vm0, %v2022_v7  ;;  %1787 = vmatprep.mubr.msk.bf16.mxu1 %vm216_vm0, %v2030_v9  ;;  %v299_v12 = vld [vmem:[%s2015_s29] sm:$0xf]  ;;  %v301_v14 = vld [vmem:[%s2015_s29 + $0x8] sm:$0xf]  ;;  %v328_v18 = vshll.u32 %v300_v13, 16  ;;  %v342_v22 = vshll.u32 %v302_v15, 16 }
  0x14   : > { %1768 = vmatpush3.bf16.msra.mxu0 %v1925_v4  ;;  %1788 = vmatmul.mubr.msk.bf16.vlgmr.msra.gmra.mrb[0].mxu1 %vm216_vm0, %v2035_v10  ;;  %v319_v16 = vshrl.u32 %v299_v12, 16  ;;  %v322_v17 = vshll.u32 %v299_v12, 16  ;;  %v333_v19 = vshrl.u32 %v301_v14, 16  ;;  %v303_v20 = vld [vmem:[%s2015_s29 + $0x10] sm:$0xf]  ;;  %v336_v21 = vshll.u32 %v301_v14, 16 }
  0x15   : > { %1763 = vmatprep.mubr.msk.bf16.mxu0 %vm216_vm0, %v2030_v9  ;;  %1816 = vmatpush3.bf16.msra.mxu1 %v1928_v5  ;;  %v304_v23 = vld [vmem:[%s2015_s29 + $0x14] sm:$0x1]  ;;  %v305_v24 = vld [vmem:[%s2015_s29 + $0x18] sm:$0xf]  ;;  %v330_v27 = vrot.slane %v328_v18, 5  ;;  %v344_v31 = vrot.slane %v342_v22, 5 }
  0x16   : > { %1769 = vmatprep.subr.bf16.mxu0 %v1930_v11  ;;  %1817 = vmatprep.subr.bf16.mxu1 %v1929_v8  ;;  %v321_v25 = vrot.slane %v319_v16, 4  ;;  %v324_v26 = vrot.slane %v322_v17, 5  ;;  %v335_v28 = vrot.slane %v333_v19, 4  ;;  %v306_v29 = vld [vmem:[%s2015_s29 + $0x1c] sm:$0x1]  ;;  %v338_v30 = vrot.slane %v336_v21, 5 }
  0x17   : > { %v347_v32 = vshrl.u32 %v303_v20, 16  ;;  %v350_v33 = vshll.u32 %v303_v20, 16  ;;  %v356_v35 = vshll.u32 %v304_v23, 16  ;;  %v361_v36 = vshrl.u32 %v305_v24, 16  ;;  %v307_v38 = vld [vmem:[%s2015_s29 + $0x20] sm:$0xf] }
  0x18   : > { %1770 = vmatpush3.bf16.msra.mxu0 %v1930_v11  ;;  %v325_v34 = vor.u32 %v324_v26, %v321_v25  ;;  %v364_v37 = vshll.u32 %v305_v24, 16  ;;  %v339_v41 = vor.u32 %v338_v30, %v335_v28  ;;  %v370_v44 = vshll.u32 %v306_v29, 16  ;;  %v308_v45 = vld [vmem:[%s2015_s29 + $0x24] sm:$0x1]  ;;  %v309_v50 = vld [vmem:[%s2015_s29 + $0x28] sm:$0xf] }
  0x19   : > { %1779 = vmatprep.subr.bf16.mxu0 %v1990_v1  ;;  %1818 = vmatpush3.bf16.msra.mxu1 %v1929_v8  ;;  %v349_v42 = vrot.slane %v347_v32, 4  ;;  %v352_v43 = vrot.slane %v350_v33, 5  ;;  %v358_v47 = vrot.slane %v356_v35, 5  ;;  %v363_v48 = vrot.slane %v361_v36, 4  ;;  %v310_v57 = vld [vmem:[%s2015_s29 + $0x2c] sm:$0x1] }
  0x1a   : > { %v326_v46 = vrot.slane %v325_v34, 4  ;;  %v366_v49 = vrot.slane %v364_v37, 5  ;;  %1827 = vmatprep.subr.bf16.mxu1 %v1931_v39  ;;  %v340_v51 = vrot.slane %v339_v41, 4  ;;  %v372_v53 = vrot.slane %v370_v44, 5  ;;  %v311_v0 = vld [vmem:[%s2015_s29 + $0x30] sm:$0xf] }
  0x1b   : > { %1764 = vmatmul.mubr.msk.bf16.gmra.mrb[4].mxu0 %vm216_vm0, %v2035_v10  ;;  %v353_v52 = vor.u32 %v352_v43, %v349_v42  ;;  %v375_v54 = vshrl.u32 %v307_v38, 16  ;;  %v378_v58 = vshll.u32 %v307_v38, 16  ;;  %v384_v59 = vshll.u32 %v308_v45, 16  ;;  %v312_v8 = vld [vmem:[%s2015_s29 + $0x34] sm:$0x1]  ;;  %v1932_v25 = vld [vmem:[%s2280_s1 + $0x58] sm:$0xff]  }
  0x1c   : > { %v331_v55 = vsel %vm2063_vm3, %v326_v46, %v330_v27  ;;  %v367_v56 = vor.u32 %v366_v49, %v363_v48  ;;  %v345_v60 = vsel %vm2063_vm3, %v340_v51, %v344_v31  ;;  %v389_v63 = vshrl.u32 %v309_v50, 16  ;;  %v313_v11 = vld [vmem:[%s2015_s29 + $0x38] sm:$0xf]  ;;  %v314_v16 = vld [vmem:[%s2015_s29 + $0x3c] sm:$0x1]  ;;  %v1933_v36 = vld [vmem:[%s2280_s1 + $0x40] sm:$0xff]  }
  0x1d   : > { %v354_v61 = vrot.slane %v353_v52, 4  ;;  %v377_v62 = vrot.slane %v375_v54, 4  ;;  %v1573_v2 = vcombine.low %v331_v55, %v345_v60  ;;  %v380_v5 = vrot.slane %v378_v58, 5  ;;  %v1653_v51 = vld [vmem:[%s2015_s29 + $0x10] sm:$0xf]  ;;  %v1935_v52 = vld [vmem:[%s2280_s1 + $0x48] sm:$0xff]  }
  0x1e   : > { %v368_v4 = vrot.slane %v367_v56, 4  ;;  %v391_v13 = vrot.slane %v389_v63, 4  ;;  %v392_v14 = vshll.u32 %v309_v50, 16  ;;  %v398_v15 = vshll.u32 %v310_v57, 16  ;;  %v1937_v54 = vld [vmem:[%s2015_s29 + $0x8] ss:$8 sps:$4 sm:$0xff]  }
  0x1f   : > { %v359_v12 = vsel %vm2063_vm3, %v354_v61, %v358_v47  ;;  %1819 = vmatprep.mubr.msk.bf16.mxu1 %vm216_vm0, %v1573_v2  ;;  %1771 = vmatprep.mubr.msk.bf16.mxu0 %vm216_vm0, %v1573_v2  ;;  %v381_v18 = vor.u32 %v380_v5, %v377_v62  ;;  %v403_v19 = vshrl.u32 %v311_v0, 16  ;;  %v406_v20 = vshll.u32 %v311_v0, 16  ;;  %v2135_v60 = vld [vmem:[%s2280_s1 + $0x80] sm:$0xff]   ;;  %v1652_v62 = vld [vmem:[%s2015_s29 + $0xc] sm:$0x1] }
  0x20   : > { %v373_v17 = vsel %vm2063_vm3, %v368_v4, %v372_v53  ;;  %v386_v22 = vrot.slane %v384_v59, 5  ;;  %v394_v23 = vrot.slane %v392_v14, 5  ;;  %v412_v24 = vshll.u32 %v312_v8, 16  ;;  %v1936_v53 = vld [vmem:[%s2280_s1 + $0x78] sm:$0xff]   ;;  %v1939_v59 = vld [vmem:[%s2280_s1 + $0x30] sm:$0xff]  }
  0x21   : > { %v1574_v21 = vcombine.low %v359_v12, %v373_v17  ;;  %v382_v26 = vrot.slane %v381_v18, 4  ;;  %v405_v27 = vrot.slane %v403_v19, 4  ;;  %v408_v28 = vrot.slane %v406_v20, 5  ;;  %v1938_v61 = vld [vmem:[%s2015_s29 + $0x18] ss:$8 sps:$4 sm:$0xff]  }
  0x22   : > { %v417_v29 = vshrl.u32 %v313_v11, 16  ;;  %v395_v30 = vor.u32 %v394_v23, %v391_v13  ;;  %v400_v31 = vrot.slane %v398_v15, 5  ;;  %v420_v32 = vshll.u32 %v313_v11, 16  ;;  %v1654_v63 = vld [vmem:[%s2015_s29 + $0x14] sm:$0x1]  ;;  %v1942_v13 = vld [vmem:[%s2280_s1 + $0x38] sm:$0xff]  }
  0x23   : > { %1820 = vmatmul.mubr.msk.bf16.vlgmr.msra.gmra.mrb[4].mxu1 %vm216_vm0, %v1574_v21  ;;  %1772 = vmatmul.mubr.msk.bf16.vlgmr.msra.gmra.mrb[8].mxu0 %vm216_vm0, %v1574_v21  ;;  %v426_v33 = vshll.u32 %v314_v16, 16  ;;  %v409_v34 = vor.u32 %v408_v28, %v405_v27  ;;  %v387_v37 = vsel %vm2063_vm3, %v382_v26, %v386_v22  ;;  %v414_v41 = vrot.slane %v412_v24, 5  ;;  %v1655_v8 = vld [vmem:[%s2015_s29 + $0x18] sm:$0xf]  ;;  %v1657_v11 = vld [vmem:[%s2015_s29 + $0x20] sm:$0xf] }
  0x24   : > { %1780 = vmatpush3.bf16.msra.mxu0 %v1990_v1  ;;  %v419_v35 = vrot.slane %v417_v29, 4  ;;  %1828 = vmatpush3.bf16.msra.mxu1 %v1931_v39  ;;  %v396_v38 = vrot.slane %v395_v30, 4  ;;  %v422_v42 = vrot.slane %v420_v32, 5  ;;  %v1934_v1 = vld [vmem:[%s2280_s1 + $0x70] sm:$0xff]   ;;  %v1103_v57 = vshrl.u32 %v1653_v51, 16 }
  0x25   : > { %1829 = vmatprep.subr.bf16.mxu1 %v1932_v25  ;;  %1781 = vmatprep.subr.bf16.mxu0 %v2001_v3  ;;  %v410_v43 = vrot.slane %v409_v34, 4  ;;  %v428_v45 = vrot.slane %v426_v33, 5  ;;  %v1106_v58 = vshll.u32 %v1653_v51, 16  ;;  %v1940_v12 = vld [vmem:[%s2015_s29 + $0x28] ss:$8 sps:$4 sm:$0xff]   ;;  %v1098_v14 = vshll.u32 %v1652_v62, 16 }
  0x26   : > { %v401_v39 = vsel %vm2063_vm3, %v396_v38, %v400_v31  ;;  %v423_v44 = vor.u32 %v422_v42, %v419_v35  ;;  %v1105_v4 = vrot.slane %v1103_v57, 4  ;;  %v1112_v15 = vshll.u32 %v1654_v63, 16  ;;  %v1659_v18 = vld [vmem:[%s2015_s29 + $0x28] sm:$0xf]  ;;  %v1661_v19 = vld [vmem:[%s2015_s29 + $0x30] sm:$0xf] }
  0x27   : > { %v1575_v46 = vcombine.low %v387_v37, %v401_v39  ;;  %v415_v47 = vsel %vm2063_vm3, %v410_v43, %v414_v41  ;;  %v1108_v5 = vrot.slane %v1106_v58, 5  ;;  %v1117_v16 = vshrl.u32 %v1655_v8, 16  ;;  %v1941_v28 = vld [vmem:[%s2015_s29 + $0x38] ss:$8 sps:$4 sm:$0xff]   ;;  %v1656_v35 = vld [vmem:[%s2015_s29 + $0x1c] sm:$0x1] }
  0x28   : > { %1830 = vmatpush3.bf16.msra.mxu1 %v1932_v25  ;;  %1782 = vmatpush3.bf16.msra.mxu0 %v2001_v3  ;;  %v424_v48 = vrot.slane %v423_v44, 4  ;;  %v1651_v3 = vld [vmem:[%s2015_s29 + $0x8] sm:$0xf]  ;;  %v1120_v17 = vshll.u32 %v1655_v8, 16  ;;  %v1131_v22 = vshrl.u32 %v1657_v11, 16  ;;  %v1134_v23 = vshll.u32 %v1657_v11, 16 }
  0x29   : > { %1791 = vmatprep.subr.bf16.mxu0 %v1933_v36  ;;  %1839 = vmatprep.subr.bf16.mxu1 %v1934_v1  ;;  %v1089_v55 = vshrl.u32 %v1651_v3, 16  ;;  %v1092_v56 = vshll.u32 %v1651_v3, 16  ;;  %v1109_v21 = vor.u32 %v1108_v5, %v1105_v4  ;;  %v1145_v24 = vshrl.u32 %v1659_v18, 16  ;;  %v1944_v38 = vld [vmem:[%s2280_s1 + $0x88] sm:$0xff]   ;;  %v1658_v41 = vld [vmem:[%s2015_s29 + $0x24] sm:$0x1] }
  0x2a   : > { %1823 = vmatprep.mubr.msk.bf16.mxu1 %vm216_vm0, %v1575_v46  ;;  %1775 = vmatprep.mubr.msk.bf16.mxu0 %vm216_vm0, %v1575_v46  ;;  %v429_v49 = vsel %vm2063_vm3, %v424_v48, %v428_v45  ;;  %v1148_v25 = vshll.u32 %v1659_v18, 16  ;;  %v1159_v26 = vshrl.u32 %v1661_v19, 16  ;;  %v1162_v27 = vshll.u32 %v1661_v19, 16  ;;  %v1663_v42 = vld [vmem:[%s2015_s29 + $0x38] sm:$0xf] }
  0x2b   : > { %v1576_v50 = vcombine.low %v415_v47, %v429_v49  ;;  %v1091_v0 = vrot.slane %v1089_v55, 4  ;;  %v1094_v2 = vrot.slane %v1092_v56, 5  ;;  %v1100_v29 = vrot.slane %v1098_v14, 5  ;;  %v1665_v45 = vld [vmem:[%s2015_s29 + $0x40] sm:$0xf] }
  0x2c   : > { %v1114_v30 = vrot.slane %v1112_v15, 5  ;;  %v1119_v31 = vrot.slane %v1117_v16, 4  ;;  %v1122_v32 = vrot.slane %v1120_v17, 5  ;;  %v1110_v34 = vrot.slane %v1109_v21, 4  ;;  %v1660_v48 = vld [vmem:[%s2015_s29 + $0x2c] sm:$0x1] }
  0x2d   : > { %1824 = vmatmul.mubr.msk.bf16.gmra.mrb[8].mxu1 %vm216_vm0, %v1576_v50  ;;  %1776 = vmatmul.mubr.msk.bf16.gmra.mrb[12].mxu0 %vm216_vm0, %v1576_v50  ;;  %v1095_v20 = vor.u32 %v1094_v2, %v1091_v0  ;;  %v1136_v37 = vrot.slane %v1134_v23, 5  ;;  %v1150_v43 = vrot.slane %v1148_v25, 5  ;;  %v1161_v39 = vrot.slane %v1159_v26, 4  ;;  %v1662_v49 = vld [vmem:[%s2015_s29 + $0x34] sm:$0x1] }
  0x2e   : > { %1831 = vmatprep.mubr.msk.bf16.mxu1 %vm216_vm0, %v2018_v6  ;;  %1783 = vmatprep.mubr.msk.bf16.mxu0 %vm216_vm0, %v2018_v6  ;;  %v1164_v44 = vrot.slane %v1162_v27, 5  ;;  %v1123_v46 = vor.u32 %v1122_v32, %v1119_v31  ;;  %v1126_v47 = vshll.u32 %v1656_v35, 16  ;;  %v1115_v3 = vsel %vm2063_vm3, %v1110_v34, %v1114_v30  ;;  %v1666_v16 = vld [vmem:[%s2015_s29 + $0x44] sm:$0x1] }
  0x2f   : > { %v1096_v33 = vrot.slane %v1095_v20, 4  ;;  %v1187_v55 = vshrl.u32 %v1665_v45, 16  ;;  %v1190_v56 = vshll.u32 %v1665_v45, 16  ;;  %v1154_v58 = vshll.u32 %v1660_v48, 16 }
  0x30   : > { %v1128_v62 = vrot.slane %v1126_v47, 5  ;;  %v1124_v0 = vrot.slane %v1123_v46, 4 }
  0x31   : > { %v1101_v50 = vsel %vm2063_vm3, %v1096_v33, %v1100_v29  ;;  %v1189_v11 = vrot.slane %v1187_v55, 4  ;;  %v1156_v14 = vrot.slane %v1154_v58, 5 }
  0x32   : > { %v1671_v63 = vcombine.low %v1101_v50, %v1115_v3  ;;  %v1129_v17 = vsel %vm2063_vm3, %v1124_v0, %v1128_v62 }
  0x35   : > { %1832 = vmatmul.mubr.msk.bf16.vlgmr.msra.gmra.mrb[4].mxu1 %vm216_vm0, %v2022_v7  ;;  %1784 = vmatmul.mubr.msk.bf16.vlgmr.msra.gmra.mrb[8].mxu0 %vm216_vm0, %v2022_v7 }
  0x36   : > { %1835 = vmatprep.mubr.msk.bf16.mxu1 %vm216_vm0, %v2030_v9  ;;  %1792 = vmatpush3.bf16.msra.mxu0 %v1933_v36  ;;  %v1133_v36 = vrot.slane %v1131_v22, 4  ;;  %v1196_v22 = vshll.u32 %v1666_v16, 16 }
  0x37   : > { %1840 = vmatpush3.bf16.msra.mxu1 %v1934_v1  ;;  %1793 = vmatprep.subr.bf16.mxu0 %v1935_v52  ;;  %v1147_v1 = vrot.slane %v1145_v24, 4 }
  0x38   : > { %1841 = vmatprep.subr.bf16.mxu1 %v1936_v53  ;;  %1795 = vmatprep.mubr.msk.bf16.mxu0 %vm216_vm0, %v1937_v54  ;;  %v1137_v51 = vor.u32 %v1136_v37, %v1133_v36  ;;  %v1198_v29 = vrot.slane %v1196_v22, 5 }
  0x39   : > { %v1151_v57 = vor.u32 %v1150_v43, %v1147_v1 }
  0x3a   : > { %1794 = vmatpush3.bf16.msra.mxu0 %v1935_v52  ;;  %v1140_v52 = vshll.u32 %v1658_v41, 16  ;;  %v1138_v2 = vrot.slane %v1137_v51, 4 }
  0x3b   : > { %1842 = vmatpush3.bf16.msra.mxu1 %v1936_v53  ;;  %1803 = vmatprep.subr.bf16.mxu0 %v1939_v59  ;;  %v1173_v53 = vshrl.u32 %v1663_v42, 16 }
  0x3c   : > { %1851 = vmatprep.subr.bf16.mxu1 %v2135_v60  ;;  %v1142_v4 = vrot.slane %v1140_v52, 5 }
  0x3d   : > { %1836 = vmatmul.mubr.msk.bf16.gmra.mrb[8].mxu1 %vm216_vm0, %v2035_v10  ;;  %1796 = vmatmul.mubr.msk.bf16.vlgmr.msra.gmra.mrb[16].mxu0 %vm216_vm0, %v1938_v61  ;;  %v1175_v5 = vrot.slane %v1173_v53, 4 }
  0x3e   : > { %1843 = vmatprep.mubr.msk.bf16.mxu1 %vm216_vm0, %v1937_v54  ;;  %1804 = vmatpush3.bf16.msra.mxu0 %v1939_v59  ;;  %v1176_v54 = vshll.u32 %v1663_v42, 16  ;;  %v1165_v59 = vor.u32 %v1164_v44, %v1161_v39  ;;  %v1143_v19 = vsel %vm2063_vm3, %v1138_v2, %v1142_v4 }
  0x3f   : > { %1799 = vmatprep.mubr.msk.bf16.mxu0 %vm216_vm0, %v1940_v12  ;;  %1805 = vmatprep.subr.bf16.mxu0 %v1942_v13  ;;  %v1672_v24 = vcombine.low %v1129_v17, %v1143_v19 }
  0x40   : > { %v1178_v8 = vrot.slane %v1176_v54, 5  ;;  %v1166_v15 = vrot.slane %v1165_v59, 4 }
  0x42   : > { %1806 = vmatpush3.bf16.msra.mxu0 %v1942_v13  ;;  %v1152_v13 = vrot.slane %v1151_v57, 4  ;;  %v1179_v20 = vor.u32 %v1178_v8, %v1175_v5 }
  0x44   : > { %v1157_v23 = vsel %vm2063_vm3, %v1152_v13, %v1156_v14  ;;  %v1180_v27 = vrot.slane %v1179_v20, 4 }
  0x45   : > { %1844 = vmatmul.mubr.msk.bf16.vlgmr.msra.gmra.mrb[4].mxu1 %vm216_vm0, %v1938_v61  ;;  %1800 = vmatmul.mubr.msk.bf16.gmra.mrb[20].mxu0 %vm216_vm0, %v1941_v28  ;;  %v1168_v61 = vshll.u32 %v1662_v49, 16 }
  0x46   : > { %1847 = vmatprep.mubr.msk.bf16.mxu1 %vm216_vm0, %v1940_v12  ;;  %1852 = vmatpush3.bf16.msra.mxu1 %v2135_v60  ;;  %v1664_v60 = vld [vmem:[%s2015_s29 + $0x3c] sm:$0x1]  ;;  %v1192_v12 = vrot.slane %v1190_v56, 5  ;;  %s1953_s29 = smov 16  }
  0x47   : > { %1853 = vmatprep.subr.bf16.mxu1 %v1944_v38  ;;  %1807 = vmatprep.mubr.msk.bf16.mxu0 %vm216_vm0, %v2018_v6  ;;  %v1170_v6 = vrot.slane %v1168_v61, 5  ;;  %v1182_v18 = vshll.u32 %v1664_v60, 16 }
  0x48   : > { %v1193_v21 = vor.u32 %v1192_v12, %v1189_v11 }
  0x49   : > { %v1184_v25 = vrot.slane %v1182_v18, 5 }
  0x4a   : > { %1854 = vmatpush3.bf16.msra.mxu1 %v1944_v38 }
  0x4d   : > { %1848 = vmatmul.mubr.msk.bf16.gmra.mrb[8].mxu1 %vm216_vm0, %v1941_v28  ;;  %1808 = vmatmul.mubr.msk.bf16.vlgmr.msra.gmra.mrb[16].mxu0 %vm216_vm0, %v2022_v7  ;;  %v1171_v7 = vsel %vm2063_vm3, %v1166_v15, %v1170_v6  ;;  %v1194_v28 = vrot.slane %v1193_v21, 4 }
  0x4e   : > { %1855 = vmatprep.mubr.msk.bf16.mxu1 %vm216_vm0, %v1671_v63  ;;  %1811 = vmatprep.mubr.msk.bf16.mxu0 %vm216_vm0, %v2030_v9  ;;  %v1673_v26 = vcombine.low %v1157_v23, %v1171_v7  ;;  %v1185_v9 = vsel %vm2063_vm3, %v1180_v27, %v1184_v25  ;;  %v1681_v23 = vld [vmem:[%s2281_s2] ss:$0 sm:$0xff] }
  0x4f   : > { %v1199_v30 = vsel %vm2063_vm3, %v1194_v28, %v1198_v29 }
  0x50   : > { %v1674_v31 = vcombine.low %v1185_v9, %v1199_v30 }
  0x55   : > { %1856 = vmatmul.mubr.msk.bf16.vlgmr.msra.gmra.mrb[4].mxu1 %vm216_vm0, %v1672_v24  ;;  %1812 = vmatmul.mubr.msk.bf16.gmra.mrb[20].mxu0 %vm216_vm0, %v2035_v10 }
  0x56   : > { %1859 = vmatprep.mubr.msk.bf16.mxu1 %vm216_vm0, %v1673_v26 }
  0x5d   : > { %1860 = vmatmul.mubr.msk.bf16.gmra.mrb[8].mxu1 %vm216_vm0, %v1674_v31 }
  0xe6   : > { %v2200_v32 = vpop.f32.mrb[0].mxu0 }
  0xe7   : > { %v2202_v33 = vpop.f32.mrb[1].mxu0  ;;  %v1789_v35 = vpop.f32.mrb[0].mxu1 }
  0xe8   : > { %v2204_v34 = vpop.f32.mrb[2].mxu0  ;;  %v598_v10 = vpop.f32.mrb[1].mxu1 }
  0xe9   : > { %v2206_v36 = vpop.f32.mrb[3].mxu0  ;;  %v1790_v37 = vpop.f32.mrb[2].mxu1 }
  0xea   : > { %v601_v38 = vpop.f32.mrb[3].mxu1 }
  0xee   : > { %v2208_v41 = vpop.f32.mrb[4].mxu0 }
  0xef   : > { %v2210_v42 = vpop.f32.mrb[5].mxu0 }
  0xf0   : > { %v2212_v40 = vpop.f32.mrb[6].mxu0 }
  0xf1   : > { %v2214_v1 = vpop.f32.mrb[7].mxu0 }
 0x100   : > { %v1777_v43 = vpop.f32.mrb[12].mxu0 }
 0x101   : > { %v607_v39 = vadd.f32 %v1789_v35, %v1777_v43  ;;  %v521_v44 = vpop.f32.mrb[13].mxu0 }
 0x102   : > { %v599_v45 = vadd.f32 %v598_v10, %v521_v44  ;;  %v1778_v46 = vpop.f32.mrb[14].mxu0 }
 0x103   : > { %v610_v47 = vadd.f32 %v1790_v37, %v1778_v46  ;;  %1334 = vrot.lane.b32.xlu0 %v607_v39, %s1953_s29  ;;  %v524_v48 = vpop.f32.mrb[15].mxu0 }
 0x104   : > { %v602_v49 = vadd.f32 %v601_v38, %v524_v48 }
 0x105   : > { %1336 = vrot.lane.b32.xlu1 %v610_v47, %s1953_s29 }
 0x107   : > { %1330 = vrot.lane.b32.xlu0 %v599_v45, %s1953_s29 }
 0x108   : > { %v1785_v50 = vpop.f32.mrb[8].mxu0 }
 0x109   : > { %1332 = vrot.lane.b32.xlu1 %v602_v49, %s1953_s29  ;;  %v582_v3 = vpop.f32.mrb[9].mxu0 }
 0x10a   : > { %v1786_v51 = vpop.f32.mrb[10].mxu0 }
 0x10b   : > { %1322 = vrot.lane.b32.xlu0 %v582_v3, %s1953_s29  ;;  %v585_v52 = vpop.f32.mrb[11].mxu0 }
 0x10d   : > { %1326 = vrot.lane.b32.xlu1 %v1785_v50, %s1953_s29 }
 0x10f   : > { %1324 = vrot.lane.b32.xlu0 %v585_v52, %s1953_s29 }
 0x111   : > { %1328 = vrot.lane.b32.xlu1 %v1786_v51, %s1953_s29 }
 0x120   : > { %v1809_v53 = vpop.f32.mrb[16].mxu0 }
 0x121   : > { %1358 = vrot.lane.b32.xlu0 %v1809_v53, %s1954_s30  ;;  %v787_v54 = vpop.f32.mrb[17].mxu0 }
 0x122   : > { %v1810_v55 = vpop.f32.mrb[18].mxu0 }
 0x123   : > { %1360 = vrot.lane.b32.xlu1 %v1810_v55, %s1954_s30  ;;  %v790_v56 = vpop.f32.mrb[19].mxu0 }
 0x125   : > { %1354 = vrot.lane.b32.xlu0 %v787_v54, %s1954_s30 }
 0x127   : > { %1356 = vrot.lane.b32.xlu1 %v790_v56, %s1954_s30 }
 0x128   : > { %v1857_v57 = vpop.f32.mrb[4].mxu1  ;;  %v1813_v58 = vpop.f32.mrb[20].mxu0 }
 0x129   : > { %v1275_v59 = vpop.f32.mrb[5].mxu1  ;;  %1390 = vrot.lane.b32.xlu0 %v1857_v57, %s1955_s4  ;;  %v803_v61 = vpop.f32.mrb[21].mxu0 }
 0x12a   : > { %v1858_v62 = vpop.f32.mrb[6].mxu1  ;;  %v1814_v63 = vpop.f32.mrb[22].mxu0 }
 0x12b   : > { %v1278_v0 = vpop.f32.mrb[7].mxu1  ;;  %1392 = vrot.lane.b32.xlu1 %v1858_v62, %s1955_s4  ;;  %v806_v2 = vpop.f32.mrb[23].mxu0 }
 0x12d   : > { %1386 = vrot.lane.b32.xlu0 %v1275_v59, %s1955_s4 }
 0x12f   : > { %1388 = vrot.lane.b32.xlu1 %v1278_v0, %s1955_s4 }
 0x130   : > { %v1861_v4 = vpop.f32.mrb[8].mxu1 }
 0x131   : > { %v1291_v60 = vpop.f32.mrb[9].mxu1  ;;  %1366 = vrot.lane.b32.xlu0 %v1813_v58, %s1954_s30 }
 0x132   : > { %v1862_v5 = vpop.f32.mrb[10].mxu1 }
 0x133   : > { %v1294_v8 = vpop.f32.mrb[11].mxu1  ;;  %1368 = vrot.lane.b32.xlu1 %v1814_v63, %s1954_s30 }
 0x135   : > { %1362 = vrot.lane.b32.xlu0 %v803_v61, %s1954_s30 }
 0x137   : > { %1364 = vrot.lane.b32.xlu1 %v806_v2, %s1954_s30 }
 0x139   : > { %1394 = vrot.lane.b32.xlu0 %v1291_v60, %s1955_s4 }
 0x13b   : > { %1396 = vrot.lane.b32.xlu1 %v1294_v8, %s1955_s4 }
 0x13d   : > { %1398 = vrot.lane.b32.xlu0 %v1861_v4, %s1955_s4 }
 0x13f   : > { %1400 = vrot.lane.b32.xlu1 %v1862_v5, %s1955_s4 }
 0x175   : > { %v1335_v11 = vpop.permute.xlu0 %1334 }
 0x176   : > { %v1417_v58 = vsel %vm1410_vm4, %v2208_v41, %v1335_v11 }
 0x177   : > { %v2216_v12 = vpop.permute.xlu1 %1336 }
 0x179   : > { %v1331_v13 = vpop.permute.xlu0 %1330 }
 0x17a   : > { %v1415_v3 = vsel %vm1410_vm4, %v2210_v42, %v1331_v13 }
 0x17b   : > { %v1333_v14 = vpop.permute.xlu1 %1332 }
 0x17c   : > { %v1416_v53 = vsel %vm1410_vm4, %v2214_v1, %v1333_v14  ;;  %v1418_v1 = vsel %vm1410_vm4, %v2212_v40, %v2216_v12 }
 0x17d   : > { %v1323_v15 = vpop.permute.xlu0 %1322 }
 0x17e   : > { %v1411_v9 = vsel %vm1410_vm4, %v2202_v33, %v1323_v15 }
 0x17f   : > { %v1327_v6 = vpop.permute.xlu1 %1326 }
 0x180   : > { %v1413_v22 = vsel %vm1410_vm4, %v2200_v32, %v1327_v6 }
 0x181   : > { %v1325_v16 = vpop.permute.xlu0 %1324 }
 0x182   : > { %v1412_v33 = vsel %vm1410_vm4, %v2206_v36, %v1325_v16 }
 0x183   : > { %v1329_v17 = vpop.permute.xlu1 %1328 }
 0x184   : > { %v1414_v25 = vsel %vm1410_vm4, %v2204_v34, %v1329_v17 }
 0x193   : > { %v1359_v18 = vpop.permute.xlu0 %1358 }
 0x194   : > { %v1421_v7 = vsel %vm216_vm0, %v1413_v22, %v1359_v18 }
 0x195   : > { %v1361_v19 = vpop.permute.xlu1 %1360 }
 0x196   : > { %v1422_v27 = vsel %vm216_vm0, %v1414_v25, %v1361_v19 }
 0x197   : > { %v1355_v20 = vpop.permute.xlu0 %1354 }
 0x198   : > { %v1419_v31 = vsel %vm216_vm0, %v1411_v9, %v1355_v20 }
 0x199   : > { %v1357_v21 = vpop.permute.xlu1 %1356 }
 0x19a   : > { %v1420_v37 = vsel %vm216_vm0, %v1412_v33, %v1357_v21 }
 0x19b   : > { %v1391_v24 = vpop.permute.xlu0 %1390 }
 0x19c   : > { %v1430_v26 = vsel %vm1427_vm5, %v1421_v7, %v1391_v24 }
 0x19d   : > { %v1445_v28 = vadd.f32 %v1681_v23, %v1430_v26  ;;  %v1393_v29 = vpop.permute.xlu1 %1392 }
 0x19e   : > { %v1431_v30 = vsel %vm1427_vm5, %v1422_v27, %v1393_v29 }
 0x19f   : > { %v1695_v32 = vpack.c.bf16 %v1445_v28, %v1445_v28  ;;  %v1446_v34 = vadd.f32 %v1681_v23, %v1431_v30  ;;  %v1387_v35 = vpop.permute.xlu0 %1386 }
 0x1a0   : > { %v1428_v10 = vsel %vm1427_vm5, %v1419_v31, %v1387_v35 }
 0x1a1   : > { %1486 = vst.msk [vmem:[%s2234_s10 + $0x8] sm:$0xf] %vm1483_vm6, %v1695_v32  ;;  %v1696_v38 = vpack.c.bf16 %v1446_v34, %v1446_v34  ;;  %v1443_v43 = vadd.f32 %v1681_v23, %v1428_v10  ;;  %v1389_v39 = vpop.permute.xlu1 %1388 }
 0x1a2   : > { %v1429_v44 = vsel %vm1427_vm5, %v1420_v37, %v1389_v39 }
 0x1a3   : > { %1487 = vst.msk [vmem:[%s2234_s10 + $0xc] sm:$0xf] %vm1483_vm6, %v1696_v38  ;;  %v1693_v45 = vpack.c.bf16 %v1443_v43, %v1443_v43  ;;  %v1444_v46 = vadd.f32 %v1681_v23, %v1429_v44  ;;  %v1367_v47 = vpop.permute.xlu0 %1366 }
 0x1a4   : > { %v1425_v42 = vsel %vm216_vm0, %v1417_v58, %v1367_v47 }
 0x1a5   : > { %1484 = vst.msk [vmem:[%s2234_s10] sm:$0xf] %vm1483_vm6, %v1693_v45  ;;  %v1694_v48 = vpack.c.bf16 %v1444_v46, %v1444_v46  ;;  %v1369_v36 = vpop.permute.xlu1 %1368 }
 0x1a6   : > { %v1426_v2 = vsel %vm216_vm0, %v1418_v1, %v1369_v36 }
 0x1a7   : > { %1485 = vst.msk [vmem:[%s2234_s10 + $0x4] sm:$0xf] %vm1483_vm6, %v1694_v48  ;;  %v1363_v49 = vpop.permute.xlu0 %1362 }
 0x1a8   : > { %v1423_v51 = vsel %vm216_vm0, %v1415_v3, %v1363_v49 }
 0x1a9   : > { %v1365_v50 = vpop.permute.xlu1 %1364 }
 0x1aa   : > { %v1424_v55 = vsel %vm216_vm0, %v1416_v53, %v1365_v50 }
 0x1ab   : > { %v1395_v52 = vpop.permute.xlu0 %1394 }
 0x1ac   : > { %v1432_v54 = vsel %vm1427_vm5, %v1423_v51, %v1395_v52 }
 0x1ad   : > { %v1447_v56 = vadd.f32 %v1681_v23, %v1432_v54  ;;  %v1397_v57 = vpop.permute.xlu1 %1396 }
 0x1ae   : > { %v1433_v59 = vsel %vm1427_vm5, %v1424_v55, %v1397_v57 }
 0x1af   : > { %v1697_v61 = vpack.c.bf16 %v1447_v56, %v1447_v56  ;;  %v1448_v62 = vadd.f32 %v1681_v23, %v1433_v59  ;;  %v1399_v63 = vpop.permute.xlu0 %1398 }
 0x1b0   : > { %v1434_v0 = vsel %vm1427_vm5, %v1425_v42, %v1399_v63 }
 0x1b1   : > { %1488 = vst.msk [vmem:[%s2234_s10 + $0x10] sm:$0xf] %vm1483_vm6, %v1697_v61  ;;  %v1698_v41 = vpack.c.bf16 %v1448_v62, %v1448_v62  ;;  %v1449_v4 = vadd.f32 %v1681_v23, %v1434_v0  ;;  %v1401_v60 = vpop.permute.xlu1 %1400 }
 0x1b2   : > { %v1435_v5 = vsel %vm1427_vm5, %v1426_v2, %v1401_v60 }
 0x1b3   : > { %1489 = vst.msk [vmem:[%s2234_s10 + $0x14] sm:$0xf] %vm1483_vm6, %v1698_v41  ;;  %v1699_v8 = vpack.c.bf16 %v1449_v4, %v1449_v4  ;;  %v1450_v11 = vadd.f32 %v1681_v23, %v1435_v5 }
 0x1b5   : > { %1490 = vst.msk [vmem:[%s2234_s10 + $0x18] sm:$0xf] %vm1483_vm6, %v1699_v8  ;;  %v1700_v13 = vpack.c.bf16 %v1450_v11, %v1450_v11 }
 0x1b7   : > { %1491 = vst.msk [vmem:[%s2234_s10 + $0x1c] sm:$0xf] %vm1483_vm6, %v1700_v13 }
 0x1b8 PF: > { %s13_s12 = sadd.s32 1, %s1951_s12  }
 0x1b9   : > { %p10_p4 = scmp.ge.s32.totalorder %s13_s12, 4  }
 0x1bb   :  { %12 = sbr.rel (!%p10_p4) target bundleno = 1 (0x1), region = 71 }

// kernel: forward.17
= control target key start
LH: loop header
LB: loop body
LE: loop exit
PB: predicated region body
PF: predicated region fallthrough
CT: control target
= control target key end

     0   :  { %s6328_s12 = smov 0   ;;  %s8128_s0 = inlined_call_operand.vmem [shape: bf16[2,18,18,16], index: 0, kind: input, shape index: {}]   ;;  %s8129_s1 = inlined_call_operand.vmem [shape: bf16[9,16,3], index: 1, kind: input, shape index: {}]   ;;  %s8130_s2 = inlined_call_operand.vmem [shape: f32[1,3], index: 2, kind: input, shape index: {}]   ;;  %s8131_s3 = inlined_call_operand.vmem [shape: f32[2,256,3], index: 3, kind: output, shape index: {}]  }
   0x1 LB: > { %s4893_s13 = sadd.s32 4294967295, %s6306_s12   ;;  %p4897_p0 = scmp.ge.s32.totalorder %s6306_s12, 1  ;;  %s6306_s12 = sphi %s6328_s12, %s13_s12  }
   0x2   : > { %p137_p1 = scmp.lt.s32.totalorder %s6306_s12, 3 }
   0x4   : > { %p138_p2 = pnand %p4897_p0, %p137_p1 }
   0x6   : > { %141 = sbr.rel (%p138_p2) target bundleno = 585 (0x249), region = 32 }
   0xd   : > { %v6184_v0 = vld [vmem:[%s8129_s1 + $0x8] sm:$0xff]   ;;  %p161_p3 = scmp.lt.s32.totalorder %s4893_s13, 1  ;;  %v6185_v1 = vld [vmem:[%s8129_s1 + $0x20] sm:$0xff]   ;;  %vm222_vm0 = vsmask.f32 3328  ;;  %vm666_vm3 = vcmask 130048  }
   0xe   : > { %5611 = vmatprep.subr.bf16.mxu1 %v6184_v0  ;;  %v6347_v2 = vld [vmem:[%s8129_s1] sm:$0xff]   ;;  %5747 = vmatprep.subr.bf16.mxu0 %v6185_v1  ;;  %v6354_v3 = vld [vmem:[%s8129_s1 + $0x28] sm:$0xff]   ;;  %vm223_vm1 = vsmask.f32 7440  ;;  %vm1219_vm4 = vcmask 1042432   ;;  %vm1220_vm5 = vcmask 1046532  }
   0xf   : > { %s8197_s13 = smov (!%p161_p3, %s4893_s13), 1  ;;  %5612 = vmatpush3.bf16.msra.mxu1 %v6184_v0  ;;  %5748 = vmatpush3.bf16.msra.mxu0 %v6185_v1  ;;  %vm6378_vm2 = vmor %vm222_vm0, %vm223_vm1  ;;  %vm4805_vm7 = vcmask 23552  }
  0x10   : > { %s6175_s20 = smul.u32 216, %s8197_s13  ;;  %5645 = vmatprep.subr.bf16.mxu1 %v6347_v2  ;;  %5781 = vmatprep.subr.bf16.mxu0 %v6354_v3  ;;  %vm6600_vm6 = vmor %vm1219_vm4, %vm1220_vm5  ;;  %s5457_s15 = sshll.u32 %s8197_s13, 8 }
  0x12   : > { %s6359_s25 = scalar_lea.vmem %s8128_s0, %s6175_s20  ;;  %s8027_s20 = scalar_lea.vmem %s8131_s3, %s5457_s15 }
  0x13   : > { %v172_v4 = vld [vmem:[%s6359_s25] sm:$0xf]  ;;  %v173_v5 = vld [vmem:[%s6359_s25 + $0x4] sm:$0xf]  ;;  %v206_v6 = vld [vmem:[%s6359_s25 + $0x8] sm:$0x1] }
  0x14   : > { %v226_v7 = vshrl.u32 %v172_v4, 16  ;;  %v229_v8 = vshll.u32 %v172_v4, 16  ;;  %v235_v9 = vshll.u32 %v173_v5, 16  ;;  %v239_v10 = vshrl.u32 %v173_v5, 16  ;;  %v5087_v11 = vld [vmem:[%s6359_s25 + $0xc] sm:$0xf] }
  0x15   : > { %v245_v12 = vshll.u32 %v206_v6, 16  ;;  %v6367_v13 = vld [vmem:[%s6359_s25 + $0x10] sm:$0xf]  ;;  %v6370_v14 = vld [vmem:[%s6359_s25 + $0x14] sm:$0x1]  ;;  %v2044_v20 = vshrl.u32 %v5087_v11, 16 }
  0x16   : > { %v228_v15 = vrot.slane %v226_v7, 4  ;;  %v231_v16 = vrot.slane %v229_v8, 5  ;;  %v237_v17 = vrot.slane %v235_v9, 5  ;;  %v241_v18 = vrot.slane %v239_v10, 4  ;;  %v174_v27 = vld [vmem:[%s6359_s25 + $0xc] sm:$0xf] }
  0x17   : > { %v247_v19 = vrot.slane %v245_v12, 5  ;;  %v2047_v21 = vshll.u32 %v5087_v11, 16  ;;  %v2053_v22 = vshll.u32 %v6367_v13, 16  ;;  %v2057_v25 = vshrl.u32 %v6367_v13, 16  ;;  %v175_v32 = vld [vmem:[%s6359_s25 + $0x10] sm:$0xf] }
  0x18   : > { %v232_v23 = vor.u32 %v231_v16, %v228_v15  ;;  %v242_v24 = vor.u32 %v241_v18, %v237_v17  ;;  %v2063_v26 = vshll.u32 %v6370_v14, 16  ;;  %v2046_v29 = vrot.slane %v2044_v20, 4  ;;  %v207_v38 = vld [vmem:[%s6359_s25 + $0x14] sm:$0x1]  ;;  %v5090_v49 = vld [vmem:[%s6359_s25 + $0x18] sm:$0xf] }
  0x19   : > { %v2049_v30 = vrot.slane %v2047_v21, 5  ;;  %v2055_v31 = vrot.slane %v2053_v22, 5  ;;  %v2059_v35 = vrot.slane %v2057_v25, 4  ;;  %v250_v39 = vshrl.u32 %v174_v27, 16  ;;  %v6390_v54 = vld [vmem:[%s6359_s25 + $0x1c] sm:$0xf] }
  0x1a   : > { %v233_v33 = vrot.slane %v232_v23, 4  ;;  %v243_v34 = vrot.slane %v242_v24, 4  ;;  %v2065_v37 = vrot.slane %v2063_v26, 5  ;;  %v253_v40 = vshll.u32 %v174_v27, 16  ;;  %v6398_v59 = vld [vmem:[%s6359_s25 + $0x20] sm:$0x1] }
  0x1b   : > { %v2050_v36 = vor.u32 %v2049_v30, %v2046_v29  ;;  %v2060_v43 = vor.u32 %v2059_v35, %v2055_v31  ;;  %v259_v44 = vshll.u32 %v175_v32, 16  ;;  %v252_v47 = vrot.slane %v250_v39, 4  ;;  %v176_v10 = vld [vmem:[%s6359_s25 + $0x18] sm:$0xf]  ;;  %v208_v24 = vld [vmem:[%s6359_s25 + $0x20] sm:$0x1] }
  0x1c   : > { %v238_v41 = vsel %vm6378_vm2, %v233_v33, %v237_v17  ;;  %v248_v42 = vsel %vm6378_vm2, %v243_v34, %v247_v19  ;;  %v255_v48 = vrot.slane %v253_v40, 5  ;;  %v263_v52 = vshrl.u32 %v175_v32, 16  ;;  %v177_v17 = vld [vmem:[%s6359_s25 + $0x1c] sm:$0xf]  ;;  %v5093_v32 = vld [vmem:[%s6359_s25 + $0x24] sm:$0xf] }
  0x1d   : > { %v4903_v45 = vcombine.low %v238_v41, %v248_v42  ;;  %v2051_v46 = vrot.slane %v2050_v36, 4  ;;  %v2061_v50 = vrot.slane %v2060_v43, 4  ;;  %v261_v51 = vrot.slane %v259_v44, 5 }
  0x1e   : > { %v269_v53 = vshll.u32 %v207_v38, 16  ;;  %v2791_v56 = vrot.slane %v6367_v13, 5  ;;  %v2794_v57 = vrot.slane %v6370_v14, 5  ;;  %v256_v58 = vor.u32 %v255_v48, %v252_v47  ;;  %v6190_v38 = vld [vmem:[%s8129_s1 + $0x10] sm:$0xff]   ;;  %v6633_v14 = vld [vmem:[%s6359_s25 + $0x7c] sm:$0xf] }
  0x1f   : > { %5613 = vmatprep.mubr.msk.bf16.mxu1 %vm666_vm3, %v4903_v45  ;;  %v2056_v55 = vsel %vm6378_vm2, %v2051_v46, %v2055_v31  ;;  %v2066_v60 = vsel %vm6378_vm2, %v2061_v50, %v2065_v37  ;;  %v265_v61 = vrot.slane %v263_v52, 4  ;;  %v2068_v63 = vshrl.u32 %v5090_v49, 16  ;;  %v6421_v37 = vld [vmem:[%s6359_s25 + $0x28] sm:$0xf]  ;;  %v6430_v45 = vld [vmem:[%s6359_s25 + $0x2c] sm:$0x1] }
  0x20   : > { %v271_v62 = vrot.slane %v269_v53, 5  ;;  %v5137_v0 = vcombine.low %v2056_v55, %v2066_v60  ;;  %v257_v1 = vrot.slane %v256_v58, 4  ;;  %v2071_v4 = vshll.u32 %v5090_v49, 16  ;;  %v178_v52 = vld [vmem:[%s6359_s25 + $0x24] sm:$0xf] }
  0x21   : > { %v2077_v5 = vshll.u32 %v6390_v54, 16  ;;  %v266_v6 = vor.u32 %v265_v61, %v261_v51  ;;  %v2070_v7 = vrot.slane %v2068_v63, 4  ;;  %v2081_v8 = vshrl.u32 %v6390_v54, 16  ;;  %v179_v61 = vld [vmem:[%s6359_s25 + $0x28] sm:$0xf] }
  0x22   : > { %v2087_v9 = vshll.u32 %v6398_v59, 16  ;;  %5749 = vmatprep.mubr.msk.bf16.mxu0 %vm666_vm3, %v5137_v0  ;;  %v262_v11 = vsel %vm6378_vm2, %v257_v1, %v261_v51  ;;  %v2073_v12 = vrot.slane %v2071_v4, 5  ;;  %v2798_v16 = vrot.slane %v6390_v54, 5 }
  0x23   : > { %v2079_v15 = vrot.slane %v2077_v5, 5  ;;  %v267_v18 = vrot.slane %v266_v6, 4  ;;  %v2083_v19 = vrot.slane %v2081_v8, 4  ;;  %v2801_v21 = vrot.slane %v6398_v59, 5  ;;  %v209_v6 = vld [vmem:[%s6359_s25 + $0x2c] sm:$0x1] }
  0x24   : > { %v2089_v20 = vrot.slane %v2087_v9, 5  ;;  %v2074_v22 = vor.u32 %v2073_v12, %v2070_v7  ;;  %v6414_v23 = vrot.slane %v2798_v16, 4  ;;  %v274_v25 = vshrl.u32 %v176_v10, 16 }
  0x25   : > { %v277_v26 = vshll.u32 %v176_v10, 16  ;;  %v272_v27 = vsel %vm6378_vm2, %v267_v18, %v271_v62  ;;  %v2084_v29 = vor.u32 %v2083_v19, %v2079_v15  ;;  %v283_v30 = vshll.u32 %v177_v17, 16  ;;  %v6441_v62 = vld [vmem:[%s8129_s1 + $0x30] sm:$0xff]  }
  0x26   : > { %v287_v31 = vshrl.u32 %v177_v17, 16  ;;  %v4904_v33 = vcombine.low %v262_v11, %v272_v27  ;;  %v2075_v34 = vrot.slane %v2074_v22, 4  ;;  %v276_v35 = vrot.slane %v274_v25, 4  ;;  %v6454_v22 = vld [vmem:[%s6359_s25 + $0x34] sm:$0xf] }
  0x27   : > { %v279_v36 = vrot.slane %v277_v26, 5  ;;  %v2085_v39 = vrot.slane %v2084_v29, 4  ;;  %v285_v40 = vrot.slane %v283_v30, 5  ;;  %v293_v42 = vshll.u32 %v208_v24, 16  ;;  %v6461_v30 = vld [vmem:[%s6359_s25 + $0x38] sm:$0x1] }
  0x28   : > { %v289_v41 = vrot.slane %v287_v31, 4  ;;  %5614 = vmatmul.mubr.msk.bf16.vlgmr.msra.gmra.mrb[0].mxu1 %vm666_vm3, %v4904_v33  ;;  %v2080_v43 = vsel %vm6378_vm2, %v2075_v34, %v2079_v15  ;;  %v2092_v46 = vshrl.u32 %v5093_v32, 16  ;;  %v2095_v47 = vshll.u32 %v5093_v32, 16  ;;  %v5096_v15 = vld [vmem:[%s6359_s25 + $0x30] sm:$0xf] }
  0x29   : > { %v280_v44 = vor.u32 %v279_v36, %v276_v35  ;;  %5646 = vmatpush3.bf16.msra.mxu1 %v6347_v2  ;;  %v2090_v48 = vsel %vm6378_vm2, %v2085_v39, %v2089_v20  ;;  %v295_v50 = vrot.slane %v293_v42, 5  ;;  %v2101_v51 = vshll.u32 %v6421_v37, 16  ;;  %v180_v42 = vld [vmem:[%s6359_s25 + $0x30] sm:$0xf] }
  0x2a   : > { %v290_v49 = vor.u32 %v289_v41, %v285_v40  ;;  %v5138_v53 = vcombine.low %v2080_v43, %v2090_v48  ;;  %v2094_v58 = vrot.slane %v2092_v46, 4  ;;  %v2097_v60 = vrot.slane %v2095_v47, 5  ;;  %5679 = vmatprep.subr.bf16.mxu1 %v6190_v38  ;;  %v181_v48 = vld [vmem:[%s6359_s25 + $0x34] sm:$0xf] }
  0x2b   : > { %v281_v55 = vrot.slane %v280_v44, 4  ;;  %v2103_v63 = vrot.slane %v2101_v51, 5  ;;  %v2105_v0 = vshrl.u32 %v6421_v37, 16  ;;  %v2111_v1 = vshll.u32 %v6430_v45, 16 }
  0x2c   : > { %v291_v2 = vrot.slane %v290_v49, 4  ;;  %5750 = vmatmul.mubr.msk.bf16.vlgmr.msra.gmra.mrb[0].mxu0 %vm666_vm3, %v5138_v53  ;;  %v2098_v5 = vor.u32 %v2097_v60, %v2094_v58  ;;  %v298_v7 = vshrl.u32 %v178_v52, 16  ;;  %v301_v8 = vshll.u32 %v178_v52, 16  ;;  %v210_v53 = vld [vmem:[%s6359_s25 + $0x38] sm:$0x1] }
  0x2d   : > { %v286_v4 = vsel %vm6378_vm2, %v281_v55, %v285_v40  ;;  %5782 = vmatpush3.bf16.msra.mxu0 %v6354_v3  ;;  %v2107_v10 = vrot.slane %v2105_v0, 4  ;;  %v2113_v11 = vrot.slane %v2111_v1, 5  ;;  %v307_v12 = vshll.u32 %v179_v61, 16 }
  0x2e   : > { %v296_v9 = vsel %vm6378_vm2, %v291_v2, %v295_v50  ;;  %v2099_v18 = vrot.slane %v2098_v5, 4  ;;  %v300_v19 = vrot.slane %v298_v7, 4  ;;  %v303_v20 = vrot.slane %v301_v8, 5  ;;  %5815 = vmatprep.subr.bf16.mxu0 %v6441_v62 }
  0x2f   : > { %v4905_v17 = vcombine.low %v286_v4, %v296_v9  ;;  %v2108_v24 = vor.u32 %v2107_v10, %v2103_v63  ;;  %v309_v25 = vrot.slane %v307_v12, 5  ;;  %v311_v26 = vshrl.u32 %v179_v61, 16  ;;  %v5099_v4 = vld [vmem:[%s6359_s25 + $0x3c] sm:$0xf]  ;;  %v6478_v9 = vld [vmem:[%s6359_s25 + $0x40] sm:$0xf] }
  0x30   : > { %v317_v3 = vshll.u32 %v209_v6, 16  ;;  %v2104_v27 = vsel %vm6378_vm2, %v2099_v18, %v2103_v63  ;;  %v304_v29 = vor.u32 %v303_v20, %v300_v19  ;;  %v2116_v31 = vshrl.u32 %v5096_v15, 16  ;;  %v6483_v20 = vld [vmem:[%s6359_s25 + $0x44] sm:$0x1] }
  0x31   : > { %5617 = vmatprep.mubr.msk.bf16.mxu1 %vm666_vm3, %v4905_v17  ;;  %v2119_v32 = vshll.u32 %v5096_v15, 16  ;;  %v2109_v33 = vrot.slane %v2108_v24, 4  ;;  %v313_v34 = vrot.slane %v311_v26, 4  ;;  %v2125_v36 = vshll.u32 %v6454_v22, 16 }
  0x32   : > { %v319_v35 = vrot.slane %v317_v3, 5  ;;  %v305_v38 = vrot.slane %v304_v29, 4  ;;  %v2118_v39 = vrot.slane %v2116_v31, 4  ;;  %v2129_v41 = vshrl.u32 %v6454_v22, 16  ;;  %v182_v29 = vld [vmem:[%s6359_s25 + $0x3c] sm:$0xf] }
  0x33   : > { %v2121_v40 = vrot.slane %v2119_v32, 5  ;;  %v2114_v43 = vsel %vm6378_vm2, %v2109_v33, %v2113_v11  ;;  %v314_v44 = vor.u32 %v313_v34, %v309_v25  ;;  %v2127_v46 = vrot.slane %v2125_v36, 5 }
  0x34   : > { %v2135_v47 = vshll.u32 %v6461_v30, 16  ;;  %v5139_v49 = vcombine.low %v2104_v27, %v2114_v43  ;;  %v310_v50 = vsel %vm6378_vm2, %v305_v38, %v309_v25  ;;  %v2131_v52 = vrot.slane %v2129_v41, 4 }
  0x35   : > { %v2122_v51 = vor.u32 %v2121_v40, %v2118_v39  ;;  %v315_v55 = vrot.slane %v314_v44, 4  ;;  %v322_v60 = vshrl.u32 %v180_v42, 16  ;;  %v325_v61 = vshll.u32 %v180_v42, 16 }
  0x36   : > { %v2137_v58 = vrot.slane %v2135_v47, 5  ;;  %5753 = vmatprep.mubr.msk.bf16.mxu0 %vm666_vm3, %v5139_v49  ;;  %v2132_v63 = vor.u32 %v2131_v52, %v2127_v46  ;;  %v331_v0 = vshll.u32 %v181_v48, 16  ;;  %v335_v1 = vshrl.u32 %v181_v48, 16  ;;  %v211_v49 = vld [vmem:[%s6359_s25 + $0x44] sm:$0x1] }
  0x37   : > { %v2123_v2 = vrot.slane %v2122_v51, 4  ;;  %v320_v5 = vsel %vm6378_vm2, %v315_v55, %v319_v35  ;;  %v324_v6 = vrot.slane %v322_v60, 4  ;;  %v327_v7 = vrot.slane %v325_v61, 5  ;;  %v183_v35 = vld [vmem:[%s6359_s25 + $0x40] sm:$0xf] }
  0x38   : > { %v341_v8 = vshll.u32 %v210_v53, 16  ;;  %v4906_v10 = vcombine.low %v310_v50, %v320_v5  ;;  %v2133_v12 = vrot.slane %v2132_v63, 4  ;;  %v333_v15 = vrot.slane %v331_v0, 5  ;;  %v5102_v51 = vld [vmem:[%s6359_s25 + $0x48] sm:$0xf] }
  0x39   : > { %v2128_v11 = vsel %vm6378_vm2, %v2123_v2, %v2127_v46  ;;  %v328_v17 = vor.u32 %v327_v7, %v324_v6  ;;  %v337_v18 = vrot.slane %v335_v1, 4  ;;  %v2140_v24 = vshrl.u32 %v5099_v4, 16  ;;  %v6501_v60 = vld [vmem:[%s6359_s25 + $0x4c] sm:$0xf] }
  0x3a   : > { %v343_v19 = vrot.slane %v341_v8, 5  ;;  %5618 = vmatmul.mubr.msk.bf16.gmra.mrb[4].mxu1 %vm666_vm3, %v4906_v10  ;;  %v2138_v25 = vsel %vm6378_vm2, %v2133_v12, %v2137_v58  ;;  %v2143_v26 = vshll.u32 %v5099_v4, 16  ;;  %v2149_v3 = vshll.u32 %v6478_v9, 16  ;;  %v6509_v10 = vld [vmem:[%s6359_s25 + $0x50] sm:$0x1] }
  0x3b   : > { %v2153_v27 = vshrl.u32 %v6478_v9, 16  ;;  %v5140_v31 = vcombine.low %v2128_v11, %v2138_v25  ;;  %v329_v32 = vrot.slane %v328_v17, 4  ;;  %v338_v33 = vor.u32 %v337_v18, %v333_v15  ;;  %v6516_v25 = vld [vmem:[%s6359_s25 + $0x4c] sm:$0xf] }
  0x3c   : > { %v2142_v34 = vrot.slane %v2140_v24, 4  ;;  %v2145_v36 = vrot.slane %v2143_v26, 5  ;;  %v2151_v38 = vrot.slane %v2149_v3, 5  ;;  %v2159_v40 = vshll.u32 %v6483_v20, 16 }
  0x3d   : > { %v2155_v39 = vrot.slane %v2153_v27, 4  ;;  %5754 = vmatmul.mubr.msk.bf16.gmra.mrb[4].mxu0 %vm666_vm3, %v5140_v31  ;;  %v334_v41 = vsel %vm6378_vm2, %v329_v32, %v333_v15  ;;  %v339_v42 = vrot.slane %v338_v33, 4  ;;  %v346_v43 = vshrl.u32 %v182_v29, 16  ;;  %v6513_v15 = vld [vmem:[%s6359_s25 + $0x48] sm:$0xf] }
  0x3e   : > { %v349_v44 = vshll.u32 %v182_v29, 16  ;;  %v2146_v46 = vor.u32 %v2145_v36, %v2142_v34  ;;  %v2161_v48 = vrot.slane %v2159_v40, 5  ;;  %v355_v50 = vshll.u32 %v183_v35, 16  ;;  %v212_v34 = vld [vmem:[%s6359_s25 + $0x50] sm:$0x1] }
  0x3f   : > { %v2156_v47 = vor.u32 %v2155_v39, %v2151_v38  ;;  %v344_v52 = vsel %vm6378_vm2, %v339_v42, %v343_v19  ;;  %v348_v53 = vrot.slane %v346_v43, 4  ;;  %v359_v58 = vshrl.u32 %v183_v35, 16 }
  0x40   : > { %v351_v55 = vrot.slane %v349_v44, 5  ;;  %v4907_v61 = vcombine.low %v334_v41, %v344_v52  ;;  %v2147_v2 = vrot.slane %v2146_v46, 4  ;;  %v357_v0 = vrot.slane %v355_v50, 5  ;;  %v5105_v41 = vld [vmem:[%s6359_s25 + $0x54] sm:$0xf] }
  0x41   : > { %v2157_v63 = vrot.slane %v2156_v47, 4  ;;  %v361_v4 = vrot.slane %v359_v58, 4  ;;  %v365_v5 = vshll.u32 %v211_v49, 16  ;;  %v2164_v6 = vshrl.u32 %v5102_v51, 16 }
  0x42   : > { %v352_v1 = vor.u32 %v351_v55, %v348_v53  ;;  %5621 = vmatprep.mubr.msk.bf16.mxu1 %vm666_vm3, %v4907_v61  ;;  %v2152_v7 = vsel %vm6378_vm2, %v2147_v2, %v2151_v38  ;;  %v2167_v11 = vshll.u32 %v5102_v51, 16  ;;  %v2173_v12 = vshll.u32 %v6501_v60, 16  ;;  %v6532_v51 = vld [vmem:[%s6359_s25 + $0x58] sm:$0xf] }
  0x43   : > { %v2162_v8 = vsel %vm6378_vm2, %v2157_v63, %v2161_v48  ;;  %v362_v19 = vor.u32 %v361_v4, %v357_v0  ;;  %v367_v24 = vrot.slane %v365_v5, 5  ;;  %v2166_v26 = vrot.slane %v2164_v6, 4 }
  0x44   : > { %v5141_v17 = vcombine.low %v2152_v7, %v2162_v8  ;;  %v353_v18 = vrot.slane %v352_v1, 4  ;;  %v2169_v3 = vrot.slane %v2167_v11, 5  ;;  %v2175_v27 = vrot.slane %v2173_v12, 5  ;;  %v6542_v8 = vld [vmem:[%s6359_s25 + $0x54] sm:$0xf] }
  0x45   : > { %v2177_v29 = vshrl.u32 %v6501_v60, 16  ;;  %v363_v32 = vrot.slane %v362_v19, 4  ;;  %v2183_v33 = vshll.u32 %v6509_v10, 16  ;;  %v370_v35 = vshrl.u32 %v6513_v15, 16  ;;  %v6548_v19 = vld [vmem:[%s6359_s25 + $0x58] sm:$0xf] }
  0x46   : > { %5757 = vmatprep.mubr.msk.bf16.mxu0 %vm666_vm3, %v5141_v17  ;;  %v358_v31 = vsel %vm6378_vm2, %v353_v18, %v357_v0  ;;  %v2170_v36 = vor.u32 %v2169_v3, %v2166_v26  ;;  %v373_v39 = vshll.u32 %v6513_v15, 16  ;;  %v379_v40 = vshll.u32 %v6516_v25, 16  ;;  %v6538_v0 = vld [vmem:[%s6359_s25 + $0x5c] sm:$0x1] }
  0x47   : > { %v2179_v38 = vrot.slane %v2177_v29, 4  ;;  %v368_v42 = vsel %vm6378_vm2, %v363_v32, %v367_v24  ;;  %v2185_v43 = vrot.slane %v2183_v33, 5  ;;  %v372_v44 = vrot.slane %v370_v35, 4  ;;  %v213_v33 = vld [vmem:[%s6359_s25 + $0x5c] sm:$0x1] }
  0x48   : > { %v383_v46 = vshrl.u32 %v6516_v25, 16  ;;  %v4908_v47 = vcombine.low %v358_v31, %v368_v42  ;;  %v2171_v48 = vrot.slane %v2170_v36, 4  ;;  %v375_v50 = vrot.slane %v373_v39, 5 }
  0x49   : > { %v2180_v49 = vor.u32 %v2179_v38, %v2175_v27  ;;  %v381_v52 = vrot.slane %v379_v40, 5  ;;  %v389_v55 = vshll.u32 %v212_v34, 16  ;;  %v2188_v58 = vshrl.u32 %v5105_v41, 16  ;;  %v5108_v40 = vld [vmem:[%s6359_s25 + $0x60] sm:$0xf] }
  0x4a   : > { %v385_v53 = vrot.slane %v383_v46, 4  ;;  %5622 = vmatmul.mubr.msk.bf16.gmra.mrb[8].mxu1 %vm666_vm3, %v4908_v47  ;;  %v2176_v61 = vsel %vm6378_vm2, %v2171_v48, %v2175_v27  ;;  %v376_v63 = vor.u32 %v375_v50, %v372_v44  ;;  %v2191_v1 = vshll.u32 %v5105_v41, 16  ;;  %v6562_v46 = vld [vmem:[%s6359_s25 + $0x64] sm:$0xf] }
  0x4b   : > { %v2181_v2 = vrot.slane %v2180_v49, 4  ;;  %v391_v5 = vrot.slane %v389_v55, 5  ;;  %v2190_v6 = vrot.slane %v2188_v58, 4  ;;  %v2197_v7 = vshll.u32 %v6532_v51, 16  ;;  %v6569_v55 = vld [vmem:[%s6359_s25 + $0x68] sm:$0x1] }
  0x4c   : > { %v386_v4 = vor.u32 %v385_v53, %v381_v52  ;;  %v377_v12 = vrot.slane %v376_v63, 4  ;;  %v2193_v17 = vrot.slane %v2191_v1, 5  ;;  %v2201_v18 = vshrl.u32 %v6532_v51, 16 }
  0x4d   : > { %v2186_v11 = vsel %vm6378_vm2, %v2181_v2, %v2185_v43  ;;  %v2199_v3 = vrot.slane %v2197_v7, 5  ;;  %v2207_v27 = vshll.u32 %v6538_v0, 16  ;;  %v394_v34 = vshrl.u32 %v6542_v8, 16 }
  0x4e   : > { %v5142_v24 = vcombine.low %v2176_v61, %v2186_v11  ;;  %v387_v26 = vrot.slane %v386_v4, 4  ;;  %v382_v29 = vsel %vm6378_vm2, %v377_v12, %v381_v52  ;;  %v2194_v31 = vor.u32 %v2193_v17, %v2190_v6  ;;  %v6579_v17 = vld [vmem:[%s6359_s25 + $0x64] sm:$0xf] }
  0x4f   : > { %v2203_v32 = vrot.slane %v2201_v18, 4  ;;  %v2209_v36 = vrot.slane %v2207_v27, 5  ;;  %v397_v38 = vshll.u32 %v6542_v8, 16  ;;  %v403_v39 = vshll.u32 %v6548_v19, 16 }
  0x50   : > { %5758 = vmatmul.mubr.msk.bf16.gmra.mrb[8].mxu0 %vm666_vm3, %v5142_v24  ;;  %v392_v35 = vsel %vm6378_vm2, %v387_v26, %v391_v5  ;;  %v2195_v42 = vrot.slane %v2194_v31, 4  ;;  %v396_v44 = vrot.slane %v394_v34, 4  ;;  %v407_v49 = vshrl.u32 %v6548_v19, 16  ;;  %v6573_v5 = vld [vmem:[%s6359_s25 + $0x60] sm:$0xf] }
  0x51   : > { %v4909_v41 = vcombine.low %v382_v29, %v392_v35  ;;  %v2204_v43 = vor.u32 %v2203_v32, %v2199_v3  ;;  %v399_v47 = vrot.slane %v397_v38, 5  ;;  %v405_v48 = vrot.slane %v403_v39, 5  ;;  %v214_v35 = vld [vmem:[%s6359_s25 + $0x68] sm:$0x1] }
  0x52   : > { %v413_v50 = vshll.u32 %v213_v33, 16  ;;  %v2200_v52 = vsel %vm6378_vm2, %v2195_v42, %v2199_v3  ;;  %v2212_v58 = vshrl.u32 %v5108_v40, 16  ;;  %v2215_v61 = vshll.u32 %v5108_v40, 16 }
  0x53   : > { %5625 = vmatprep.mubr.msk.bf16.mxu1 %vm666_vm3, %v4909_v41  ;;  %v2205_v53 = vrot.slane %v2204_v43, 4  ;;  %v400_v2 = vor.u32 %v399_v47, %v396_v44  ;;  %v409_v63 = vrot.slane %v407_v49, 4  ;;  %v2221_v4 = vshll.u32 %v6562_v46, 16  ;;  %v5170_v43 = vld [vmem:[%s6359_s25 + $0xc] sm:$0xe] }
  0x54   : > { %v415_v1 = vrot.slane %v413_v50, 5  ;;  %v2214_v7 = vrot.slane %v2212_v58, 4  ;;  %v2217_v11 = vrot.slane %v2215_v61, 5  ;;  %v2225_v12 = vshrl.u32 %v6562_v46, 16 }
  0x55   : > { %v2210_v6 = vsel %vm6378_vm2, %v2205_v53, %v2209_v36  ;;  %v401_v24 = vrot.slane %v400_v2, 4  ;;  %v410_v26 = vor.u32 %v409_v63, %v405_v48  ;;  %v2223_v3 = vrot.slane %v2221_v4, 5 }
  0x56   : > { %v5143_v18 = vcombine.low %v2200_v52, %v2210_v6  ;;  %v2218_v27 = vor.u32 %v2217_v11, %v2214_v7  ;;  %v2227_v29 = vrot.slane %v2225_v12, 4  ;;  %v2231_v31 = vshll.u32 %v6569_v55, 16  ;;  %v6607_v7 = vld [vmem:[%s6359_s25 + $0x70] sm:$0xf] }
  0x57   : > { %v418_v32 = vshrl.u32 %v6573_v5, 16  ;;  %v406_v33 = vsel %vm6378_vm2, %v401_v24, %v405_v48  ;;  %v411_v34 = vrot.slane %v410_v26, 4  ;;  %v421_v36 = vshll.u32 %v6573_v5, 16  ;;  %v6594_v48 = vld [vmem:[%s6359_s25 + $0x6c] sm:$0xf] }
  0x58   : > { %5761 = vmatprep.mubr.msk.bf16.mxu0 %vm666_vm3, %v5143_v18  ;;  %v427_v38 = vshll.u32 %v6579_v17, 16  ;;  %v2219_v39 = vrot.slane %v2218_v27, 4  ;;  %v2228_v40 = vor.u32 %v2227_v29, %v2223_v3  ;;  %v2233_v41 = vrot.slane %v2231_v31, 5  ;;  %v215_v31 = vld [vmem:[%s6359_s25 + $0x74] sm:$0x1] }
  0x59   : > { %v420_v42 = vrot.slane %v418_v32, 4  ;;  %v416_v44 = vsel %vm6378_vm2, %v411_v34, %v415_v1  ;;  %v423_v47 = vrot.slane %v421_v36, 5  ;;  %v431_v50 = vshrl.u32 %v6579_v17, 16  ;;  %v5171_v32 = vld [vmem:[%s6359_s25 + $0x18] sm:$0xe] }
  0x5a   : > { %v429_v49 = vrot.slane %v427_v38, 5  ;;  %v4910_v52 = vcombine.low %v406_v33, %v416_v44  ;;  %v2224_v53 = vsel %vm6378_vm2, %v2219_v39, %v2223_v3  ;;  %v2229_v58 = vrot.slane %v2228_v40, 4  ;;  %v6626_v38 = vld [vmem:[%s6359_s25 + $0x78] sm:$0xf] }
  0x5b   : > { %v437_v61 = vshll.u32 %v214_v35, 16  ;;  %v424_v63 = vor.u32 %v423_v47, %v420_v42  ;;  %v433_v1 = vrot.slane %v431_v50, 4  ;;  %v5186_v4 = vrot.slane %v5170_v43, 9  ;;  %v5172_v47 = vld [vmem:[%s6359_s25 + $0x24] sm:$0xe] }
  0x5c   : > { %v2793_v6 = vrot.slane %v2791_v56, 4  ;;  %5626 = vmatmul.mubr.msk.bf16.gmra.mrb[12].mxu1 %vm666_vm3, %v4910_v52  ;;  %v2234_v11 = vsel %vm6378_vm2, %v2229_v58, %v2233_v41  ;;  %v442_v18 = vshrl.u32 %v6594_v48, 16  ;;  %v445_v24 = vshll.u32 %v6594_v48, 16  ;;  %v216_v41 = vld [vmem:[%s6359_s25 + $0x80] sm:$0x1] }
  0x5d   : > { %v439_v12 = vrot.slane %v437_v61, 5  ;;  %v5144_v26 = vcombine.low %v2224_v53, %v2234_v11  ;;  %v425_v3 = vrot.slane %v424_v63, 4  ;;  %v434_v27 = vor.u32 %v433_v1, %v429_v49 }
  0x5e   : > { %v2792_v29 = vsel %vm6600_vm6, %v5186_v4, %v2791_v56  ;;  %v2795_v33 = vsel %vm6600_vm6, %v2793_v6, %v2794_v57  ;;  %v444_v34 = vrot.slane %v442_v18, 4  ;;  %v447_v35 = vrot.slane %v445_v24, 5  ;;  %v6660_v24 = vld [vmem:[%s6359_s25 + $0x88] sm:$0xf] }
  0x5f   : > { %v451_v36 = vshll.u32 %v6607_v7, 16  ;;  %5762 = vmatmul.mubr.msk.bf16.gmra.mrb[12].mxu0 %vm666_vm3, %v5144_v26  ;;  %v430_v13 = vsel %vm6378_vm2, %v425_v3, %v429_v49  ;;  %v435_v56 = vrot.slane %v434_v27, 4  ;;  %v5204_v39 = vcombine.low %v2792_v29, %v2795_v33 }
  0x60   : > { %v455_v40 = vshrl.u32 %v6607_v7, 16  ;;  %v448_v57 = vor.u32 %v447_v35, %v444_v34  ;;  %v461_v43 = vshll.u32 %v215_v31, 16  ;;  %v5187_v44 = vrot.slane %v5171_v32, 9  ;;  %v217_v35 = vld [vmem:[%s6359_s25 + $0x8c] sm:$0x1] }
  0x61   : > { %v453_v42 = vrot.slane %v451_v36, 5  ;;  %v440_v50 = vsel %vm6378_vm2, %v435_v56, %v439_v12  ;;  %5783 = vmatprep.mubr.msk.bf16.mxu0 %vm666_vm3, %v5204_v39  ;;  %v2802_v49 = vsel %vm6600_vm6, %v6414_v23, %v2801_v21  ;;  %v466_v53 = vshrl.u32 %v6626_v38, 16  ;;  %v6652_v12 = vld [vmem:[%s6359_s25 + $0x84] sm:$0xf] }
  0x62   : > { %v457_v52 = vrot.slane %v455_v40, 4  ;;  %v4911_v58 = vcombine.low %v430_v13, %v440_v50  ;;  %v449_v61 = vrot.slane %v448_v57, 4  ;;  %v463_v63 = vrot.slane %v461_v43, 5  ;;  %v5173_v40 = vld [vmem:[%s6359_s25 + $0x30] sm:$0xe] }
  0x63   : > { %v2799_v1 = vsel %vm6600_vm6, %v5187_v44, %v2798_v16  ;;  %v468_v11 = vrot.slane %v466_v53, 4  ;;  %v469_v59 = vshll.u32 %v6626_v38, 16  ;;  %v475_v23 = vshll.u32 %v6633_v14, 16  ;;  %v6665_v16 = vld [vmem:[%s8129_s1 + $0x38] sm:$0xff]   ;;  %v6684_v50 = vld [vmem:[%s6359_s25 + $0x90] sm:$0xf] }
  0x64   : > { %v458_v4 = vor.u32 %v457_v52, %v453_v42  ;;  %v5205_v6 = vcombine.low %v2799_v1, %v2802_v49  ;;  %5629 = vmatprep.mubr.msk.bf16.mxu1 %vm666_vm3, %v4911_v58  ;;  %v454_v21 = vsel %vm6378_vm2, %v449_v61, %v453_v42  ;;  %v479_v54 = vshrl.u32 %v6633_v14, 16  ;;  %v6689_v58 = vld [vmem:[%s6359_s25 + $0x94] sm:$0xf] }
  0x65   : > { %v485_v18 = vshll.u32 %v216_v41, 16  ;;  %v471_v3 = vrot.slane %v469_v59, 5  ;;  %v5188_v27 = vrot.slane %v5172_v47, 9  ;;  %v2805_v29 = vrot.slane %v6421_v37, 5 }
  0x66   : > { %v459_v26 = vrot.slane %v458_v4, 4  ;;  %v477_v31 = vrot.slane %v475_v23, 5  ;;  %v481_v32 = vrot.slane %v479_v54, 4  ;;  %v2808_v34 = vrot.slane %v6430_v45, 5  ;;  %v218_v23 = vld [vmem:[%s6359_s25 + $0x98] sm:$0x1] }
  0x67   : > { %v487_v33 = vrot.slane %v485_v18, 5  ;;  %5784 = vmatmul.mubr.msk.bf16.vlgmr.msra.gmra.mrb[0].mxu0 %vm666_vm3, %v5205_v6  ;;  %v472_v13 = vor.u32 %v471_v3, %v468_v11  ;;  %v2806_v56 = vsel %vm6600_vm6, %v5188_v27, %v2805_v29  ;;  %v2807_v39 = vrot.slane %v2805_v29, 4  ;;  %v5174_v27 = vld [vmem:[%s6359_s25 + $0x3c] sm:$0xe] }
  0x68   : > { %v464_v36 = vsel %vm6378_vm2, %v459_v26, %v463_v63  ;;  %5816 = vmatpush3.bf16.msra.mxu0 %v6441_v62  ;;  %v482_v37 = vor.u32 %v481_v32, %v477_v31  ;;  %v490_v45 = vshrl.u32 %v6652_v12, 16  ;;  %v493_v57 = vshll.u32 %v6652_v12, 16 }
  0x69   : > { %v4912_v41 = vcombine.low %v454_v21, %v464_v36  ;;  %v473_v42 = vrot.slane %v472_v13, 4  ;;  %v2809_v43 = vsel %vm6600_vm6, %v2807_v39, %v2808_v34  ;;  %v499_v44 = vshll.u32 %v6660_v24, 16  ;;  %5849 = vmatprep.subr.bf16.mxu0 %v6665_v16 }
  0x6a   : > { %v503_v47 = vshrl.u32 %v6660_v24, 16  ;;  %v483_v62 = vrot.slane %v482_v37, 4  ;;  %v5206_v52 = vcombine.low %v2806_v56, %v2809_v43  ;;  %v492_v49 = vrot.slane %v490_v45, 4 }
  0x6b   : > { %5630 = vmatmul.mubr.msk.bf16.gmra.mrb[16].mxu1 %vm666_vm3, %v4912_v41  ;;  %v495_v53 = vrot.slane %v493_v57, 5  ;;  %v478_v61 = vsel %vm6378_vm2, %v473_v42, %v477_v31  ;;  %v501_v63 = vrot.slane %v499_v44, 5  ;;  %v509_v4 = vshll.u32 %v217_v35, 16  ;;  %v6717_v42 = vld [vmem:[%s6359_s25 + $0xa0] sm:$0xf] }
  0x6c   : > { %v505_v1 = vrot.slane %v503_v47, 4  ;;  %v488_v6 = vsel %vm6378_vm2, %v483_v62, %v487_v33  ;;  %5787 = vmatprep.mubr.msk.bf16.mxu0 %vm666_vm3, %v5206_v52  ;;  %v5189_v59 = vrot.slane %v5173_v40, 9  ;;  %v2812_v21 = vrot.slane %v6454_v22, 5  ;;  %v6712_v40 = vld [vmem:[%s6359_s25 + $0x9c] sm:$0xf] }
  0x6d   : > { %v496_v11 = vor.u32 %v495_v53, %v492_v49  ;;  %v4913_v54 = vcombine.low %v478_v61, %v488_v6  ;;  %v511_v26 = vrot.slane %v509_v4, 5  ;;  %v2815_v3 = vrot.slane %v6461_v30, 5  ;;  %v219_v52 = vld [vmem:[%s6359_s25 + $0xa4] sm:$0x1] }
  0x6e   : > { %v506_v18 = vor.u32 %v505_v1, %v501_v63  ;;  %v2813_v31 = vsel %vm6600_vm6, %v5189_v59, %v2812_v21  ;;  %v2814_v32 = vrot.slane %v2812_v21, 4  ;;  %v514_v33 = vshrl.u32 %v6684_v50, 16  ;;  %v5175_v59 = vld [vmem:[%s6359_s25 + $0x48] sm:$0xe] }
  0x6f   : > { %v497_v29 = vrot.slane %v496_v11, 4  ;;  %5633 = vmatprep.mubr.msk.bf16.mxu1 %vm666_vm3, %v4913_v54  ;;  %v517_v22 = vshll.u32 %v6684_v50, 16  ;;  %v523_v35 = vshll.u32 %v6689_v58, 16  ;;  %v527_v36 = vshrl.u32 %v6689_v58, 16 }
  0x70   : > { %v507_v34 = vrot.slane %v506_v18, 4  ;;  %v2816_v13 = vsel %vm6600_vm6, %v2814_v32, %v2815_v3  ;;  %v516_v56 = vrot.slane %v514_v33, 4  ;;  %v533_v39 = vshll.u32 %v218_v23, 16  ;;  %v6736_v33 = vld [vmem:[%s6359_s25 + $0xa8] sm:$0xf] }
  0x71   : > { %v502_v30 = vsel %vm6378_vm2, %v497_v29, %v501_v63  ;;  %v5207_v37 = vcombine.low %v2813_v31, %v2816_v13  ;;  %v519_v45 = vrot.slane %v517_v22, 5  ;;  %v525_v57 = vrot.slane %v523_v35, 5 }
  0x72   : > { %v512_v41 = vsel %vm6378_vm2, %v507_v34, %v511_v26  ;;  %v529_v44 = vrot.slane %v527_v36, 4  ;;  %v535_v47 = vrot.slane %v533_v39, 5  ;;  %v5190_v62 = vrot.slane %v5174_v27, 9 }
  0x73   : > { %v4914_v43 = vcombine.low %v502_v30, %v512_v41  ;;  %5788 = vmatmul.mubr.msk.bf16.gmra.mrb[4].mxu0 %vm666_vm3, %v5207_v37  ;;  %v520_v49 = vor.u32 %v519_v45, %v516_v56  ;;  %v2819_v53 = vrot.slane %v6478_v9, 5  ;;  %v2822_v61 = vrot.slane %v6483_v20, 5  ;;  %v6741_v30 = vld [vmem:[%s6359_s25 + $0xac] sm:$0xf]  ;;  %v220_v37 = vld [vmem:[%s6359_s25 + $0xb0] sm:$0x1] }
  0x74   : > { %v538_v63 = vshrl.u32 %v6712_v40, 16  ;;  %v530_v1 = vor.u32 %v529_v44, %v525_v57  ;;  %v541_v4 = vshll.u32 %v6712_v40, 16  ;;  %v547_v6 = vshll.u32 %v6717_v42, 16  ;;  %v5176_v45 = vld [vmem:[%s6359_s25 + $0x54] sm:$0xe] }
  0x75   : > { %5634 = vmatmul.mubr.msk.bf16.gmra.mrb[20].mxu1 %vm666_vm3, %v4914_v43  ;;  %v551_v11 = vshrl.u32 %v6717_v42, 16  ;;  %v521_v21 = vrot.slane %v520_v49, 4  ;;  %v2820_v23 = vsel %vm6600_vm6, %v5190_v62, %v2819_v53  ;;  %v2821_v9 = vrot.slane %v2819_v53, 4  ;;  %v6751_v62 = vld [vmem:[%s6359_s25 + $0xb4] sm:$0xf] }
  0x76   : > { %v540_v20 = vrot.slane %v538_v63, 4  ;;  %v531_v54 = vrot.slane %v530_v1, 4  ;;  %v543_v18 = vrot.slane %v541_v4, 5  ;;  %v549_v26 = vrot.slane %v547_v6, 5  ;;  %v6763_v4 = vld [vmem:[%s6359_s25 + $0xb8] sm:$0xf] }
  0x77   : > { %v553_v3 = vrot.slane %v551_v11, 4  ;;  %v526_v27 = vsel %vm6378_vm2, %v521_v21, %v525_v57  ;;  %v2823_v29 = vsel %vm6600_vm6, %v2821_v9, %v2822_v61  ;;  %v557_v31 = vshll.u32 %v219_v52, 16 }
  0x78   : > { %v5191_v32 = vrot.slane %v5175_v59, 9  ;;  %v536_v34 = vsel %vm6378_vm2, %v531_v54, %v535_v47  ;;  %v5208_v22 = vcombine.low %v2820_v23, %v2823_v29  ;;  %v544_v35 = vor.u32 %v543_v18, %v540_v20  ;;  %v221_v18 = vld [vmem:[%s6359_s25 + $0xbc] sm:$0x1] }
  0x79   : > { %v554_v36 = vor.u32 %v553_v3, %v549_v26  ;;  %v4915_v13 = vcombine.low %v526_v27, %v536_v34  ;;  %v559_v56 = vrot.slane %v557_v31, 5  ;;  %v2826_v39 = vrot.slane %v6501_v60, 5  ;;  %v5177_v31 = vld [vmem:[%s6359_s25 + $0x60] sm:$0xe] }
  0x7a   : > { %v2829_v41 = vrot.slane %v6509_v10, 5  ;;  %5791 = vmatprep.mubr.msk.bf16.mxu0 %vm666_vm3, %v5208_v22  ;;  %v545_v57 = vrot.slane %v544_v35, 4  ;;  %v562_v44 = vshrl.u32 %v6736_v33, 16  ;;  %v565_v47 = vshll.u32 %v6736_v33, 16 }
  0x7b   : > { %v555_v43 = vrot.slane %v554_v36, 4  ;;  %5637 = vmatprep.mubr.msk.bf16.mxu1 %vm666_vm3, %v4915_v13  ;;  %v2827_v60 = vsel %vm6600_vm6, %v5191_v32, %v2826_v39  ;;  %v2828_v52 = vrot.slane %v2826_v39, 4  ;;  %v571_v10 = vshll.u32 %v6741_v30, 16  ;;  %v5178_v36 = vld [vmem:[%s6359_s25 + $0x6c] sm:$0xe] }
  0x7c   : > { %v575_v49 = vshrl.u32 %v6741_v30, 16  ;;  %v550_v53 = vsel %vm6378_vm2, %v545_v57, %v549_v26  ;;  %v564_v63 = vrot.slane %v562_v44, 4  ;;  %v567_v1 = vrot.slane %v565_v47, 5 }
  0x7d   : > { %v560_v61 = vsel %vm6378_vm2, %v555_v43, %v559_v56  ;;  %v2830_v11 = vsel %vm6600_vm6, %v2828_v52, %v2829_v41  ;;  %v573_v59 = vrot.slane %v571_v10, 5  ;;  %v581_v20 = vshll.u32 %v220_v37, 16  ;;  %v5113_v52 = vld [vmem:[%s6359_s25 + $0x74] sm:$0x1] }
  0x7e   : > { %v4916_v6 = vcombine.low %v550_v53, %v560_v61  ;;  %v577_v21 = vrot.slane %v575_v49, 4  ;;  %v5209_v23 = vcombine.low %v2827_v60, %v2830_v11  ;;  %v568_v9 = vor.u32 %v567_v1, %v564_v63  ;;  %v5112_v60 = vld [vmem:[%s6359_s25 + $0x70] sm:$0xf] }
  0x7f   : > { %v5192_v54 = vrot.slane %v5176_v45, 9  ;;  %v2833_v3 = vrot.slane %v6532_v51, 5  ;;  %v2836_v27 = vrot.slane %v6538_v0, 5  ;;  %v586_v29 = vshrl.u32 %v6751_v62, 16 }
  0x80   : > { %5638 = vmatmul.mubr.msk.bf16.gmra.mrb[24].mxu1 %vm666_vm3, %v4916_v6  ;;  %v578_v26 = vor.u32 %v577_v21, %v573_v59  ;;  %5792 = vmatmul.mubr.msk.bf16.gmra.mrb[8].mxu0 %vm666_vm3, %v5209_v23  ;;  %v569_v32 = vrot.slane %v568_v9, 4  ;;  %v583_v34 = vrot.slane %v581_v20, 5  ;;  %v589_v22 = vshll.u32 %v6751_v62, 16 }
  0x81   : > { %v595_v35 = vshll.u32 %v6763_v4, 16  ;;  %v2834_v51 = vsel %vm6600_vm6, %v5192_v54, %v2833_v3  ;;  %v2835_v56 = vrot.slane %v2833_v3, 4  ;;  %v588_v0 = vrot.slane %v586_v29, 4  ;;  %v5179_v54 = vld [vmem:[%s6359_s25 + $0x78] sm:$0xe] }
  0x82   : > { %v579_v13 = vrot.slane %v578_v26, 4  ;;  %v574_v39 = vsel %vm6378_vm2, %v569_v32, %v573_v59  ;;  %v591_v41 = vrot.slane %v589_v22, 5  ;;  %v599_v45 = vshrl.u32 %v6763_v4, 16  ;;  %v6241_v29 = vld [vmem:[%s6359_s25] sm:$0xf] }
  0x83   : > { %v597_v37 = vrot.slane %v595_v35, 5  ;;  %v2837_v43 = vsel %vm6600_vm6, %v2835_v56, %v2836_v27  ;;  %v605_v44 = vshll.u32 %v221_v18, 16  ;;  %v5193_v47 = vrot.slane %v5177_v31, 9  ;;  %v6803_v31 = vld [vmem:[%s6359_s25 + $0x4] sm:$0xf] }
  0x84   : > { %v584_v57 = vsel %vm6378_vm2, %v579_v13, %v583_v34  ;;  %v5210_v49 = vcombine.low %v2834_v51, %v2837_v43  ;;  %v592_v53 = vor.u32 %v591_v41, %v588_v0  ;;  %v601_v61 = vrot.slane %v599_v45, 4  ;;  %v6807_v34 = vld [vmem:[%s6359_s25 + $0x7c] sm:$0xf]  ;;  %v6810_v22 = vld [vmem:[%s6359_s25 + $0x80] sm:$0x1] }
  0x85   : > { %v4917_v10 = vcombine.low %v574_v39, %v584_v57  ;;  %v607_v63 = vrot.slane %v605_v44, 5  ;;  %v2840_v1 = vrot.slane %v6562_v46, 5  ;;  %v2843_v6 = vrot.slane %v6569_v55, 5  ;;  %v5180_v35 = vld [vmem:[%s6359_s25 + $0x84] sm:$0xe] }
  0x86   : > { %v5194_v11 = vrot.slane %v5178_v36, 9  ;;  %5795 = vmatprep.mubr.msk.bf16.mxu0 %vm666_vm3, %v5210_v49  ;;  %v593_v59 = vrot.slane %v592_v53, 4  ;;  %v602_v21 = vor.u32 %v601_v61, %v597_v37  ;;  %v2847_v23 = vrot.slane %v5112_v60, 5  ;;  %v5118_v0 = vld [vmem:[%s6359_s25 + $0x88] sm:$0xf] }
  0x87   : > { %5641 = vmatprep.mubr.msk.bf16.mxu1 %vm666_vm3, %v4917_v10  ;;  %v2850_v9 = vrot.slane %v5113_v52, 5  ;;  %v2841_v20 = vsel %vm6600_vm6, %v5193_v47, %v2840_v1  ;;  %v2842_v46 = vrot.slane %v2840_v1, 4  ;;  %v4936_v32 = vcombine.low %v6241_v29, %v6803_v31  ;;  %v5119_v39 = vld [vmem:[%s6359_s25 + $0x8c] sm:$0x1]  ;;  %v5121_v45 = vld [vmem:[%s6359_s25 + $0x94] sm:$0xf] }
  0x88   : > { %v598_v55 = vsel %vm6378_vm2, %v593_v59, %v597_v37  ;;  %v603_v18 = vrot.slane %v602_v21, 4  ;;  %v2848_v26 = vsel %vm6600_vm6, %v5194_v11, %v2847_v23  ;;  %v2849_v3 = vrot.slane %v2847_v23, 4  ;;  %v5122_v52 = vld [vmem:[%s6359_s25 + $0x98] sm:$0x1]  ;;  %v5181_v10 = vld [vmem:[%s6359_s25 + $0x90] sm:$0xe] }
  0x89   : > { %v2844_v27 = vsel %vm6600_vm6, %v2842_v46, %v2843_v6  ;;  %v5195_v56 = vrot.slane %v5179_v54, 9  ;;  %v2854_v57 = vrot.slane %v6807_v34, 5  ;;  %v2857_v43 = vrot.slane %v6810_v22, 5  ;;  %v5125_v11 = vld [vmem:[%s6359_s25 + $0xa4] sm:$0x1] }
  0x8a   : > { %v608_v36 = vsel %vm6378_vm2, %v603_v18, %v607_v63  ;;  %v5211_v13 = vcombine.low %v2841_v20, %v2844_v27  ;;  %v2851_v51 = vsel %vm6600_vm6, %v2849_v3, %v2850_v9  ;;  %v5196_v44 = vrot.slane %v5180_v35, 9  ;;  %v5124_v63 = vld [vmem:[%s6359_s25 + $0xa0] sm:$0xf]  ;;  %v5182_v59 = vld [vmem:[%s6359_s25 + $0x9c] sm:$0xe] }
  0x8b   : > { %v4918_v41 = vcombine.low %v598_v55, %v608_v36  ;;  %v5212_v37 = vcombine.low %v2848_v26, %v2851_v51  ;;  %v2861_v47 = vrot.slane %v5118_v0, 5  ;;  %v2864_v60 = vrot.slane %v5119_v39, 5  ;;  %v6243_v21 = vld [vmem:[%s6359_s25 + $0xc] sm:$0xf]  ;;  %v6837_v23 = vld [vmem:[%s6359_s25 + $0x10] sm:$0xf] }
  0x8c   : > { %5796 = vmatmul.mubr.msk.bf16.gmra.mrb[12].mxu0 %vm666_vm3, %v5211_v13  ;;  %v2855_v49 = vsel %vm6600_vm6, %v5195_v56, %v2854_v57  ;;  %v2856_v53 = vrot.slane %v2854_v57, 4  ;;  %v2868_v61 = vrot.slane %v5121_v45, 5  ;;  %v4937_v9 = vcombine.low %v6243_v21, %v6837_v23  ;;  %v6245_v27 = vld [vmem:[%s6359_s25 + $0x18] sm:$0xf]  ;;  %v6846_v29 = vld [vmem:[%s6359_s25 + $0x1c] sm:$0xf] }
  0x8d   : > { %5642 = vmatmul.mubr.msk.bf16.gmra.mrb[28].mxu1 %vm666_vm3, %v4918_v41  ;;  %5799 = vmatprep.mubr.msk.bf16.mxu0 %vm666_vm3, %v5212_v37  ;;  %v2862_v1 = vsel %vm6600_vm6, %v5196_v44, %v2861_v47  ;;  %v2863_v6 = vrot.slane %v2861_v47, 4  ;;  %v5197_v46 = vrot.slane %v5181_v10, 9  ;;  %v2871_v54 = vrot.slane %v5122_v52, 5  ;;  %v5127_v51 = vld [vmem:[%s6359_s25 + $0xac] sm:$0xf]  ;;  %v6854_v39 = vld [vmem:[%s8129_s1 + $0x18] sm:$0xff]  }
  0x8e   : > { %5647 = vmatprep.mubr.msk.bf16.mxu1 %vm666_vm3, %v4936_v32  ;;  %v2858_v20 = vsel %vm6600_vm6, %v2856_v53, %v2857_v43  ;;  %v2870_v26 = vrot.slane %v2868_v61, 4  ;;  %v2875_v3 = vrot.slane %v5124_v63, 5  ;;  %v4938_v32 = vcombine.low %v6245_v27, %v6846_v29  ;;  %v5130_v0 = vld [vmem:[%s6359_s25 + $0xb8] sm:$0xf]  ;;  %v6247_v57 = vld [vmem:[%s8129_s1 + $0x10] sm:$0xff]  }
  0x8f   : > { %v5213_v55 = vcombine.low %v2855_v49, %v2858_v20  ;;  %v2865_v18 = vsel %vm6600_vm6, %v2863_v6, %v2864_v60  ;;  %v5198_v36 = vrot.slane %v5182_v59, 9  ;;  %v2878_v13 = vrot.slane %v5125_v11, 5  ;;  %v5128_v47 = vld [vmem:[%s6359_s25 + $0xb0] sm:$0x1]  ;;  %v5183_v60 = vld [vmem:[%s6359_s25 + $0xa8] sm:$0xe] }
  0x90   : > { %v5214_v35 = vcombine.low %v2862_v1, %v2865_v18  ;;  %v2877_v56 = vrot.slane %v2875_v3, 4  ;;  %v2869_v41 = vsel %vm6600_vm6, %v5197_v46, %v2868_v61  ;;  %v2872_v37 = vsel %vm6600_vm6, %v2870_v26, %v2871_v54  ;;  %v5131_v10 = vld [vmem:[%s6359_s25 + $0xbc] sm:$0x1]  ;;  %v5184_v49 = vld [vmem:[%s6359_s25 + $0xb4] sm:$0xe] }
  0x91   : > { %v2882_v45 = vrot.slane %v5127_v51, 5  ;;  %v2876_v43 = vsel %vm6600_vm6, %v5198_v36, %v2875_v3  ;;  %v2889_v52 = vrot.slane %v5130_v0, 5  ;;  %v6248_v53 = vld [vmem:[%s6359_s25 + $0x24] sm:$0xf]  ;;  %v6878_v61 = vld [vmem:[%s6359_s25 + $0x28] sm:$0xf]  ;;  %v5215_v1 = vcombine.low %v2869_v41, %v2872_v37 }
  0x92   : > { %v2879_v44 = vsel %vm6600_vm6, %v2877_v56, %v2878_v13  ;;  %v4939_v63 = vcombine.low %v6248_v53, %v6878_v61  ;;  %v5133_v6 = vld [vmem:[%s6359_s25 + $0xc4] sm:$0xf]  ;;  %v5199_v59 = vrot.slane %v5183_v60, 9  ;;  %v6250_v20 = vld [vmem:[%s6359_s25 + $0x30] sm:$0xf]  ;;  %v2892_v26 = vrot.slane %v5131_v10, 5 }
  0x93   : > { %v5216_v11 = vcombine.low %v2876_v43, %v2879_v44  ;;  %v2884_v21 = vrot.slane %v2882_v45, 4  ;;  %v6884_v46 = vld [vmem:[%s6359_s25 + $0x34] sm:$0xf]  ;;  %v2891_v18 = vrot.slane %v2889_v52, 4  ;;  %v5134_v13 = vld [vmem:[%s6359_s25 + $0xc8] sm:$0x1] }
  0x94   : > { %5800 = vmatmul.mubr.msk.bf16.gmra.mrb[16].mxu0 %vm666_vm3, %v5213_v55  ;;  %v4940_v54 = vcombine.low %v6250_v20, %v6884_v46  ;;  %v5200_v55 = vrot.slane %v5184_v49, 9  ;;  %v2883_v3 = vsel %vm6600_vm6, %v5199_v59, %v2882_v45  ;;  %v5185_v51 = vld [vmem:[%s6359_s25 + $0xc0] sm:$0xe]  ;;  %v6252_v56 = vld [vmem:[%s6359_s25 + $0x3c] sm:$0xf]  ;;  %v2899_v44 = vrot.slane %v5134_v13, 5 }
  0x95   : > { %5648 = vmatmul.mubr.msk.bf16.vlgmr.msra.gmra.mrb[0].mxu1 %vm666_vm3, %v4937_v9  ;;  %5803 = vmatprep.mubr.msk.bf16.mxu0 %vm666_vm3, %v5214_v35  ;;  %v2885_v9 = vrot.slane %v5128_v47, 5  ;;  %v2893_v36 = vsel %vm6600_vm6, %v2891_v18, %v2892_v26  ;;  %v6903_v0 = vld [vmem:[%s6359_s25 + $0x40] sm:$0xf]  ;;  %v4942_v47 = vcombine.low %v6513_v15, %v6516_v25  ;;  %v2269_v10 = vshll.u32 %v6807_v34, 16  ;;  %v6199_v53 = vld [vmem:[%s6359_s25 + $0x18] sm:$0xff]  }
  0x96   : > { %5680 = vmatpush3.bf16.msra.mxu1 %v6247_v57  ;;  %5651 = vmatprep.mubr.msk.bf16.mxu1 %vm666_vm3, %v4938_v32  ;;  %v2896_v32 = vrot.slane %v5133_v6, 5  ;;  %v2890_v35 = vsel %vm6600_vm6, %v5200_v55, %v2889_v52  ;;  %v4941_v41 = vcombine.low %v6252_v56, %v6903_v0  ;;  %v5201_v57 = vrot.slane %v5185_v51, 9 }
  0x97   : > { %5713 = vmatprep.subr.bf16.mxu1 %v6854_v39  ;;  %v2886_v27 = vsel %vm6600_vm6, %v2884_v21, %v2885_v9  ;;  %v5218_v45 = vcombine.low %v2890_v35, %v2893_v36  ;;  %v2273_v15 = vshrl.u32 %v6807_v34, 16  ;;  %v4943_v49 = vcombine.low %v6542_v8, %v6548_v19  ;;  %v1171_v8 = vld [vmem:[%s6359_s25] sm:$0xe]  ;;  %v1172_v19 = vld [vmem:[%s6359_s25 + $0xc] sm:$0xe] }
  0x98   : > { %v5217_v37 = vcombine.low %v2883_v3, %v2886_v27  ;;  %v2898_v43 = vrot.slane %v2896_v32, 4  ;;  %v2897_v60 = vsel %vm6600_vm6, %v5201_v57, %v2896_v32  ;;  %v1231_v21 = vrot.slane %v6837_v23, 5  ;;  %v1173_v34 = vld [vmem:[%s6359_s25 + $0x18] sm:$0xe]  ;;  %v6202_v27 = vld [vmem:[%s6359_s25 + $0x24] sm:$0xff]   ;;  %v6204_v32 = vld [vmem:[%s6359_s25 + $0x30] sm:$0xff]  }
  0x99   : > { %v2275_v6 = vrot.slane %v2273_v15, 4  ;;  %v2279_v9 = vshll.u32 %v6810_v22, 16  ;;  %v1224_v23 = vrot.slane %v6803_v31, 5  ;;  %v1238_v20 = vrot.slane %v6846_v29, 5  ;;  %v1175_v36 = vld [vmem:[%s6359_s25 + $0x30] sm:$0xe] }
  0x9a   : > { %v2900_v52 = vsel %vm6600_vm6, %v2898_v43, %v2899_v44  ;;  %v4945_v18 = vcombine.low %v6594_v48, %v6607_v7  ;;  %v1245_v26 = vrot.slane %v6878_v61, 5  ;;  %v1252_v3 = vrot.slane %v6884_v46, 5  ;;  %v6256_v48 = vld [vmem:[%s6359_s25 + $0x20] sm:$0x1]  ;;  %v6257_v57 = vld [vmem:[%s6359_s25 + $0x2c] sm:$0x1] }
  0x9b   : > { %v5219_v25 = vcombine.low %v2897_v60, %v2900_v52  ;;  %v4946_v22 = vcombine.low %v6626_v38, %v6633_v14  ;;  %v4947_v31 = vcombine.low %v6652_v12, %v6660_v24  ;;  %v4969_v29 = vrot.slane %v1171_v8, 9  ;;  %v6955_v46 = vld [vmem:[%s8129_s1 + $0x40] sm:$0xff]  }
  0x9c   : > { %5804 = vmatmul.mubr.msk.bf16.gmra.mrb[20].mxu0 %vm666_vm3, %v5215_v1  ;;  %v6923_v1 = vrot.slane %v2269_v10, 5  ;;  %v4970_v35 = vrot.slane %v1172_v19, 9  ;;  %v1233_v13 = vrot.slane %v1231_v21, 4  ;;  %v4971_v51 = vrot.slane %v1173_v34, 9  ;;  %v6258_v10 = vld [vmem:[%s6359_s25 + $0x38] sm:$0x1] }
  0x9d   : > { %5652 = vmatmul.mubr.msk.bf16.gmra.mrb[4].mxu1 %vm666_vm3, %v4939_v63  ;;  %5807 = vmatprep.mubr.msk.bf16.mxu0 %vm666_vm3, %v5216_v11  ;;  %v4944_v63 = vcombine.low %v6573_v5, %v6579_v17  ;;  %v6254_v11 = vld [vmem:[%s6359_s25 + $0x8] sm:$0x1]  ;;  %v6255_v5 = vld [vmem:[%s6359_s25 + $0x14] sm:$0x1]  ;;  %v1241_v7 = vrot.slane %v6256_v48, 5  ;;  %v4948_v38 = vcombine.low %v6684_v50, %v6689_v58  ;;  %v4949_v14 = vcombine.low %v6712_v40, %v6717_v42 }
  0x9e   : > { %5655 = vmatprep.mubr.msk.bf16.mxu1 %vm666_vm3, %v4940_v54  ;;  %8148 = vst [vmem:[#allocation2_spill] sm:$0xff] %v6923_v1  ;;  %v1227_v59 = vrot.slane %v6254_v11, 5  ;;  %v1234_v17 = vrot.slane %v6255_v5, 5  ;;  %v1174_v54 = vld [vmem:[%s6359_s25 + $0x24] sm:$0xe]  ;;  %v2276_v55 = vor.u32 %v2275_v6, %v6923_v1  ;;  %v1226_v56 = vrot.slane %v1224_v23, 4 }
  0x9f   : > { %v4972_v61 = vrot.slane %v1174_v54, 9  ;;  %v1248_v43 = vrot.slane %v6257_v57, 5  ;;  %v4973_v44 = vrot.slane %v1175_v36, 9  ;;  %v4950_v60 = vcombine.low %v6736_v33, %v6741_v30  ;;  %v1177_v6 = vld [vmem:[%s6359_s25 + $0x48] sm:$0xe]  ;;  %v6210_v58 = vld [vmem:[%s6359_s25 + $0x54] sm:$0xff]  }
  0xa0   : > { %v6968_v52 = vsel %vm6600_vm6, %v4969_v29, %v1224_v23  ;;  %v1255_v15 = vrot.slane %v6258_v10, 5  ;;  %v6989_v11 = vrot.slane %v2276_v55, 4  ;;  %v5304_v34 = vld [vmem:[%s6359_s25 + $0x18] sm:$0xf]  ;;  %v6208_v5 = vld [vmem:[%s6359_s25 + $0x48] sm:$0xff]  }
  0xa1   : > { %v7004_v19 = vsel %vm6600_vm6, %v4972_v61, %v1245_v26  ;;  %v6259_v23 = vld [vmem:[%s6359_s25 + $0x44] sm:$0x1]  ;;  %v1178_v55 = vld [vmem:[%s6359_s25 + $0x54] sm:$0xe]  ;;  %v3614_v48 = vshll.u32 %v5304_v34, 16 }
  0xa2   : > { %8150 = vst [vmem:[#allocation4_spill] sm:$0xff] %v6989_v11  ;;  %v4976_v10 = vrot.slane %v1178_v55, 9  ;;  %v5310_v55 = vld [vmem:[%s6359_s25 + $0x30] sm:$0xf]  ;;  %v5311_v50 = vld [vmem:[%s6359_s25 + $0x34] sm:$0xf] }
  0xa3   : > { %v3616_v24 = vrot.slane %v3614_v48, 5 }
  0xa4   : > { %5808 = vmatmul.mubr.msk.bf16.gmra.mrb[24].mxu0 %vm666_vm3, %v5217_v37  ;;  %v1176_v37 = vld [vmem:[%s6359_s25 + $0x3c] sm:$0xe] }
  0xa5   : > { %5656 = vmatmul.mubr.msk.bf16.gmra.mrb[8].mxu1 %vm666_vm3, %v4941_v41  ;;  %5811 = vmatprep.mubr.msk.bf16.mxu0 %vm666_vm3, %v5218_v45  ;;  %v1240_v41 = vrot.slane %v1238_v20, 4  ;;  %v1247_v45 = vrot.slane %v1245_v26, 4 }
  0xa6   : > { %5659 = vmatprep.mubr.msk.bf16.mxu1 %vm666_vm3, %v4942_v47  ;;  %v1254_v47 = vrot.slane %v1252_v3, 4 }
  0xa7   : > { %v7000_v8 = vsel %vm6600_vm6, %v1240_v41, %v1241_v7  ;;  %v7019_v26 = vsel %vm6600_vm6, %v1247_v45, %v1248_v43  ;;  %v6261_v45 = vld [vmem:[%s6359_s25 + $0x50] sm:$0x1]  ;;  %v3668_v41 = vshll.u32 %v5311_v50, 16 }
  0xa8   : > { %v1269_v57 = vrot.slane %v6261_v45, 5  ;;  %v8158_v11 = vcombine.low %v7004_v19, %v7019_v26 }
  0xac   : > { %5812 = vmatmul.mubr.msk.bf16.gmra.mrb[28].mxu0 %vm666_vm3, %v5219_v25  ;;  %v1259_v25 = vrot.slane %v6903_v0, 5  ;;  %v6986_v0 = vsel %vm6600_vm6, %v4971_v51, %v1238_v20  ;;  %v1262_v20 = vrot.slane %v6259_v23, 5  ;;  %v3611_v51 = vshrl.u32 %v5304_v34, 16  ;;  %v7063_v34 = vld [vmem:[%s6359_s25 + $0x5c] sm:$0x1] }
  0xad   : > { %5660 = vmatmul.mubr.msk.bf16.gmra.mrb[12].mxu1 %vm666_vm3, %v4943_v49  ;;  %5817 = vmatprep.mubr.msk.bf16.mxu0 %vm666_vm3, %v6199_v53  ;;  %v6972_v49 = vrot.slane %v2279_v9, 5  ;;  %v6978_v53 = vsel %vm6600_vm6, %v4970_v35, %v1231_v21  ;;  %v6996_v21 = vsel %vm6600_vm6, %v1226_v56, %v1227_v59  ;;  %v4974_v9 = vrot.slane %v1176_v37, 9  ;;  %v6260_v59 = vld [vmem:[%s6359_s25 + $0x4c] sm:$0xf] }
  0xae   : > { %5663 = vmatprep.mubr.msk.bf16.mxu1 %vm666_vm3, %v4944_v63  ;;  %v6982_v63 = vsel %vm6600_vm6, %v1233_v13, %v1234_v17  ;;  %v7010_v17 = vsel %vm6600_vm6, %v4973_v44, %v1252_v3  ;;  %v1266_v54 = vrot.slane %v6260_v59, 5  ;;  %v1261_v3 = vrot.slane %v1259_v25, 4  ;;  %v7034_v13 = vld [vmem:[%s6359_s25 + $0x60] sm:$0xe] }
  0xaf   : > { %8149 = vst [vmem:[#allocation3_spill] sm:$0xff] %v6972_v49  ;;  %v7044_v43 = vsel %vm6600_vm6, %v4974_v9, %v1259_v25  ;;  %v6262_v25 = vld [vmem:[%s6359_s25 + $0x58] sm:$0xf]  ;;  %v1276_v9 = vrot.slane %v7063_v34, 5  ;;  %v4977_v23 = vrot.slane %v7034_v13, 9  ;;  %v3613_v12 = vrot.slane %v3611_v51, 4 }
  0xb0   : > { %v1268_v37 = vrot.slane %v1266_v54, 4  ;;  %v7048_v44 = vsel %vm6600_vm6, %v1261_v3, %v1262_v20  ;;  %v6264_v20 = vld [vmem:[%s6359_s25 + $0x64] sm:$0xf]  ;;  %v6265_v34 = vld [vmem:[%s6359_s25 + $0x70] sm:$0xf]  ;;  %v3672_v56 = vshrl.u32 %v5311_v50, 16 }
  0xb1   : > { %v1280_v59 = vrot.slane %v6264_v20, 5  ;;  %v1287_v20 = vrot.slane %v6265_v34, 5  ;;  %v5309_v34 = vld [vmem:[%s6359_s25 + $0x2c] sm:$0x1] }
  0xb2   : > { %v7080_v3 = vsel %vm6600_vm6, %v1268_v37, %v1269_v57  ;;  %v3659_v37 = vshrl.u32 %v5310_v55, 16  ;;  %v3662_v57 = vshll.u32 %v5310_v55, 16 }
  0xb3   : > { %v1282_v36 = vrot.slane %v1280_v59, 4 }
  0xb4   : > { %5818 = vmatmul.mubr.msk.bf16.vlgmr.msra.gmra.mrb[0].mxu0 %vm666_vm3, %v6202_v27  ;;  %v7023_v27 = vsel %vm6600_vm6, %v1254_v47, %v1255_v15  ;;  %v5306_v15 = vld [vmem:[%s6359_s25 + $0x20] sm:$0x1]  ;;  %v3664_v50 = vrot.slane %v3662_v57, 5  ;;  %v6216_v57 = vld [vmem:[%s6359_s25 + $0x78] sm:$0xff]  }
  0xb5   : > { %5664 = vmatmul.mubr.msk.bf16.gmra.mrb[16].mxu1 %vm666_vm3, %v4945_v18  ;;  %5850 = vmatpush3.bf16.msra.mxu0 %v6665_v16  ;;  %v6206_v16 = vld [vmem:[%s6359_s25 + $0x3c] sm:$0xff]   ;;  %v3630_v48 = vshll.u32 %v5306_v15, 16 }
  0xb6   : > { %5667 = vmatprep.mubr.msk.bf16.mxu1 %vm666_vm3, %v4946_v22  ;;  %5821 = vmatprep.mubr.msk.bf16.mxu0 %vm666_vm3, %v6204_v32  ;;  %v5305_v18 = vld [vmem:[%s6359_s25 + $0x1c] sm:$0xf]  ;;  %v4975_v22 = vrot.slane %v1177_v6, 9  ;;  %v5307_v6 = vld [vmem:[%s6359_s25 + $0x24] sm:$0xf] }
  0xb7   : > { %5883 = vmatprep.subr.bf16.mxu0 %v6955_v46  ;;  %v3620_v7 = vshll.u32 %v5305_v18, 16  ;;  %v3624_v61 = vshrl.u32 %v5305_v18, 16  ;;  %v3638_v13 = vshll.u32 %v5307_v6, 16  ;;  %v3617_v18 = vor.u32 %v3616_v24, %v3613_v12 }
  0xb8   : > { %v7052_v47 = vsel %vm6600_vm6, %v4975_v22, %v1266_v54  ;;  %v5308_v54 = vld [vmem:[%s6359_s25 + $0x28] sm:$0xf]  ;;  %v3635_v22 = vshrl.u32 %v5307_v6, 16  ;;  %v1289_v24 = vrot.slane %v1287_v20, 4 }
  0xb9   : > { %v3640_v29 = vrot.slane %v3638_v13, 5  ;;  %v3661_v13 = vrot.slane %v3659_v37, 4  ;;  %v3618_v40 = vrot.slane %v3617_v18, 4 }
  0xba   : > { %v3637_v15 = vrot.slane %v3635_v22, 4  ;;  %v5312_v22 = vld [vmem:[%s6359_s25 + $0x38] sm:$0x1] }
  0xbb   : > { %v3678_v37 = vshll.u32 %v5312_v22, 16 }
  0xbc   : > { %5822 = vmatmul.mubr.msk.bf16.gmra.mrb[4].mxu0 %vm666_vm3, %v6206_v16  ;;  %v1273_v16 = vrot.slane %v6262_v25, 5  ;;  %v1180_v25 = vld [vmem:[%s6359_s25 + $0x6c] sm:$0xe] }
  0xbd   : > { %5668 = vmatmul.mubr.msk.bf16.gmra.mrb[20].mxu1 %vm666_vm3, %v4947_v31  ;;  %5825 = vmatprep.mubr.msk.bf16.mxu0 %vm666_vm3, %v6208_v5  ;;  %v7073_v31 = vrot.slane %v3620_v7, 5  ;;  %v3626_v5 = vrot.slane %v3624_v61, 4  ;;  %v3644_v7 = vshll.u32 %v5308_v54, 16  ;;  %v3648_v61 = vshrl.u32 %v5308_v54, 16 }
  0xbe   : > { %5671 = vmatprep.mubr.msk.bf16.mxu1 %vm666_vm3, %v4948_v38  ;;  %v6212_v38 = vld [vmem:[%s6359_s25 + $0x60] sm:$0xff]   ;;  %v7087_v51 = vsel %vm6600_vm6, %v4976_v10, %v1273_v16  ;;  %v1275_v45 = vrot.slane %v1273_v16, 4  ;;  %v6266_v10 = vld [vmem:[%s6359_s25 + $0x68] sm:$0x1]  ;;  %v7094_v16 = vrot.slane %v3630_v48, 5  ;;  %v4978_v54 = vrot.slane %v1180_v25, 9 }
  0xbf   : > { %v3627_v6 = vor.u32 %v3626_v5, %v7073_v31  ;;  %v1283_v35 = vrot.slane %v6266_v10, 5  ;;  %v7097_v32 = vrot.slane %v3644_v7, 5  ;;  %v3650_v12 = vrot.slane %v3648_v61, 4  ;;  %v6267_v5 = vld [vmem:[%s6359_s25 + $0x74] sm:$0x1]  ;;  %v6214_v25 = vld [vmem:[%s6359_s25 + $0x6c] sm:$0xff]  }
  0xc0   : > { %v1290_v55 = vrot.slane %v6267_v5, 5  ;;  %v7116_v48 = vsel %vm6600_vm6, %v4977_v23, %v1280_v59  ;;  %v3641_v7 = vor.u32 %v3640_v29, %v3637_v15  ;;  %v3654_v61 = vshll.u32 %v5309_v34, 16  ;;  %v6269_v10 = vld [vmem:[%s6359_s25 + $0x88] sm:$0xf] }
  0xc1   : > { %v3628_v42 = vrot.slane %v3627_v6, 4  ;;  %v7121_v33 = vsel %vm6600_vm6, %v1275_v45, %v1276_v9  ;;  %v7129_v23 = vsel %vm6600_vm6, %v1282_v36, %v1283_v35  ;;  %v7133_v29 = vsel %vm6600_vm6, %v4978_v54, %v1287_v20  ;;  %v1182_v45 = vld [vmem:[%s6359_s25 + $0x84] sm:$0xe]  ;;  %v5313_v20 = vld [vmem:[%s6359_s25 + $0x3c] sm:$0xf] }
  0xc2   : > { %v7137_v9 = vsel %vm6600_vm6, %v1289_v24, %v1290_v55  ;;  %v3665_v59 = vor.u32 %v3664_v50, %v3661_v13  ;;  %v3623_v6 = vsel %vm6378_vm2, %v3618_v40, %v7073_v31  ;;  %v1301_v15 = vrot.slane %v6269_v10, 5  ;;  %v6270_v24 = vld [vmem:[%s6359_s25 + $0x80] sm:$0x1] }
  0xc3   : > { %v3633_v35 = vsel %vm6378_vm2, %v3628_v42, %v7094_v16  ;;  %v3642_v54 = vrot.slane %v3641_v7, 4  ;;  %v3656_v34 = vrot.slane %v3654_v61, 5  ;;  %v1297_v5 = vrot.slane %v6270_v24, 5  ;;  %v7151_v55 = vld [vmem:[%s6359_s25 + $0x40] sm:$0xf] }
  0xc4   : > { %5826 = vmatmul.mubr.msk.bf16.gmra.mrb[8].mxu0 %vm666_vm3, %v6210_v58  ;;  %v3674_v58 = vrot.slane %v3672_v56, 4  ;;  %v1181_v56 = vld [vmem:[%s6359_s25 + $0x78] sm:$0xe]  ;;  %8151 = vst [vmem:[#allocation5_spill] sm:$0xff] %v7151_v55  ;;  %v3680_v13 = vrot.slane %v3678_v37, 5  ;;  %v4980_v16 = vrot.slane %v1182_v45, 9  ;;  %v8152_v50 = vcombine.low %v6751_v62, %v6763_v4 }
  0xc5   : > { %5672 = vmatmul.mubr.msk.bf16.gmra.mrb[24].mxu1 %vm666_vm3, %v4949_v14  ;;  %5829 = vmatprep.mubr.msk.bf16.mxu0 %vm666_vm3, %v6212_v38  ;;  %v7110_v14 = vrot.slane %v3668_v41, 5  ;;  %v6268_v41 = vld [vmem:[%s6359_s25 + $0x7c] sm:$0xf]  ;;  %v3666_v40 = vrot.slane %v3665_v59, 4  ;;  %v6271_v42 = vld [vmem:[%s6359_s25 + $0x8c] sm:$0x1]  ;;  %v3647_v45 = vsel %vm6378_vm2, %v3642_v54, %v7097_v32 }
  0xc6   : > { %5675 = vmatprep.mubr.msk.bf16.mxu1 %vm666_vm3, %v4950_v60  ;;  %v3651_v60 = vor.u32 %v3650_v12, %v7097_v32  ;;  %v1294_v18 = vrot.slane %v6268_v41, 5  ;;  %v4979_v12 = vrot.slane %v1181_v56, 9  ;;  %v3683_v7 = vshrl.u32 %v5313_v20, 16  ;;  %v6217_v41 = vld [vmem:[%s6359_s25 + $0x84] sm:$0xff]   ;;  %v6218_v59 = vld [vmem:[%s6359_s25 + $0x90] sm:$0xff]  }
  0xc7   : > { %v3675_v36 = vor.u32 %v3674_v58, %v7110_v14  ;;  %v1304_v58 = vrot.slane %v6271_v42, 5  ;;  %v3686_v61 = vshll.u32 %v5313_v20, 16  ;;  %v1303_v56 = vrot.slane %v1301_v15, 4  ;;  %v7191_v20 = vld [vmem:[%s6359_s25 + $0x4c] sm:$0xf] }
  0xc8   : > { %v3652_v31 = vrot.slane %v3651_v60, 4  ;;  %v1296_v22 = vrot.slane %v1294_v18, 4  ;;  %v3692_v62 = vshll.u32 %v7151_v55, 16  ;;  %v3696_v4 = vshrl.u32 %v7151_v55, 16  ;;  %v7269_v37 = vld [vmem:[%s6359_s25 + $0x5c] sm:$0x1] }
  0xc9   : > { %v3676_v60 = vrot.slane %v3675_v36, 4  ;;  %v7183_v10 = vsel %vm6600_vm6, %v4979_v12, %v1294_v18  ;;  %v3671_v24 = vsel %vm6378_vm2, %v3666_v40, %v7110_v14  ;;  %v7198_v32 = vsel %vm6600_vm6, %v4980_v16, %v1301_v15  ;;  %v7202_v18 = vld [vmem:[%s6359_s25 + $0x58] sm:$0xf]  ;;  %v7216_v40 = vld [vmem:[%s6359_s25 + $0x90] sm:$0xe] }
  0xca   : > { %v3657_v36 = vsel %vm6378_vm2, %v3652_v31, %v3656_v34  ;;  %v3685_v54 = vrot.slane %v3683_v7, 4  ;;  %v3688_v34 = vrot.slane %v3686_v61, 5  ;;  %v5319_v31 = vld [vmem:[%s6359_s25 + $0x54] sm:$0xf]  ;;  %v3698_v14 = vrot.slane %v3696_v4, 4 }
  0xcb   : > { %v3681_v12 = vsel %vm6378_vm2, %v3676_v60, %v3680_v13  ;;  %v3716_v42 = vshll.u32 %v7191_v20, 16  ;;  %v3720_v7 = vshrl.u32 %v7191_v20, 16  ;;  %v3731_v13 = vshrl.u32 %v5319_v31, 16  ;;  %v1184_v38 = vld [vmem:[%s6359_s25 + $0x9c] sm:$0xe] }
  0xcc   : > { %5830 = vmatmul.mubr.msk.bf16.gmra.mrb[12].mxu0 %vm666_vm3, %v6214_v25  ;;  %v8153_v25 = vcombine.low %v6968_v52, %v6996_v21  ;;  %v7171_v52 = vcombine.low %v3623_v6, %v3633_v35  ;;  %v7187_v6 = vsel %vm6600_vm6, %v1296_v22, %v1297_v5  ;;  %v5316_v35 = vld [vmem:[%s6359_s25 + $0x48] sm:$0xf]  ;;  %v7208_v5 = vsel %vm6600_vm6, %v1303_v56, %v1304_v58  ;;  %v7211_v22 = vld [vmem:[%s6359_s25 + $0x44] sm:$0x1] }
  0xcd   : > { %5676 = vmatmul.mubr.msk.bf16.gmra.mrb[28].mxu1 %vm666_vm3, %v8152_v50  ;;  %5833 = vmatprep.mubr.msk.bf16.mxu0 %vm666_vm3, %v6216_v57  ;;  %8154 = vst [vmem:[#allocation6_spill] sm:$0xff] %v7211_v22  ;;  %v7213_v50 = vrot.slane %v3692_v62, 5  ;;  %v3707_v15 = vshrl.u32 %v5316_v35, 16  ;;  %v3710_v16 = vshll.u32 %v5316_v35, 16  ;;  %v3734_v61 = vshll.u32 %v5319_v31, 16 }
  0xce   : > { %5681 = vmatprep.mubr.msk.bf16.mxu1 %vm666_vm3, %v8153_v25  ;;  %v3740_v58 = vshll.u32 %v7202_v18, 16  ;;  %v3744_v25 = vshrl.u32 %v7202_v18, 16  ;;  %v8155_v60 = vcombine.low %v6978_v53, %v6982_v63  ;;  %v7228_v56 = vcombine.low %v3647_v45, %v3657_v36  ;;  %v7245_v35 = vld [vmem:[%s6359_s25 + $0x50] sm:$0x1]  ;;  %v6274_v62 = vld [vmem:[%s6359_s25 + $0x98] sm:$0x1] }
  0xcf   : > { %v7232_v4 = vcombine.low %v3671_v24, %v3681_v12  ;;  %v8156_v53 = vcombine.low %v6986_v0, %v7000_v8  ;;  %v3699_v45 = vor.u32 %v3698_v14, %v7213_v50  ;;  %v5322_v24 = vld [vmem:[%s6359_s25 + $0x60] sm:$0xf]  ;;  %v3709_v31 = vrot.slane %v3707_v15, 4  ;;  %v7251_v8 = vld [vmem:[%s6359_s25 + $0x64] sm:$0xf]  ;;  %v6220_v14 = vld [vmem:[%s6359_s25 + $0xa8] sm:$0xff]  }
  0xd0   : > { %v7248_v12 = vrot.slane %v3716_v42, 5  ;;  %v3722_v0 = vrot.slane %v3720_v7, 4  ;;  %v3736_v15 = vrot.slane %v3734_v61, 5  ;;  %v6273_v7 = vld [vmem:[%s6359_s25 + $0x94] sm:$0xf]  ;;  %v1311_v21 = vrot.slane %v6274_v62, 5 }
  0xd1   : > { %v1308_v63 = vrot.slane %v6273_v7, 5  ;;  %v3726_v57 = vshll.u32 %v7245_v35, 16  ;;  %v3755_v36 = vshrl.u32 %v5322_v24, 16  ;;  %v3768_v61 = vshrl.u32 %v7251_v8, 16  ;;  %v6275_v7 = vld [vmem:[%s6359_s25 + $0xa0] sm:$0xf] }
  0xd2   : > { %v1315_v55 = vrot.slane %v6275_v7, 5  ;;  %v3700_v62 = vrot.slane %v3699_v45, 4  ;;  %v1322_v45 = vrot.slane %v6741_v30, 5  ;;  %v7296_v7 = vld [vmem:[%s6359_s25 + $0x68] sm:$0x1]  ;;  %v6221_v30 = vld [vmem:[%s6359_s25 + $0xb4] sm:$0xff]  }
  0xd3   : > { %v3757_v19 = vrot.slane %v3755_v36, 4  ;;  %8160 = vst [vmem:[#allocation8_spill] sm:$0xff] %v7296_v7  ;;  %v6222_v36 = vld [vmem:[%s6359_s25 + $0xc0] sm:$0xff]  }
  0xd4   : > { %5834 = vmatmul.mubr.msk.bf16.gmra.mrb[16].mxu0 %vm666_vm3, %v6217_v41  ;;  %v3702_v41 = vshll.u32 %v7211_v22, 16  ;;  %v3758_v22 = vshll.u32 %v5322_v24, 16  ;;  %v3750_v24 = vshll.u32 %v7269_v37, 16 }
  0xd5   : > { %5682 = vmatmul.mubr.msk.bf16.vlgmr.msra.gmra.mrb[0].mxu1 %vm666_vm3, %v8155_v60  ;;  %5837 = vmatprep.mubr.msk.bf16.mxu0 %vm666_vm3, %v6218_v59  ;;  %v3689_v59 = vor.u32 %v3688_v34, %v3685_v54  ;;  %v7256_v54 = vld [vmem:[%s8129_s1 + $0x20] sm:$0xff]   ;;  %v3733_v60 = vrot.slane %v3731_v13, 4  ;;  %v3764_v13 = vshll.u32 %v7251_v8, 16 }
  0xd6   : > { %5714 = vmatpush3.bf16.msra.mxu1 %v6854_v39  ;;  %5685 = vmatprep.mubr.msk.bf16.mxu1 %vm666_vm3, %v8156_v53  ;;  %v3712_v39 = vrot.slane %v3710_v16, 5  ;;  %8157 = vst [vmem:[#allocation7_spill] sm:$0xff] %v7256_v54  ;;  %v6219_v34 = vld [vmem:[%s6359_s25 + $0x9c] sm:$0xff]   ;;  %v7261_v53 = vrot.slane %v3740_v58, 5  ;;  %v3746_v16 = vrot.slane %v3744_v25, 4  ;;  %v7263_v42 = vrot.slane %v3702_v41, 5 }
  0xd7   : > { %5917 = vmatprep.subr.bf16.mxu1 %v7256_v54  ;;  %v7274_v58 = vrot.slane %v3689_v59, 4  ;;  %v3723_v41 = vor.u32 %v3722_v0, %v7248_v12  ;;  %v3737_v54 = vor.u32 %v3736_v15, %v3733_v60  ;;  %v1310_v59 = vrot.slane %v1308_v63, 4  ;;  %v1185_v0 = vld [vmem:[%s6359_s25 + $0xa8] sm:$0xe] }
  0xd8   : > { %v3713_v25 = vor.u32 %v3712_v39, %v3709_v31  ;;  %v3747_v1 = vor.u32 %v3746_v16, %v7261_v53  ;;  %v3728_v31 = vrot.slane %v3726_v57, 5  ;;  %v4982_v39 = vrot.slane %v1184_v38, 9  ;;  %v6276_v57 = vld [vmem:[%s6359_s25 + $0xa4] sm:$0x1] }
  0xd9   : > { %v3760_v26 = vrot.slane %v3758_v22, 5  ;;  %v7292_v60 = vrot.slane %v3764_v13, 5  ;;  %v3724_v15 = vrot.slane %v3723_v41, 4  ;;  %v1317_v16 = vrot.slane %v1315_v55, 4  ;;  %v6277_v41 = vld [vmem:[%s6359_s25 + $0xb0] sm:$0x1] }
  0xda   : > { %v1318_v38 = vrot.slane %v6276_v57, 5  ;;  %v4983_v49 = vrot.slane %v1185_v0, 9  ;;  %v3695_v22 = vsel %vm6378_vm2, %v7274_v58, %v7213_v50  ;;  %v8161_v13 = vrot.slane %v7216_v40, 9  ;;  %v1186_v50 = vld [vmem:[%s6359_s25 + $0xb4] sm:$0xe] }
  0xdb   : > { %v1325_v57 = vrot.slane %v6277_v41, 5  ;;  %v3774_v0 = vshll.u32 %v7296_v7, 16  ;;  %v5325_v58 = vld [vmem:[%s6359_s25 + $0x6c] sm:$0xf]  ;;  %v7320_v40 = vsel %vm6600_vm6, %v1310_v59, %v1311_v21  ;;  %v8163_v59 = vcombine.low %v7044_v43, %v7048_v44 }
  0xdc   : > { %5838 = vmatmul.mubr.msk.bf16.gmra.mrb[20].mxu0 %vm666_vm3, %v6219_v34  ;;  %v8159_v34 = vcombine.low %v7010_v17, %v7023_v27  ;;  %v3738_v17 = vrot.slane %v3737_v54, 4  ;;  %v3748_v27 = vrot.slane %v3747_v1, 4  ;;  %v3705_v1 = vsel %vm6378_vm2, %v3700_v62, %v7263_v42 }
  0xdd   : > { %5686 = vmatmul.mubr.msk.bf16.gmra.mrb[4].mxu1 %vm666_vm3, %v8158_v11  ;;  %5841 = vmatprep.mubr.msk.bf16.mxu0 %vm666_vm3, %v6220_v14  ;;  %v3770_v11 = vrot.slane %v3768_v61, 4  ;;  %v3714_v14 = vrot.slane %v3713_v25, 4  ;;  %v7308_v61 = vsel %vm6600_vm6, %v8161_v13, %v1308_v63  ;;  %v1324_v25 = vrot.slane %v1322_v45, 4 }
  0xde   : > { %5689 = vmatprep.mubr.msk.bf16.mxu1 %vm666_vm3, %v8159_v34  ;;  %v3752_v34 = vrot.slane %v3750_v24, 5  ;;  %v3761_v54 = vor.u32 %v3760_v26, %v3757_v19  ;;  %v7327_v42 = vsel %vm6600_vm6, %v4982_v39, %v1315_v55  ;;  %v7331_v62 = vsel %vm6600_vm6, %v1317_v16, %v1318_v38  ;;  %v6278_v39 = vld [vmem:[%s6359_s25 + $0xb8] sm:$0xf] }
  0xdf   : > { %v3771_v24 = vor.u32 %v3770_v11, %v7292_v60  ;;  %v3719_v63 = vsel %vm6378_vm2, %v3714_v14, %v7248_v12  ;;  %v3729_v19 = vsel %vm6378_vm2, %v3724_v15, %v3728_v31  ;;  %v3743_v21 = vsel %vm6378_vm2, %v3738_v17, %v7261_v53  ;;  %v7380_v17 = vld [vmem:[%s6359_s25 + $0x7c] sm:$0xf] }
  0xe0   : > { %v3753_v12 = vsel %vm6378_vm2, %v3748_v27, %v3752_v34  ;;  %v7343_v55 = vsel %vm6600_vm6, %v4983_v49, %v1322_v45  ;;  %v7352_v31 = vsel %vm6600_vm6, %v1324_v25, %v1325_v57  ;;  %v4984_v53 = vrot.slane %v1186_v50, 9  ;;  %v7356_v49 = vld [vmem:[%s6359_s25 + $0x70] sm:$0xf]  ;;  %8167 = vst [vmem:[#allocation12_spill] sm:$0xff] %v7380_v17  ;;  %v5331_v27 = vld [vmem:[%s6359_s25 + $0x84] sm:$0xf] }
  0xe1   : > { %8162 = vst [vmem:[#allocation9_spill] sm:$0xff] %v7343_v55  ;;  %8164 = vst [vmem:[#allocation10_spill] sm:$0xff] %v7352_v31  ;;  %v1329_v26 = vrot.slane %v6278_v39, 5  ;;  %v3779_v45 = vshrl.u32 %v5325_v58, 16  ;;  %v8166_v43 = vcombine.low %v7052_v47, %v7080_v3  ;;  %v7362_v44 = vcombine.low %v3695_v22, %v3705_v1  ;;  %v5328_v3 = vld [vmem:[%s6359_s25 + $0x78] sm:$0xf] }
  0xe2   : > { %8165 = vst [vmem:[#allocation11_spill] sm:$0xff] %v7356_v49  ;;  %v7364_v11 = vrot.slane %v3761_v54, 4  ;;  %v7366_v14 = vrot.slane %v3771_v24, 4  ;;  %v7368_v15 = vrot.slane %v3774_v0, 5  ;;  %v7372_v38 = vcombine.low %v3719_v63, %v3729_v19  ;;  %v6223_v34 = vld [vmem:[%s6359_s25 + $0xcc] sm:$0xff]  }
  0xe3   : > { %v7376_v47 = vcombine.low %v3743_v21, %v3753_v12  ;;  %v7387_v22 = vld [vmem:[%s6359_s25 + $0xbc] sm:$0x1]  ;;  %v3782_v25 = vshll.u32 %v5325_v58, 16  ;;  %v3788_v41 = vshll.u32 %v7356_v49, 16  ;;  %v7392_v57 = vld [vmem:[%s6359_s25 + $0x88] sm:$0xf]  ;;  %v7396_v1 = vsel %vm6600_vm6, %v4984_v53, %v1329_v26 }
  0xe4   : > { %5842 = vmatmul.mubr.msk.bf16.gmra.mrb[24].mxu0 %vm666_vm3, %v6221_v30  ;;  %8168 = vst [vmem:[#allocation13_spill] sm:$0xff] %v7392_v57  ;;  %v7398_v54 = vrot.slane %v1329_v26, 4  ;;  %v7400_v24 = vrot.slane %v3779_v45, 4  ;;  %v3792_v0 = vshrl.u32 %v7356_v49, 16  ;;  %v5334_v50 = vld [vmem:[%s6359_s25 + $0x90] sm:$0xf]  ;;  %v8171_v58 = vcombine.low %v7087_v51, %v7121_v33 }
  0xe5   : > { %5690 = vmatmul.mubr.msk.bf16.gmra.mrb[8].mxu1 %vm666_vm3, %v8163_v59  ;;  %5845 = vmatprep.mubr.msk.bf16.mxu0 %vm666_vm3, %v6222_v36  ;;  %v3803_v19 = vshrl.u32 %v5328_v3, 16  ;;  %v3806_v21 = vshll.u32 %v5328_v3, 16  ;;  %v7413_v12 = vld [vmem:[%s6359_s25 + $0x94] sm:$0xf]  ;;  %v3812_v53 = vshll.u32 %v7380_v17, 16  ;;  %v3816_v39 = vshrl.u32 %v7380_v17, 16 }
  0xe6   : > { %5693 = vmatprep.mubr.msk.bf16.mxu1 %vm666_vm3, %v8166_v43  ;;  %8169 = vst [vmem:[#allocation14_spill] sm:$0xff] %v7413_v12  ;;  %v7416_v59 = vld [vmem:[%s6359_s25 + $0x74] sm:$0x1]  ;;  %v3827_v26 = vshrl.u32 %v5331_v27, 16  ;;  %v3830_v45 = vshll.u32 %v5331_v27, 16  ;;  %v3836_v43 = vshll.u32 %v7392_v57, 16 }
  0xe7   : > { %8170 = vst [vmem:[#allocation15_spill] sm:$0xff] %v7416_v59  ;;  %v3840_v36 = vshrl.u32 %v7392_v57, 16  ;;  %v3851_v30 = vshrl.u32 %v5334_v50, 16  ;;  %v3854_v3 = vshll.u32 %v5334_v50, 16  ;;  %v3784_v63 = vrot.slane %v3782_v25, 5 }
  0xe8   : > { %v7429_v27 = vrot.slane %v3788_v41, 5  ;;  %v3860_v16 = vshll.u32 %v7413_v12, 16  ;;  %v3864_v13 = vshrl.u32 %v7413_v12, 16  ;;  %v8172_v50 = vcombine.low %v7116_v48, %v7129_v23  ;;  %v5337_v41 = vld [vmem:[%s6359_s25 + $0x9c] sm:$0xf] }
  0xe9   : > { %v3794_v51 = vrot.slane %v3792_v0, 4  ;;  %v3798_v33 = vshll.u32 %v7416_v59, 16  ;;  %v3808_v25 = vrot.slane %v3806_v21, 5  ;;  %v3818_v57 = vrot.slane %v3816_v39, 4  ;;  %v7445_v17 = vld [vmem:[%s6359_s25 + $0x8c] sm:$0x1] }
  0xea   : > { %v3829_v49 = vrot.slane %v3827_v26, 4  ;;  %v3832_v12 = vrot.slane %v3830_v45, 5  ;;  %v7447_v31 = vrot.slane %v3836_v43, 5  ;;  %v3842_v48 = vrot.slane %v3840_v36, 4  ;;  %v7453_v0 = vld [vmem:[%s6359_s25 + $0x98] sm:$0x1] }
  0xeb   : > { %v3853_v23 = vrot.slane %v3851_v30, 4  ;;  %v3856_v55 = vrot.slane %v3854_v3, 5  ;;  %v7455_v59 = vrot.slane %v3860_v16, 5  ;;  %v3875_v21 = vshrl.u32 %v5337_v41, 16 }
  0xec   : > { %5846 = vmatmul.mubr.msk.bf16.gmra.mrb[28].mxu0 %vm666_vm3, %v6223_v34  ;;  %v7432_v34 = vld [vmem:[%s6359_s25 + $0x80] sm:$0x1]  ;;  %v3785_v39 = vor.u32 %v3784_v63, %v7400_v24  ;;  %v3795_v7 = vor.u32 %v3794_v51, %v7429_v27  ;;  %v3833_v30 = vor.u32 %v3832_v12, %v3829_v49  ;;  %v3843_v16 = vor.u32 %v3842_v48, %v7447_v31 }
  0xed   : > { %5694 = vmatmul.mubr.msk.bf16.gmra.mrb[12].mxu1 %vm666_vm3, %v8171_v58  ;;  %5851 = vmatprep.mubr.msk.bf16.mxu0 %vm666_vm3, %v7171_v52  ;;  %v3805_v52 = vrot.slane %v3803_v19, 4  ;;  %v7442_v58 = vrot.slane %v3812_v53, 5  ;;  %v3866_v19 = vrot.slane %v3864_v13, 4  ;;  %v3878_v53 = vshll.u32 %v5337_v41, 16 }
  0xee   : > { %5697 = vmatprep.mubr.msk.bf16.mxu1 %vm666_vm3, %v8172_v50  ;;  %v7450_v50 = vld [vmem:[%s6359_s25 + $0xa0] sm:$0xf]  ;;  %v3822_v45 = vshll.u32 %v7432_v34, 16  ;;  %v3846_v13 = vshll.u32 %v7445_v17, 16  ;;  %v3857_v24 = vor.u32 %v3856_v55, %v3853_v23  ;;  %v3870_v63 = vshll.u32 %v7453_v0, 16 }
  0xef   : > { %v3809_v26 = vor.u32 %v3808_v25, %v3805_v52  ;;  %v3819_v36 = vor.u32 %v3818_v57, %v7442_v58  ;;  %v3884_v43 = vshll.u32 %v7450_v50, 16  ;;  %v3888_v3 = vshrl.u32 %v7450_v50, 16 }
  0xf0   : > { %v8173_v51 = vcombine.low %v7133_v29, %v7137_v9  ;;  %v3800_v49 = vrot.slane %v3798_v33, 5  ;;  %v3867_v57 = vor.u32 %v3866_v19, %v7455_v59  ;;  %v3877_v12 = vrot.slane %v3875_v21, 4 }
  0xf1   : > { %v8174_v52 = vcombine.low %v7183_v10, %v7187_v6  ;;  %v3786_v55 = vrot.slane %v3785_v39, 4  ;;  %v3796_v29 = vrot.slane %v3795_v7, 4  ;;  %v3810_v9 = vrot.slane %v3809_v26, 4 }
  0xf2   : > { %v3824_v25 = vrot.slane %v3822_v45, 5  ;;  %v3820_v33 = vrot.slane %v3819_v36, 4  ;;  %v3834_v41 = vrot.slane %v3833_v30, 4  ;;  %v7481_v48 = vrot.slane %v3884_v43, 5 }
  0xf3   : > { %v3890_v23 = vrot.slane %v3888_v3, 4  ;;  %v3844_v19 = vrot.slane %v3843_v16, 4  ;;  %v3848_v21 = vrot.slane %v3846_v13, 5  ;;  %v3858_v10 = vrot.slane %v3857_v24, 4 }
  0xf4   : > { %5852 = vmatmul.mubr.msk.bf16.vlgmr.msra.gmra.mrb[0].mxu0 %vm666_vm3, %v7228_v56  ;;  %v3880_v56 = vrot.slane %v3878_v53, 5  ;;  %v3872_v6 = vrot.slane %v3870_v63, 5  ;;  %v7484_v53 = vld [vmem:[%s6359_s25 + $0xa4] sm:$0x1]  ;;  %v8175_v26 = vrot.slane %v7387_v22, 5  ;;  %v3791_v36 = vsel %vm6378_vm2, %v3786_v55, %v7429_v27 }
  0xf5   : > { %5698 = vmatmul.mubr.msk.bf16.gmra.mrb[16].mxu1 %vm666_vm3, %v8173_v51  ;;  %5884 = vmatpush3.bf16.msra.mxu0 %v6955_v46  ;;  %v5340_v46 = vld [vmem:[%s6359_s25 + $0xa8] sm:$0xf]  ;;  %v3868_v51 = vrot.slane %v3867_v57, 4  ;;  %v3801_v30 = vsel %vm6378_vm2, %v3796_v29, %v3800_v49  ;;  %v3815_v43 = vsel %vm6378_vm2, %v3810_v9, %v7442_v58  ;;  %v3825_v22 = vsel %vm6378_vm2, %v3820_v33, %v3824_v25 }
  0xf6   : > { %5701 = vmatprep.mubr.msk.bf16.mxu1 %vm666_vm3, %v8174_v52  ;;  %5855 = vmatprep.mubr.msk.bf16.mxu0 %vm666_vm3, %v7232_v4  ;;  %v3881_v52 = vor.u32 %v3880_v56, %v3877_v12  ;;  %v7487_v4 = vld [vmem:[%s6359_s25 + $0xac] sm:$0xf]  ;;  %v3899_v7 = vshrl.u32 %v5340_v46, 16  ;;  %v3902_v39 = vshll.u32 %v5340_v46, 16  ;;  %v7494_v45 = vsel %vm6600_vm6, %v7398_v54, %v8175_v26 }
  0xf7   : > { %v3839_v54 = vsel %vm6378_vm2, %v3834_v41, %v7447_v31  ;;  %v3891_v3 = vor.u32 %v3890_v23, %v7481_v48  ;;  %v3894_v16 = vshll.u32 %v7484_v53, 16  ;;  %v3849_v27 = vsel %vm6378_vm2, %v3844_v19, %v3848_v21  ;;  %v5391_v31 = vld [vmem:[%s6359_s25 + $0x48] sm:$0xe]  ;;  %v5394_v26 = vld [vmem:[%s6359_s25 + $0x6c] sm:$0xe] }
  0xf8   : > { %v3863_v58 = vsel %vm6378_vm2, %v3858_v10, %v7455_v59  ;;  %v3908_v13 = vshll.u32 %v7487_v4, 16  ;;  %v3912_v24 = vshrl.u32 %v7487_v4, 16  ;;  %v8176_v63 = vcombine.low %v7198_v32, %v7208_v5  ;;  %v7530_v59 = vld [vmem:[%s6359_s25 + $0xb0] sm:$0x1] }
  0xf9   : > { %v3882_v49 = vrot.slane %v3881_v52, 4  ;;  %v3901_v57 = vrot.slane %v3899_v7, 4  ;;  %v3904_v12 = vrot.slane %v3902_v39, 5  ;;  %v8177_v56 = vcombine.low %v7308_v61, %v7320_v40  ;;  %v5343_v40 = vld [vmem:[%s6359_s25 + $0xb4] sm:$0xf] }
  0xfa   : > { %v8178_v32 = vsel %vm6378_vm2, %v7366_v14, %v7368_v15  ;;  %v8179_v5 = vsel %vm6378_vm2, %v7364_v11, %v7292_v60  ;;  %v5002_v55 = vcombine.low %v7396_v1, %v7494_v45  ;;  %v7548_v29 = vcombine.low %v3791_v36, %v3801_v30  ;;  %v5392_v15 = vld [vmem:[%s6359_s25 + $0x54] sm:$0xe] }
  0xfb   : > { %v7550_v61 = vcombine.low %v3815_v43, %v3825_v22  ;;  %v7553_v9 = vcombine.low %v3839_v54, %v3849_v27  ;;  %v3892_v25 = vrot.slane %v3891_v3, 4  ;;  %v3896_v46 = vrot.slane %v3894_v16, 5  ;;  %v8181_v16 = vld [vmem:[#allocation8_spill] sm:$0xff] }
  0xfc   : > { %5856 = vmatmul.mubr.msk.bf16.gmra.mrb[4].mxu0 %vm666_vm3, %v7362_v44  ;;  %v3873_v44 = vsel %vm6378_vm2, %v3868_v51, %v3872_v6  ;;  %v5407_v14 = vrot.slane %v5391_v31, 9  ;;  %v7558_v60 = vrot.slane %v3908_v13, 5  ;;  %v3914_v11 = vrot.slane %v3912_v24, 4  ;;  %v5393_v6 = vld [vmem:[%s6359_s25 + $0x60] sm:$0xe]  ;;  %v8182_v13 = vld [vmem:[#allocation9_spill] sm:$0xff] }
  0xfd   : > { %5702 = vmatmul.mubr.msk.bf16.gmra.mrb[20].mxu1 %vm666_vm3, %v8176_v63  ;;  %5859 = vmatprep.mubr.msk.bf16.mxu0 %vm666_vm3, %v7372_v38  ;;  %v5360_v38 = vcombine.low %v8179_v5, %v8178_v32  ;;  %v7556_v33 = vcombine.low %v3863_v58, %v3873_v44  ;;  %v3918_v41 = vshll.u32 %v7530_v59, 16  ;;  %v3887_v23 = vsel %vm6378_vm2, %v3882_v49, %v7481_v48  ;;  %v8183_v24 = vld [vmem:[#allocation10_spill] sm:$0xff]  ;;  %v8185_v63 = vld [vmem:[#allocation11_spill] sm:$0xff] }
  0xfe   : > { %5705 = vmatprep.mubr.msk.bf16.mxu1 %vm666_vm3, %v8177_v56  ;;  %v3905_v19 = vor.u32 %v3904_v12, %v3901_v57  ;;  %v4386_v21 = vrot.slane %v7191_v20, 5  ;;  %v4389_v10 = vrot.slane %v7245_v35, 5  ;;  %v3923_v51 = vshrl.u32 %v5343_v40, 16  ;;  %v7580_v35 = vld [vmem:[%s6359_s25 + $0xb8] sm:$0xf]  ;;  %v8186_v49 = vld [vmem:[#allocation15_spill] sm:$0xff] }
  0xff   : > { %v5408_v52 = vrot.slane %v5392_v15, 9  ;;  %v4393_v7 = vrot.slane %v7202_v18, 5  ;;  %v4396_v39 = vrot.slane %v7269_v37, 5  ;;  %v3897_v36 = vsel %vm6378_vm2, %v3892_v25, %v3896_v46  ;;  %v5346_v12 = vld [vmem:[%s6359_s25 + $0xc0] sm:$0xf] }
 0x100   : > { %v3926_v30 = vshll.u32 %v5343_v40, 16  ;;  %v7574_v48 = vsel %vm6600_vm6, %v5407_v14, %v4386_v21  ;;  %v4388_v43 = vrot.slane %v4386_v21, 4  ;;  %v3915_v20 = vor.u32 %v3914_v11, %v7558_v60  ;;  %v5395_v14 = vld [vmem:[%s6359_s25 + $0x78] sm:$0xe] }
 0x101   : > { %v7584_v37 = vsel %vm6600_vm6, %v5408_v52, %v4393_v7  ;;  %v4395_v18 = vrot.slane %v4393_v7, 4  ;;  %v5409_v22 = vrot.slane %v5393_v6, 9  ;;  %v8180_v54 = vcombine.low %v7327_v42, %v7331_v62  ;;  %v6225_v6 = vld [vmem:[%s6359_s25 + $0xc] sm:$0xff]  }
 0x102   : > { %v4400_v3 = vrot.slane %v7251_v8, 5  ;;  %v4403_v27 = vrot.slane %v8181_v16, 5  ;;  %v5410_v58 = vrot.slane %v5394_v26, 9  ;;  %v8184_v31 = vcombine.low %v8182_v13, %v8183_v24  ;;  %v8188_v13 = vld [vmem:[#allocation3_spill] sm:$0xff]  ;;  %v8189_v24 = vld [vmem:[#allocation4_spill] sm:$0xff] }
 0x103   : > { %v7605_v62 = vsel %vm6600_vm6, %v4395_v18, %v4396_v39  ;;  %v4407_v44 = vrot.slane %v8185_v63, 5  ;;  %v4410_v8 = vrot.slane %v8186_v49, 5  ;;  %v3932_v57 = vshll.u32 %v7580_v35, 16  ;;  %v7642_v39 = vld [vmem:[%s6359_s25 + $0xc4] sm:$0xf]  ;;  %v8190_v49 = vld [vmem:[#allocation13_spill] sm:$0xff] }
 0x104   : > { %5860 = vmatmul.mubr.msk.bf16.gmra.mrb[8].mxu0 %vm666_vm3, %v7376_v47  ;;  %v7593_v47 = vsel %vm6600_vm6, %v4388_v43, %v4389_v10  ;;  %v5426_v56 = vcombine.low %v7584_v37, %v7605_v62  ;;  %v7615_v32 = vsel %vm6600_vm6, %v5409_v22, %v4400_v3  ;;  %v4402_v5 = vrot.slane %v4400_v3, 4  ;;  %v5114_v10 = vld [vmem:[%s6359_s25 + $0x78] sm:$0xf]  ;;  %v8187_v22 = vld [vmem:[#allocation12_spill] sm:$0xff]  ;;  %v6290_v62 = vld [vmem:[%s6359_s25 + $0xa0] sm:$0xf] }
 0x105   : > { %5706 = vmatmul.mubr.msk.bf16.gmra.mrb[24].mxu1 %vm666_vm3, %v8180_v54  ;;  %5863 = vmatprep.mubr.msk.bf16.mxu0 %vm666_vm3, %v5360_v38  ;;  %v5425_v42 = vcombine.low %v7574_v48, %v7593_v47  ;;  %v7617_v38 = vrot.slane %v3918_v41, 5  ;;  %v3936_v40 = vshrl.u32 %v7580_v35, 16  ;;  %v7622_v25 = vsel %vm6600_vm6, %v5410_v58, %v4407_v44 }
 0x106   : > { %5709 = vmatprep.mubr.msk.bf16.mxu1 %vm666_vm3, %v8184_v31  ;;  %v4409_v46 = vrot.slane %v4407_v44, 4  ;;  %v7625_v15 = vcombine.low %v3887_v23, %v3897_v36  ;;  %v7627_v11 = vrot.slane %v3905_v19, 4  ;;  %v7629_v21 = vrot.slane %v3923_v51, 4 }
 0x107   : > { %v7633_v41 = vsel %vm6600_vm6, %v4402_v5, %v4403_v27  ;;  %v7637_v52 = vrot.slane %v3915_v20, 4  ;;  %v7639_v7 = vrot.slane %v3926_v30, 5  ;;  %v7650_v51 = vrot.slane %v3932_v57, 5  ;;  %v5396_v20 = vld [vmem:[%s6359_s25 + $0x84] sm:$0xe] }
 0x108   : > { %v5427_v23 = vcombine.low %v7615_v32, %v7633_v41  ;;  %v7648_v19 = vsel %vm6600_vm6, %v4409_v46, %v4410_v8  ;;  %v3947_v26 = vshrl.u32 %v5346_v12, 16  ;;  %v5411_v43 = vrot.slane %v5395_v14, 9  ;;  %v7658_v30 = vld [vmem:[%s6359_s25 + $0xbc] sm:$0x1]  ;;  %v5349_v5 = vld [vmem:[%s6359_s25 + $0xcc] sm:$0xf] }
 0x109   : > { %v5428_v36 = vcombine.low %v7622_v25, %v7648_v19  ;;  %v3950_v18 = vshll.u32 %v5346_v12, 16  ;;  %v4414_v54 = vrot.slane %v8187_v22, 5  ;;  %v4417_v3 = vrot.slane %v7432_v34, 5  ;;  %v6226_v14 = vld [vmem:[%s6359_s25 + $0x18] sm:$0xff]   ;;  %v5397_v22 = vld [vmem:[%s6359_s25 + $0x90] sm:$0xe] }
 0x10a   : > { %v2260_v16 = vshrl.u32 %v5114_v10, 16  ;;  %v3956_v27 = vshll.u32 %v7642_v39, 16  ;;  %v2263_v58 = vshll.u32 %v5114_v10, 16  ;;  %v2282_v34 = vsel %vm6378_vm2, %v8189_v24, %v8188_v13  ;;  %v8191_v24 = vld [vmem:[#allocation14_spill] sm:$0xff]  ;;  %v6294_v19 = vld [vmem:[%s6359_s25 + $0xac] sm:$0xf] }
 0x10b   : > { %v7677_v1 = vsel %vm6600_vm6, %v5411_v43, %v4414_v54  ;;  %v4416_v45 = vrot.slane %v4414_v54, 4  ;;  %v3938_v31 = vrot.slane %v3936_v40, 4  ;;  %v3942_v63 = vshll.u32 %v7658_v30, 16 }
 0x10c   : > { %5864 = vmatmul.mubr.msk.bf16.gmra.mrb[12].mxu0 %vm666_vm3, %v7548_v29  ;;  %v3960_v29 = vshrl.u32 %v7642_v39, 16  ;;  %v2265_v44 = vrot.slane %v2263_v58, 5  ;;  %v4421_v8 = vrot.slane %v8190_v49, 5  ;;  %v3911_v57 = vsel %vm6378_vm2, %v7627_v11, %v7558_v60  ;;  %v6227_v60 = vld [vmem:[%s6359_s25 + $0x24] sm:$0xff]  }
 0x10d   : > { %5710 = vmatmul.mubr.msk.bf16.gmra.mrb[28].mxu1 %vm666_vm3, %v5002_v55  ;;  %5867 = vmatprep.mubr.msk.bf16.mxu0 %vm666_vm3, %v7550_v61  ;;  %v2262_v55 = vrot.slane %v2260_v16, 4  ;;  %v5412_v61 = vrot.slane %v5396_v20, 9  ;;  %v3929_v12 = vor.u32 %v7639_v7, %v7629_v21  ;;  %v7690_v46 = vsel %vm6600_vm6, %v4416_v45, %v4417_v3  ;;  %v7701_v7 = vld [vmem:[%s6359_s25 + $0xd0] sm:$0xf] }
 0x10e   : > { %5715 = vmatprep.mubr.msk.bf16.mxu1 %vm666_vm3, %v6225_v6  ;;  %v4424_v40 = vrot.slane %v7445_v17, 5  ;;  %v3949_v10 = vrot.slane %v3947_v26, 4  ;;  %v3952_v6 = vrot.slane %v3950_v18, 5  ;;  %v5429_v43 = vcombine.low %v7677_v1, %v7690_v46  ;;  %v7713_v18 = vld [vmem:[%s6359_s25 + $0xc8] sm:$0x1] }
 0x10f   : > { %v2266_v20 = vor.u32 %v2265_v44, %v2262_v55  ;;  %v7698_v11 = vrot.slane %v3956_v27, 5  ;;  %v3962_v21 = vrot.slane %v3960_v29, 4  ;;  %v7705_v54 = vsel %vm6600_vm6, %v5412_v61, %v4421_v8  ;;  %v8192_v55 = vld [vmem:[#allocation2_spill] sm:$0xff] }
 0x110   : > { %v4423_v3 = vrot.slane %v4421_v8, 4  ;;  %v3921_v17 = vsel %vm6378_vm2, %v7637_v52, %v7617_v38  ;;  %v3939_v26 = vor.u32 %v3938_v31, %v7650_v51  ;;  %v3971_v16 = vshrl.u32 %v5349_v5, 16  ;;  %v8193_v31 = vld [vmem:[#allocation7_spill] sm:$0xff] }
 0x111   : > { %v2267_v27 = vrot.slane %v2266_v20, 4  ;;  %v3974_v29 = vshll.u32 %v5349_v5, 16  ;;  %v5413_v13 = vrot.slane %v5397_v22, 9  ;;  %v4428_v45 = vrot.slane %v8191_v24, 5 }
 0x112   : > { %v7719_v58 = vsel %vm6600_vm6, %v4423_v3, %v4424_v40  ;;  %v3980_v38 = vshll.u32 %v7701_v7, 16  ;;  %v3984_v52 = vshrl.u32 %v7701_v7, 16  ;;  %v3953_v44 = vor.u32 %v3952_v6, %v3949_v10  ;;  %v5398_v10 = vld [vmem:[%s6359_s25 + $0x9c] sm:$0xe]  ;;  %v6228_v6 = vld [vmem:[%s6359_s25 + $0x30] sm:$0xff]  }
 0x113   : > { %v5430_v61 = vcombine.low %v7705_v54, %v7719_v58  ;;  %v3966_v49 = vshll.u32 %v7713_v18, 16  ;;  %v3944_v5 = vrot.slane %v3942_v63, 5  ;;  %v7740_v40 = vsel %vm6600_vm6, %v5413_v13, %v4428_v45  ;;  %v6229_v13 = vld [vmem:[%s6359_s25 + $0x3c] sm:$0xff]  }
 0x114   : > { %5868 = vmatmul.mubr.msk.bf16.gmra.mrb[16].mxu0 %vm666_vm3, %v7553_v9  ;;  %v2272_v9 = vsel %vm6378_vm2, %v2267_v27, %v8192_v55  ;;  %v4431_v20 = vrot.slane %v7453_v0, 5  ;;  %v5366_v22 = vcombine.low %v3911_v57, %v3921_v17  ;;  %v3930_v3 = vrot.slane %v3929_v12, 4 }
 0x115   : > { %5716 = vmatmul.mubr.msk.bf16.vlgmr.msra.gmra.mrb[0].mxu1 %vm666_vm3, %v6226_v14  ;;  %5871 = vmatprep.mubr.msk.bf16.mxu0 %vm666_vm3, %v7556_v33  ;;  %v3963_v33 = vor.u32 %v3962_v21, %v7698_v11  ;;  %v7736_v8 = vcombine.low %v2272_v9, %v2282_v34  ;;  %v4430_v14 = vrot.slane %v4428_v45, 4  ;;  %v3940_v27 = vrot.slane %v3939_v26, 4  ;;  %v7746_v21 = vld [vmem:[%s6359_s25 + $0xd4] sm:$0x1]  ;;  %v5387_v9 = vld [vmem:[%s6359_s25 + $0x18] sm:$0xe] }
 0x116   : > { %5918 = vmatpush3.bf16.msra.mxu1 %v8193_v31  ;;  %5719 = vmatprep.mubr.msk.bf16.mxu1 %vm666_vm3, %v6227_v60  ;;  %v3973_v60 = vrot.slane %v3971_v16, 4  ;;  %v3976_v24 = vrot.slane %v3974_v29, 5  ;;  %v7748_v34 = vrot.slane %v3980_v38, 5  ;;  %v3986_v55 = vrot.slane %v3984_v52, 4 }
 0x117   : > { %v7752_v63 = vsel %vm6600_vm6, %v4430_v14, %v4431_v20  ;;  %v3954_v45 = vrot.slane %v3953_v44, 4  ;;  %v3964_v0 = vrot.slane %v3963_v33, 4  ;;  %v3968_v57 = vrot.slane %v3966_v49, 5  ;;  %v6280_v33 = vld [vmem:[%s6359_s25 + $0x1c] sm:$0xf] }
 0x118   : > { %v5431_v12 = vcombine.low %v7740_v40, %v7752_v63  ;;  %v5414_v17 = vrot.slane %v5398_v10, 9  ;;  %v4435_v26 = vrot.slane %v7450_v50, 5  ;;  %v3935_v16 = vsel %vm6378_vm2, %v3930_v3, %v7650_v51  ;;  %v5399_v14 = vld [vmem:[%s6359_s25 + $0xa8] sm:$0xe] }
 0x119   : > { %v3945_v29 = vsel %vm6378_vm2, %v3940_v27, %v3944_v5  ;;  %v3990_v38 = vshll.u32 %v7746_v21, 16  ;;  %v4438_v52 = vrot.slane %v7484_v53, 5  ;;  %v3977_v50 = vor.u32 %v3976_v24, %v3973_v60  ;;  %v6230_v60 = vld [vmem:[%s6359_s25 + $0x48] sm:$0xff]   ;;  %v6281_v24 = vld [vmem:[%s6359_s25 + $0x20] sm:$0x1] }
 0x11a   : > { %v7773_v51 = vsel %vm6600_vm6, %v5414_v17, %v4435_v26  ;;  %v4437_v31 = vrot.slane %v4435_v26, 4  ;;  %v3959_v53 = vsel %vm6378_vm2, %v3954_v45, %v7698_v11  ;;  %v3969_v44 = vsel %vm6378_vm2, %v3964_v0, %v3968_v57  ;;  %v5400_v26 = vld [vmem:[%s6359_s25 + $0xb4] sm:$0xe] }
 0x11b   : > { %v4358_v49 = vrot.slane %v6280_v33, 5  ;;  %v5367_v20 = vcombine.low %v3935_v16, %v3945_v29  ;;  %v5403_v3 = vrot.slane %v5387_v9, 9  ;;  %v5368_v11 = vcombine.low %v3959_v53, %v3969_v44  ;;  %v5389_v33 = vld [vmem:[%s6359_s25 + $0x30] sm:$0xe] }
 0x11c   : > { %5872 = vmatmul.mubr.msk.bf16.gmra.mrb[20].mxu0 %vm666_vm3, %v7625_v15  ;;  %v3987_v15 = vor.u32 %v3986_v55, %v7748_v34  ;;  %v7784_v5 = vsel %vm6600_vm6, %v4437_v31, %v4438_v52  ;;  %v3978_v10 = vrot.slane %v3977_v50, 4  ;;  %v4361_v55 = vrot.slane %v6281_v24, 5  ;;  %v5388_v52 = vld [vmem:[%s6359_s25 + $0x24] sm:$0xe]  ;;  %v6282_v50 = vld [vmem:[%s6359_s25 + $0x28] sm:$0xf] }
 0x11d   : > { %5720 = vmatmul.mubr.msk.bf16.gmra.mrb[4].mxu1 %vm666_vm3, %v6228_v6  ;;  %5875 = vmatprep.mubr.msk.bf16.mxu0 %vm666_vm3, %v5366_v22  ;;  %v3992_v22 = vrot.slane %v3990_v38, 5  ;;  %v5432_v27 = vcombine.low %v7773_v51, %v7784_v5  ;;  %v4360_v45 = vrot.slane %v4358_v49, 4  ;;  %v5415_v0 = vrot.slane %v5399_v14, 9  ;;  %v6283_v31 = vld [vmem:[%s6359_s25 + $0x34] sm:$0xf] }
 0x11e   : > { %5723 = vmatprep.mubr.msk.bf16.mxu1 %vm666_vm3, %v6229_v13  ;;  %v3988_v6 = vrot.slane %v3987_v15, 4  ;;  %v6231_v13 = vld [vmem:[%s6359_s25 + $0x54] sm:$0xff]   ;;  %v4442_v57 = vrot.slane %v7487_v4, 5  ;;  %v4445_v17 = vrot.slane %v7530_v59, 5  ;;  %v3983_v4 = vsel %vm6378_vm2, %v3978_v10, %v7748_v34  ;;  %v6232_v10 = vld [vmem:[%s6359_s25 + $0x60] sm:$0xff]  }
 0x11f   : > { %v4359_v38 = vsel %vm6600_vm6, %v5403_v3, %v4358_v49  ;;  %v4365_v15 = vrot.slane %v6282_v50, 5  ;;  %v4362_v9 = vsel %vm6600_vm6, %v4360_v45, %v4361_v55  ;;  %v4372_v53 = vrot.slane %v6283_v31, 5  ;;  %v6284_v3 = vld [vmem:[%s6359_s25 + $0x2c] sm:$0x1]  ;;  %v6299_v51 = vld [vmem:[%s6359_s25 + $0xc8] sm:$0x1] }
 0x120   : > { %v7798_v16 = vsel %vm6600_vm6, %v5415_v0, %v4442_v57  ;;  %v4444_v29 = vrot.slane %v4442_v57, 4  ;;  %v3993_v59 = vsel %vm6378_vm2, %v3988_v6, %v3992_v22  ;;  %v5416_v44 = vrot.slane %v5400_v26, 9  ;;  %v6233_v45 = vld [vmem:[%s6359_s25 + $0x6c] sm:$0xff]   ;;  %v5401_v26 = vld [vmem:[%s6359_s25 + $0xc0] sm:$0xe] }
 0x121   : > { %v4449_v14 = vrot.slane %v7580_v35, 5  ;;  %v5404_v22 = vrot.slane %v5388_v52, 9  ;;  %v5421_v6 = vcombine.low %v4359_v38, %v4362_v9  ;;  %v4367_v24 = vrot.slane %v4365_v15, 4  ;;  %v6285_v35 = vld [vmem:[%s6359_s25 + $0x38] sm:$0x1] }
 0x122   : > { %v7817_v34 = vsel %vm6600_vm6, %v4444_v29, %v4445_v17  ;;  %v5405_v0 = vrot.slane %v5389_v33, 9  ;;  %v4374_v57 = vrot.slane %v4372_v53, 4  ;;  %v4375_v17 = vrot.slane %v6285_v35, 5  ;;  %v8194_v38 = vld [vmem:[#allocation5_spill] sm:$0xff] }
 0x123   : > { %v5433_v49 = vcombine.low %v7798_v16, %v7817_v34  ;;  %v7828_v55 = vsel %vm6600_vm6, %v5416_v44, %v4449_v14  ;;  %v4379_v52 = vrot.slane %v8194_v38, 5  ;;  %v5417_v50 = vrot.slane %v5401_v26, 9  ;;  %v5390_v44 = vld [vmem:[%s6359_s25 + $0x3c] sm:$0xe]  ;;  %v6286_v38 = vld [vmem:[%s6359_s25 + $0x70] sm:$0xf] }
 0x124   : > { %5876 = vmatmul.mubr.msk.bf16.gmra.mrb[24].mxu0 %vm666_vm3, %v5367_v20  ;;  %v5369_v20 = vcombine.low %v3983_v4, %v3993_v59  ;;  %v4366_v4 = vsel %vm6600_vm6, %v5404_v22, %v4365_v15  ;;  %v4373_v9 = vsel %vm6600_vm6, %v5405_v0, %v4372_v53  ;;  %v4376_v31 = vsel %vm6600_vm6, %v4374_v57, %v4375_v17  ;;  %v5111_v22 = vld [vmem:[%s6359_s25 + $0x6c] sm:$0xf] }
 0x125   : > { %5724 = vmatmul.mubr.msk.bf16.gmra.mrb[8].mxu1 %vm666_vm3, %v6230_v60  ;;  %5879 = vmatprep.mubr.msk.bf16.mxu0 %vm666_vm3, %v5368_v11  ;;  %v4368_v60 = vrot.slane %v6284_v3, 5  ;;  %v4452_v11 = vrot.slane %v7658_v30, 5  ;;  %v4456_v33 = vrot.slane %v7642_v39, 5  ;;  %v4459_v15 = vrot.slane %v7713_v18, 5 }
 0x126   : > { %5727 = vmatprep.mubr.msk.bf16.mxu1 %vm666_vm3, %v6231_v13  ;;  %v4451_v13 = vrot.slane %v4449_v14, 4  ;;  %v5402_v14 = vld [vmem:[%s6359_s25 + $0xcc] sm:$0xe]  ;;  %v4381_v53 = vrot.slane %v4379_v52, 4  ;;  %v2236_v0 = vshrl.u32 %v5111_v22, 16  ;;  %v2239_v57 = vshll.u32 %v5111_v22, 16 }
 0x127   : > { %v4369_v59 = vsel %vm6600_vm6, %v4367_v24, %v4368_v60  ;;  %v7859_v3 = vsel %vm6600_vm6, %v5417_v50, %v4456_v33  ;;  %v4458_v60 = vrot.slane %v4456_v33, 4  ;;  %v8195_v24 = vld [vmem:[#allocation6_spill] sm:$0xff]  ;;  %v5418_v18 = vrot.slane %v5402_v14, 9 }
 0x128   : > { %v7835_v29 = vsel %vm6600_vm6, %v4451_v13, %v4452_v11  ;;  %v6234_v11 = vld [vmem:[%s6359_s25 + $0x78] sm:$0xff]   ;;  %v4382_v13 = vrot.slane %v8195_v24, 5  ;;  %v4463_v17 = vrot.slane %v7701_v7, 5  ;;  %v4466_v26 = vrot.slane %v7746_v21, 5 }
 0x129   : > { %v5434_v30 = vcombine.low %v7828_v55, %v7835_v29  ;;  %v7866_v39 = vsel %vm6600_vm6, %v4458_v60, %v4459_v15  ;;  %v2245_v50 = vshll.u32 %v6286_v38, 16  ;;  %v6236_v15 = vld [vmem:[%s6359_s25 + $0x90] sm:$0xff]   ;;  %v6237_v60 = vld [vmem:[%s6359_s25 + $0x9c] sm:$0xff]   ;;  %v2423_v5 = vshll.u32 %v6299_v51, 16 }
 0x12a   : > { %v5435_v35 = vcombine.low %v7859_v3, %v7866_v39  ;;  %v7883_v7 = vsel %vm6600_vm6, %v5418_v18, %v4463_v17  ;;  %v4465_v21 = vrot.slane %v4463_v17, 4  ;;  %v5120_v17 = vld [vmem:[%s6359_s25 + $0x90] sm:$0xf] }
 0x12b   : > { %v2247_v14 = vrot.slane %v2245_v50, 5 }
 0x12c   : > { %5880 = vmatmul.mubr.msk.bf16.gmra.mrb[28].mxu0 %vm666_vm3, %v5369_v20  ;;  %v5422_v20 = vcombine.low %v4366_v4, %v4369_v59  ;;  %v4383_v59 = vsel %vm6600_vm6, %v4381_v53, %v4382_v13 }
 0x12d   : > { %5728 = vmatmul.mubr.msk.bf16.gmra.mrb[12].mxu1 %vm666_vm3, %v6232_v10  ;;  %5885 = vmatprep.mubr.msk.bf16.mxu0 %vm666_vm3, %v5421_v6  ;;  %v5423_v10 = vcombine.low %v4373_v9, %v4376_v31  ;;  %v5406_v6 = vrot.slane %v5390_v44, 9  ;;  %v2249_v9 = vshrl.u32 %v6286_v38, 16  ;;  %v2238_v31 = vrot.slane %v2236_v0, 4  ;;  %v6239_v38 = vld [vmem:[%s6359_s25 + $0xb4] sm:$0xff]  }
 0x12e   : > { %5731 = vmatprep.mubr.msk.bf16.mxu1 %vm666_vm3, %v6233_v45  ;;  %v6235_v45 = vld [vmem:[%s6359_s25 + $0x84] sm:$0xff]   ;;  %v2241_v44 = vrot.slane %v2239_v57, 5 }
 0x12f   : > { %v4380_v4 = vsel %vm6600_vm6, %v5406_v6, %v4379_v52  ;;  %v7887_v52 = vsel %vm6600_vm6, %v4465_v21, %v4466_v26  ;;  %v6287_v6 = vld [vmem:[%s6359_s25 + $0x74] sm:$0x1]  ;;  %v6238_v26 = vld [vmem:[%s6359_s25 + $0xa8] sm:$0xff]   ;;  %v2308_v21 = vshrl.u32 %v5120_v17, 16 }
 0x130   : > { %v5424_v33 = vcombine.low %v4380_v4, %v4383_v59  ;;  %v5436_v22 = vcombine.low %v7883_v7, %v7887_v52  ;;  %v2255_v53 = vshll.u32 %v6287_v6, 16  ;;  %v5123_v59 = vld [vmem:[%s6359_s25 + $0x9c] sm:$0xf]  ;;  %v6291_v6 = vld [vmem:[%s6359_s25 + $0x8c] sm:$0x1] }
 0x132   : > { %v2257_v48 = vrot.slane %v2255_v53, 5  ;;  %v2303_v53 = vshll.u32 %v6291_v6, 16 }
 0x134   : > { %5886 = vmatmul.mubr.msk.bf16.vlgmr.msra.gmra.mrb[0].mxu0 %vm666_vm3, %v5422_v20  ;;  %v2251_v20 = vrot.slane %v2249_v9, 4 }
 0x135   : > { %5732 = vmatmul.mubr.msk.bf16.gmra.mrb[16].mxu1 %vm666_vm3, %v6234_v11  ;;  %5889 = vmatprep.mubr.msk.bf16.mxu0 %vm666_vm3, %v5423_v10  ;;  %v5117_v11 = vld [vmem:[%s6359_s25 + $0x84] sm:$0xf]  ;;  %v2242_v10 = vor.u32 %v2241_v44, %v2238_v31  ;;  %v2311_v31 = vshll.u32 %v5120_v17, 16 }
 0x136   : > { %5735 = vmatprep.mubr.msk.bf16.mxu1 %vm666_vm3, %v6235_v45  ;;  %v2252_v2 = vor.u32 %v2251_v20, %v2247_v14  ;;  %v2284_v24 = vshrl.u32 %v5117_v11, 16  ;;  %v2287_v13 = vshll.u32 %v5117_v11, 16  ;;  %v6288_v45 = vld [vmem:[%s6359_s25 + $0x88] sm:$0xf]  ;;  %v2335_v11 = vshll.u32 %v5123_v59, 16 }
 0x137   : > { %v2293_v18 = vshll.u32 %v6288_v45, 16  ;;  %v2297_v0 = vshrl.u32 %v6288_v45, 16  ;;  %v2243_v57 = vrot.slane %v2242_v10, 4  ;;  %v2341_v10 = vshll.u32 %v6290_v62, 16 }
 0x138   : > { %v2253_v4 = vrot.slane %v2252_v2, 4  ;;  %v2286_v47 = vrot.slane %v2284_v24, 4  ;;  %v2310_v24 = vrot.slane %v2308_v21, 4  ;;  %v2313_v32 = vrot.slane %v2311_v31, 5  ;;  %v6293_v31 = vld [vmem:[%s6359_s25 + $0xa4] sm:$0x1] }
 0x139   : > { %v7907_v50 = vrot.slane %v2293_v18, 5  ;;  %v2299_v9 = vrot.slane %v2297_v0, 4  ;;  %v2248_v44 = vsel %vm6378_vm2, %v2243_v57, %v2247_v14  ;;  %v2337_v45 = vrot.slane %v2335_v11, 5  ;;  %v6240_v18 = vld [vmem:[%s6359_s25 + $0xc0] sm:$0xff]  }
 0x13a   : > { %v2258_v14 = vsel %vm6378_vm2, %v2253_v4, %v2257_v48  ;;  %v7930_v17 = vrot.slane %v2341_v10, 5  ;;  %v5126_v4 = vld [vmem:[%s6359_s25 + $0xa8] sm:$0xf] }
 0x13b   : > { %v2300_v2 = vor.u32 %v2299_v9, %v7907_v50  ;;  %v5145_v0 = vcombine.low %v2248_v44, %v2258_v14  ;;  %v2351_v44 = vshll.u32 %v6293_v31, 16  ;;  %v2359_v25 = vshll.u32 %v5126_v4, 16 }
 0x13c   : > { %5890 = vmatmul.mubr.msk.bf16.gmra.mrb[4].mxu0 %vm666_vm3, %v5424_v33  ;;  %v6289_v33 = vld [vmem:[%s6359_s25 + $0x94] sm:$0xf] }
 0x13d   : > { %5736 = vmatmul.mubr.msk.bf16.gmra.mrb[20].mxu1 %vm666_vm3, %v6236_v15  ;;  %5893 = vmatprep.mubr.msk.bf16.mxu0 %vm666_vm3, %v5425_v42  ;;  %v2289_v42 = vrot.slane %v2287_v13, 5  ;;  %v2317_v15 = vshll.u32 %v6289_v33, 16  ;;  %v2321_v20 = vshrl.u32 %v6289_v33, 16  ;;  %v2301_v48 = vrot.slane %v2300_v2, 4 }
 0x13e   : > { %5739 = vmatprep.mubr.msk.bf16.mxu1 %vm666_vm3, %v6237_v60  ;;  %v2332_v60 = vshrl.u32 %v5123_v59, 16  ;;  %v6292_v59 = vld [vmem:[%s6359_s25 + $0x98] sm:$0x1]  ;;  %v2356_v33 = vshrl.u32 %v5126_v4, 16  ;;  %v5132_v4 = vld [vmem:[%s6359_s25 + $0xc0] sm:$0xf] }
 0x13f   : > { %v2290_v37 = vor.u32 %v2289_v42, %v2286_v47  ;;  %v7927_v41 = vrot.slane %v2317_v15, 5  ;;  %v2305_v47 = vrot.slane %v2303_v53, 5  ;;  %v2314_v42 = vor.u32 %v2313_v32, %v2310_v24  ;;  %v5129_v15 = vld [vmem:[%s6359_s25 + $0xb4] sm:$0xf] }
 0x140   : > { %v2334_v13 = vrot.slane %v2332_v60, 4  ;;  %v2369_v60 = vshrl.u32 %v6294_v19, 16  ;;  %v2380_v1 = vshrl.u32 %v5129_v15, 16  ;;  %v2383_v46 = vshll.u32 %v5129_v15, 16 }
 0x141   : > { %v2291_v57 = vrot.slane %v2290_v37, 4  ;;  %v2306_v14 = vsel %vm6378_vm2, %v2301_v48, %v2305_v47  ;;  %v2315_v37 = vrot.slane %v2314_v42, 4  ;;  %v2353_v53 = vrot.slane %v2351_v44, 5 }
 0x142   : > { %v2338_v21 = vor.u32 %v2337_v45, %v2334_v13  ;;  %v2358_v24 = vrot.slane %v2356_v33, 4  ;;  %v2371_v45 = vrot.slane %v2369_v60, 4  ;;  %v6298_v33 = vld [vmem:[%s6359_s25 + $0xbc] sm:$0x1] }
 0x143   : > { %v2296_v11 = vsel %vm6378_vm2, %v2291_v57, %v7907_v50  ;;  %v2320_v48 = vsel %vm6378_vm2, %v2315_v37, %v7927_v41  ;;  %v2399_v40 = vshll.u32 %v6298_v33, 16 }
 0x144   : > { %5894 = vmatmul.mubr.msk.bf16.gmra.mrb[8].mxu0 %vm666_vm3, %v5426_v56  ;;  %v2345_v56 = vshrl.u32 %v6290_v62, 16  ;;  %v2339_v6 = vrot.slane %v2338_v21, 4  ;;  %v5147_v50 = vcombine.low %v2296_v11, %v2306_v14 }
 0x145   : > { %5740 = vmatmul.mubr.msk.bf16.gmra.mrb[24].mxu1 %vm666_vm3, %v6238_v26  ;;  %5897 = vmatprep.mubr.msk.bf16.mxu0 %vm666_vm3, %v5427_v23  ;;  %v2323_v23 = vrot.slane %v2321_v20, 4 }
 0x146   : > { %5743 = vmatprep.mubr.msk.bf16.mxu1 %vm666_vm3, %v6239_v38  ;;  %v2347_v26 = vrot.slane %v2345_v56, 4  ;;  %v2327_v38 = vshll.u32 %v6292_v59, 16  ;;  %v2344_v42 = vsel %vm6378_vm2, %v2339_v6, %v7930_v17  ;;  %v2425_v6 = vrot.slane %v2423_v5, 5 }
 0x147   : > { %v2324_v9 = vor.u32 %v2323_v23, %v7927_v41  ;;  %v2361_v23 = vrot.slane %v2359_v25, 5  ;;  %v6296_v41 = vld [vmem:[%s6359_s25 + $0xb0] sm:$0x1] }
 0x148   : > { %v2348_v20 = vor.u32 %v2347_v26, %v7930_v17  ;;  %v2329_v62 = vrot.slane %v2327_v38, 5  ;;  %v2375_v59 = vshll.u32 %v6296_v41, 16  ;;  %v2404_v38 = vshrl.u32 %v5132_v4, 16 }
 0x149   : > { %v2325_v2 = vrot.slane %v2324_v9, 4  ;;  %v2362_v58 = vor.u32 %v2361_v23, %v2358_v24  ;;  %v2407_v17 = vshll.u32 %v5132_v4, 16  ;;  %v6297_v9 = vld [vmem:[%s6359_s25 + $0xc4] sm:$0xf] }
 0x14a   : > { %v2349_v32 = vrot.slane %v2348_v20, 4  ;;  %v2413_v21 = vshll.u32 %v6297_v9, 16  ;;  %v2417_v31 = vshrl.u32 %v6297_v9, 16  ;;  %v2377_v25 = vrot.slane %v2375_v59, 5 }
 0x14b   : > { %v2330_v47 = vsel %vm6378_vm2, %v2325_v2, %v2329_v62  ;;  %v2363_v15 = vrot.slane %v2362_v58, 4  ;;  %v2401_v62 = vrot.slane %v2399_v40, 5 }
 0x14c   : > { %5898 = vmatmul.mubr.msk.bf16.gmra.mrb[12].mxu0 %vm666_vm3, %v5428_v36  ;;  %v2365_v36 = vshll.u32 %v6294_v19, 16  ;;  %v2354_v54 = vsel %vm6378_vm2, %v2349_v32, %v2353_v53  ;;  %v5148_v63 = vcombine.low %v2320_v48, %v2330_v47  ;;  %v2406_v19 = vrot.slane %v2404_v38, 4 }
 0x14d   : > { %5744 = vmatmul.mubr.msk.bf16.gmra.mrb[28].mxu1 %vm666_vm3, %v6240_v18  ;;  %5901 = vmatprep.mubr.msk.bf16.mxu0 %vm666_vm3, %v5429_v43  ;;  %v6295_v43 = vld [vmem:[%s6359_s25 + $0xb8] sm:$0xf]  ;;  %v2382_v18 = vrot.slane %v2380_v1, 4  ;;  %v2415_v60 = vrot.slane %v2413_v21, 5  ;;  %v2419_v11 = vrot.slane %v2417_v31, 4 }
 0x14e   : > { %5765 = vmatprep.mubr.msk.bf16.mxu1 %vm666_vm3, %v5145_v0  ;;  %v2389_v10 = vshll.u32 %v6295_v43, 16  ;;  %v2393_v56 = vshrl.u32 %v6295_v43, 16  ;;  %v2367_v13 = vrot.slane %v2365_v36, 5  ;;  %v2385_v0 = vrot.slane %v2383_v46, 5 }
 0x14f   : > { %v2409_v36 = vrot.slane %v2407_v17, 5 }
 0x150   : > { %v2391_v57 = vrot.slane %v2389_v10, 5  ;;  %v2395_v26 = vrot.slane %v2393_v56, 4  ;;  %v2368_v1 = vsel %vm6378_vm2, %v2363_v15, %v2367_v13  ;;  %v2420_v10 = vor.u32 %v2419_v11, %v2415_v60 }
 0x151   : > { %v2410_v43 = vor.u32 %v2409_v36, %v2406_v19 }
 0x152   : > { %v2396_v44 = vor.u32 %v2395_v26, %v2391_v57  ;;  %v2421_v2 = vrot.slane %v2420_v10, 4  ;;  %v8022_v26 = vld [vmem:[%s8130_s2] ss:$0 sm:$0xff] }
 0x153   : > { %v2411_v56 = vrot.slane %v2410_v43, 4 }
 0x154   : > { %5902 = vmatmul.mubr.msk.bf16.gmra.mrb[16].mxu0 %vm666_vm3, %v5430_v61  ;;  %v2372_v61 = vor.u32 %v2371_v45, %v2367_v13  ;;  %v2397_v37 = vrot.slane %v2396_v44, 4  ;;  %v2426_v24 = vsel %vm6378_vm2, %v2421_v2, %v2425_v6 }
 0x155   : > { %5766 = vmatmul.mubr.msk.bf16.vlgmr.msra.gmra.mrb[16].mxu1 %vm666_vm3, %v7736_v8  ;;  %5905 = vmatprep.mubr.msk.bf16.mxu0 %vm666_vm3, %v5431_v12  ;;  %v2386_v8 = vor.u32 %v2385_v0, %v2382_v18  ;;  %v5149_v12 = vcombine.low %v2344_v42, %v2354_v54  ;;  %v2416_v53 = vsel %vm6378_vm2, %v2411_v56, %v2415_v60 }
 0x156   : > { %5769 = vmatprep.mubr.msk.bf16.mxu1 %vm666_vm3, %v5147_v50  ;;  %v2373_v20 = vrot.slane %v2372_v61, 4  ;;  %v2402_v16 = vsel %vm6378_vm2, %v2397_v37, %v2401_v62  ;;  %v5152_v32 = vcombine.low %v2416_v53, %v2426_v24 }
 0x157   : > { %v2387_v14 = vrot.slane %v2386_v8, 4 }
 0x158   : > { %v2378_v46 = vsel %vm6378_vm2, %v2373_v20, %v2377_v25 }
 0x159   : > { %v5150_v34 = vcombine.low %v2368_v1, %v2378_v46 }
 0x15c   : > { %5906 = vmatmul.mubr.msk.bf16.gmra.mrb[20].mxu0 %vm666_vm3, %v5432_v27  ;;  %v2392_v27 = vsel %vm6378_vm2, %v2387_v14, %v2391_v57 }
 0x15d   : > { %5770 = vmatmul.mubr.msk.bf16.gmra.mrb[20].mxu1 %vm666_vm3, %v5148_v63  ;;  %5909 = vmatprep.mubr.msk.bf16.mxu0 %vm666_vm3, %v5433_v49  ;;  %v5151_v49 = vcombine.low %v2392_v27, %v2402_v16 }
 0x15e   : > { %5773 = vmatprep.mubr.msk.bf16.mxu1 %vm666_vm3, %v5149_v12 }
 0x164   : > { %5910 = vmatmul.mubr.msk.bf16.gmra.mrb[24].mxu0 %vm666_vm3, %v5434_v30 }
 0x165   : > { %5774 = vmatmul.mubr.msk.bf16.gmra.mrb[24].mxu1 %vm666_vm3, %v5150_v34  ;;  %5913 = vmatprep.mubr.msk.bf16.mxu0 %vm666_vm3, %v5435_v35 }
 0x166   : > { %5777 = vmatprep.mubr.msk.bf16.mxu1 %vm666_vm3, %v5151_v49 }
 0x16c   : > { %5914 = vmatmul.mubr.msk.bf16.gmra.mrb[28].mxu0 %vm666_vm3, %v5436_v22 }
 0x16d   : > { %5778 = vmatmul.mubr.msk.bf16.gmra.mrb[28].mxu1 %vm666_vm3, %v5152_v32 }
 0x1e8   : > { %v5717_v55 = vpop.f32.mrb[0].mxu1 }
 0x1e9   : > { %v1836_v29 = vpop.f32.mrb[1].mxu1 }
 0x1ea   : > { %v5718_v30 = vpop.f32.mrb[2].mxu1 }
 0x1eb   : > { %v1839_v3 = vpop.f32.mrb[3].mxu1 }
 0x1f0   : > { %v5721_v39 = vpop.f32.mrb[4].mxu1 }
 0x1f1   : > { %v1852_v35 = vpop.f32.mrb[5].mxu1 }
 0x1f2   : > { %v5722_v23 = vpop.f32.mrb[6].mxu1 }
 0x1f3   : > { %v1855_v13 = vpop.f32.mrb[7].mxu1 }
 0x1f8   : > { %v5725_v45 = vpop.f32.mrb[8].mxu1 }
 0x1f9   : > { %v1868_v28 = vpop.f32.mrb[9].mxu1 }
 0x1fa   : > { %v5726_v50 = vpop.f32.mrb[10].mxu1 }
 0x1fb   : > { %v1871_v18 = vpop.f32.mrb[11].mxu1 }
 0x200   : > { %v5729_v0 = vpop.f32.mrb[12].mxu1 }
 0x201   : > { %v1884_v57 = vpop.f32.mrb[13].mxu1 }
 0x202   : > { %v5730_v7 = vpop.f32.mrb[14].mxu1 }
 0x203   : > { %v1887_v52 = vpop.f32.mrb[15].mxu1 }
 0x207   : > { %v5887_v22 = vpop.f32.mrb[0].mxu0 }
 0x208   : > { %v5919_v4 = vadd.f32 %v5887_v22, %v5717_v55  ;;  %v4607_v48 = vpop.f32.mrb[1].mxu0 }
 0x209   : > { %v5920_v47 = vadd.f32 %v4607_v48, %v1836_v29  ;;  %v5888_v42 = vpop.f32.mrb[2].mxu0 }
 0x20a   : > { %v4775_v54 = vadd.f32 %v5919_v4, %v8022_v26  ;;  %v5921_v58 = vadd.f32 %v5888_v42, %v5718_v30  ;;  %v4610_v61 = vpop.f32.mrb[3].mxu0 }
 0x20b   : > { %v4773_v41 = vadd.f32 %v5920_v47, %v8022_v26  ;;  %v5922_v59 = vadd.f32 %v4610_v61, %v1839_v3 }
 0x20c   : > { %4808 = vst.msk [vmem:[%s8027_s20 + $0x10] sm:$0xff] %vm4805_vm7, %v4775_v54  ;;  %v4776_v38 = vadd.f32 %v5921_v58, %v8022_v26 }
 0x20d   : > { %4806 = vst.msk [vmem:[%s8027_s20] sm:$0xff] %vm4805_vm7, %v4773_v41  ;;  %v4774_v17 = vadd.f32 %v5922_v59, %v8022_v26 }
 0x20e   : > { %4809 = vst.msk [vmem:[%s8027_s20 + $0x18] sm:$0xff] %vm4805_vm7, %v4776_v38 }
 0x20f   : > { %4807 = vst.msk [vmem:[%s8027_s20 + $0x8] sm:$0xff] %vm4805_vm7, %v4774_v17  ;;  %v5891_v9 = vpop.f32.mrb[4].mxu0 }
 0x210   : > { %v5923_v21 = vadd.f32 %v5891_v9, %v5721_v39  ;;  %v4623_v31 = vpop.f32.mrb[5].mxu0 }
 0x211   : > { %v5924_v8 = vadd.f32 %v4623_v31, %v1852_v35  ;;  %v5892_v44 = vpop.f32.mrb[6].mxu0 }
 0x212   : > { %v4779_v33 = vadd.f32 %v5923_v21, %v8022_v26  ;;  %v5925_v40 = vadd.f32 %v5892_v44, %v5722_v23  ;;  %v4626_v63 = vpop.f32.mrb[7].mxu0 }
 0x213   : > { %v4777_v12 = vadd.f32 %v5924_v8, %v8022_v26  ;;  %v5926_v15 = vadd.f32 %v4626_v63, %v1855_v13 }
 0x214   : > { %4812 = vst.msk [vmem:[%s8027_s20 + $0x30] sm:$0xff] %vm4805_vm7, %v4779_v33  ;;  %v4780_v20 = vadd.f32 %v5925_v40, %v8022_v26 }
 0x215   : > { %4810 = vst.msk [vmem:[%s8027_s20 + $0x20] sm:$0xff] %vm4805_vm7, %v4777_v12  ;;  %v4778_v25 = vadd.f32 %v5926_v15, %v8022_v26 }
 0x216   : > { %4813 = vst.msk [vmem:[%s8027_s20 + $0x38] sm:$0xff] %vm4805_vm7, %v4780_v20 }
 0x217   : > { %4811 = vst.msk [vmem:[%s8027_s20 + $0x28] sm:$0xff] %vm4805_vm7, %v4778_v25  ;;  %v5895_v19 = vpop.f32.mrb[8].mxu0 }
 0x218   : > { %v5927_v36 = vadd.f32 %v5895_v19, %v5725_v45  ;;  %v4639_v60 = vpop.f32.mrb[9].mxu0 }
 0x219   : > { %v5928_v11 = vadd.f32 %v4639_v60, %v1868_v28  ;;  %v5896_v14 = vpop.f32.mrb[10].mxu0 }
 0x21a   : > { %v4783_v37 = vadd.f32 %v5927_v36, %v8022_v26  ;;  %v5929_v62 = vadd.f32 %v5896_v14, %v5726_v50  ;;  %v4642_v1 = vpop.f32.mrb[11].mxu0 }
 0x21b   : > { %v4781_v46 = vadd.f32 %v5928_v11, %v8022_v26  ;;  %v5930_v43 = vadd.f32 %v4642_v1, %v1871_v18 }
 0x21c   : > { %4816 = vst.msk [vmem:[%s8027_s20 + $0x50] sm:$0xff] %vm4805_vm7, %v4783_v37  ;;  %v4784_v10 = vadd.f32 %v5929_v62, %v8022_v26 }
 0x21d   : > { %4814 = vst.msk [vmem:[%s8027_s20 + $0x40] sm:$0xff] %vm4805_vm7, %v4781_v46  ;;  %v4782_v51 = vadd.f32 %v5930_v43, %v8022_v26 }
 0x21e   : > { %4817 = vst.msk [vmem:[%s8027_s20 + $0x58] sm:$0xff] %vm4805_vm7, %v4784_v10 }
 0x21f   : > { %4815 = vst.msk [vmem:[%s8027_s20 + $0x48] sm:$0xff] %vm4805_vm7, %v4782_v51  ;;  %v5899_v5 = vpop.f32.mrb[12].mxu0 }
 0x220   : > { %v5931_v27 = vadd.f32 %v5899_v5, %v5729_v0  ;;  %v4655_v16 = vpop.f32.mrb[13].mxu0 }
 0x221   : > { %v5932_v34 = vadd.f32 %v4655_v16, %v1884_v57  ;;  %v5900_v49 = vpop.f32.mrb[14].mxu0 }
 0x222   : > { %v4787_v56 = vadd.f32 %v5931_v27, %v8022_v26  ;;  %v5933_v2 = vadd.f32 %v5900_v49, %v5730_v7  ;;  %v4658_v6 = vpop.f32.mrb[15].mxu0 }
 0x223   : > { %v4785_v53 = vadd.f32 %v5932_v34, %v8022_v26  ;;  %v5934_v24 = vadd.f32 %v4658_v6, %v1887_v52 }
 0x224   : > { %4820 = vst.msk [vmem:[%s8027_s20 + $0x70] sm:$0xff] %vm4805_vm7, %v4787_v56  ;;  %v4788_v32 = vadd.f32 %v5933_v2, %v8022_v26 }
 0x225   : > { %4818 = vst.msk [vmem:[%s8027_s20 + $0x60] sm:$0xff] %vm4805_vm7, %v4785_v53  ;;  %v4786_v55 = vadd.f32 %v5934_v24, %v8022_v26 }
 0x226   : > { %4821 = vst.msk [vmem:[%s8027_s20 + $0x78] sm:$0xff] %vm4805_vm7, %v4788_v32 }
 0x227   : > { %4819 = vst.msk [vmem:[%s8027_s20 + $0x68] sm:$0xff] %vm4805_vm7, %v4786_v55  ;;  %v5903_v29 = vpop.f32.mrb[16].mxu0 }
 0x228   : > { %v5767_v30 = vpop.f32.mrb[16].mxu1  ;;  %v4671_v3 = vpop.f32.mrb[17].mxu0 }
 0x229   : > { %v5935_v39 = vadd.f32 %v5903_v29, %v5767_v30  ;;  %v2630_v35 = vpop.f32.mrb[17].mxu1  ;;  %v5904_v23 = vpop.f32.mrb[18].mxu0 }
 0x22a   : > { %v5936_v13 = vadd.f32 %v4671_v3, %v2630_v35  ;;  %v5768_v45 = vpop.f32.mrb[18].mxu1  ;;  %v4674_v28 = vpop.f32.mrb[19].mxu0 }
 0x22b   : > { %v4791_v50 = vadd.f32 %v5935_v39, %v8022_v26  ;;  %v5937_v18 = vadd.f32 %v5904_v23, %v5768_v45  ;;  %v2633_v0 = vpop.f32.mrb[19].mxu1 }
 0x22c   : > { %v4789_v57 = vadd.f32 %v5936_v13, %v8022_v26  ;;  %v5938_v7 = vadd.f32 %v4674_v28, %v2633_v0 }
 0x22d   : > { %4824 = vst.msk [vmem:[%s8027_s20 + $0x90] sm:$0xff] %vm4805_vm7, %v4791_v50  ;;  %v4792_v52 = vadd.f32 %v5937_v18, %v8022_v26 }
 0x22e   : > { %4822 = vst.msk [vmem:[%s8027_s20 + $0x80] sm:$0xff] %vm4805_vm7, %v4789_v57  ;;  %v4790_v22 = vadd.f32 %v5938_v7, %v8022_v26 }
 0x22f   : > { %4825 = vst.msk [vmem:[%s8027_s20 + $0x98] sm:$0xff] %vm4805_vm7, %v4792_v52  ;;  %v5907_v4 = vpop.f32.mrb[20].mxu0 }
 0x230   : > { %4823 = vst.msk [vmem:[%s8027_s20 + $0x88] sm:$0xff] %vm4805_vm7, %v4790_v22  ;;  %v5771_v48 = vpop.f32.mrb[20].mxu1  ;;  %v4687_v47 = vpop.f32.mrb[21].mxu0 }
 0x231   : > { %v5939_v42 = vadd.f32 %v5907_v4, %v5771_v48  ;;  %v2646_v54 = vpop.f32.mrb[21].mxu1  ;;  %v5908_v58 = vpop.f32.mrb[22].mxu0 }
 0x232   : > { %v5940_v61 = vadd.f32 %v4687_v47, %v2646_v54  ;;  %v5772_v41 = vpop.f32.mrb[22].mxu1  ;;  %v4690_v59 = vpop.f32.mrb[23].mxu0 }
 0x233   : > { %v4795_v38 = vadd.f32 %v5939_v42, %v8022_v26  ;;  %v5941_v17 = vadd.f32 %v5908_v58, %v5772_v41  ;;  %v2649_v9 = vpop.f32.mrb[23].mxu1 }
 0x234   : > { %v4793_v21 = vadd.f32 %v5940_v61, %v8022_v26  ;;  %v5942_v31 = vadd.f32 %v4690_v59, %v2649_v9 }
 0x235   : > { %4828 = vst.msk [vmem:[%s8027_s20 + $0xb0] sm:$0xff] %vm4805_vm7, %v4795_v38  ;;  %v4796_v8 = vadd.f32 %v5941_v17, %v8022_v26 }
 0x236   : > { %4826 = vst.msk [vmem:[%s8027_s20 + $0xa0] sm:$0xff] %vm4805_vm7, %v4793_v21  ;;  %v4794_v44 = vadd.f32 %v5942_v31, %v8022_v26 }
 0x237   : > { %4829 = vst.msk [vmem:[%s8027_s20 + $0xb8] sm:$0xff] %vm4805_vm7, %v4796_v8  ;;  %v5911_v33 = vpop.f32.mrb[24].mxu0 }
 0x238   : > { %4827 = vst.msk [vmem:[%s8027_s20 + $0xa8] sm:$0xff] %vm4805_vm7, %v4794_v44  ;;  %v5775_v40 = vpop.f32.mrb[24].mxu1  ;;  %v4703_v63 = vpop.f32.mrb[25].mxu0 }
 0x239   : > { %v5943_v12 = vadd.f32 %v5911_v33, %v5775_v40  ;;  %v2662_v15 = vpop.f32.mrb[25].mxu1  ;;  %v5912_v20 = vpop.f32.mrb[26].mxu0 }
 0x23a   : > { %v5944_v25 = vadd.f32 %v4703_v63, %v2662_v15  ;;  %v5776_v19 = vpop.f32.mrb[26].mxu1  ;;  %v4706_v36 = vpop.f32.mrb[27].mxu0 }
 0x23b   : > { %v4799_v60 = vadd.f32 %v5943_v12, %v8022_v26  ;;  %v5945_v11 = vadd.f32 %v5912_v20, %v5776_v19  ;;  %v2665_v14 = vpop.f32.mrb[27].mxu1 }
 0x23c   : > { %v4797_v37 = vadd.f32 %v5944_v25, %v8022_v26  ;;  %v5946_v62 = vadd.f32 %v4706_v36, %v2665_v14 }
 0x23d   : > { %4832 = vst.msk [vmem:[%s8027_s20 + $0xd0] sm:$0xff] %vm4805_vm7, %v4799_v60  ;;  %v4800_v1 = vadd.f32 %v5945_v11, %v8022_v26 }
 0x23e   : > { %4830 = vst.msk [vmem:[%s8027_s20 + $0xc0] sm:$0xff] %vm4805_vm7, %v4797_v37  ;;  %v4798_v46 = vadd.f32 %v5946_v62, %v8022_v26 }
 0x23f   : > { %4833 = vst.msk [vmem:[%s8027_s20 + $0xd8] sm:$0xff] %vm4805_vm7, %v4800_v1  ;;  %v5915_v43 = vpop.f32.mrb[28].mxu0 }
 0x240   : > { %4831 = vst.msk [vmem:[%s8027_s20 + $0xc8] sm:$0xff] %vm4805_vm7, %v4798_v46  ;;  %v5779_v10 = vpop.f32.mrb[28].mxu1  ;;  %v4719_v51 = vpop.f32.mrb[29].mxu0 }
 0x241   : > { %v5947_v5 = vadd.f32 %v5915_v43, %v5779_v10  ;;  %v2678_v27 = vpop.f32.mrb[29].mxu1  ;;  %v5916_v16 = vpop.f32.mrb[30].mxu0 }
 0x242   : > { %v5948_v34 = vadd.f32 %v4719_v51, %v2678_v27  ;;  %v5780_v49 = vpop.f32.mrb[30].mxu1  ;;  %v4722_v56 = vpop.f32.mrb[31].mxu0 }
 0x243   : > { %v4803_v2 = vadd.f32 %v5947_v5, %v8022_v26  ;;  %v5949_v6 = vadd.f32 %v5916_v16, %v5780_v49  ;;  %v2681_v53 = vpop.f32.mrb[31].mxu1 }
 0x244   : > { %v4801_v24 = vadd.f32 %v5948_v34, %v8022_v26  ;;  %v5950_v32 = vadd.f32 %v4722_v56, %v2681_v53 }
 0x245   : > { %4836 = vst.msk [vmem:[%s8027_s20 + $0xf0] sm:$0xff] %vm4805_vm7, %v4803_v2  ;;  %v4804_v55 = vadd.f32 %v5949_v6, %v8022_v26 }
 0x246   : > { %4834 = vst.msk [vmem:[%s8027_s20 + $0xe0] sm:$0xff] %vm4805_vm7, %v4801_v24  ;;  %v4802_v29 = vadd.f32 %v5950_v32, %v8022_v26 }
 0x247   : > { %4837 = vst.msk [vmem:[%s8027_s20 + $0xf8] sm:$0xff] %vm4805_vm7, %v4804_v55 }
 0x248   : > { %4835 = vst.msk [vmem:[%s8027_s20 + $0xe8] sm:$0xff] %vm4805_vm7, %v4802_v29 }
 0x249 PF: > { %s13_s12 = sadd.s32 1, %s6306_s12  }
 0x24a   : > { %p10_p4 = scmp.ge.s32.totalorder %s13_s12, 4  }
 0x24c   :  { %12 = sbr.rel (!%p10_p4) target bundleno = 1 (0x1), region = 72 }

</bundles_post_ra>
